<compile_context>
chip_gen: v7x
topology: tpu7x:2x2x1
jax: 0.10.0
libtpu: 0.0.40
codegen_flags: <defaults>
</compile_context>

<pallas_src>
import functools
import math

import jax
import jax.numpy as jnp
from jax.experimental import pallas as pl
from jax.experimental.pallas import tpu as pltpu


def _dcn_kernel(x_ref, offy_ref, offx_ref, by_ref, bx_ref, w_ref, o_ref, *, H, W):
    """One (batch item, P-tile) grid step.

    x_ref:          (1, C, H*W)   bf16  full image (resident across P tiles)
    offy/offx_ref:  (1, K, PT)    f32   learned offsets (dy / dx)
    by/bx_ref:      (K, PT)       f32   base (un-offset) sampling coordinates
    w_ref:          (K, O, C)     bf16  conv weight, one (O, C) slab per tap
    o_ref:          (1, O, PT)    f32
    """
    HW = x_ref.shape[2]
    K = by_ref.shape[0]
    O = w_ref.shape[1]
    PT = o_ref.shape[2]

    x = x_ref[0]                                   # (C, HW) bf16

    # ---- coordinate math (f32, small: K x PT) ------------------------------
    y = by_ref[...] + offy_ref[0]                  # (K, PT) sampling rows
    xc = bx_ref[...] + offx_ref[0]                 # (K, PT) sampling cols
    # Outer validity check (matches the CUDA reference: h_im > -1 && h_im < H ...)
    outer = (y > -1.0) & (y < float(H)) & (xc > -1.0) & (xc < float(W))

    y0f = jnp.floor(y)
    x0f = jnp.floor(xc)
    ly = y - y0f
    lx = xc - x0f
    hy = 1.0 - ly
    hx = 1.0 - lx
    y0 = y0f.astype(jnp.int32)
    x0 = x0f.astype(jnp.int32)

    def corner_weight(dy, dx, wt):
        cy = y0 + dy
        cx = x0 + dx
        inb = (cy >= 0) & (cy <= H - 1) & (cx >= 0) & (cx <= W - 1)
        return jnp.where(inb & outer, wt, 0.0)     # (K, PT) f32

    w00 = corner_weight(0, 0, hy * hx)             # top-left
    w01 = corner_weight(0, 1, hy * lx)             # top-right
    w10 = corner_weight(1, 0, ly * hx)             # bottom-left
    w11 = corner_weight(1, 1, ly * lx)             # bottom-right
    idx0 = y0 * W + x0                             # (K, PT) flat top-left index
    # (Out-of-range corner indices either match nothing or match a wrapped
    #  position whose corner weight is already masked to 0 — both are safe.)

    # Hoisted: flat hw index along the contraction (sublane) axis.
    hw_iota = jax.lax.broadcasted_iota(jnp.int32, (HW, PT), 0)

    acc = jnp.zeros((O, PT), jnp.float32)
    for k in range(K):
        # One diff pass + four fused where-selects -> interpolation slab M_k.
        diff = hw_iota - idx0[k:k + 1, :]                           # (HW, PT) i32
        m_k = (jnp.where(diff == 0,     w00[k:k + 1, :], 0.0)
               + jnp.where(diff == 1,     w01[k:k + 1, :], 0.0)
               + jnp.where(diff == W,     w10[k:k + 1, :], 0.0)
               + jnp.where(diff == W + 1, w11[k:k + 1, :], 0.0))    # (HW, PT) f32

        # Deformable im2col for tap k as an MXU matmul (bf16 in, f32 accum).
        cols_k = jax.lax.dot_general(
            x, m_k.astype(jnp.bfloat16),
            (((1,), (0,)), ((), ())),
            preferred_element_type=jnp.float32)                     # (C, PT)

        # Accumulate the conv output for this tap: no (C,K*P)->(C*K,P) relayout.
        acc = acc + jnp.dot(w_ref[k], cols_k.astype(jnp.bfloat16),
                            preferred_element_type=jnp.float32)     # (O, PT)

    o_ref[0] = acc.astype(o_ref.dtype)


def deformable_conv2d(x, offset, weight, stride=(1, 1), padding=(0, 0),
                      dilation=(1, 1), groups=1, deformable_groups=1,
                      p_tile=None):
    """Forward of DeformableConv (conv_offset2d) — NCHW in, NCHW out."""
    # TODO(synk): general groups > 1 / deformable_groups > 1 (module default is 1).
    assert groups == 1 and deformable_groups == 1

    N, C, H, W = x.shape
    O, Cg, kh, kw = weight.shape
    assert Cg == C
    K = kh * kw
    sh, sw = stride
    ph, pw = padding
    dh, dw = dilation
    Ho = (H + 2 * ph - (dh * (kh - 1) + 1)) // sh + 1
    Wo = (W + 2 * pw - (dw * (kw - 1) + 1)) // sw + 1
    P = Ho * Wo
    HW = H * W
    assert offset.shape == (N, 2 * K, Ho, Wo)

    # --- base sampling coordinates (K, P), offset split, flattening ----------
    ki, kj = jnp.meshgrid(jnp.arange(kh), jnp.arange(kw), indexing="ij")
    ki = ki.reshape(K).astype(jnp.float32)
    kj = kj.reshape(K).astype(jnp.float32)
    hi, wi = jnp.meshgrid(jnp.arange(Ho), jnp.arange(Wo), indexing="ij")
    hi = hi.reshape(P).astype(jnp.float32)
    wi = wi.reshape(P).astype(jnp.float32)
    base_y = (hi[None, :] * sh - ph) + ki[:, None] * dh     # (K, P)
    base_x = (wi[None, :] * sw - pw) + kj[:, None] * dw     # (K, P)

    off = offset.reshape(N, K, 2, P).astype(jnp.float32)
    off_y = off[:, :, 0]                                    # (N, K, P)
    off_x = off[:, :, 1]

    # --- choose the P tile: largest multiple of 128 whose (HW, PT) f32 slab
    #     fits a conservative budget (safe for v5e/v6e scoped VMEM and v7x's
    #     64 MiB physical VMEM).
    if p_tile is None:
        m_budget = 4 * 1024 * 1024                # bytes for one (HW, PT) f32 slab
        p_cap = max(128, (m_budget // (HW * 4)) // 128 * 128)
        p_tile = min(p_cap, pl.cdiv(P, 128) * 128)
    assert p_tile % 128 == 0
    P_pad = pl.cdiv(P, p_tile) * p_tile
    num_pt = P_pad // p_tile

    if P_pad != P:
        pad = P_pad - P
        off_y = jnp.pad(off_y, ((0, 0), (0, 0), (0, pad)))
        off_x = jnp.pad(off_x, ((0, 0), (0, 0), (0, pad)))
        base_y = jnp.pad(base_y, ((0, 0), (0, pad)))
        base_x = jnp.pad(base_x, ((0, 0), (0, pad)))

    # bf16 MXU operands (coordinate math stays f32); halves HBM bytes for x.
    x2 = x.reshape(N, C, HW).astype(jnp.bfloat16)
    w2 = jnp.transpose(weight.reshape(O, C, K), (2, 0, 1)).astype(jnp.bfloat16)  # (K,O,C)

    kernel = functools.partial(_dcn_kernel, H=H, W=W)
    flops = 2 * N * K * P_pad * C * (HW + O)
    bytes_accessed = (x2.size * 2 + off_y.size * 4 + off_x.size * 4 +
                      base_y.size * 4 + base_x.size * 4 + w2.size * 2 +
                      N * O * P_pad * 4)

    out = pl.pallas_call(
        kernel,
        out_shape=jax.ShapeDtypeStruct((N, O, P_pad), jnp.float32),
        grid_spec=pltpu.PrefetchScalarGridSpec(
            num_scalar_prefetch=0,
            # P-tile axis innermost: the x block index depends only on n, so the
            # (C, HW) image block is not re-fetched across P tiles.
            grid=(N, num_pt),
            in_specs=[
                pl.BlockSpec((1, C, HW), lambda n, p: (n, 0, 0)),
                pl.BlockSpec((1, K, p_tile), lambda n, p: (n, 0, p)),
                pl.BlockSpec((1, K, p_tile), lambda n, p: (n, 0, p)),
                pl.BlockSpec((K, p_tile), lambda n, p: (0, p)),
                pl.BlockSpec((K, p_tile), lambda n, p: (0, p)),
                pl.BlockSpec((K, O, C), lambda n, p: (0, 0, 0)),
            ],
            out_specs=pl.BlockSpec((1, O, p_tile), lambda n, p: (n, 0, p)),
        ),
        compiler_params=pltpu.CompilerParams(
            dimension_semantics=("parallel", "parallel"),
            vmem_limit_bytes=32 * 1024 * 1024),
        cost_estimate=pl.CostEstimate(flops=flops, transcendentals=0,
                                      bytes_accessed=bytes_accessed),
    )(x2, off_y, off_x, base_y, base_x, w2)
    return out[:, :, :P].reshape(N, O, Ho, Wo)


def _ref_deform_conv(x, offset, weight, stride, padding, dilation):
    """Pure-JAX reference (same DCNv1 semantics) for validation."""
    N, C, H, W = x.shape
    O, _, kh, kw = weight.shape
    K = kh * kw
    sh, sw = stride
    ph, pw = padding
    dh, dw = dilation
    Ho = (H + 2 * ph - (dh * (kh - 1) + 1)) // sh + 1
    Wo = (W + 2 * pw - (dw * (kw - 1) + 1)) // sw + 1

    ki, kj = jnp.meshgrid(jnp.arange(kh), jnp.arange(kw), indexing="ij")
    ki = ki.reshape(K).astype(jnp.float32)
    kj = kj.reshape(K).astype(jnp.float32)
    hi, wi = jnp.meshgrid(jnp.arange(Ho), jnp.arange(Wo), indexing="ij")
    base_y = hi[None].astype(jnp.float32) * sh - ph + ki[:, None, None] * dh
    base_x = wi[None].astype(jnp.float32) * sw - pw + kj[:, None, None] * dw

    off = offset.reshape(N, K, 2, Ho, Wo)
    y = base_y[None] + off[:, :, 0]          # (N, K, Ho, Wo)
    xx = base_x[None] + off[:, :, 1]
    outer = ((y > -1) & (y < H) & (xx > -1) & (xx < W)).astype(jnp.float32)
    y0 = jnp.floor(y)
    x0 = jnp.floor(xx)
    ly = y - y0
    lx = xx - x0
    hy = 1.0 - ly
    hx = 1.0 - lx

    cols = jnp.zeros((N, C, K, Ho, Wo), jnp.float32)
    for dy, dx, wt in ((0, 0, hy * hx), (0, 1, hy * lx),
                       (1, 0, ly * hx), (1, 1, ly * lx)):
        cy = y0 + dy
        cx = x0 + dx
        inb = ((cy >= 0) & (cy <= H - 1) & (cx >= 0) & (cx <= W - 1)).astype(jnp.float32)
        wts = wt * inb * outer
        iy = jnp.clip(cy, 0, H - 1).astype(jnp.int32)
        ix = jnp.clip(cx, 0, W - 1).astype(jnp.int32)
        gathered = jax.vmap(lambda xi, iyi, ixi: xi[:, iyi, ixi])(x, iy, ix)  # (N,C,K,Ho,Wo)
        cols = cols + wts[:, None] * gathered

    w3 = weight.reshape(O, C, K)
    return jnp.einsum("ock,nckhw->nohw", w3, cols)


def _check(x, offset, weight, stride, padding, dilation, p_tile=None, tol=2e-2):
    out = deformable_conv2d(x, offset, weight, stride, padding, dilation,
                            p_tile=p_tile)
    out = jax.block_until_ready(out)
    ref = _ref_deform_conv(x, offset, weight, stride, padding, dilation)
    assert out.shape == ref.shape, (out.shape, ref.shape)
    # bf16 MXU feed -> tolerance loosened vs the pure-f32 reference.
    if not jnp.allclose(out, ref, atol=tol, rtol=tol):
        max_err = float(jnp.max(jnp.abs(out - ref)))
        raise AssertionError(f"Pallas DCN mismatch, max abs err = {max_err}")


if __name__ == "__main__":
    key = jax.random.PRNGKey(0)
    k_w, k_x, k_off, k_wb, k_xb, k_offb = jax.random.split(key, 6)

    # ---- Config 1: module defaults at toy size; p_tile=128 forces a 2-step
    #      P-tile grid per image (exercises the resident-x multi-tile path).
    N, C, H, W = 2, 4, 16, 16
    O, kh, kw = 8, 3, 3
    stride, padding, dilation = (1, 1), (1, 1), (1, 1)
    K = kh * kw
    Ho = (H + 2 * padding[0] - (dilation[0] * (kh - 1) + 1)) // stride[0] + 1
    Wo = (W + 2 * padding[1] - (dilation[1] * (kw - 1) + 1)) // stride[1] + 1

    # DeformableConv.reset_parameters(): uniform(-stdv, stdv), stdv = 1/sqrt(C*kh*kw)
    stdv = 1.0 / math.sqrt(C * kh * kw)
    weight = jax.random.uniform(k_w, (O, C, kh, kw), jnp.float32, -stdv, stdv)
    x = jax.random.normal(k_x, (N, C, H, W), jnp.float32)
    offset = jax.random.uniform(k_off, (N, 2 * K, Ho, Wo), jnp.float32, -2.0, 2.0)
    _check(x, offset, weight, stride, padding, dilation, p_tile=128)

    # ---- Config 2: strided + non-square, exercises the P-padding path
    #      (Ho*Wo not a multiple of 128).
    Nb, Cb, Hb, Wb = 1, 4, 10, 12
    Ob = 8
    stride_b, padding_b, dilation_b = (2, 2), (1, 1), (1, 1)
    Hob = (Hb + 2 * padding_b[0] - (dilation_b[0] * (kh - 1) + 1)) // stride_b[0] + 1
    Wob = (Wb + 2 * padding_b[1] - (dilation_b[1] * (kw - 1) + 1)) // stride_b[1] + 1
    stdv_b = 1.0 / math.sqrt(Cb * kh * kw)
    weight_b = jax.random.uniform(k_wb, (Ob, Cb, kh, kw), jnp.float32, -stdv_b, stdv_b)
    x_b = jax.random.normal(k_xb, (Nb, Cb, Hb, Wb), jnp.float32)
    offset_b = jax.random.uniform(k_offb, (Nb, 2 * K, Hob, Wob), jnp.float32, -2.0, 2.0)
    _check(x_b, offset_b, weight_b, stride_b, padding_b, dilation_b)

    print("KERNEL_OK")
</pallas_src>

<mosaic_0001>
module attributes {stable_mosaic.version = 11 : i64} {
  func.func @_dcn_kernel(%arg0: i32, %arg1: i32, %arg2: memref<1x4x256xbf16, #tpu.memory_space<vmem>>, %arg3: memref<1x9x128xf32, #tpu.memory_space<vmem>>, %arg4: memref<1x9x128xf32, #tpu.memory_space<vmem>>, %arg5: memref<9x128xf32, #tpu.memory_space<vmem>>, %arg6: memref<9x128xf32, #tpu.memory_space<vmem>>, %arg7: memref<9x8x4xbf16, #tpu.memory_space<vmem>>, %arg8: memref<1x8x128xf32, #tpu.memory_space<vmem>>) attributes {dimension_semantics = [#tpu.dimension_semantics<parallel>, #tpu.dimension_semantics<parallel>], iteration_bounds = array<i64: 2, 2>, scalar_prefetch = 0 : i64, scratch_operands = 0 : i64, tpu.core_type = #tpu.core_type<tc>, window_params = [{transform_indices = @transform_0, window_bounds = array<i64: 1, 4, 256>}, {transform_indices = @transform_1, window_bounds = array<i64: 1, 9, 128>}, {transform_indices = @transform_2, window_bounds = array<i64: 1, 9, 128>}, {transform_indices = @transform_3, window_bounds = array<i64: 9, 128>}, {transform_indices = @transform_4, window_bounds = array<i64: 9, 128>}, {pipeline_mode = #tpu.pipeline_mode<synchronous>, transform_indices = @transform_5, window_bounds = array<i64: 9, 8, 4>}, {transform_indices = @transform_6, window_bounds = array<i64: 1, 8, 128>}]} {
    %c0 = arith.constant 0 : index
    %c0_0 = arith.constant 0 : index
    %c0_1 = arith.constant 0 : index
    %0 = vector.load %arg2[%c0, %c0_0, %c0_1] : memref<1x4x256xbf16, #tpu.memory_space<vmem>>, vector<1x4x256xbf16>
    %1 = vector.shape_cast %0 : vector<1x4x256xbf16> to vector<4x256xbf16>
    %c0_2 = arith.constant 0 : index
    %c0_3 = arith.constant 0 : index
    %2 = vector.load %arg5[%c0_2, %c0_3] : memref<9x128xf32, #tpu.memory_space<vmem>>, vector<9x128xf32>
    %c0_4 = arith.constant 0 : index
    %c0_5 = arith.constant 0 : index
    %c0_6 = arith.constant 0 : index
    %3 = vector.load %arg3[%c0_4, %c0_5, %c0_6] : memref<1x9x128xf32, #tpu.memory_space<vmem>>, vector<1x9x128xf32>
    %4 = vector.shape_cast %3 : vector<1x9x128xf32> to vector<9x128xf32>
    %5 = arith.addf %2, %4 : vector<9x128xf32>
    %c0_7 = arith.constant 0 : index
    %c0_8 = arith.constant 0 : index
    %6 = vector.load %arg6[%c0_7, %c0_8] : memref<9x128xf32, #tpu.memory_space<vmem>>, vector<9x128xf32>
    %c0_9 = arith.constant 0 : index
    %c0_10 = arith.constant 0 : index
    %c0_11 = arith.constant 0 : index
    %7 = vector.load %arg4[%c0_9, %c0_10, %c0_11] : memref<1x9x128xf32, #tpu.memory_space<vmem>>, vector<1x9x128xf32>
    %8 = vector.shape_cast %7 : vector<1x9x128xf32> to vector<9x128xf32>
    %9 = arith.addf %6, %8 : vector<9x128xf32>
    %cst = arith.constant -1.000000e+00 : f32
    %10 = vector.broadcast %cst : f32 to vector<9x128xf32>
    %11 = arith.cmpf ogt, %5, %10 : vector<9x128xf32>
    %cst_12 = arith.constant 1.600000e+01 : f32
    %12 = vector.broadcast %cst_12 : f32 to vector<9x128xf32>
    %13 = arith.cmpf olt, %5, %12 : vector<9x128xf32>
    %14 = arith.andi %11, %13 : vector<9x128xi1>
    %cst_13 = arith.constant -1.000000e+00 : f32
    %15 = vector.broadcast %cst_13 : f32 to vector<9x128xf32>
    %16 = arith.cmpf ogt, %9, %15 : vector<9x128xf32>
    %17 = arith.andi %14, %16 : vector<9x128xi1>
    %cst_14 = arith.constant 1.600000e+01 : f32
    %18 = vector.broadcast %cst_14 : f32 to vector<9x128xf32>
    %19 = arith.cmpf olt, %9, %18 : vector<9x128xf32>
    %20 = arith.andi %17, %19 : vector<9x128xi1>
    %21 = math.floor %5 : vector<9x128xf32>
    %22 = math.floor %9 : vector<9x128xf32>
    %23 = arith.subf %5, %21 : vector<9x128xf32>
    %24 = arith.subf %9, %22 : vector<9x128xf32>
    %cst_15 = arith.constant 1.000000e+00 : f32
    %25 = vector.broadcast %cst_15 : f32 to vector<9x128xf32>
    %26 = arith.subf %25, %23 : vector<9x128xf32>
    %cst_16 = arith.constant 1.000000e+00 : f32
    %27 = vector.broadcast %cst_16 : f32 to vector<9x128xf32>
    %28 = arith.subf %27, %24 : vector<9x128xf32>
    %29 = arith.fptosi %21 : vector<9x128xf32> to vector<9x128xi32>
    %30 = arith.fptosi %22 : vector<9x128xf32> to vector<9x128xi32>
    %31 = arith.mulf %26, %28 : vector<9x128xf32>
    %c0_i32 = arith.constant 0 : i32
    %32 = vector.broadcast %c0_i32 : i32 to vector<9x128xi32>
    %33 = arith.addi %29, %32 : vector<9x128xi32>
    %c0_i32_17 = arith.constant 0 : i32
    %34 = vector.broadcast %c0_i32_17 : i32 to vector<9x128xi32>
    %35 = arith.addi %30, %34 : vector<9x128xi32>
    %c0_i32_18 = arith.constant 0 : i32
    %36 = vector.broadcast %c0_i32_18 : i32 to vector<9x128xi32>
    %37 = arith.cmpi sge, %33, %36 : vector<9x128xi32>
    %c15_i32 = arith.constant 15 : i32
    %38 = vector.broadcast %c15_i32 : i32 to vector<9x128xi32>
    %39 = arith.cmpi sle, %33, %38 : vector<9x128xi32>
    %40 = arith.andi %37, %39 : vector<9x128xi1>
    %c0_i32_19 = arith.constant 0 : i32
    %41 = vector.broadcast %c0_i32_19 : i32 to vector<9x128xi32>
    %42 = arith.cmpi sge, %35, %41 : vector<9x128xi32>
    %43 = arith.andi %40, %42 : vector<9x128xi1>
    %c15_i32_20 = arith.constant 15 : i32
    %44 = vector.broadcast %c15_i32_20 : i32 to vector<9x128xi32>
    %45 = arith.cmpi sle, %35, %44 : vector<9x128xi32>
    %46 = arith.andi %43, %45 : vector<9x128xi1>
    %47 = arith.andi %46, %20 : vector<9x128xi1>
    %cst_21 = arith.constant 0.000000e+00 : f32
    %48 = vector.broadcast %cst_21 : f32 to vector<9x128xf32>
    %49 = arith.select %47, %31, %48 : vector<9x128xi1>, vector<9x128xf32>
    %50 = arith.mulf %26, %24 : vector<9x128xf32>
    %c0_i32_22 = arith.constant 0 : i32
    %51 = vector.broadcast %c0_i32_22 : i32 to vector<9x128xi32>
    %52 = arith.addi %29, %51 : vector<9x128xi32>
    %c1_i32 = arith.constant 1 : i32
    %53 = vector.broadcast %c1_i32 : i32 to vector<9x128xi32>
    %54 = arith.addi %30, %53 : vector<9x128xi32>
    %c0_i32_23 = arith.constant 0 : i32
    %55 = vector.broadcast %c0_i32_23 : i32 to vector<9x128xi32>
    %56 = arith.cmpi sge, %52, %55 : vector<9x128xi32>
    %c15_i32_24 = arith.constant 15 : i32
    %57 = vector.broadcast %c15_i32_24 : i32 to vector<9x128xi32>
    %58 = arith.cmpi sle, %52, %57 : vector<9x128xi32>
    %59 = arith.andi %56, %58 : vector<9x128xi1>
    %c0_i32_25 = arith.constant 0 : i32
    %60 = vector.broadcast %c0_i32_25 : i32 to vector<9x128xi32>
    %61 = arith.cmpi sge, %54, %60 : vector<9x128xi32>
    %62 = arith.andi %59, %61 : vector<9x128xi1>
    %c15_i32_26 = arith.constant 15 : i32
    %63 = vector.broadcast %c15_i32_26 : i32 to vector<9x128xi32>
    %64 = arith.cmpi sle, %54, %63 : vector<9x128xi32>
    %65 = arith.andi %62, %64 : vector<9x128xi1>
    %66 = arith.andi %65, %20 : vector<9x128xi1>
    %cst_27 = arith.constant 0.000000e+00 : f32
    %67 = vector.broadcast %cst_27 : f32 to vector<9x128xf32>
    %68 = arith.select %66, %50, %67 : vector<9x128xi1>, vector<9x128xf32>
    %69 = arith.mulf %23, %28 : vector<9x128xf32>
    %c1_i32_28 = arith.constant 1 : i32
    %70 = vector.broadcast %c1_i32_28 : i32 to vector<9x128xi32>
    %71 = arith.addi %29, %70 : vector<9x128xi32>
    %c0_i32_29 = arith.constant 0 : i32
    %72 = vector.broadcast %c0_i32_29 : i32 to vector<9x128xi32>
    %73 = arith.addi %30, %72 : vector<9x128xi32>
    %c0_i32_30 = arith.constant 0 : i32
    %74 = vector.broadcast %c0_i32_30 : i32 to vector<9x128xi32>
    %75 = arith.cmpi sge, %71, %74 : vector<9x128xi32>
    %c15_i32_31 = arith.constant 15 : i32
    %76 = vector.broadcast %c15_i32_31 : i32 to vector<9x128xi32>
    %77 = arith.cmpi sle, %71, %76 : vector<9x128xi32>
    %78 = arith.andi %75, %77 : vector<9x128xi1>
    %c0_i32_32 = arith.constant 0 : i32
    %79 = vector.broadcast %c0_i32_32 : i32 to vector<9x128xi32>
    %80 = arith.cmpi sge, %73, %79 : vector<9x128xi32>
    %81 = arith.andi %78, %80 : vector<9x128xi1>
    %c15_i32_33 = arith.constant 15 : i32
    %82 = vector.broadcast %c15_i32_33 : i32 to vector<9x128xi32>
    %83 = arith.cmpi sle, %73, %82 : vector<9x128xi32>
    %84 = arith.andi %81, %83 : vector<9x128xi1>
    %85 = arith.andi %84, %20 : vector<9x128xi1>
    %cst_34 = arith.constant 0.000000e+00 : f32
    %86 = vector.broadcast %cst_34 : f32 to vector<9x128xf32>
    %87 = arith.select %85, %69, %86 : vector<9x128xi1>, vector<9x128xf32>
    %88 = arith.mulf %23, %24 : vector<9x128xf32>
    %c1_i32_35 = arith.constant 1 : i32
    %89 = vector.broadcast %c1_i32_35 : i32 to vector<9x128xi32>
    %90 = arith.addi %29, %89 : vector<9x128xi32>
    %c1_i32_36 = arith.constant 1 : i32
    %91 = vector.broadcast %c1_i32_36 : i32 to vector<9x128xi32>
    %92 = arith.addi %30, %91 : vector<9x128xi32>
    %c0_i32_37 = arith.constant 0 : i32
    %93 = vector.broadcast %c0_i32_37 : i32 to vector<9x128xi32>
    %94 = arith.cmpi sge, %90, %93 : vector<9x128xi32>
    %c15_i32_38 = arith.constant 15 : i32
    %95 = vector.broadcast %c15_i32_38 : i32 to vector<9x128xi32>
    %96 = arith.cmpi sle, %90, %95 : vector<9x128xi32>
    %97 = arith.andi %94, %96 : vector<9x128xi1>
    %c0_i32_39 = arith.constant 0 : i32
    %98 = vector.broadcast %c0_i32_39 : i32 to vector<9x128xi32>
    %99 = arith.cmpi sge, %92, %98 : vector<9x128xi32>
    %100 = arith.andi %97, %99 : vector<9x128xi1>
    %c15_i32_40 = arith.constant 15 : i32
    %101 = vector.broadcast %c15_i32_40 : i32 to vector<9x128xi32>
    %102 = arith.cmpi sle, %92, %101 : vector<9x128xi32>
    %103 = arith.andi %100, %102 : vector<9x128xi1>
    %104 = arith.andi %103, %20 : vector<9x128xi1>
    %cst_41 = arith.constant 0.000000e+00 : f32
    %105 = vector.broadcast %cst_41 : f32 to vector<9x128xf32>
    %106 = arith.select %104, %88, %105 : vector<9x128xi1>, vector<9x128xf32>
    %c16_i32 = arith.constant 16 : i32
    %107 = vector.broadcast %c16_i32 : i32 to vector<9x128xi32>
    %108 = arith.muli %29, %107 : vector<9x128xi32>
    %109 = arith.addi %108, %30 : vector<9x128xi32>
    %110 = tpu.iota {dimensions = array<i32: 0>} : vector<256x128xi32>
    %cst_42 = arith.constant 0.000000e+00 : f32
    %111 = vector.broadcast %cst_42 : f32 to vector<8x128xf32>
    %112 = vector.extract_strided_slice %109 {offsets = [0, 0], sizes = [1, 128], strides = [1, 1]} : vector<9x128xi32> to vector<1x128xi32>
    %113 = vector.broadcast %112 : vector<1x128xi32> to vector<256x128xi32>
    %114 = arith.subi %110, %113 : vector<256x128xi32>
    %c0_i32_43 = arith.constant 0 : i32
    %115 = vector.broadcast %c0_i32_43 : i32 to vector<256x128xi32>
    %116 = arith.cmpi eq, %114, %115 : vector<256x128xi32>
    %117 = vector.extract_strided_slice %49 {offsets = [0, 0], sizes = [1, 128], strides = [1, 1]} : vector<9x128xf32> to vector<1x128xf32>
    %cst_44 = arith.constant 0.000000e+00 : f32
    %118 = vector.shape_cast %117 : vector<1x128xf32> to vector<1x128xf32>
    %119 = vector.broadcast %118 : vector<1x128xf32> to vector<256x128xf32>
    %120 = vector.broadcast %cst_44 : f32 to vector<256x128xf32>
    %121 = arith.select %116, %119, %120 : vector<256x128xi1>, vector<256x128xf32>
    %c1_i32_45 = arith.constant 1 : i32
    %122 = vector.broadcast %c1_i32_45 : i32 to vector<256x128xi32>
    %123 = arith.cmpi eq, %114, %122 : vector<256x128xi32>
    %124 = vector.extract_strided_slice %68 {offsets = [0, 0], sizes = [1, 128], strides = [1, 1]} : vector<9x128xf32> to vector<1x128xf32>
    %cst_46 = arith.constant 0.000000e+00 : f32
    %125 = vector.shape_cast %124 : vector<1x128xf32> to vector<1x128xf32>
    %126 = vector.broadcast %125 : vector<1x128xf32> to vector<256x128xf32>
    %127 = vector.broadcast %cst_46 : f32 to vector<256x128xf32>
    %128 = arith.select %123, %126, %127 : vector<256x128xi1>, vector<256x128xf32>
    %129 = arith.addf %121, %128 : vector<256x128xf32>
    %c16_i32_47 = arith.constant 16 : i32
    %130 = vector.broadcast %c16_i32_47 : i32 to vector<256x128xi32>
    %131 = arith.cmpi eq, %114, %130 : vector<256x128xi32>
    %132 = vector.extract_strided_slice %87 {offsets = [0, 0], sizes = [1, 128], strides = [1, 1]} : vector<9x128xf32> to vector<1x128xf32>
    %cst_48 = arith.constant 0.000000e+00 : f32
    %133 = vector.shape_cast %132 : vector<1x128xf32> to vector<1x128xf32>
    %134 = vector.broadcast %133 : vector<1x128xf32> to vector<256x128xf32>
    %135 = vector.broadcast %cst_48 : f32 to vector<256x128xf32>
    %136 = arith.select %131, %134, %135 : vector<256x128xi1>, vector<256x128xf32>
    %137 = arith.addf %129, %136 : vector<256x128xf32>
    %c17_i32 = arith.constant 17 : i32
    %138 = vector.broadcast %c17_i32 : i32 to vector<256x128xi32>
    %139 = arith.cmpi eq, %114, %138 : vector<256x128xi32>
    %140 = vector.extract_strided_slice %106 {offsets = [0, 0], sizes = [1, 128], strides = [1, 1]} : vector<9x128xf32> to vector<1x128xf32>
    %cst_49 = arith.constant 0.000000e+00 : f32
    %141 = vector.shape_cast %140 : vector<1x128xf32> to vector<1x128xf32>
    %142 = vector.broadcast %141 : vector<1x128xf32> to vector<256x128xf32>
    %143 = vector.broadcast %cst_49 : f32 to vector<256x128xf32>
    %144 = arith.select %139, %142, %143 : vector<256x128xi1>, vector<256x128xf32>
    %145 = arith.addf %137, %144 : vector<256x128xf32>
    %146 = arith.truncf %145 : vector<256x128xf32> to vector<256x128xbf16>
    %cst_50 = arith.constant dense<0.000000e+00> : vector<4x128xf32>
    %147 = tpu.matmul %1, %146, %cst_50 {dimension_numbers = #tpu.dot_dimension_numbers<[1], [0], [0], [1], [0, 0, 1, 1], [], []>} : vector<4x256xbf16>, vector<256x128xbf16>, vector<4x128xf32> -> vector<4x128xf32>
    %c0_51 = arith.constant 0 : index
    %c0_52 = arith.constant 0 : index
    %c0_53 = arith.constant 0 : index
    %148 = vector.load %arg7[%c0_51, %c0_52, %c0_53] : memref<9x8x4xbf16, #tpu.memory_space<vmem>>, vector<1x8x4xbf16>
    %149 = vector.shape_cast %148 : vector<1x8x4xbf16> to vector<8x4xbf16>
    %150 = arith.truncf %147 : vector<4x128xf32> to vector<4x128xbf16>
    %cst_54 = arith.constant dense<0.000000e+00> : vector<8x128xf32>
    %151 = tpu.matmul %149, %150, %cst_54 {dimension_numbers = #tpu.dot_dimension_numbers<[1], [0], [0], [1], [0, 0, 1, 1], [], []>} : vector<8x4xbf16>, vector<4x128xbf16>, vector<8x128xf32> -> vector<8x128xf32>
    %152 = arith.addf %111, %151 : vector<8x128xf32>
    %153 = vector.extract_strided_slice %109 {offsets = [1, 0], sizes = [1, 128], strides = [1, 1]} : vector<9x128xi32> to vector<1x128xi32>
    %154 = vector.broadcast %153 : vector<1x128xi32> to vector<256x128xi32>
    %155 = arith.subi %110, %154 : vector<256x128xi32>
    %c0_i32_55 = arith.constant 0 : i32
    %156 = vector.broadcast %c0_i32_55 : i32 to vector<256x128xi32>
    %157 = arith.cmpi eq, %155, %156 : vector<256x128xi32>
    %158 = vector.extract_strided_slice %49 {offsets = [1, 0], sizes = [1, 128], strides = [1, 1]} : vector<9x128xf32> to vector<1x128xf32>
    %cst_56 = arith.constant 0.000000e+00 : f32
    %159 = vector.shape_cast %158 : vector<1x128xf32> to vector<1x128xf32>
    %160 = vector.broadcast %159 : vector<1x128xf32> to vector<256x128xf32>
    %161 = vector.broadcast %cst_56 : f32 to vector<256x128xf32>
    %162 = arith.select %157, %160, %161 : vector<256x128xi1>, vector<256x128xf32>
    %c1_i32_57 = arith.constant 1 : i32
    %163 = vector.broadcast %c1_i32_57 : i32 to vector<256x128xi32>
    %164 = arith.cmpi eq, %155, %163 : vector<256x128xi32>
    %165 = vector.extract_strided_slice %68 {offsets = [1, 0], sizes = [1, 128], strides = [1, 1]} : vector<9x128xf32> to vector<1x128xf32>
    %cst_58 = arith.constant 0.000000e+00 : f32
    %166 = vector.shape_cast %165 : vector<1x128xf32> to vector<1x128xf32>
    %167 = vector.broadcast %166 : vector<1x128xf32> to vector<256x128xf32>
    %168 = vector.broadcast %cst_58 : f32 to vector<256x128xf32>
    %169 = arith.select %164, %167, %168 : vector<256x128xi1>, vector<256x128xf32>
    %170 = arith.addf %162, %169 : vector<256x128xf32>
    %c16_i32_59 = arith.constant 16 : i32
    %171 = vector.broadcast %c16_i32_59 : i32 to vector<256x128xi32>
    %172 = arith.cmpi eq, %155, %171 : vector<256x128xi32>
    %173 = vector.extract_strided_slice %87 {offsets = [1, 0], sizes = [1, 128], strides = [1, 1]} : vector<9x128xf32> to vector<1x128xf32>
    %cst_60 = arith.constant 0.000000e+00 : f32
    %174 = vector.shape_cast %173 : vector<1x128xf32> to vector<1x128xf32>
    %175 = vector.broadcast %174 : vector<1x128xf32> to vector<256x128xf32>
    %176 = vector.broadcast %cst_60 : f32 to vector<256x128xf32>
    %177 = arith.select %172, %175, %176 : vector<256x128xi1>, vector<256x128xf32>
    %178 = arith.addf %170, %177 : vector<256x128xf32>
    %c17_i32_61 = arith.constant 17 : i32
    %179 = vector.broadcast %c17_i32_61 : i32 to vector<256x128xi32>
    %180 = arith.cmpi eq, %155, %179 : vector<256x128xi32>
    %181 = vector.extract_strided_slice %106 {offsets = [1, 0], sizes = [1, 128], strides = [1, 1]} : vector<9x128xf32> to vector<1x128xf32>
    %cst_62 = arith.constant 0.000000e+00 : f32
    %182 = vector.shape_cast %181 : vector<1x128xf32> to vector<1x128xf32>
    %183 = vector.broadcast %182 : vector<1x128xf32> to vector<256x128xf32>
    %184 = vector.broadcast %cst_62 : f32 to vector<256x128xf32>
    %185 = arith.select %180, %183, %184 : vector<256x128xi1>, vector<256x128xf32>
    %186 = arith.addf %178, %185 : vector<256x128xf32>
    %187 = arith.truncf %186 : vector<256x128xf32> to vector<256x128xbf16>
    %cst_63 = arith.constant dense<0.000000e+00> : vector<4x128xf32>
    %188 = tpu.matmul %1, %187, %cst_63 {dimension_numbers = #tpu.dot_dimension_numbers<[1], [0], [0], [1], [0, 0, 1, 1], [], []>} : vector<4x256xbf16>, vector<256x128xbf16>, vector<4x128xf32> -> vector<4x128xf32>
    %c1 = arith.constant 1 : index
    %c0_64 = arith.constant 0 : index
    %c0_65 = arith.constant 0 : index
    %189 = vector.load %arg7[%c1, %c0_64, %c0_65] : memref<9x8x4xbf16, #tpu.memory_space<vmem>>, vector<1x8x4xbf16>
    %190 = vector.shape_cast %189 : vector<1x8x4xbf16> to vector<8x4xbf16>
    %191 = arith.truncf %188 : vector<4x128xf32> to vector<4x128xbf16>
    %cst_66 = arith.constant dense<0.000000e+00> : vector<8x128xf32>
    %192 = tpu.matmul %190, %191, %cst_66 {dimension_numbers = #tpu.dot_dimension_numbers<[1], [0], [0], [1], [0, 0, 1, 1], [], []>} : vector<8x4xbf16>, vector<4x128xbf16>, vector<8x128xf32> -> vector<8x128xf32>
    %193 = arith.addf %152, %192 : vector<8x128xf32>
    %194 = vector.extract_strided_slice %109 {offsets = [2, 0], sizes = [1, 128], strides = [1, 1]} : vector<9x128xi32> to vector<1x128xi32>
    %195 = vector.broadcast %194 : vector<1x128xi32> to vector<256x128xi32>
    %196 = arith.subi %110, %195 : vector<256x128xi32>
    %c0_i32_67 = arith.constant 0 : i32
    %197 = vector.broadcast %c0_i32_67 : i32 to vector<256x128xi32>
    %198 = arith.cmpi eq, %196, %197 : vector<256x128xi32>
    %199 = vector.extract_strided_slice %49 {offsets = [2, 0], sizes = [1, 128], strides = [1, 1]} : vector<9x128xf32> to vector<1x128xf32>
    %cst_68 = arith.constant 0.000000e+00 : f32
    %200 = vector.shape_cast %199 : vector<1x128xf32> to vector<1x128xf32>
    %201 = vector.broadcast %200 : vector<1x128xf32> to vector<256x128xf32>
    %202 = vector.broadcast %cst_68 : f32 to vector<256x128xf32>
    %203 = arith.select %198, %201, %202 : vector<256x128xi1>, vector<256x128xf32>
    %c1_i32_69 = arith.constant 1 : i32
    %204 = vector.broadcast %c1_i32_69 : i32 to vector<256x128xi32>
    %205 = arith.cmpi eq, %196, %204 : vector<256x128xi32>
    %206 = vector.extract_strided_slice %68 {offsets = [2, 0], sizes = [1, 128], strides = [1, 1]} : vector<9x128xf32> to vector<1x128xf32>
    %cst_70 = arith.constant 0.000000e+00 : f32
    %207 = vector.shape_cast %206 : vector<1x128xf32> to vector<1x128xf32>
    %208 = vector.broadcast %207 : vector<1x128xf32> to vector<256x128xf32>
    %209 = vector.broadcast %cst_70 : f32 to vector<256x128xf32>
    %210 = arith.select %205, %208, %209 : vector<256x128xi1>, vector<256x128xf32>
    %211 = arith.addf %203, %210 : vector<256x128xf32>
    %c16_i32_71 = arith.constant 16 : i32
    %212 = vector.broadcast %c16_i32_71 : i32 to vector<256x128xi32>
    %213 = arith.cmpi eq, %196, %212 : vector<256x128xi32>
    %214 = vector.extract_strided_slice %87 {offsets = [2, 0], sizes = [1, 128], strides = [1, 1]} : vector<9x128xf32> to vector<1x128xf32>
    %cst_72 = arith.constant 0.000000e+00 : f32
    %215 = vector.shape_cast %214 : vector<1x128xf32> to vector<1x128xf32>
    %216 = vector.broadcast %215 : vector<1x128xf32> to vector<256x128xf32>
    %217 = vector.broadcast %cst_72 : f32 to vector<256x128xf32>
    %218 = arith.select %213, %216, %217 : vector<256x128xi1>, vector<256x128xf32>
    %219 = arith.addf %211, %218 : vector<256x128xf32>
    %c17_i32_73 = arith.constant 17 : i32
    %220 = vector.broadcast %c17_i32_73 : i32 to vector<256x128xi32>
    %221 = arith.cmpi eq, %196, %220 : vector<256x128xi32>
    %222 = vector.extract_strided_slice %106 {offsets = [2, 0], sizes = [1, 128], strides = [1, 1]} : vector<9x128xf32> to vector<1x128xf32>
    %cst_74 = arith.constant 0.000000e+00 : f32
    %223 = vector.shape_cast %222 : vector<1x128xf32> to vector<1x128xf32>
    %224 = vector.broadcast %223 : vector<1x128xf32> to vector<256x128xf32>
    %225 = vector.broadcast %cst_74 : f32 to vector<256x128xf32>
    %226 = arith.select %221, %224, %225 : vector<256x128xi1>, vector<256x128xf32>
    %227 = arith.addf %219, %226 : vector<256x128xf32>
    %228 = arith.truncf %227 : vector<256x128xf32> to vector<256x128xbf16>
    %cst_75 = arith.constant dense<0.000000e+00> : vector<4x128xf32>
    %229 = tpu.matmul %1, %228, %cst_75 {dimension_numbers = #tpu.dot_dimension_numbers<[1], [0], [0], [1], [0, 0, 1, 1], [], []>} : vector<4x256xbf16>, vector<256x128xbf16>, vector<4x128xf32> -> vector<4x128xf32>
    %c2 = arith.constant 2 : index
    %c0_76 = arith.constant 0 : index
    %c0_77 = arith.constant 0 : index
    %230 = vector.load %arg7[%c2, %c0_76, %c0_77] : memref<9x8x4xbf16, #tpu.memory_space<vmem>>, vector<1x8x4xbf16>
    %231 = vector.shape_cast %230 : vector<1x8x4xbf16> to vector<8x4xbf16>
    %232 = arith.truncf %229 : vector<4x128xf32> to vector<4x128xbf16>
    %cst_78 = arith.constant dense<0.000000e+00> : vector<8x128xf32>
    %233 = tpu.matmul %231, %232, %cst_78 {dimension_numbers = #tpu.dot_dimension_numbers<[1], [0], [0], [1], [0, 0, 1, 1], [], []>} : vector<8x4xbf16>, vector<4x128xbf16>, vector<8x128xf32> -> vector<8x128xf32>
    %234 = arith.addf %193, %233 : vector<8x128xf32>
    %235 = vector.extract_strided_slice %109 {offsets = [3, 0], sizes = [1, 128], strides = [1, 1]} : vector<9x128xi32> to vector<1x128xi32>
    %236 = vector.broadcast %235 : vector<1x128xi32> to vector<256x128xi32>
    %237 = arith.subi %110, %236 : vector<256x128xi32>
    %c0_i32_79 = arith.constant 0 : i32
    %238 = vector.broadcast %c0_i32_79 : i32 to vector<256x128xi32>
    %239 = arith.cmpi eq, %237, %238 : vector<256x128xi32>
    %240 = vector.extract_strided_slice %49 {offsets = [3, 0], sizes = [1, 128], strides = [1, 1]} : vector<9x128xf32> to vector<1x128xf32>
    %cst_80 = arith.constant 0.000000e+00 : f32
    %241 = vector.shape_cast %240 : vector<1x128xf32> to vector<1x128xf32>
    %242 = vector.broadcast %241 : vector<1x128xf32> to vector<256x128xf32>
    %243 = vector.broadcast %cst_80 : f32 to vector<256x128xf32>
    %244 = arith.select %239, %242, %243 : vector<256x128xi1>, vector<256x128xf32>
    %c1_i32_81 = arith.constant 1 : i32
    %245 = vector.broadcast %c1_i32_81 : i32 to vector<256x128xi32>
    %246 = arith.cmpi eq, %237, %245 : vector<256x128xi32>
    %247 = vector.extract_strided_slice %68 {offsets = [3, 0], sizes = [1, 128], strides = [1, 1]} : vector<9x128xf32> to vector<1x128xf32>
    %cst_82 = arith.constant 0.000000e+00 : f32
    %248 = vector.shape_cast %247 : vector<1x128xf32> to vector<1x128xf32>
    %249 = vector.broadcast %248 : vector<1x128xf32> to vector<256x128xf32>
    %250 = vector.broadcast %cst_82 : f32 to vector<256x128xf32>
    %251 = arith.select %246, %249, %250 : vector<256x128xi1>, vector<256x128xf32>
    %252 = arith.addf %244, %251 : vector<256x128xf32>
    %c16_i32_83 = arith.constant 16 : i32
    %253 = vector.broadcast %c16_i32_83 : i32 to vector<256x128xi32>
    %254 = arith.cmpi eq, %237, %253 : vector<256x128xi32>
    %255 = vector.extract_strided_slice %87 {offsets = [3, 0], sizes = [1, 128], strides = [1, 1]} : vector<9x128xf32> to vector<1x128xf32>
    %cst_84 = arith.constant 0.000000e+00 : f32
    %256 = vector.shape_cast %255 : vector<1x128xf32> to vector<1x128xf32>
    %257 = vector.broadcast %256 : vector<1x128xf32> to vector<256x128xf32>
    %258 = vector.broadcast %cst_84 : f32 to vector<256x128xf32>
    %259 = arith.select %254, %257, %258 : vector<256x128xi1>, vector<256x128xf32>
    %260 = arith.addf %252, %259 : vector<256x128xf32>
    %c17_i32_85 = arith.constant 17 : i32
    %261 = vector.broadcast %c17_i32_85 : i32 to vector<256x128xi32>
    %262 = arith.cmpi eq, %237, %261 : vector<256x128xi32>
    %263 = vector.extract_strided_slice %106 {offsets = [3, 0], sizes = [1, 128], strides = [1, 1]} : vector<9x128xf32> to vector<1x128xf32>
    %cst_86 = arith.constant 0.000000e+00 : f32
    %264 = vector.shape_cast %263 : vector<1x128xf32> to vector<1x128xf32>
    %265 = vector.broadcast %264 : vector<1x128xf32> to vector<256x128xf32>
    %266 = vector.broadcast %cst_86 : f32 to vector<256x128xf32>
    %267 = arith.select %262, %265, %266 : vector<256x128xi1>, vector<256x128xf32>
    %268 = arith.addf %260, %267 : vector<256x128xf32>
    %269 = arith.truncf %268 : vector<256x128xf32> to vector<256x128xbf16>
    %cst_87 = arith.constant dense<0.000000e+00> : vector<4x128xf32>
    %270 = tpu.matmul %1, %269, %cst_87 {dimension_numbers = #tpu.dot_dimension_numbers<[1], [0], [0], [1], [0, 0, 1, 1], [], []>} : vector<4x256xbf16>, vector<256x128xbf16>, vector<4x128xf32> -> vector<4x128xf32>
    %c3 = arith.constant 3 : index
    %c0_88 = arith.constant 0 : index
    %c0_89 = arith.constant 0 : index
    %271 = vector.load %arg7[%c3, %c0_88, %c0_89] : memref<9x8x4xbf16, #tpu.memory_space<vmem>>, vector<1x8x4xbf16>
    %272 = vector.shape_cast %271 : vector<1x8x4xbf16> to vector<8x4xbf16>
    %273 = arith.truncf %270 : vector<4x128xf32> to vector<4x128xbf16>
    %cst_90 = arith.constant dense<0.000000e+00> : vector<8x128xf32>
    %274 = tpu.matmul %272, %273, %cst_90 {dimension_numbers = #tpu.dot_dimension_numbers<[1], [0], [0], [1], [0, 0, 1, 1], [], []>} : vector<8x4xbf16>, vector<4x128xbf16>, vector<8x128xf32> -> vector<8x128xf32>
    %275 = arith.addf %234, %274 : vector<8x128xf32>
    %276 = vector.extract_strided_slice %109 {offsets = [4, 0], sizes = [1, 128], strides = [1, 1]} : vector<9x128xi32> to vector<1x128xi32>
    %277 = vector.broadcast %276 : vector<1x128xi32> to vector<256x128xi32>
    %278 = arith.subi %110, %277 : vector<256x128xi32>
    %c0_i32_91 = arith.constant 0 : i32
    %279 = vector.broadcast %c0_i32_91 : i32 to vector<256x128xi32>
    %280 = arith.cmpi eq, %278, %279 : vector<256x128xi32>
    %281 = vector.extract_strided_slice %49 {offsets = [4, 0], sizes = [1, 128], strides = [1, 1]} : vector<9x128xf32> to vector<1x128xf32>
    %cst_92 = arith.constant 0.000000e+00 : f32
    %282 = vector.shape_cast %281 : vector<1x128xf32> to vector<1x128xf32>
    %283 = vector.broadcast %282 : vector<1x128xf32> to vector<256x128xf32>
    %284 = vector.broadcast %cst_92 : f32 to vector<256x128xf32>
    %285 = arith.select %280, %283, %284 : vector<256x128xi1>, vector<256x128xf32>
    %c1_i32_93 = arith.constant 1 : i32
    %286 = vector.broadcast %c1_i32_93 : i32 to vector<256x128xi32>
    %287 = arith.cmpi eq, %278, %286 : vector<256x128xi32>
    %288 = vector.extract_strided_slice %68 {offsets = [4, 0], sizes = [1, 128], strides = [1, 1]} : vector<9x128xf32> to vector<1x128xf32>
    %cst_94 = arith.constant 0.000000e+00 : f32
    %289 = vector.shape_cast %288 : vector<1x128xf32> to vector<1x128xf32>
    %290 = vector.broadcast %289 : vector<1x128xf32> to vector<256x128xf32>
    %291 = vector.broadcast %cst_94 : f32 to vector<256x128xf32>
    %292 = arith.select %287, %290, %291 : vector<256x128xi1>, vector<256x128xf32>
    %293 = arith.addf %285, %292 : vector<256x128xf32>
    %c16_i32_95 = arith.constant 16 : i32
    %294 = vector.broadcast %c16_i32_95 : i32 to vector<256x128xi32>
    %295 = arith.cmpi eq, %278, %294 : vector<256x128xi32>
    %296 = vector.extract_strided_slice %87 {offsets = [4, 0], sizes = [1, 128], strides = [1, 1]} : vector<9x128xf32> to vector<1x128xf32>
    %cst_96 = arith.constant 0.000000e+00 : f32
    %297 = vector.shape_cast %296 : vector<1x128xf32> to vector<1x128xf32>
    %298 = vector.broadcast %297 : vector<1x128xf32> to vector<256x128xf32>
    %299 = vector.broadcast %cst_96 : f32 to vector<256x128xf32>
    %300 = arith.select %295, %298, %299 : vector<256x128xi1>, vector<256x128xf32>
    %301 = arith.addf %293, %300 : vector<256x128xf32>
    %c17_i32_97 = arith.constant 17 : i32
    %302 = vector.broadcast %c17_i32_97 : i32 to vector<256x128xi32>
    %303 = arith.cmpi eq, %278, %302 : vector<256x128xi32>
    %304 = vector.extract_strided_slice %106 {offsets = [4, 0], sizes = [1, 128], strides = [1, 1]} : vector<9x128xf32> to vector<1x128xf32>
    %cst_98 = arith.constant 0.000000e+00 : f32
    %305 = vector.shape_cast %304 : vector<1x128xf32> to vector<1x128xf32>
    %306 = vector.broadcast %305 : vector<1x128xf32> to vector<256x128xf32>
    %307 = vector.broadcast %cst_98 : f32 to vector<256x128xf32>
    %308 = arith.select %303, %306, %307 : vector<256x128xi1>, vector<256x128xf32>
    %309 = arith.addf %301, %308 : vector<256x128xf32>
    %310 = arith.truncf %309 : vector<256x128xf32> to vector<256x128xbf16>
    %cst_99 = arith.constant dense<0.000000e+00> : vector<4x128xf32>
    %311 = tpu.matmul %1, %310, %cst_99 {dimension_numbers = #tpu.dot_dimension_numbers<[1], [0], [0], [1], [0, 0, 1, 1], [], []>} : vector<4x256xbf16>, vector<256x128xbf16>, vector<4x128xf32> -> vector<4x128xf32>
    %c4 = arith.constant 4 : index
    %c0_100 = arith.constant 0 : index
    %c0_101 = arith.constant 0 : index
    %312 = vector.load %arg7[%c4, %c0_100, %c0_101] : memref<9x8x4xbf16, #tpu.memory_space<vmem>>, vector<1x8x4xbf16>
    %313 = vector.shape_cast %312 : vector<1x8x4xbf16> to vector<8x4xbf16>
    %314 = arith.truncf %311 : vector<4x128xf32> to vector<4x128xbf16>
    %cst_102 = arith.constant dense<0.000000e+00> : vector<8x128xf32>
    %315 = tpu.matmul %313, %314, %cst_102 {dimension_numbers = #tpu.dot_dimension_numbers<[1], [0], [0], [1], [0, 0, 1, 1], [], []>} : vector<8x4xbf16>, vector<4x128xbf16>, vector<8x128xf32> -> vector<8x128xf32>
    %316 = arith.addf %275, %315 : vector<8x128xf32>
    %317 = vector.extract_strided_slice %109 {offsets = [5, 0], sizes = [1, 128], strides = [1, 1]} : vector<9x128xi32> to vector<1x128xi32>
    %318 = vector.broadcast %317 : vector<1x128xi32> to vector<256x128xi32>
    %319 = arith.subi %110, %318 : vector<256x128xi32>
    %c0_i32_103 = arith.constant 0 : i32
    %320 = vector.broadcast %c0_i32_103 : i32 to vector<256x128xi32>
    %321 = arith.cmpi eq, %319, %320 : vector<256x128xi32>
    %322 = vector.extract_strided_slice %49 {offsets = [5, 0], sizes = [1, 128], strides = [1, 1]} : vector<9x128xf32> to vector<1x128xf32>
    %cst_104 = arith.constant 0.000000e+00 : f32
    %323 = vector.shape_cast %322 : vector<1x128xf32> to vector<1x128xf32>
    %324 = vector.broadcast %323 : vector<1x128xf32> to vector<256x128xf32>
    %325 = vector.broadcast %cst_104 : f32 to vector<256x128xf32>
    %326 = arith.select %321, %324, %325 : vector<256x128xi1>, vector<256x128xf32>
    %c1_i32_105 = arith.constant 1 : i32
    %327 = vector.broadcast %c1_i32_105 : i32 to vector<256x128xi32>
    %328 = arith.cmpi eq, %319, %327 : vector<256x128xi32>
    %329 = vector.extract_strided_slice %68 {offsets = [5, 0], sizes = [1, 128], strides = [1, 1]} : vector<9x128xf32> to vector<1x128xf32>
    %cst_106 = arith.constant 0.000000e+00 : f32
    %330 = vector.shape_cast %329 : vector<1x128xf32> to vector<1x128xf32>
    %331 = vector.broadcast %330 : vector<1x128xf32> to vector<256x128xf32>
    %332 = vector.broadcast %cst_106 : f32 to vector<256x128xf32>
    %333 = arith.select %328, %331, %332 : vector<256x128xi1>, vector<256x128xf32>
    %334 = arith.addf %326, %333 : vector<256x128xf32>
    %c16_i32_107 = arith.constant 16 : i32
    %335 = vector.broadcast %c16_i32_107 : i32 to vector<256x128xi32>
    %336 = arith.cmpi eq, %319, %335 : vector<256x128xi32>
    %337 = vector.extract_strided_slice %87 {offsets = [5, 0], sizes = [1, 128], strides = [1, 1]} : vector<9x128xf32> to vector<1x128xf32>
    %cst_108 = arith.constant 0.000000e+00 : f32
    %338 = vector.shape_cast %337 : vector<1x128xf32> to vector<1x128xf32>
    %339 = vector.broadcast %338 : vector<1x128xf32> to vector<256x128xf32>
    %340 = vector.broadcast %cst_108 : f32 to vector<256x128xf32>
    %341 = arith.select %336, %339, %340 : vector<256x128xi1>, vector<256x128xf32>
    %342 = arith.addf %334, %341 : vector<256x128xf32>
    %c17_i32_109 = arith.constant 17 : i32
    %343 = vector.broadcast %c17_i32_109 : i32 to vector<256x128xi32>
    %344 = arith.cmpi eq, %319, %343 : vector<256x128xi32>
    %345 = vector.extract_strided_slice %106 {offsets = [5, 0], sizes = [1, 128], strides = [1, 1]} : vector<9x128xf32> to vector<1x128xf32>
    %cst_110 = arith.constant 0.000000e+00 : f32
    %346 = vector.shape_cast %345 : vector<1x128xf32> to vector<1x128xf32>
    %347 = vector.broadcast %346 : vector<1x128xf32> to vector<256x128xf32>
    %348 = vector.broadcast %cst_110 : f32 to vector<256x128xf32>
    %349 = arith.select %344, %347, %348 : vector<256x128xi1>, vector<256x128xf32>
    %350 = arith.addf %342, %349 : vector<256x128xf32>
    %351 = arith.truncf %350 : vector<256x128xf32> to vector<256x128xbf16>
    %cst_111 = arith.constant dense<0.000000e+00> : vector<4x128xf32>
    %352 = tpu.matmul %1, %351, %cst_111 {dimension_numbers = #tpu.dot_dimension_numbers<[1], [0], [0], [1], [0, 0, 1, 1], [], []>} : vector<4x256xbf16>, vector<256x128xbf16>, vector<4x128xf32> -> vector<4x128xf32>
    %c5 = arith.constant 5 : index
    %c0_112 = arith.constant 0 : index
    %c0_113 = arith.constant 0 : index
    %353 = vector.load %arg7[%c5, %c0_112, %c0_113] : memref<9x8x4xbf16, #tpu.memory_space<vmem>>, vector<1x8x4xbf16>
    %354 = vector.shape_cast %353 : vector<1x8x4xbf16> to vector<8x4xbf16>
    %355 = arith.truncf %352 : vector<4x128xf32> to vector<4x128xbf16>
    %cst_114 = arith.constant dense<0.000000e+00> : vector<8x128xf32>
    %356 = tpu.matmul %354, %355, %cst_114 {dimension_numbers = #tpu.dot_dimension_numbers<[1], [0], [0], [1], [0, 0, 1, 1], [], []>} : vector<8x4xbf16>, vector<4x128xbf16>, vector<8x128xf32> -> vector<8x128xf32>
    %357 = arith.addf %316, %356 : vector<8x128xf32>
    %358 = vector.extract_strided_slice %109 {offsets = [6, 0], sizes = [1, 128], strides = [1, 1]} : vector<9x128xi32> to vector<1x128xi32>
    %359 = vector.broadcast %358 : vector<1x128xi32> to vector<256x128xi32>
    %360 = arith.subi %110, %359 : vector<256x128xi32>
    %c0_i32_115 = arith.constant 0 : i32
    %361 = vector.broadcast %c0_i32_115 : i32 to vector<256x128xi32>
    %362 = arith.cmpi eq, %360, %361 : vector<256x128xi32>
    %363 = vector.extract_strided_slice %49 {offsets = [6, 0], sizes = [1, 128], strides = [1, 1]} : vector<9x128xf32> to vector<1x128xf32>
    %cst_116 = arith.constant 0.000000e+00 : f32
    %364 = vector.shape_cast %363 : vector<1x128xf32> to vector<1x128xf32>
    %365 = vector.broadcast %364 : vector<1x128xf32> to vector<256x128xf32>
    %366 = vector.broadcast %cst_116 : f32 to vector<256x128xf32>
    %367 = arith.select %362, %365, %366 : vector<256x128xi1>, vector<256x128xf32>
    %c1_i32_117 = arith.constant 1 : i32
    %368 = vector.broadcast %c1_i32_117 : i32 to vector<256x128xi32>
    %369 = arith.cmpi eq, %360, %368 : vector<256x128xi32>
    %370 = vector.extract_strided_slice %68 {offsets = [6, 0], sizes = [1, 128], strides = [1, 1]} : vector<9x128xf32> to vector<1x128xf32>
    %cst_118 = arith.constant 0.000000e+00 : f32
    %371 = vector.shape_cast %370 : vector<1x128xf32> to vector<1x128xf32>
    %372 = vector.broadcast %371 : vector<1x128xf32> to vector<256x128xf32>
    %373 = vector.broadcast %cst_118 : f32 to vector<256x128xf32>
    %374 = arith.select %369, %372, %373 : vector<256x128xi1>, vector<256x128xf32>
    %375 = arith.addf %367, %374 : vector<256x128xf32>
    %c16_i32_119 = arith.constant 16 : i32
    %376 = vector.broadcast %c16_i32_119 : i32 to vector<256x128xi32>
    %377 = arith.cmpi eq, %360, %376 : vector<256x128xi32>
    %378 = vector.extract_strided_slice %87 {offsets = [6, 0], sizes = [1, 128], strides = [1, 1]} : vector<9x128xf32> to vector<1x128xf32>
    %cst_120 = arith.constant 0.000000e+00 : f32
    %379 = vector.shape_cast %378 : vector<1x128xf32> to vector<1x128xf32>
    %380 = vector.broadcast %379 : vector<1x128xf32> to vector<256x128xf32>
    %381 = vector.broadcast %cst_120 : f32 to vector<256x128xf32>
    %382 = arith.select %377, %380, %381 : vector<256x128xi1>, vector<256x128xf32>
    %383 = arith.addf %375, %382 : vector<256x128xf32>
    %c17_i32_121 = arith.constant 17 : i32
    %384 = vector.broadcast %c17_i32_121 : i32 to vector<256x128xi32>
    %385 = arith.cmpi eq, %360, %384 : vector<256x128xi32>
    %386 = vector.extract_strided_slice %106 {offsets = [6, 0], sizes = [1, 128], strides = [1, 1]} : vector<9x128xf32> to vector<1x128xf32>
    %cst_122 = arith.constant 0.000000e+00 : f32
    %387 = vector.shape_cast %386 : vector<1x128xf32> to vector<1x128xf32>
    %388 = vector.broadcast %387 : vector<1x128xf32> to vector<256x128xf32>
    %389 = vector.broadcast %cst_122 : f32 to vector<256x128xf32>
    %390 = arith.select %385, %388, %389 : vector<256x128xi1>, vector<256x128xf32>
    %391 = arith.addf %383, %390 : vector<256x128xf32>
    %392 = arith.truncf %391 : vector<256x128xf32> to vector<256x128xbf16>
    %cst_123 = arith.constant dense<0.000000e+00> : vector<4x128xf32>
    %393 = tpu.matmul %1, %392, %cst_123 {dimension_numbers = #tpu.dot_dimension_numbers<[1], [0], [0], [1], [0, 0, 1, 1], [], []>} : vector<4x256xbf16>, vector<256x128xbf16>, vector<4x128xf32> -> vector<4x128xf32>
    %c6 = arith.constant 6 : index
    %c0_124 = arith.constant 0 : index
    %c0_125 = arith.constant 0 : index
    %394 = vector.load %arg7[%c6, %c0_124, %c0_125] : memref<9x8x4xbf16, #tpu.memory_space<vmem>>, vector<1x8x4xbf16>
    %395 = vector.shape_cast %394 : vector<1x8x4xbf16> to vector<8x4xbf16>
    %396 = arith.truncf %393 : vector<4x128xf32> to vector<4x128xbf16>
    %cst_126 = arith.constant dense<0.000000e+00> : vector<8x128xf32>
    %397 = tpu.matmul %395, %396, %cst_126 {dimension_numbers = #tpu.dot_dimension_numbers<[1], [0], [0], [1], [0, 0, 1, 1], [], []>} : vector<8x4xbf16>, vector<4x128xbf16>, vector<8x128xf32> -> vector<8x128xf32>
    %398 = arith.addf %357, %397 : vector<8x128xf32>
    %399 = vector.extract_strided_slice %109 {offsets = [7, 0], sizes = [1, 128], strides = [1, 1]} : vector<9x128xi32> to vector<1x128xi32>
    %400 = vector.broadcast %399 : vector<1x128xi32> to vector<256x128xi32>
    %401 = arith.subi %110, %400 : vector<256x128xi32>
    %c0_i32_127 = arith.constant 0 : i32
    %402 = vector.broadcast %c0_i32_127 : i32 to vector<256x128xi32>
    %403 = arith.cmpi eq, %401, %402 : vector<256x128xi32>
    %404 = vector.extract_strided_slice %49 {offsets = [7, 0], sizes = [1, 128], strides = [1, 1]} : vector<9x128xf32> to vector<1x128xf32>
    %cst_128 = arith.constant 0.000000e+00 : f32
    %405 = vector.shape_cast %404 : vector<1x128xf32> to vector<1x128xf32>
    %406 = vector.broadcast %405 : vector<1x128xf32> to vector<256x128xf32>
    %407 = vector.broadcast %cst_128 : f32 to vector<256x128xf32>
    %408 = arith.select %403, %406, %407 : vector<256x128xi1>, vector<256x128xf32>
    %c1_i32_129 = arith.constant 1 : i32
    %409 = vector.broadcast %c1_i32_129 : i32 to vector<256x128xi32>
    %410 = arith.cmpi eq, %401, %409 : vector<256x128xi32>
    %411 = vector.extract_strided_slice %68 {offsets = [7, 0], sizes = [1, 128], strides = [1, 1]} : vector<9x128xf32> to vector<1x128xf32>
    %cst_130 = arith.constant 0.000000e+00 : f32
    %412 = vector.shape_cast %411 : vector<1x128xf32> to vector<1x128xf32>
    %413 = vector.broadcast %412 : vector<1x128xf32> to vector<256x128xf32>
    %414 = vector.broadcast %cst_130 : f32 to vector<256x128xf32>
    %415 = arith.select %410, %413, %414 : vector<256x128xi1>, vector<256x128xf32>
    %416 = arith.addf %408, %415 : vector<256x128xf32>
    %c16_i32_131 = arith.constant 16 : i32
    %417 = vector.broadcast %c16_i32_131 : i32 to vector<256x128xi32>
    %418 = arith.cmpi eq, %401, %417 : vector<256x128xi32>
    %419 = vector.extract_strided_slice %87 {offsets = [7, 0], sizes = [1, 128], strides = [1, 1]} : vector<9x128xf32> to vector<1x128xf32>
    %cst_132 = arith.constant 0.000000e+00 : f32
    %420 = vector.shape_cast %419 : vector<1x128xf32> to vector<1x128xf32>
    %421 = vector.broadcast %420 : vector<1x128xf32> to vector<256x128xf32>
    %422 = vector.broadcast %cst_132 : f32 to vector<256x128xf32>
    %423 = arith.select %418, %421, %422 : vector<256x128xi1>, vector<256x128xf32>
    %424 = arith.addf %416, %423 : vector<256x128xf32>
    %c17_i32_133 = arith.constant 17 : i32
    %425 = vector.broadcast %c17_i32_133 : i32 to vector<256x128xi32>
    %426 = arith.cmpi eq, %401, %425 : vector<256x128xi32>
    %427 = vector.extract_strided_slice %106 {offsets = [7, 0], sizes = [1, 128], strides = [1, 1]} : vector<9x128xf32> to vector<1x128xf32>
    %cst_134 = arith.constant 0.000000e+00 : f32
    %428 = vector.shape_cast %427 : vector<1x128xf32> to vector<1x128xf32>
    %429 = vector.broadcast %428 : vector<1x128xf32> to vector<256x128xf32>
    %430 = vector.broadcast %cst_134 : f32 to vector<256x128xf32>
    %431 = arith.select %426, %429, %430 : vector<256x128xi1>, vector<256x128xf32>
    %432 = arith.addf %424, %431 : vector<256x128xf32>
    %433 = arith.truncf %432 : vector<256x128xf32> to vector<256x128xbf16>
    %cst_135 = arith.constant dense<0.000000e+00> : vector<4x128xf32>
    %434 = tpu.matmul %1, %433, %cst_135 {dimension_numbers = #tpu.dot_dimension_numbers<[1], [0], [0], [1], [0, 0, 1, 1], [], []>} : vector<4x256xbf16>, vector<256x128xbf16>, vector<4x128xf32> -> vector<4x128xf32>
    %c7 = arith.constant 7 : index
    %c0_136 = arith.constant 0 : index
    %c0_137 = arith.constant 0 : index
    %435 = vector.load %arg7[%c7, %c0_136, %c0_137] : memref<9x8x4xbf16, #tpu.memory_space<vmem>>, vector<1x8x4xbf16>
    %436 = vector.shape_cast %435 : vector<1x8x4xbf16> to vector<8x4xbf16>
    %437 = arith.truncf %434 : vector<4x128xf32> to vector<4x128xbf16>
    %cst_138 = arith.constant dense<0.000000e+00> : vector<8x128xf32>
    %438 = tpu.matmul %436, %437, %cst_138 {dimension_numbers = #tpu.dot_dimension_numbers<[1], [0], [0], [1], [0, 0, 1, 1], [], []>} : vector<8x4xbf16>, vector<4x128xbf16>, vector<8x128xf32> -> vector<8x128xf32>
    %439 = arith.addf %398, %438 : vector<8x128xf32>
    %440 = vector.extract_strided_slice %109 {offsets = [8, 0], sizes = [1, 128], strides = [1, 1]} : vector<9x128xi32> to vector<1x128xi32>
    %441 = vector.broadcast %440 : vector<1x128xi32> to vector<256x128xi32>
    %442 = arith.subi %110, %441 : vector<256x128xi32>
    %c0_i32_139 = arith.constant 0 : i32
    %443 = vector.broadcast %c0_i32_139 : i32 to vector<256x128xi32>
    %444 = arith.cmpi eq, %442, %443 : vector<256x128xi32>
    %445 = vector.extract_strided_slice %49 {offsets = [8, 0], sizes = [1, 128], strides = [1, 1]} : vector<9x128xf32> to vector<1x128xf32>
    %cst_140 = arith.constant 0.000000e+00 : f32
    %446 = vector.shape_cast %445 : vector<1x128xf32> to vector<1x128xf32>
    %447 = vector.broadcast %446 : vector<1x128xf32> to vector<256x128xf32>
    %448 = vector.broadcast %cst_140 : f32 to vector<256x128xf32>
    %449 = arith.select %444, %447, %448 : vector<256x128xi1>, vector<256x128xf32>
    %c1_i32_141 = arith.constant 1 : i32
    %450 = vector.broadcast %c1_i32_141 : i32 to vector<256x128xi32>
    %451 = arith.cmpi eq, %442, %450 : vector<256x128xi32>
    %452 = vector.extract_strided_slice %68 {offsets = [8, 0], sizes = [1, 128], strides = [1, 1]} : vector<9x128xf32> to vector<1x128xf32>
    %cst_142 = arith.constant 0.000000e+00 : f32
    %453 = vector.shape_cast %452 : vector<1x128xf32> to vector<1x128xf32>
    %454 = vector.broadcast %453 : vector<1x128xf32> to vector<256x128xf32>
    %455 = vector.broadcast %cst_142 : f32 to vector<256x128xf32>
    %456 = arith.select %451, %454, %455 : vector<256x128xi1>, vector<256x128xf32>
    %457 = arith.addf %449, %456 : vector<256x128xf32>
    %c16_i32_143 = arith.constant 16 : i32
    %458 = vector.broadcast %c16_i32_143 : i32 to vector<256x128xi32>
    %459 = arith.cmpi eq, %442, %458 : vector<256x128xi32>
    %460 = vector.extract_strided_slice %87 {offsets = [8, 0], sizes = [1, 128], strides = [1, 1]} : vector<9x128xf32> to vector<1x128xf32>
    %cst_144 = arith.constant 0.000000e+00 : f32
    %461 = vector.shape_cast %460 : vector<1x128xf32> to vector<1x128xf32>
    %462 = vector.broadcast %461 : vector<1x128xf32> to vector<256x128xf32>
    %463 = vector.broadcast %cst_144 : f32 to vector<256x128xf32>
    %464 = arith.select %459, %462, %463 : vector<256x128xi1>, vector<256x128xf32>
    %465 = arith.addf %457, %464 : vector<256x128xf32>
    %c17_i32_145 = arith.constant 17 : i32
    %466 = vector.broadcast %c17_i32_145 : i32 to vector<256x128xi32>
    %467 = arith.cmpi eq, %442, %466 : vector<256x128xi32>
    %468 = vector.extract_strided_slice %106 {offsets = [8, 0], sizes = [1, 128], strides = [1, 1]} : vector<9x128xf32> to vector<1x128xf32>
    %cst_146 = arith.constant 0.000000e+00 : f32
    %469 = vector.shape_cast %468 : vector<1x128xf32> to vector<1x128xf32>
    %470 = vector.broadcast %469 : vector<1x128xf32> to vector<256x128xf32>
    %471 = vector.broadcast %cst_146 : f32 to vector<256x128xf32>
    %472 = arith.select %467, %470, %471 : vector<256x128xi1>, vector<256x128xf32>
    %473 = arith.addf %465, %472 : vector<256x128xf32>
    %474 = arith.truncf %473 : vector<256x128xf32> to vector<256x128xbf16>
    %cst_147 = arith.constant dense<0.000000e+00> : vector<4x128xf32>
    %475 = tpu.matmul %1, %474, %cst_147 {dimension_numbers = #tpu.dot_dimension_numbers<[1], [0], [0], [1], [0, 0, 1, 1], [], []>} : vector<4x256xbf16>, vector<256x128xbf16>, vector<4x128xf32> -> vector<4x128xf32>
    %c8 = arith.constant 8 : index
    %c0_148 = arith.constant 0 : index
    %c0_149 = arith.constant 0 : index
    %476 = vector.load %arg7[%c8, %c0_148, %c0_149] : memref<9x8x4xbf16, #tpu.memory_space<vmem>>, vector<1x8x4xbf16>
    %477 = vector.shape_cast %476 : vector<1x8x4xbf16> to vector<8x4xbf16>
    %478 = arith.truncf %475 : vector<4x128xf32> to vector<4x128xbf16>
    %cst_150 = arith.constant dense<0.000000e+00> : vector<8x128xf32>
    %479 = tpu.matmul %477, %478, %cst_150 {dimension_numbers = #tpu.dot_dimension_numbers<[1], [0], [0], [1], [0, 0, 1, 1], [], []>} : vector<8x4xbf16>, vector<4x128xbf16>, vector<8x128xf32> -> vector<8x128xf32>
    %480 = arith.addf %439, %479 : vector<8x128xf32>
    %c0_151 = arith.constant 0 : index
    %c0_152 = arith.constant 0 : index
    %c0_153 = arith.constant 0 : index
    %481 = vector.load %arg8[%c0_151, %c0_152, %c0_153] : memref<1x8x128xf32, #tpu.memory_space<vmem>>, vector<1x8x128xf32>
    %482 = vector.shape_cast %481 : vector<1x8x128xf32> to vector<8x128xf32>
    %483 = vector.shape_cast %480 : vector<8x128xf32> to vector<1x8x128xf32>
    tpu.vector_store %arg8[%c0_151, %c0_152, %c0_153], %483 {strides = array<i32>} : memref<1x8x128xf32, #tpu.memory_space<vmem>>, vector<1x8x128xf32>,
    return
  }
  func.func @transform_0(%arg0: i32, %arg1: i32) -> (i32, i32, i32) {
    %c0_i32 = arith.constant 0 : i32
    %c0_i32_0 = arith.constant 0 : i32
    %c0_i32_1 = arith.constant 0 : i32
    return %arg0, %c0_i32, %c0_i32_0 : i32, i32, i32
  }
  func.func @transform_1(%arg0: i32, %arg1: i32) -> (i32, i32, i32) {
    %c0_i32 = arith.constant 0 : i32
    %c0_i32_0 = arith.constant 0 : i32
    return %arg0, %c0_i32, %arg1 : i32, i32, i32
  }
  func.func @transform_2(%arg0: i32, %arg1: i32) -> (i32, i32, i32) {
    %c0_i32 = arith.constant 0 : i32
    %c0_i32_0 = arith.constant 0 : i32
    return %arg0, %c0_i32, %arg1 : i32, i32, i32
  }
  func.func @transform_3(%arg0: i32, %arg1: i32) -> (i32, i32) {
    %c0_i32 = arith.constant 0 : i32
    %c0_i32_0 = arith.constant 0 : i32
    return %c0_i32, %arg1 : i32, i32
  }
  func.func @transform_4(%arg0: i32, %arg1: i32) -> (i32, i32) {
    %c0_i32 = arith.constant 0 : i32
    %c0_i32_0 = arith.constant 0 : i32
    return %c0_i32, %arg1 : i32, i32
  }
  func.func @transform_5(%arg0: i32, %arg1: i32) -> (i32, i32, i32) {
    %c0_i32 = arith.constant 0 : i32
    %c0_i32_0 = arith.constant 0 : i32
    %c0_i32_1 = arith.constant 0 : i32
    %c0_i32_2 = arith.constant 0 : i32
    return %c0_i32, %c0_i32_0, %c0_i32_1 : i32, i32, i32
  }
  func.func @transform_6(%arg0: i32, %arg1: i32) -> (i32, i32, i32) {
    %c0_i32 = arith.constant 0 : i32
    %c0_i32_0 = arith.constant 0 : i32
    return %arg0, %c0_i32, %arg1 : i32, i32, i32
  }
}

</mosaic_0001>

<bundles_post_ra>
// kernel: tpu_custom_call.1
= control target key start
LH: loop header
LB: loop body
LE: loop exit
PB: predicated region body
PF: predicated region fallthrough
CT: control target
= control target key end

     0   :  { %11 = vsyncpa [#allocation7], 0  ;;  %s8965_s0 = inlined_call_operand.vmem [shape: bf16[2,4,256], index: 0, kind: input, shape index: {}]   ;;  %s8966_s1 = inlined_call_operand.vmem [shape: f32[2,9,256], index: 1, kind: input, shape index: {}]   ;;  %s8967_s2 = inlined_call_operand.vmem [shape: f32[2,9,256], index: 2, kind: input, shape index: {}]   ;;  %s8968_s3 = inlined_call_operand.vmem [shape: f32[9,256], index: 3, kind: input, shape index: {}]   ;;  %s8969_s4 = inlined_call_operand.vmem [shape: f32[9,256], index: 4, kind: input, shape index: {}]   ;;  %s8970_s5 = inlined_call_operand.vmem [shape: bf16[9,8,4], index: 5, kind: input, shape index: {}]   ;;  %s8971_s6 = inlined_call_operand.hbm [shape: f32[2,8,256], index: 6, kind: output, shape index: {}]  }
   0x1   :  { %13 = vsyncpa [#allocation7 + $0x1], 0  ;;  %s6014_s21 = smov 0   ;;  %s6016_s22 = smov 0  }
   0x2   :  { %s6018_s23 = smov 0   ;;  %s6020_s24 = smov 0  }
   0x3   :  { %s6022_s25 = smov 0   ;;  %s6024_s26 = smov 0  }
   0x4   :  { %s6026_s27 = smov 0   ;;  %s6028_s28 = smov 0  }
   0x5   :  { %s6030_s29 = smov 0   ;;  %s6032_s30 = smov 0  }
   0x6 LB: > { %9063 = sst [smem:[#allocation9_spill]] %s5938_s21  ;;  %s5414_s7 = sadd.s32 4294967295, %s5974_s30   ;;  %s5974_s30 = sphi %s6032_s30, %s19_s30   ;;  %s5970_s29 = sphi %s6030_s29, %s9218_s29   ;;  %s5966_s28 = sphi %s6028_s28, %s9217_s28   ;;  %s5962_s27 = sphi %s6026_s27, %s9216_s27   ;;  %s5958_s26 = sphi %s6024_s26, %s9215_s26   ;;  %s5954_s25 = sphi %s6022_s25, %s9214_s25   ;;  %s5950_s24 = sphi %s6020_s24, %s9213_s24   ;;  %s5946_s23 = sphi %s6018_s23, %s9212_s23   ;;  %s5942_s22 = sphi %s6016_s22, %s9211_s22   ;;  %s5938_s21 = sphi %s6014_s21, %s9210_s21  }
   0x7   : > { %s5415_s8 = sadd.s32 4294967294, %s5974_s30   ;;  %s28_s9 = sadd.s32 1, %s5966_s28 }
   0x8   : > { %s31_s10 = sadd.s32 1, %s5970_s29  ;;  %p29_p0 = scmp.ge.s32.totalorder %s28_s9, 2 }
   0x9   : > { %s66_s11 = sadd.s32 1, %s5954_s25  ;;  %p73_p1 = scmp.ne.s32.totalorder %s5954_s25, %s5950_s24 }
   0xa   : > { %p74_p2 = scmp.eq.s32.totalorder %s5974_s30, 0  ;;  %s9220_s9 = smov (%p29_p0, %s28_s9), 0 }
   0xb   : > { %9064 = sst [smem:[#allocation10_spill]] %s9220_s9  ;;  %s9222_s10 = smov (!%p29_p0, %s31_s10), %s5970_s29 }
   0xc   : > { %s62_s12 = ssub.s32 %s5966_s28, %s9220_s9  ;;  %p6080_p3 = por %p74_p2, %p73_p1 }
   0xd   : > { %p33_p4 = scmp.ge.s32.totalorder %s9222_s10, 2  ;;  %p118_p5 = scmp.eq.s32.totalorder %s62_s12, 0 }
   0xe   : > { %s120_s14 = sadd.s32 1, %s5946_s23  ;;  %p127_p6 = scmp.ne.s32.totalorder %s5946_s23, %s5942_s22 }
   0xf   : > { %s9224_s10 = smov (%p33_p4, %s9222_s10), 0  ;;  %p206_p8 = scmp.eq.s32.totalorder %s5414_s7, 3 }
  0x10   : > { %9066 = sst [smem:[#allocation11_spill]] %s9224_s10  ;;  %s61_s16 = ssub.s32 %s5970_s29, %s9224_s10 }
  0x11   : > { %s6090_s15 = scalar_select %p118_p5, %s5946_s23, %s120_s14  }
  0x12   : > { %p6094_p7 = por %p127_p6, %p74_p2  ;;  %s63_s18 = sor.u32 %s62_s12, %s61_s16 }
  0x13   : > { %9067 = sst [smem:[#allocation12_spill]] %s6090_s15  ;;  %p64_p9 = scmp.eq.s32.totalorder %s63_s18, 0 }
  0x14   : > { %p211_p10 = scmp.ne.s32.totalorder %s5950_s24, %s5938_s21  ;;  %p6103_p11 = por %p206_p8, %p73_p1 }
  0x15   : > { %p212_p12 = scmp.eq.s32.totalorder %s5415_s8, 3  ;;  %p5417_p0 = scmp.ge.s32.totalorder %s5974_s30, 4 }
  0x16   : > { %s6108_s20 = scalar_select %p64_p9, %s5954_s25, %s66_s11  }
  0x17   : > { %p6110_p13 = por %p212_p12, %p211_p10  ;;  %231 = sbr.rel (%p5417_p0) target bundleno = 58 (0x3a), region = 20 }
  0x18   : > { %9070 = sst [smem:[#allocation13_spill]] %s6108_s20 }
  0x19   : > { %s9071_s14 = scalar_select %p6110_p13, 1, 0 }
  0x1b   : > { %9072 = sst [smem:[#allocation14_spill]] %s9071_s14 }
  0x1e   : > { %242 = sbr.rel (!%p6080_p3) target bundleno = 37 (0x25), region = 28  ;;  %s244_s7 = sand.u32 (%p6080_p3), 1, %s5954_s25  }
  0x1f   : > { %s5419_s12 = sshll.u32 (%p6080_p3), %s5970_s29, 2  ;;  %s5418_s16 = sshll.u32 (%p6080_p3), %s244_s7, 4 }
  0x20   : > { %s248_s18 = sadd.s32 (%p6080_p3), %s5966_s28, %s5419_s12  ;;  %s246_s20 = scalar_lea.vmem (%p6080_p3), [#allocation2], %s5418_s16 }
  0x21   : > { %s5420_s8 = sshll.u32 (%p6080_p3), %s248_s18, 3 }
  0x22   : > { %s250_s9 = scalar_lea.vmem (%p6080_p3), %s8966_s1, %s5420_s8 }
  0x23   : > { %v280_v0 = vld [vmem:[%s250_s9] sm:$0xff] (%p6080_p3)  ;;  %v282_v1 = vld [vmem:[%s250_s9 + $0x10] sm:$0xff] (%p6080_p3) }
  0x24   : > { %281 = vst [vmem:[%s246_s20] sm:$0xff] (%p6080_p3), %v280_v0  ;;  %283 = vst [vmem:[%s246_s20 + $0x8] sm:$0xff] (%p6080_p3), %v282_v1 }
  0x25 PF: > { %289 = sbr.rel (!%p6080_p3) target bundleno = 44 (0x2c), region = 66  ;;  %s291_s15 = sand.u32 (%p6080_p3), 1, %s5954_s25  }
  0x26   : > { %s5422_s7 = sshll.u32 (%p6080_p3), %s5970_s29, 2  ;;  %s5421_s12 = sshll.u32 (%p6080_p3), %s291_s15, 4 }
  0x27   : > { %s295_s18 = sadd.s32 (%p6080_p3), %s5966_s28, %s5422_s7  ;;  %s293_s9 = scalar_lea.vmem (%p6080_p3), [#allocation3], %s5421_s12 }
  0x28   : > { %s5423_s14 = sshll.u32 (%p6080_p3), %s295_s18, 3 }
  0x29   : > { %s297_s8 = scalar_lea.vmem (%p6080_p3), %s8967_s2, %s5423_s14 }
  0x2a   : > { %v327_v2 = vld [vmem:[%s297_s8] sm:$0xff] (%p6080_p3)  ;;  %v329_v3 = vld [vmem:[%s297_s8 + $0x10] sm:$0xff] (%p6080_p3) }
  0x2b   : > { %328 = vst [vmem:[%s293_s9] sm:$0xff] (%p6080_p3), %v327_v2  ;;  %330 = vst [vmem:[%s293_s9 + $0x8] sm:$0xff] (%p6080_p3), %v329_v3 }
  0x2c PF: > { %336 = sbr.rel (!%p6094_p7) target bundleno = 51 (0x33), region = 104  ;;  %s338_s13 = sand.u32 (%p6094_p7), 1, %s5946_s23  }
  0x2d   : > { %s5425_s20 = sshll.u32 (%p6094_p7), %s5966_s28, 3  ;;  %s5424_s15 = sshll.u32 (%p6094_p7), %s338_s13, 4 }
  0x2e   : > { %s342_s7 = scalar_lea.vmem (%p6094_p7), %s8968_s3, %s5425_s20  ;;  %s340_s21 = scalar_lea.vmem (%p6094_p7), [#allocation4], %s5424_s15 }
  0x2f   : > { %v372_v4 = vld [vmem:[%s342_s7] sm:$0xff] (%p6094_p7)  ;;  %v374_v5 = vld [vmem:[%s342_s7 + $0x10] sm:$0xff] (%p6094_p7) }
  0x30   : > { %373 = vst [vmem:[%s340_s21] sm:$0xff] (%p6094_p7), %v372_v4  ;;  %375 = vst [vmem:[%s340_s21 + $0x8] sm:$0xff] (%p6094_p7), %v374_v5 }
  0x33 PF: > { %381 = sbr.rel (!%p6094_p7) target bundleno = 58 (0x3a), region = 142  ;;  %s383_s14 = sand.u32 (%p6094_p7), 1, %s5946_s23  }
  0x34   : > { %s5427_s12 = sshll.u32 (%p6094_p7), %s5966_s28, 3  ;;  %s5426_s18 = sshll.u32 (%p6094_p7), %s383_s14, 4 }
  0x35   : > { %s387_s9 = scalar_lea.vmem (%p6094_p7), %s8969_s4, %s5427_s12  ;;  %s385_s13 = scalar_lea.vmem (%p6094_p7), [#allocation5], %s5426_s18 }
  0x36   : > { %v417_v6 = vld [vmem:[%s387_s9] sm:$0xff] (%p6094_p7)  ;;  %v419_v7 = vld [vmem:[%s387_s9 + $0x10] sm:$0xff] (%p6094_p7) }
  0x37   : > { %418 = vst [vmem:[%s385_s13] sm:$0xff] (%p6094_p7), %v417_v6  ;;  %420 = vst [vmem:[%s385_s13 + $0x8] sm:$0xff] (%p6094_p7), %v419_v7 }
  0x3a PF: > { %p5428_p1 = scmp.ge.s32.totalorder %s5974_s30, 1  ;;  %p425_p2 = scmp.lt.s32.totalorder %s5974_s30, 5 }
  0x3c   : > { %p426_p3 = pnand %p5428_p1, %p425_p2 }
  0x3e   : > { %429 = sbr.rel (%p426_p3) target bundleno = 1772 (0x6ec), region = 180 }
  0x45   : > { %s6148_s17 = sand.u32 1, %s5950_s24   ;;  %s446_s20 = sand.u32 1, %s5942_s22   ;;  %v616_v8 = vlaneseq }
  0x46   : > { %s5429_s15 = sshll.u32 %s6148_s17, 4  ;;  %s6152_s16 = sshll.u32 %s446_s20, 4 }
  0x47   : > { %v6154_v9 = vshrl.u32 %v616_v8, 7  ;;  %s6156_s11 = scalar_lea.vmem [#allocation2], %s5429_s15  ;;  %s6159_s7 = scalar_lea.vmem [#allocation3], %s5429_s15 }
  0x48   : > { %v508_v10 = vld [vmem:[%s6156_s11] sm:$0xff]  ;;  %s448_s22 = scalar_lea.vmem [#allocation4], %s6152_s16  ;;  %s455_s21 = scalar_lea.vmem [#allocation5], %s6152_s16 }
  0x49   : > { %v514_v11 = vld [vmem:[%s6159_s7] sm:$0xff]  ;;  %v6169_v14 = vadd.s32 128, %v6154_v9  ;;  %v6172_v17 = vadd.s32 136, %v6154_v9  ;;  %v6175_v18 = vsub.s32 0, %v6154_v9  ;;  %p499_p4 = scmp.lt.s32.totalorder %s5962_s27, 1  ;;  %v6179_v19 = vadd.s32 8, %v6154_v9 }
  0x4a   : > { %v506_v12 = vld [vmem:[%s448_s22] sm:$0xff]  ;;  %v6182_v20 = vadd.s32 144, %v6154_v9  ;;  %v6185_v21 = vadd.s32 152, %v6154_v9  ;;  %v6188_v22 = vadd.s32 16, %v6154_v9  ;;  %v6191_v23 = vadd.s32 24, %v6154_v9 }
  0x4b   : > { %v512_v13 = vld [vmem:[%s455_s21] sm:$0xff]  ;;  %9073 = vst [vmem:[#allocation15_spill] sm:$0xff] %v6169_v14  ;;  %v510_v15 = vadd.f32 %v508_v10, %v506_v12  ;;  %9074 = vst [vmem:[#allocation16_spill] sm:$0xff] %v6172_v17  ;;  %v6194_v24 = vadd.s32 160, %v6154_v9  ;;  %s500_s14 = scalar_select %p499_p4, %s5962_s27, 1  ;;  %v6198_v27 = vadd.s32 168, %v6154_v9 }
  0x4c   : > { %v516_v16 = vadd.f32 %v514_v11, %v512_v13  ;;  %9075 = vst [vmem:[#allocation17_spill] sm:$0xff] %v6175_v18  ;;  %9076 = vst [vmem:[#allocation18_spill] sm:$0xff] %v6179_v19  ;;  %v6201_v28 = vadd.s32 32, %v6154_v9  ;;  %v6204_v29 = vadd.s32 40, %v6154_v9  ;;  %v6207_v30 = vadd.s32 176, %v6154_v9 }
  0x4d   : > { %9077 = vst [vmem:[#allocation19_spill] sm:$0xff] %v6182_v20  ;;  %9078 = vst [vmem:[#allocation20_spill] sm:$0xff] %v6185_v21  ;;  %vm518_vm0 = vcmp.gt.f32.partialorder %v510_v15, -1.0  ;;  %vm520_vm1 = vcmp.lt.f32.partialorder %v510_v15, 16.0  ;;  %v532_v25 = vfloor.f32 %v510_v15  ;;  %s5459_s12 = sshll.u32 %s500_s14, 2  ;;  %v6210_v35 = vadd.s32 184, %v6154_v9 }
  0x4e   : > { %9079 = vst [vmem:[#allocation21_spill] sm:$0xff] %v6188_v22  ;;  %9080 = vst [vmem:[#allocation22_spill] sm:$0xff] %v6191_v23  ;;  %vm524_vm3 = vcmp.gt.f32.partialorder %v516_v16, -1.0  ;;  %v534_v26 = vfloor.f32 %v516_v16  ;;  %vm528_vm4 = vcmp.lt.f32.partialorder %v516_v16, 16.0  ;;  %v6213_v36 = vadd.s32 48, %v6154_v9  ;;  %s6224_s8 = scalar_lea.vmem %s8965_s0, %s5459_s12  ;;  %s5455_s12 = sshll.u32 %s5962_s27, 1 }
  0x4f   : > { %9081 = vst [vmem:[#allocation23_spill] sm:$0xff] %v6194_v24  ;;  %vm522_vm2 = vmand %vm518_vm0, %vm520_vm1  ;;  %v536_v31 = vsub.f32 %v510_v15, %v532_v25  ;;  %v5762_v33 = vtrunc.f32 %v532_v25  ;;  %v6216_v37 = vadd.s32 56, %v6154_v9  ;;  %v6219_v38 = vadd.s32 192, %v6154_v9  ;;  %s5262_s18 = sadd.s32 %s5958_s26, %s5455_s12  ;;  %s5978_s26 = smov [#allocation6]  }
  0x50   : > { %9082 = vst [vmem:[#allocation24_spill] sm:$0xff] %v6198_v27  ;;  %9083 = vst [vmem:[#allocation25_spill] sm:$0xff] %v6201_v28  ;;  %v538_v32 = vsub.f32 %v516_v16, %v534_v26  ;;  %v5766_v34 = vtrunc.f32 %v534_v26  ;;  %v6229_v44 = vadd.s32 200, %v6154_v9  ;;  %v6232_v45 = vadd.s32 64, %v6154_v9  ;;  %s5456_s13 = sshll.u32 %s5262_s18, 7 }
  0x51   : > { %9084 = vst [vmem:[#allocation26_spill] sm:$0xff] %v6204_v29  ;;  %9085 = vst [vmem:[#allocation27_spill] sm:$0xff] %v6207_v30  ;;  %v540_v39 = vsub.f32 1.0, %v536_v31  ;;  %v5763_v41 = vcvt.f32.s32 %v5762_v33  ;;  %v6235_v46 = vadd.s32 72, %v6154_v9  ;;  %v6243_v48 = vadd.s32 208, %v6154_v9  ;;  %s8907_s16 = scalar_lea.hbm %s8971_s6, %s5456_s13 }
  0x52   : > { %vm526_vm5 = vmand %vm522_vm2, %vm524_vm3  ;;  %9086 = vst [vmem:[#allocation28_spill] sm:$0xff] %v6210_v35  ;;  %v542_v40 = vsub.f32 1.0, %v538_v32  ;;  %v5767_v42 = vcvt.f32.s32 %v5766_v34  ;;  %v6226_v43 = vmul.f32 %v538_v32, %v536_v31  ;;  %v6250_v52 = vadd.s32 216, %v6154_v9 }
  0x53   : > { %9087 = vst [vmem:[#allocation29_spill] sm:$0xff] %v6213_v36  ;;  %9088 = vst [vmem:[#allocation30_spill] sm:$0xff] %v6216_v37  ;;  %vm550_vm7 = vcmp.ge.s32.totalorder %v5763_v41, 0  ;;  %vm552_vm8 = vcmp.le.s32.totalorder %v5763_v41, 15  ;;  %v568_v54 = vmul.f32 %v540_v39, %v538_v32  ;;  %v586_v55 = vadd.s32 1, %v5763_v41 }
  0x54   : > { %9089 = vst [vmem:[#allocation31_spill] sm:$0xff] %v6219_v38  ;;  %9090 = vst [vmem:[#allocation32_spill] sm:$0xff] %v6229_v44  ;;  %vm556_vm9 = vcmp.ge.s32.totalorder %v5767_v42, 0  ;;  %v548_v49 = vmul.f32 %v542_v40, %v540_v39  ;;  %vm560_vm11 = vcmp.le.s32.totalorder %v5767_v42, 15  ;;  %v570_v51 = vadd.s32 1, %v5767_v42 }
  0x55   : > { %9091 = vst [vmem:[#allocation33_spill] sm:$0xff] %v6232_v45  ;;  %vm6238_vm6 = vmand %vm526_vm5, %vm528_vm4  ;;  %v6253_v53 = vld.sshfl [vmem:[%s6224_s8] sm:$0x33 pattern:$0x76325410]  ;;  %v612_v56 = vmul.u32 16, %v5763_v41  ;;  %v584_v58 = vmul.f32 %v542_v40, %v536_v31 }
  0x56   : > { %vm6245_vm10 = vmand %vm550_vm7, %vm552_vm8  ;;  %9096 = vst [vmem:[#allocation34_spill] sm:$0xff] %v6253_v53  ;;  %v6259_v57 = vadd.s32 80, %v6154_v9  ;;  %vm572_vm14 = vcmp.ge.s32.totalorder %v570_v51, 0  ;;  %vm576_vm15 = vcmp.le.s32.totalorder %v570_v51, 15  ;;  %v6263_v59 = vadd.s32 88, %v6154_v9 }
  0x57   : > { %vm558_vm12 = vmand %vm6245_vm10, %vm556_vm9  ;;  %v6267_v60 = vadd.s32 %v5767_v42, %v612_v56  ;;  %v6270_v61 = vadd.s32 224, %v6154_v9  ;;  %v6273_v62 = vadd.s32 232, %v6154_v9  ;;  %v6276_v63 = vadd.s32 96, %v6154_v9 }
  0x58   : > { %vm562_vm13 = vmand %vm558_vm12, %vm560_vm11  ;;  %vm588_vm2 = vcmp.ge.s32.totalorder %v586_v55, 0  ;;  %vm590_vm3 = vcmp.le.s32.totalorder %v586_v55, 15  ;;  %v6284_v1 = vadd.s32 104, %v6154_v9  ;;  %v6292_v3 = vadd.s32 240, %v6154_v9 }
  0x59   : > { %vm564_vm0 = vmand %vm562_vm13, %vm6238_vm6  ;;  %9097 = vst [vmem:[#allocation35_spill] sm:$0xff] %v6267_v60  ;;  %v6289_v2 = vrot.slane %v6267_v60, %v6175_v18  ;;  %v6295_v4 = vadd.s32 248, %v6154_v9  ;;  %v6299_v5 = vcombine.high %v6253_v53, %v6253_v53  ;;  %v6308_v7 = vadd.s32 112, %v6154_v9 }
  0x5a   : > { %9098 = vst [vmem:[#allocation36_spill] sm:$0xff] %v6276_v63  ;;  %v6278_v0 = vsel %vm564_vm0, %v548_v49, 0.0  ;;  %vm574_vm1 = vmand %vm6245_vm10, %vm572_vm14  ;;  %v6311_v8 = vadd.s32 120, %v6154_v9  ;;  %v6314_v10 = vsub.s32 1, %v6154_v9 }
  0x5b   : > { %9099 = vst [vmem:[#allocation37_spill] sm:$0xff] %v6278_v0  ;;  %9100 = vst [vmem:[#allocation38_spill] sm:$0xff] %v6284_v1  ;;  %v6305_v6 = vrot.slane %v6278_v0, %v6175_v18  ;;  %v669_v13 = vsub.s32 %v6169_v14, %v6289_v2  ;;  %v670_v15 = vsub.s32 %v6172_v17, %v6289_v2  ;;  %1112 = vmatprep.mubr.bf16.mxu1 %v6299_v5 }
  0x5c   : > { %vm578_vm4 = vmand %vm574_vm1, %vm576_vm15  ;;  %9101 = vst [vmem:[#allocation39_spill] sm:$0xff] %v6292_v3  ;;  %v653_v16 = vsub.s32 %v6154_v9, %v6289_v2  ;;  %v654_v26 = vsub.s32 %v6179_v19, %v6289_v2  ;;  %v6340_v31 = vsub.s32 %v6182_v20, %v6289_v2  ;;  %v6344_v32 = vsub.s32 %v6185_v21, %v6289_v2 }
  0x5d   : > { %9102 = vst [vmem:[#allocation40_spill] sm:$0xff] %v6295_v4  ;;  %9103 = vst [vmem:[#allocation41_spill] sm:$0xff] %v6299_v5  ;;  %vm701_vm12 = vcmp.eq.s32.totalorder %v669_v13, 0  ;;  %vm702_vm13 = vcmp.eq.s32.totalorder %v670_v15, 0  ;;  %vm770_vm0 = vcmp.eq.s32.totalorder %v670_v15, 1 }
  0x5e   : > { %vm580_vm5 = vmand %vm578_vm4, %vm6238_vm6  ;;  %9104 = vst [vmem:[#allocation42_spill] sm:$0xff] %v6308_v7  ;;  %v737_v33 = vsel %vm701_vm12, %v6305_v6, 0.0  ;;  %v738_v34 = vsel %vm702_vm13, %v6305_v6, 0.0  ;;  %vm870_vm4 = vcmp.eq.s32.totalorder %v670_v15, 16  ;;  %vm685_vm12 = vcmp.eq.s32.totalorder %v653_v16, 0 }
  0x5f   : > { %9105 = vst [vmem:[#allocation43_spill] sm:$0xff] %v6311_v8  ;;  %v6316_v11 = vsel %vm580_vm5, %v568_v54, 0.0  ;;  %vm6318_vm7 = vmand %vm588_vm2, %vm590_vm3  ;;  %vm869_vm2 = vcmp.eq.s32.totalorder %v669_v13, 16  ;;  %vm969_vm5 = vcmp.eq.s32.totalorder %v669_v13, 17  ;;  %vm686_vm13 = vcmp.eq.s32.totalorder %v654_v26, 0 }
  0x60   : > { %9106 = vst [vmem:[#allocation44_spill] sm:$0xff] %v6316_v11  ;;  %vm594_vm8 = vmand %vm6318_vm7, %vm556_vm9  ;;  %v6334_v25 = vrot.slane %v6316_v11, %v6175_v18  ;;  %vm769_vm9 = vcmp.eq.s32.totalorder %v669_v13, 1  ;;  %v721_v56 = vsel %vm685_vm12, %v6305_v6, 0.0  ;;  %v722_v47 = vsel %vm686_vm13, %v6305_v6, 0.0 }
  0x61   : > { %vm596_vm10 = vmand %vm594_vm8, %vm560_vm11  ;;  %vm970_vm8 = vcmp.eq.s32.totalorder %v670_v15, 17 }
  0x62   : > { %vm598_vm1 = vmand %vm596_vm10, %vm6238_vm6  ;;  %v805_v39 = vsel %vm769_vm9, %v6334_v25, 0.0  ;;  %v806_v40 = vsel %vm770_vm0, %v6334_v25, 0.0  ;;  %vm753_vm9 = vcmp.eq.s32.totalorder %v653_v16, 1  ;;  %vm754_vm0 = vcmp.eq.s32.totalorder %v654_v26, 1 }
  0x63   : > { %v6353_v41 = vsel %vm598_vm1, %v584_v58, 0.0  ;;  %vm604_vm11 = vmand %vm6318_vm7, %vm572_vm14  ;;  %v837_v42 = vadd.f32 %v805_v39, %v737_v33  ;;  %v838_v49 = vadd.f32 %v806_v40, %v738_v34  ;;  %v789_v34 = vsel %vm753_vm9, %v6334_v25, 0.0 }
  0x64   : > { %9109 = vst [vmem:[#allocation45_spill] sm:$0xff] %v6353_v41  ;;  %vm606_vm3 = vmand %vm604_vm11, %vm576_vm15  ;;  %v6361_v50 = vrot.slane %v6353_v41, %v6175_v18  ;;  %v790_v39 = vsel %vm754_vm0, %v6334_v25, 0.0  ;;  %vm854_vm14 = vcmp.eq.s32.totalorder %v654_v26, 16  ;;  %vm953_vm15 = vcmp.eq.s32.totalorder %v653_v16, 17 }
  0x65   : > { %vm608_vm10 = vmand %vm606_vm3, %vm6238_vm6  ;;  %vm853_vm6 = vcmp.eq.s32.totalorder %v653_v16, 16  ;;  %vm954_vm7 = vcmp.eq.s32.totalorder %v654_v26, 17  ;;  %vm703_vm1 = vcmp.eq.s32.totalorder %v6340_v31, 0  ;;  %vm704_vm11 = vcmp.eq.s32.totalorder %v6344_v32, 0 }
  0x66   : > { %v6366_v54 = vsel %vm608_vm10, %v6226_v43, 0.0  ;;  %v905_v51 = vsel %vm869_vm2, %v6361_v50, 0.0  ;;  %v906_v55 = vsel %vm870_vm4, %v6361_v50, 0.0  ;;  %v890_v21 = vsel %vm854_vm14, %v6361_v50, 0.0 }
  0x67   : > { %9110 = vst [vmem:[#allocation46_spill] sm:$0xff] %v6366_v54  ;;  %v937_v58 = vadd.f32 %v905_v51, %v837_v42  ;;  %v938_v12 = vadd.f32 %v906_v55, %v838_v49  ;;  %v6373_v33 = vrot.slane %v6366_v54, %v6175_v18  ;;  %v821_v42 = vadd.f32 %v789_v34, %v721_v56 }
  0x68   : > { %v822_v49 = vadd.f32 %v790_v39, %v722_v47  ;;  %v889_v18 = vsel %vm853_vm6, %v6361_v50, 0.0  ;;  %vm771_vm2 = vcmp.eq.s32.totalorder %v6340_v31, 1  ;;  %vm772_vm3 = vcmp.eq.s32.totalorder %v6344_v32, 1 }
  0x69   : > { %v1005_v43 = vsel %vm969_vm5, %v6373_v33, 0.0  ;;  %v1006_v40 = vsel %vm970_vm8, %v6373_v33, 0.0  ;;  %v921_v5 = vadd.f32 %v889_v18, %v821_v42  ;;  %v989_v19 = vsel %vm953_vm15, %v6373_v33, 0.0 }
  0x6a   : > { %v1037_v51 = vadd.f32 %v1005_v43, %v937_v58  ;;  %v1038_v55 = vadd.f32 %v1006_v40, %v938_v12  ;;  %v922_v53 = vadd.f32 %v890_v21, %v822_v49  ;;  %v990_v13 = vsel %vm954_vm7, %v6373_v33, 0.0 }
  0x6b   : > { %v1021_v15 = vadd.f32 %v989_v19, %v921_v5  ;;  %v739_v58 = vsel %vm703_vm1, %v6305_v6, 0.0  ;;  %v740_v12 = vsel %vm704_vm11, %v6305_v6, 0.0  ;;  %vm871_vm4 = vcmp.eq.s32.totalorder %v6340_v31, 16 }
  0x6c   : > { %v1061_v20 = vpack.c.bf16 %v1038_v55, %v1037_v51  ;;  %v1022_v56 = vadd.f32 %v990_v13, %v922_v53  ;;  %v807_v21 = vsel %vm771_vm2, %v6334_v25, 0.0  ;;  %v808_v16 = vsel %vm772_vm3, %v6334_v25, 0.0 }
  0x6d   : > { %vm872_vm5 = vcmp.eq.s32.totalorder %v6344_v32, 16  ;;  %v839_v19 = vadd.f32 %v807_v21, %v739_v58  ;;  %v840_v53 = vadd.f32 %v808_v16, %v740_v12  ;;  %v907_v5 = vsel %vm871_vm4, %v6361_v50, 0.0 }
  0x6e   : > { %5460 = vmatprep.subr.bf16.mxu1 %v1061_v20  ;;  %v1053_v18 = vpack.c.bf16 %v1022_v56, %v1021_v15  ;;  %v908_v20 = vsel %vm872_vm5, %v6361_v50, 0.0  ;;  %vm971_vm8 = vcmp.eq.s32.totalorder %v6340_v31, 17  ;;  %vm972_vm10 = vcmp.eq.s32.totalorder %v6344_v32, 17 }
  0x6f   : > { %v655_v26 = vsub.s32 %v6188_v22, %v6289_v2  ;;  %v656_v47 = vsub.s32 %v6191_v23, %v6289_v2  ;;  %v939_v34 = vadd.f32 %v907_v5, %v839_v19  ;;  %v940_v39 = vadd.f32 %v908_v20, %v840_v53 }
  0x70   : > { %5461 = vmatpush3.bf16.msra.mxu1 %v1053_v18  ;;  %v1007_v43 = vsel %vm971_vm8, %v6373_v33, 0.0  ;;  %v1008_v40 = vsel %vm972_vm10, %v6373_v33, 0.0  ;;  %v673_v18 = vsub.s32 %v6194_v24, %v6289_v2  ;;  %v674_v5 = vsub.s32 %v6198_v27, %v6289_v2 }
  0x71   : > { %vm687_vm12 = vcmp.eq.s32.totalorder %v655_v26, 0  ;;  %vm688_vm13 = vcmp.eq.s32.totalorder %v656_v47, 0  ;;  %vm755_vm9 = vcmp.eq.s32.totalorder %v655_v26, 1  ;;  %vm756_vm0 = vcmp.eq.s32.totalorder %v656_v47, 1 }
  0x72   : > { %v1039_v42 = vadd.f32 %v1007_v43, %v939_v34  ;;  %v1040_v31 = vadd.f32 %v1008_v40, %v940_v39  ;;  %v723_v32 = vsel %vm687_vm12, %v6305_v6, 0.0  ;;  %v724_v49 = vsel %vm688_vm13, %v6305_v6, 0.0 }
  0x73   : > { %v791_v51 = vsel %vm755_vm9, %v6334_v25, 0.0  ;;  %v792_v55 = vsel %vm756_vm0, %v6334_v25, 0.0  ;;  %vm855_vm6 = vcmp.eq.s32.totalorder %v655_v26, 16  ;;  %vm856_vm14 = vcmp.eq.s32.totalorder %v656_v47, 16 }
  0x74   : > { %v1062_v13 = vpack.c.bf16 %v1040_v31, %v1039_v42  ;;  %v823_v15 = vadd.f32 %v791_v51, %v723_v32  ;;  %v824_v56 = vadd.f32 %v792_v55, %v724_v49  ;;  %v891_v58 = vsel %vm855_vm6, %v6361_v50, 0.0 }
  0x75   : > { %v892_v12 = vsel %vm856_vm14, %v6361_v50, 0.0  ;;  %vm955_vm15 = vcmp.eq.s32.totalorder %v655_v26, 17  ;;  %vm956_vm7 = vcmp.eq.s32.totalorder %v656_v47, 17  ;;  %vm705_vm1 = vcmp.eq.s32.totalorder %v673_v18, 0 }
  0x76   : > { %5462 = vmatprep.subr.bf16.mxu1 %v1062_v13  ;;  %v923_v21 = vadd.f32 %v891_v58, %v823_v15  ;;  %v924_v16 = vadd.f32 %v892_v12, %v824_v56  ;;  %v991_v19 = vsel %vm955_vm15, %v6373_v33, 0.0  ;;  %v992_v53 = vsel %vm956_vm7, %v6373_v33, 0.0 }
  0x77   : > { %vm773_vm11 = vcmp.eq.s32.totalorder %v673_v18, 1  ;;  %vm873_vm2 = vcmp.eq.s32.totalorder %v673_v18, 16  ;;  %v741_v26 = vsel %vm705_vm1, %v6305_v6, 0.0  ;;  %vm706_vm3 = vcmp.eq.s32.totalorder %v674_v5, 0 }
  0x78   : > { %v1023_v20 = vadd.f32 %v991_v19, %v923_v21  ;;  %v1024_v34 = vadd.f32 %v992_v53, %v924_v16  ;;  %v809_v47 = vsel %vm773_vm11, %v6334_v25, 0.0  ;;  %vm774_vm4 = vcmp.eq.s32.totalorder %v674_v5, 1 }
  0x79   : > { %v841_v39 = vadd.f32 %v809_v47, %v741_v26  ;;  %vm874_vm5 = vcmp.eq.s32.totalorder %v674_v5, 16  ;;  %v742_v40 = vsel %vm706_vm3, %v6305_v6, 0.0  ;;  %v810_v42 = vsel %vm774_vm4, %v6334_v25, 0.0 }
  0x7a   : > { %v1054_v43 = vpack.c.bf16 %v1024_v34, %v1023_v20  ;;  %v909_v31 = vsel %vm873_vm2, %v6361_v50, 0.0  ;;  %v842_v32 = vadd.f32 %v810_v42, %v742_v40  ;;  %v910_v49 = vsel %vm874_vm5, %v6361_v50, 0.0 }
  0x7b   : > { %v941_v51 = vadd.f32 %v909_v31, %v841_v39  ;;  %vm973_vm8 = vcmp.eq.s32.totalorder %v673_v18, 17  ;;  %vm974_vm10 = vcmp.eq.s32.totalorder %v674_v5, 17  ;;  %v657_v13 = vsub.s32 %v6201_v28, %v6289_v2 }
  0x7c   : > { %5463 = vmatpush3.bf16.msra.mxu1 %v1054_v43  ;;  %v1009_v55 = vsel %vm973_vm8, %v6373_v33, 0.0  ;;  %v658_v15 = vsub.s32 %v6204_v29, %v6289_v2  ;;  %v942_v56 = vadd.f32 %v910_v49, %v842_v32  ;;  %v1010_v58 = vsel %vm974_vm10, %v6373_v33, 0.0 }
  0x7d   : > { %v1041_v12 = vadd.f32 %v1009_v55, %v941_v51  ;;  %v675_v21 = vsub.s32 %v6207_v30, %v6289_v2  ;;  %vm689_vm12 = vcmp.eq.s32.totalorder %v657_v13, 0  ;;  %vm757_vm9 = vcmp.eq.s32.totalorder %v657_v13, 1 }
  0x7e   : > { %vm690_vm13 = vcmp.eq.s32.totalorder %v658_v15, 0  ;;  %vm758_vm0 = vcmp.eq.s32.totalorder %v658_v15, 1  ;;  %v1042_v18 = vadd.f32 %v1010_v58, %v942_v56  ;;  %v725_v16 = vsel %vm689_vm12, %v6305_v6, 0.0 }
  0x7f   : > { %v726_v19 = vsel %vm690_vm13, %v6305_v6, 0.0  ;;  %v793_v53 = vsel %vm757_vm9, %v6334_v25, 0.0  ;;  %v794_v5 = vsel %vm758_vm0, %v6334_v25, 0.0  ;;  %vm857_vm6 = vcmp.eq.s32.totalorder %v657_v13, 16 }
  0x80   : > { %v825_v20 = vadd.f32 %v793_v53, %v725_v16  ;;  %vm858_vm14 = vcmp.eq.s32.totalorder %v658_v15, 16  ;;  %v1063_v34 = vpack.c.bf16 %v1042_v18, %v1041_v12  ;;  %v826_v26 = vadd.f32 %v794_v5, %v726_v19 }
  0x81   : > { %v893_v47 = vsel %vm857_vm6, %v6361_v50, 0.0  ;;  %v894_v39 = vsel %vm858_vm14, %v6361_v50, 0.0  ;;  %vm957_vm15 = vcmp.eq.s32.totalorder %v657_v13, 17  ;;  %vm958_vm7 = vcmp.eq.s32.totalorder %v658_v15, 17 }
  0x82   : > { %v925_v43 = vadd.f32 %v893_v47, %v825_v20  ;;  %v676_v40 = vsub.s32 %v6210_v35, %v6289_v2  ;;  %5464 = vmatprep.subr.bf16.mxu1 %v1063_v34  ;;  %v926_v42 = vadd.f32 %v894_v39, %v826_v26  ;;  %v993_v31 = vsel %vm957_vm15, %v6373_v33, 0.0 }
  0x83   : > { %v994_v32 = vsel %vm958_vm7, %v6373_v33, 0.0  ;;  %vm707_vm1 = vcmp.eq.s32.totalorder %v675_v21, 0  ;;  %vm775_vm2 = vcmp.eq.s32.totalorder %v675_v21, 1  ;;  %vm875_vm4 = vcmp.eq.s32.totalorder %v675_v21, 16 }
  0x84   : > { %v1025_v49 = vadd.f32 %v993_v31, %v925_v43  ;;  %vm708_vm11 = vcmp.eq.s32.totalorder %v676_v40, 0  ;;  %v743_v51 = vsel %vm707_vm1, %v6305_v6, 0.0  ;;  %v1026_v55 = vadd.f32 %v994_v32, %v926_v42 }
  0x85   : > { %v744_v56 = vsel %vm708_vm11, %v6305_v6, 0.0  ;;  %vm776_vm3 = vcmp.eq.s32.totalorder %v676_v40, 1  ;;  %v811_v13 = vsel %vm775_vm2, %v6334_v25, 0.0  ;;  %vm876_vm5 = vcmp.eq.s32.totalorder %v676_v40, 16 }
  0x86   : > { %v812_v15 = vsel %vm776_vm3, %v6334_v25, 0.0  ;;  %v843_v58 = vadd.f32 %v811_v13, %v743_v51  ;;  %v1055_v12 = vpack.c.bf16 %v1026_v55, %v1025_v49  ;;  %v911_v16 = vsel %vm875_vm4, %v6361_v50, 0.0 }
  0x87   : > { %v844_v18 = vadd.f32 %v812_v15, %v744_v56  ;;  %v912_v19 = vsel %vm876_vm5, %v6361_v50, 0.0  ;;  %vm975_vm8 = vcmp.eq.s32.totalorder %v675_v21, 17  ;;  %vm976_vm10 = vcmp.eq.s32.totalorder %v676_v40, 17 }
  0x88   : > { %v943_v53 = vadd.f32 %v911_v16, %v843_v58  ;;  %v659_v5 = vsub.s32 %v6213_v36, %v6289_v2  ;;  %5465 = vmatpush3.bf16.msra.mxu1 %v1055_v12  ;;  %v1011_v34 = vsel %vm975_vm8, %v6373_v33, 0.0  ;;  %v1012_v26 = vsel %vm976_vm10, %v6373_v33, 0.0 }
  0x89   : > { %v944_v20 = vadd.f32 %v912_v19, %v844_v18  ;;  %v660_v47 = vsub.s32 %v6216_v37, %v6289_v2  ;;  %v677_v13 = vsub.s32 %v6219_v38, %v6289_v2  ;;  %v678_v16 = vsub.s32 %v6229_v44, %v6289_v2 }
  0x8a   : > { %v1043_v39 = vadd.f32 %v1011_v34, %v943_v53  ;;  %vm691_vm12 = vcmp.eq.s32.totalorder %v659_v5, 0  ;;  %vm759_vm13 = vcmp.eq.s32.totalorder %v659_v5, 1  ;;  %vm859_vm9 = vcmp.eq.s32.totalorder %v659_v5, 16 }
  0x8b   : > { %v1044_v43 = vadd.f32 %v1012_v26, %v944_v20  ;;  %vm692_vm0 = vcmp.eq.s32.totalorder %v660_v47, 0  ;;  %v727_v21 = vsel %vm691_vm12, %v6305_v6, 0.0  ;;  %vm760_vm6 = vcmp.eq.s32.totalorder %v660_v47, 1 }
  0x8c   : > { %v728_v40 = vsel %vm692_vm0, %v6305_v6, 0.0  ;;  %v795_v42 = vsel %vm759_vm13, %v6334_v25, 0.0  ;;  %v796_v31 = vsel %vm760_vm6, %v6334_v25, 0.0  ;;  %vm860_vm14 = vcmp.eq.s32.totalorder %v660_v47, 16 }
  0x8d   : > { %v1064_v32 = vpack.c.bf16 %v1044_v43, %v1043_v39  ;;  %v827_v49 = vadd.f32 %v795_v42, %v727_v21  ;;  %v828_v51 = vadd.f32 %v796_v31, %v728_v40  ;;  %v895_v55 = vsel %vm859_vm9, %v6361_v50, 0.0 }
  0x8e   : > { %v896_v56 = vsel %vm860_vm14, %v6361_v50, 0.0  ;;  %vm959_vm15 = vcmp.eq.s32.totalorder %v659_v5, 17  ;;  %vm960_vm7 = vcmp.eq.s32.totalorder %v660_v47, 17  ;;  %vm709_vm1 = vcmp.eq.s32.totalorder %v677_v13, 0 }
  0x8f   : > { %5466 = vmatprep.subr.bf16.mxu1 %v1064_v32  ;;  %v927_v15 = vadd.f32 %v895_v55, %v827_v49  ;;  %v928_v58 = vadd.f32 %v896_v56, %v828_v51  ;;  %v995_v12 = vsel %vm959_vm15, %v6373_v33, 0.0  ;;  %v996_v18 = vsel %vm960_vm7, %v6373_v33, 0.0 }
  0x90   : > { %vm777_vm11 = vcmp.eq.s32.totalorder %v677_v13, 1  ;;  %vm877_vm2 = vcmp.eq.s32.totalorder %v677_v13, 16  ;;  %v745_v5 = vsel %vm709_vm1, %v6305_v6, 0.0  ;;  %vm710_vm3 = vcmp.eq.s32.totalorder %v678_v16, 0 }
  0x91   : > { %v1027_v19 = vadd.f32 %v995_v12, %v927_v15  ;;  %v1028_v53 = vadd.f32 %v996_v18, %v928_v58  ;;  %v813_v20 = vsel %vm777_vm11, %v6334_v25, 0.0  ;;  %vm778_vm4 = vcmp.eq.s32.totalorder %v678_v16, 1 }
  0x92   : > { %v845_v34 = vadd.f32 %v813_v20, %v745_v5  ;;  %vm878_vm5 = vcmp.eq.s32.totalorder %v678_v16, 16  ;;  %v746_v47 = vsel %vm710_vm3, %v6305_v6, 0.0  ;;  %v814_v39 = vsel %vm778_vm4, %v6334_v25, 0.0 }
  0x93   : > { %v1056_v26 = vpack.c.bf16 %v1028_v53, %v1027_v19  ;;  %v913_v43 = vsel %vm877_vm2, %v6361_v50, 0.0  ;;  %v846_v21 = vadd.f32 %v814_v39, %v746_v47  ;;  %v914_v40 = vsel %vm878_vm5, %v6361_v50, 0.0 }
  0x94   : > { %v945_v42 = vadd.f32 %v913_v43, %v845_v34  ;;  %vm977_vm8 = vcmp.eq.s32.totalorder %v677_v13, 17  ;;  %vm978_vm10 = vcmp.eq.s32.totalorder %v678_v16, 17  ;;  %v661_v32 = vsub.s32 %v6232_v45, %v6289_v2 }
  0x95   : > { %5467 = vmatpush3.bf16.msra.mxu1 %v1056_v26  ;;  %v1013_v31 = vsel %vm977_vm8, %v6373_v33, 0.0  ;;  %v662_v49 = vsub.s32 %v6235_v46, %v6289_v2  ;;  %v946_v51 = vadd.f32 %v914_v40, %v846_v21  ;;  %v1014_v55 = vsel %vm978_vm10, %v6373_v33, 0.0 }
  0x96   : > { %v1045_v56 = vadd.f32 %v1013_v31, %v945_v42  ;;  %v679_v15 = vsub.s32 %v6243_v48, %v6289_v2  ;;  %vm693_vm12 = vcmp.eq.s32.totalorder %v661_v32, 0  ;;  %vm761_vm9 = vcmp.eq.s32.totalorder %v661_v32, 1 }
  0x97   : > { %vm694_vm13 = vcmp.eq.s32.totalorder %v662_v49, 0  ;;  %vm762_vm0 = vcmp.eq.s32.totalorder %v662_v49, 1  ;;  %v1046_v13 = vadd.f32 %v1014_v55, %v946_v51  ;;  %v729_v58 = vsel %vm693_vm12, %v6305_v6, 0.0 }
  0x98   : > { %v730_v12 = vsel %vm694_vm13, %v6305_v6, 0.0  ;;  %v797_v18 = vsel %vm761_vm9, %v6334_v25, 0.0  ;;  %v798_v16 = vsel %vm762_vm0, %v6334_v25, 0.0  ;;  %vm861_vm6 = vcmp.eq.s32.totalorder %v661_v32, 16 }
  0x99   : > { %v829_v19 = vadd.f32 %v797_v18, %v729_v58  ;;  %vm862_vm14 = vcmp.eq.s32.totalorder %v662_v49, 16  ;;  %v1065_v53 = vpack.c.bf16 %v1046_v13, %v1045_v56  ;;  %v830_v5 = vadd.f32 %v798_v16, %v730_v12 }
  0x9a   : > { %v897_v20 = vsel %vm861_vm6, %v6361_v50, 0.0  ;;  %v898_v34 = vsel %vm862_vm14, %v6361_v50, 0.0  ;;  %vm961_vm15 = vcmp.eq.s32.totalorder %v661_v32, 17  ;;  %vm962_vm7 = vcmp.eq.s32.totalorder %v662_v49, 17 }
  0x9b   : > { %v929_v26 = vadd.f32 %v897_v20, %v829_v19  ;;  %v680_v47 = vsub.s32 %v6250_v52, %v6289_v2  ;;  %5468 = vmatprep.subr.bf16.mxu1 %v1065_v53  ;;  %v930_v39 = vadd.f32 %v898_v34, %v830_v5  ;;  %v997_v43 = vsel %vm961_vm15, %v6373_v33, 0.0 }
  0x9c   : > { %v998_v21 = vsel %vm962_vm7, %v6373_v33, 0.0  ;;  %vm711_vm1 = vcmp.eq.s32.totalorder %v679_v15, 0  ;;  %vm779_vm2 = vcmp.eq.s32.totalorder %v679_v15, 1  ;;  %vm879_vm4 = vcmp.eq.s32.totalorder %v679_v15, 16 }
  0x9d   : > { %v1029_v40 = vadd.f32 %v997_v43, %v929_v26  ;;  %vm712_vm11 = vcmp.eq.s32.totalorder %v680_v47, 0  ;;  %v747_v42 = vsel %vm711_vm1, %v6305_v6, 0.0  ;;  %v1030_v31 = vadd.f32 %v998_v21, %v930_v39 }
  0x9e   : > { %v748_v51 = vsel %vm712_vm11, %v6305_v6, 0.0  ;;  %vm780_vm3 = vcmp.eq.s32.totalorder %v680_v47, 1  ;;  %v815_v32 = vsel %vm779_vm2, %v6334_v25, 0.0  ;;  %vm880_vm5 = vcmp.eq.s32.totalorder %v680_v47, 16 }
  0x9f   : > { %v816_v49 = vsel %vm780_vm3, %v6334_v25, 0.0  ;;  %v847_v55 = vadd.f32 %v815_v32, %v747_v42  ;;  %v1057_v56 = vpack.c.bf16 %v1030_v31, %v1029_v40  ;;  %v915_v58 = vsel %vm879_vm4, %v6361_v50, 0.0 }
  0xa0   : > { %v848_v13 = vadd.f32 %v816_v49, %v748_v51  ;;  %v916_v12 = vsel %vm880_vm5, %v6361_v50, 0.0  ;;  %vm979_vm8 = vcmp.eq.s32.totalorder %v679_v15, 17  ;;  %vm980_vm10 = vcmp.eq.s32.totalorder %v680_v47, 17 }
  0xa1   : > { %v947_v18 = vadd.f32 %v915_v58, %v847_v55  ;;  %v663_v16 = vsub.s32 %v6259_v57, %v6289_v2  ;;  %5469 = vmatpush3.bf16.msra.mxu1 %v1057_v56  ;;  %v1015_v53 = vsel %vm979_vm8, %v6373_v33, 0.0  ;;  %v1016_v5 = vsel %vm980_vm10, %v6373_v33, 0.0 }
  0xa2   : > { %v948_v19 = vadd.f32 %v916_v12, %v848_v13  ;;  %v664_v20 = vsub.s32 %v6263_v59, %v6289_v2  ;;  %v681_v32 = vsub.s32 %v6270_v61, %v6289_v2  ;;  %v682_v58 = vsub.s32 %v6273_v62, %v6289_v2 }
  0xa3   : > { %v1047_v34 = vadd.f32 %v1015_v53, %v947_v18  ;;  %vm695_vm12 = vcmp.eq.s32.totalorder %v663_v16, 0  ;;  %vm763_vm13 = vcmp.eq.s32.totalorder %v663_v16, 1  ;;  %vm863_vm9 = vcmp.eq.s32.totalorder %v663_v16, 16 }
  0xa4   : > { %v1048_v26 = vadd.f32 %v1016_v5, %v948_v19  ;;  %vm696_vm0 = vcmp.eq.s32.totalorder %v664_v20, 0  ;;  %v731_v15 = vsel %vm695_vm12, %v6305_v6, 0.0  ;;  %vm764_vm6 = vcmp.eq.s32.totalorder %v664_v20, 1 }
  0xa5   : > { %v732_v47 = vsel %vm696_vm0, %v6305_v6, 0.0  ;;  %v799_v39 = vsel %vm763_vm13, %v6334_v25, 0.0  ;;  %v800_v43 = vsel %vm764_vm6, %v6334_v25, 0.0  ;;  %vm864_vm14 = vcmp.eq.s32.totalorder %v664_v20, 16 }
  0xa6   : > { %v1066_v21 = vpack.c.bf16 %v1048_v26, %v1047_v34  ;;  %v831_v40 = vadd.f32 %v799_v39, %v731_v15  ;;  %v832_v42 = vadd.f32 %v800_v43, %v732_v47  ;;  %v899_v31 = vsel %vm863_vm9, %v6361_v50, 0.0 }
  0xa7   : > { %v900_v51 = vsel %vm864_vm14, %v6361_v50, 0.0  ;;  %vm963_vm15 = vcmp.eq.s32.totalorder %v663_v16, 17  ;;  %vm964_vm7 = vcmp.eq.s32.totalorder %v664_v20, 17  ;;  %vm713_vm1 = vcmp.eq.s32.totalorder %v681_v32, 0 }
  0xa8   : > { %5470 = vmatprep.subr.bf16.mxu1 %v1066_v21  ;;  %v931_v49 = vadd.f32 %v899_v31, %v831_v40  ;;  %v932_v55 = vadd.f32 %v900_v51, %v832_v42  ;;  %v999_v56 = vsel %vm963_vm15, %v6373_v33, 0.0  ;;  %v1000_v13 = vsel %vm964_vm7, %v6373_v33, 0.0 }
  0xa9   : > { %vm781_vm11 = vcmp.eq.s32.totalorder %v681_v32, 1  ;;  %vm881_vm2 = vcmp.eq.s32.totalorder %v681_v32, 16  ;;  %v749_v16 = vsel %vm713_vm1, %v6305_v6, 0.0  ;;  %vm714_vm3 = vcmp.eq.s32.totalorder %v682_v58, 0 }
  0xaa   : > { %v1031_v12 = vadd.f32 %v999_v56, %v931_v49  ;;  %v1032_v18 = vadd.f32 %v1000_v13, %v932_v55  ;;  %v817_v19 = vsel %vm781_vm11, %v6334_v25, 0.0  ;;  %vm782_vm4 = vcmp.eq.s32.totalorder %v682_v58, 1 }
  0xab   : > { %v849_v53 = vadd.f32 %v817_v19, %v749_v16  ;;  %vm882_vm5 = vcmp.eq.s32.totalorder %v682_v58, 16  ;;  %v750_v20 = vsel %vm714_vm3, %v6305_v6, 0.0  ;;  %v818_v34 = vsel %vm782_vm4, %v6334_v25, 0.0 }
  0xac   : > { %v1058_v5 = vpack.c.bf16 %v1032_v18, %v1031_v12  ;;  %v917_v26 = vsel %vm881_vm2, %v6361_v50, 0.0  ;;  %v850_v15 = vadd.f32 %v818_v34, %v750_v20  ;;  %v918_v47 = vsel %vm882_vm5, %v6361_v50, 0.0 }
  0xad   : > { %v949_v39 = vadd.f32 %v917_v26, %v849_v53  ;;  %vm981_vm8 = vcmp.eq.s32.totalorder %v681_v32, 17  ;;  %vm982_vm10 = vcmp.eq.s32.totalorder %v682_v58, 17  ;;  %v665_v21 = vsub.s32 %v6276_v63, %v6289_v2 }
  0xae   : > { %5471 = vmatpush3.bf16.msra.mxu1 %v1058_v5  ;;  %v1017_v43 = vsel %vm981_vm8, %v6373_v33, 0.0  ;;  %v666_v40 = vsub.s32 %v6284_v1, %v6289_v2  ;;  %v950_v42 = vadd.f32 %v918_v47, %v850_v15  ;;  %v1018_v31 = vsel %vm982_vm10, %v6373_v33, 0.0 }
  0xaf   : > { %v1049_v51 = vadd.f32 %v1017_v43, %v949_v39  ;;  %v683_v49 = vsub.s32 %v6292_v3, %v6289_v2  ;;  %vm697_vm12 = vcmp.eq.s32.totalorder %v665_v21, 0  ;;  %vm765_vm9 = vcmp.eq.s32.totalorder %v665_v21, 1 }
  0xb0   : > { %vm698_vm13 = vcmp.eq.s32.totalorder %v666_v40, 0  ;;  %vm766_vm0 = vcmp.eq.s32.totalorder %v666_v40, 1  ;;  %v1050_v32 = vadd.f32 %v1018_v31, %v950_v42  ;;  %v733_v55 = vsel %vm697_vm12, %v6305_v6, 0.0 }
  0xb1   : > { %v734_v56 = vsel %vm698_vm13, %v6305_v6, 0.0  ;;  %v801_v13 = vsel %vm765_vm9, %v6334_v25, 0.0  ;;  %v802_v58 = vsel %vm766_vm0, %v6334_v25, 0.0  ;;  %vm865_vm6 = vcmp.eq.s32.totalorder %v665_v21, 16 }
  0xb2   : > { %v833_v12 = vadd.f32 %v801_v13, %v733_v55  ;;  %vm866_vm14 = vcmp.eq.s32.totalorder %v666_v40, 16  ;;  %v1067_v18 = vpack.c.bf16 %v1050_v32, %v1049_v51  ;;  %v834_v16 = vadd.f32 %v802_v58, %v734_v56 }
  0xb3   : > { %v901_v19 = vsel %vm865_vm6, %v6361_v50, 0.0  ;;  %v902_v53 = vsel %vm866_vm14, %v6361_v50, 0.0  ;;  %vm965_vm15 = vcmp.eq.s32.totalorder %v665_v21, 17  ;;  %vm966_vm7 = vcmp.eq.s32.totalorder %v666_v40, 17 }
  0xb4   : > { %v933_v5 = vadd.f32 %v901_v19, %v833_v12  ;;  %v684_v20 = vsub.s32 %v6295_v4, %v6289_v2  ;;  %5472 = vmatprep.subr.bf16.mxu1 %v1067_v18  ;;  %v934_v34 = vadd.f32 %v902_v53, %v834_v16  ;;  %v1001_v26 = vsel %vm965_vm15, %v6373_v33, 0.0 }
  0xb5   : > { %v1002_v15 = vsel %vm966_vm7, %v6373_v33, 0.0  ;;  %vm715_vm1 = vcmp.eq.s32.totalorder %v683_v49, 0  ;;  %vm783_vm2 = vcmp.eq.s32.totalorder %v683_v49, 1  ;;  %vm883_vm4 = vcmp.eq.s32.totalorder %v683_v49, 16 }
  0xb6   : > { %v1033_v47 = vadd.f32 %v1001_v26, %v933_v5  ;;  %vm716_vm11 = vcmp.eq.s32.totalorder %v684_v20, 0  ;;  %v751_v39 = vsel %vm715_vm1, %v6305_v6, 0.0  ;;  %v1034_v43 = vadd.f32 %v1002_v15, %v934_v34 }
  0xb7   : > { %v752_v42 = vsel %vm716_vm11, %v6305_v6, 0.0  ;;  %vm784_vm3 = vcmp.eq.s32.totalorder %v684_v20, 1  ;;  %v819_v21 = vsel %vm783_vm2, %v6334_v25, 0.0  ;;  %vm884_vm5 = vcmp.eq.s32.totalorder %v684_v20, 16 }
  0xb8   : > { %v820_v40 = vsel %vm784_vm3, %v6334_v25, 0.0  ;;  %v851_v31 = vadd.f32 %v819_v21, %v751_v39  ;;  %v1059_v51 = vpack.c.bf16 %v1034_v43, %v1033_v47  ;;  %v919_v55 = vsel %vm883_vm4, %v6361_v50, 0.0 }
  0xb9   : > { %v852_v32 = vadd.f32 %v820_v40, %v752_v42  ;;  %v920_v56 = vsel %vm884_vm5, %v6361_v50, 0.0  ;;  %vm983_vm8 = vcmp.eq.s32.totalorder %v683_v49, 17  ;;  %vm984_vm10 = vcmp.eq.s32.totalorder %v684_v20, 17 }
  0xba   : > { %v951_v13 = vadd.f32 %v919_v55, %v851_v31  ;;  %v667_v58 = vsub.s32 %v6308_v7, %v6289_v2  ;;  %5473 = vmatpush3.bf16.msra.mxu1 %v1059_v51  ;;  %v1019_v18 = vsel %vm983_vm8, %v6373_v33, 0.0  ;;  %v1020_v16 = vsel %vm984_vm10, %v6373_v33, 0.0 }
  0xbb   : > { %v952_v12 = vadd.f32 %v920_v56, %v852_v32  ;;  %v668_v19 = vsub.s32 %v6311_v8, %v6289_v2  ;;  %v6558_v42 = vrot.slane %v6267_v60, %v6314_v10  ;;  %v6572_v32 = vrot.slane %v6316_v11, %v6314_v10 }
  0xbc   : > { %v1051_v53 = vadd.f32 %v1019_v18, %v951_v13  ;;  %vm699_vm12 = vcmp.eq.s32.totalorder %v667_v58, 0  ;;  %vm767_vm13 = vcmp.eq.s32.totalorder %v667_v58, 1  ;;  %vm867_vm9 = vcmp.eq.s32.totalorder %v667_v58, 16 }
  0xbd   : > { %v1052_v5 = vadd.f32 %v1020_v16, %v952_v12  ;;  %vm700_vm0 = vcmp.eq.s32.totalorder %v668_v19, 0  ;;  %v735_v49 = vsel %vm699_vm12, %v6305_v6, 0.0  ;;  %vm768_vm6 = vcmp.eq.s32.totalorder %v668_v19, 1 }
  0xbe   : > { %v736_v20 = vsel %vm700_vm0, %v6305_v6, 0.0  ;;  %v803_v34 = vsel %vm767_vm13, %v6334_v25, 0.0  ;;  %v804_v26 = vsel %vm768_vm6, %v6334_v25, 0.0  ;;  %vm868_vm14 = vcmp.eq.s32.totalorder %v668_v19, 16 }
  0xbf   : > { %v1068_v15 = vpack.c.bf16 %v1052_v5, %v1051_v53  ;;  %v835_v47 = vadd.f32 %v803_v34, %v735_v49  ;;  %v836_v39 = vadd.f32 %v804_v26, %v736_v20  ;;  %v903_v2 = vsel %vm867_vm9, %v6361_v50, 0.0 }
  0xc0   : > { %v904_v43 = vsel %vm868_vm14, %v6361_v50, 0.0  ;;  %vm967_vm15 = vcmp.eq.s32.totalorder %v667_v58, 17  ;;  %vm968_vm7 = vcmp.eq.s32.totalorder %v668_v19, 17  ;;  %v1142_v31 = vsub.s32 %v6169_v14, %v6558_v42 }
  0xc1   : > { %5474 = vmatprep.subr.bf16.mxu1 %v1068_v15  ;;  %v935_v6 = vadd.f32 %v903_v2, %v835_v47  ;;  %v936_v21 = vadd.f32 %v904_v43, %v836_v39  ;;  %v1003_v40 = vsel %vm967_vm15, %v6373_v33, 0.0  ;;  %v1004_v25 = vsel %vm968_vm7, %v6373_v33, 0.0  ;;  %v9111_v39 = vld [vmem:[#allocation18_spill] sm:$0xff]  ;;  %v9112_v43 = vld [vmem:[#allocation19_spill] sm:$0xff] }
  0xc2   : > { %v1143_v51 = vsub.s32 %v6172_v17, %v6558_v42  ;;  %v6568_v50 = vrot.slane %v6278_v0, %v6314_v10  ;;  %v6576_v13 = vrot.slane %v6353_v41, %v6314_v10  ;;  %v6580_v33 = vrot.slane %v6366_v54, %v6314_v10 }
  0xc3   : > { %v1035_v55 = vadd.f32 %v1003_v40, %v935_v6  ;;  %v1036_v56 = vadd.f32 %v1004_v25, %v936_v21  ;;  %vm1174_vm1 = vcmp.eq.s32.totalorder %v1142_v31, 0  ;;  %vm1242_vm2 = vcmp.eq.s32.totalorder %v1142_v31, 1  ;;  %v9113_v21 = vld [vmem:[#allocation34_spill] sm:$0xff] }
  0xc4   : > { %vm1175_vm11 = vcmp.eq.s32.totalorder %v1143_v51, 0  ;;  %vm1243_vm3 = vcmp.eq.s32.totalorder %v1143_v51, 1  ;;  %v1210_v12 = vsel %vm1174_vm1, %v6568_v50, 0.0  ;;  %v1278_v16 = vsel %vm1242_vm2, %v6572_v32, 0.0 }
  0xc5   : > { %v1060_v58 = vpack.c.bf16 %v1036_v56, %v1035_v55  ;;  %v1211_v18 = vsel %vm1175_vm11, %v6568_v50, 0.0  ;;  %v1279_v19 = vsel %vm1243_vm3, %v6572_v32, 0.0  ;;  %v1310_v53 = vadd.f32 %v1278_v16, %v1210_v12 }
  0xc6   : > { %vm1342_vm4 = vcmp.eq.s32.totalorder %v1142_v31, 16  ;;  %vm1343_vm5 = vcmp.eq.s32.totalorder %v1143_v51, 16  ;;  %v1311_v5 = vadd.f32 %v1279_v19, %v1211_v18  ;;  %vm1442_vm8 = vcmp.eq.s32.totalorder %v1142_v31, 17 }
  0xc7   : > { %5475 = vmatpush3.bf16.msra.mxu1 %v1060_v58  ;;  %v1378_v10 = vsel %vm1342_vm4, %v6576_v13, 0.0  ;;  %v1379_v49 = vsel %vm1343_vm5, %v6576_v13, 0.0  ;;  %vm1443_vm10 = vcmp.eq.s32.totalorder %v1143_v51, 17  ;;  %v1478_v34 = vsel %vm1442_vm8, %v6580_v33, 0.0  ;;  %v9114_v51 = vld [vmem:[#allocation41_spill] sm:$0xff] }
  0xc8   : > { %v1410_v20 = vadd.f32 %v1378_v10, %v1310_v53  ;;  %v1126_v26 = vsub.s32 %v6154_v9, %v6558_v42  ;;  %v1411_v15 = vadd.f32 %v1379_v49, %v1311_v5  ;;  %v1479_v47 = vsel %vm1443_vm10, %v6580_v33, 0.0  ;;  %v9115_v5 = vld [vmem:[#allocation20_spill] sm:$0xff] }
  0xc9   : > { %v1127_v2 = vsub.s32 %v9111_v39, %v6558_v42  ;;  %v1144_v6 = vsub.s32 %v9112_v43, %v6558_v42  ;;  %v1145_v10 = vsub.s32 %v9115_v5, %v6558_v42 }
  0xca   : > { %1113 = vmatmul.mubr.bf16.vlgmr.msra.gmra.mrb[0].mxu1 %v9113_v21  ;;  %v1510_v40 = vadd.f32 %v1478_v34, %v1410_v20  ;;  %vm1158_vm12 = vcmp.eq.s32.totalorder %v1126_v26, 0  ;;  %vm1226_vm13 = vcmp.eq.s32.totalorder %v1126_v26, 1  ;;  %vm1326_vm9 = vcmp.eq.s32.totalorder %v1126_v26, 16 }
  0xcb   : > { %v1511_v25 = vadd.f32 %v1479_v47, %v1411_v15  ;;  %vm1159_vm0 = vcmp.eq.s32.totalorder %v1127_v2, 0  ;;  %v1194_v31 = vsel %vm1158_vm12, %v6568_v50, 0.0  ;;  %vm1227_vm6 = vcmp.eq.s32.totalorder %v1127_v2, 1  ;;  %1574 = vmatprep.mubr.bf16.mxu1 %v9114_v51 }
  0xcc   : > { %v1195_v55 = vsel %vm1159_vm0, %v6568_v50, 0.0  ;;  %v1262_v56 = vsel %vm1226_vm13, %v6572_v32, 0.0  ;;  %v1263_v58 = vsel %vm1227_vm6, %v6572_v32, 0.0  ;;  %vm1327_vm14 = vcmp.eq.s32.totalorder %v1127_v2, 16 }
  0xcd   : > { %v1534_v12 = vpack.c.bf16 %v1511_v25, %v1510_v40  ;;  %v1294_v18 = vadd.f32 %v1262_v56, %v1194_v31  ;;  %v1295_v16 = vadd.f32 %v1263_v58, %v1195_v55  ;;  %v1362_v19 = vsel %vm1326_vm9, %v6576_v13, 0.0 }
  0xce   : > { %v1363_v53 = vsel %vm1327_vm14, %v6576_v13, 0.0  ;;  %vm1426_vm15 = vcmp.eq.s32.totalorder %v1126_v26, 17  ;;  %vm1427_vm7 = vcmp.eq.s32.totalorder %v1127_v2, 17  ;;  %vm1176_vm1 = vcmp.eq.s32.totalorder %v1144_v6, 0 }
  0xcf   : > { %5482 = vmatprep.subr.bf16.mxu1 %v1534_v12  ;;  %v1394_v49 = vadd.f32 %v1362_v19, %v1294_v18  ;;  %v1395_v20 = vadd.f32 %v1363_v53, %v1295_v16  ;;  %v1462_v34 = vsel %vm1426_vm15, %v6580_v33, 0.0  ;;  %v1463_v15 = vsel %vm1427_vm7, %v6580_v33, 0.0 }
  0xd0   : > { %vm1177_vm11 = vcmp.eq.s32.totalorder %v1145_v10, 0  ;;  %vm1244_vm2 = vcmp.eq.s32.totalorder %v1144_v6, 1  ;;  %vm1245_vm3 = vcmp.eq.s32.totalorder %v1145_v10, 1  ;;  %v1212_v40 = vsel %vm1176_vm1, %v6568_v50, 0.0 }
  0xd1   : > { %v1494_v47 = vadd.f32 %v1462_v34, %v1394_v49  ;;  %v1495_v21 = vadd.f32 %v1463_v15, %v1395_v20  ;;  %v1213_v26 = vsel %vm1177_vm11, %v6568_v50, 0.0  ;;  %v1280_v2 = vsel %vm1244_vm2, %v6572_v32, 0.0 }
  0xd2   : > { %v1281_v25 = vsel %vm1245_vm3, %v6572_v32, 0.0  ;;  %vm1344_vm4 = vcmp.eq.s32.totalorder %v1144_v6, 16  ;;  %vm1345_vm5 = vcmp.eq.s32.totalorder %v1145_v10, 16  ;;  %v1312_v55 = vadd.f32 %v1280_v2, %v1212_v40 }
  0xd3   : > { %v1526_v31 = vpack.c.bf16 %v1495_v21, %v1494_v47  ;;  %v1313_v56 = vadd.f32 %v1281_v25, %v1213_v26  ;;  %v1380_v58 = vsel %vm1344_vm4, %v6576_v13, 0.0  ;;  %v1381_v12 = vsel %vm1345_vm5, %v6576_v13, 0.0 }
  0xd4   : > { %vm1444_vm8 = vcmp.eq.s32.totalorder %v1144_v6, 17  ;;  %vm1445_vm10 = vcmp.eq.s32.totalorder %v1145_v10, 17  ;;  %v1128_v18 = vsub.s32 %v6188_v22, %v6558_v42  ;;  %v1412_v16 = vadd.f32 %v1380_v58, %v1312_v55 }
  0xd5   : > { %5483 = vmatpush3.bf16.msra.mxu1 %v1526_v31  ;;  %v1413_v19 = vadd.f32 %v1381_v12, %v1313_v56  ;;  %v1480_v53 = vsel %vm1444_vm8, %v6580_v33, 0.0  ;;  %v1481_v49 = vsel %vm1445_vm10, %v6580_v33, 0.0  ;;  %v1129_v20 = vsub.s32 %v6191_v23, %v6558_v42 }
  0xd6   : > { %vm1160_vm12 = vcmp.eq.s32.totalorder %v1128_v18, 0  ;;  %vm1228_vm13 = vcmp.eq.s32.totalorder %v1128_v18, 1  ;;  %vm1328_vm9 = vcmp.eq.s32.totalorder %v1128_v18, 16  ;;  %v1512_v34 = vadd.f32 %v1480_v53, %v1412_v16 }
  0xd7   : > { %v1513_v15 = vadd.f32 %v1481_v49, %v1413_v19  ;;  %v1196_v6 = vsel %vm1160_vm12, %v6568_v50, 0.0  ;;  %v1264_v10 = vsel %vm1228_vm13, %v6572_v32, 0.0  ;;  %vm1161_vm0 = vcmp.eq.s32.totalorder %v1129_v20, 0 }
  0xd8   : > { %vm1229_vm6 = vcmp.eq.s32.totalorder %v1129_v20, 1  ;;  %v1296_v47 = vadd.f32 %v1264_v10, %v1196_v6  ;;  %vm1329_vm14 = vcmp.eq.s32.totalorder %v1129_v20, 16  ;;  %v1197_v40 = vsel %vm1161_vm0, %v6568_v50, 0.0 }
  0xd9   : > { %v1535_v21 = vpack.c.bf16 %v1513_v15, %v1512_v34  ;;  %v1265_v26 = vsel %vm1229_vm6, %v6572_v32, 0.0  ;;  %v1364_v2 = vsel %vm1328_vm9, %v6576_v13, 0.0  ;;  %v1365_v31 = vsel %vm1329_vm14, %v6576_v13, 0.0 }
  0xda   : > { %v1297_v25 = vadd.f32 %v1265_v26, %v1197_v40  ;;  %v1396_v55 = vadd.f32 %v1364_v2, %v1296_v47  ;;  %vm1428_vm15 = vcmp.eq.s32.totalorder %v1128_v18, 17  ;;  %vm1429_vm7 = vcmp.eq.s32.totalorder %v1129_v20, 17 }
  0xdb   : > { %5484 = vmatprep.subr.bf16.mxu1 %v1535_v21  ;;  %v1464_v56 = vsel %vm1428_vm15, %v6580_v33, 0.0  ;;  %v1146_v58 = vsub.s32 %v6194_v24, %v6558_v42  ;;  %v1147_v12 = vsub.s32 %v6198_v27, %v6558_v42  ;;  %v1465_v19 = vsel %vm1429_vm7, %v6580_v33, 0.0 }
  0xdc   : > { %v1397_v16 = vadd.f32 %v1365_v31, %v1297_v25  ;;  %v1496_v53 = vadd.f32 %v1464_v56, %v1396_v55  ;;  %v1130_v49 = vsub.s32 %v6201_v28, %v6558_v42  ;;  %v1131_v25 = vsub.s32 %v6204_v29, %v6558_v42 }
  0xdd   : > { %vm1178_vm1 = vcmp.eq.s32.totalorder %v1146_v58, 0  ;;  %vm1179_vm11 = vcmp.eq.s32.totalorder %v1147_v12, 0  ;;  %vm1246_vm2 = vcmp.eq.s32.totalorder %v1146_v58, 1  ;;  %vm1247_vm3 = vcmp.eq.s32.totalorder %v1147_v12, 1 }
  0xde   : > { %v1497_v18 = vadd.f32 %v1465_v19, %v1397_v16  ;;  %v1214_v20 = vsel %vm1178_vm1, %v6568_v50, 0.0  ;;  %v1215_v34 = vsel %vm1179_vm11, %v6568_v50, 0.0  ;;  %v1282_v15 = vsel %vm1246_vm2, %v6572_v32, 0.0 }
  0xdf   : > { %v1283_v6 = vsel %vm1247_vm3, %v6572_v32, 0.0  ;;  %v1314_v10 = vadd.f32 %v1282_v15, %v1214_v20  ;;  %vm1346_vm4 = vcmp.eq.s32.totalorder %v1146_v58, 16  ;;  %vm1347_vm5 = vcmp.eq.s32.totalorder %v1147_v12, 16 }
  0xe0   : > { %v1527_v47 = vpack.c.bf16 %v1497_v18, %v1496_v53  ;;  %v1315_v21 = vadd.f32 %v1283_v6, %v1215_v34  ;;  %v1382_v40 = vsel %vm1346_vm4, %v6576_v13, 0.0  ;;  %v1383_v26 = vsel %vm1347_vm5, %v6576_v13, 0.0 }
  0xe1   : > { %v1414_v2 = vadd.f32 %v1382_v40, %v1314_v10  ;;  %vm1446_vm8 = vcmp.eq.s32.totalorder %v1146_v58, 17  ;;  %vm1447_vm10 = vcmp.eq.s32.totalorder %v1147_v12, 17  ;;  %vm1162_vm12 = vcmp.eq.s32.totalorder %v1130_v49, 0 }
  0xe2   : > { %5485 = vmatpush3.bf16.msra.mxu1 %v1527_v47  ;;  %v1415_v31 = vadd.f32 %v1383_v26, %v1315_v21  ;;  %v1482_v55 = vsel %vm1446_vm8, %v6580_v33, 0.0  ;;  %v1483_v56 = vsel %vm1447_vm10, %v6580_v33, 0.0  ;;  %vm1163_vm13 = vcmp.eq.s32.totalorder %v1131_v25, 0 }
  0xe3   : > { %v1514_v16 = vadd.f32 %v1482_v55, %v1414_v2  ;;  %v1198_v19 = vsel %vm1162_vm12, %v6568_v50, 0.0  ;;  %vm1230_vm9 = vcmp.eq.s32.totalorder %v1130_v49, 1  ;;  %v1199_v18 = vsel %vm1163_vm13, %v6568_v50, 0.0 }
  0xe4   : > { %v1515_v53 = vadd.f32 %v1483_v56, %v1415_v31  ;;  %vm1231_vm0 = vcmp.eq.s32.totalorder %v1131_v25, 1  ;;  %v1266_v58 = vsel %vm1230_vm9, %v6572_v32, 0.0  ;;  %vm1330_vm6 = vcmp.eq.s32.totalorder %v1130_v49, 16 }
  0xe5   : > { %v1267_v12 = vsel %vm1231_vm0, %v6572_v32, 0.0  ;;  %v1298_v20 = vadd.f32 %v1266_v58, %v1198_v19  ;;  %vm1331_vm14 = vcmp.eq.s32.totalorder %v1131_v25, 16  ;;  %v1366_v6 = vsel %vm1330_vm6, %v6576_v13, 0.0 }
  0xe6   : > { %v1536_v34 = vpack.c.bf16 %v1515_v53, %v1514_v16  ;;  %v1299_v15 = vadd.f32 %v1267_v12, %v1199_v18  ;;  %v1367_v10 = vsel %vm1331_vm14, %v6576_v13, 0.0  ;;  %vm1430_vm15 = vcmp.eq.s32.totalorder %v1130_v49, 17 }
  0xe7   : > { %v1398_v47 = vadd.f32 %v1366_v6, %v1298_v20  ;;  %vm1431_vm7 = vcmp.eq.s32.totalorder %v1131_v25, 17  ;;  %v1148_v21 = vsub.s32 %v6207_v30, %v6558_v42  ;;  %v1466_v26 = vsel %vm1430_vm15, %v6580_v33, 0.0 }
  0xe8   : > { %5486 = vmatprep.subr.bf16.mxu1 %v1536_v34  ;;  %v1399_v40 = vadd.f32 %v1367_v10, %v1299_v15  ;;  %v1467_v2 = vsel %vm1431_vm7, %v6580_v33, 0.0  ;;  %v1149_v31 = vsub.s32 %v6210_v35, %v6558_v42  ;;  %v1132_v34 = vsub.s32 %v6213_v36, %v6558_v42 }
  0xe9   : > { %v1498_v55 = vadd.f32 %v1466_v26, %v1398_v47  ;;  %vm1180_vm1 = vcmp.eq.s32.totalorder %v1148_v21, 0  ;;  %vm1248_vm11 = vcmp.eq.s32.totalorder %v1148_v21, 1  ;;  %vm1348_vm2 = vcmp.eq.s32.totalorder %v1148_v21, 16 }
  0xea   : > { %v1499_v56 = vadd.f32 %v1467_v2, %v1399_v40  ;;  %vm1181_vm3 = vcmp.eq.s32.totalorder %v1149_v31, 0  ;;  %v1216_v49 = vsel %vm1180_vm1, %v6568_v50, 0.0  ;;  %vm1249_vm4 = vcmp.eq.s32.totalorder %v1149_v31, 1 }
  0xeb   : > { %v1217_v25 = vsel %vm1181_vm3, %v6568_v50, 0.0  ;;  %v1284_v16 = vsel %vm1248_vm11, %v6572_v32, 0.0  ;;  %v1285_v19 = vsel %vm1249_vm4, %v6572_v32, 0.0  ;;  %vm1349_vm5 = vcmp.eq.s32.totalorder %v1149_v31, 16 }
  0xec   : > { %v1528_v53 = vpack.c.bf16 %v1499_v56, %v1498_v55  ;;  %v1316_v18 = vadd.f32 %v1284_v16, %v1216_v49  ;;  %v1317_v58 = vadd.f32 %v1285_v19, %v1217_v25  ;;  %v1384_v12 = vsel %vm1348_vm2, %v6576_v13, 0.0 }
  0xed   : > { %v1385_v20 = vsel %vm1349_vm5, %v6576_v13, 0.0  ;;  %vm1448_vm8 = vcmp.eq.s32.totalorder %v1148_v21, 17  ;;  %vm1449_vm10 = vcmp.eq.s32.totalorder %v1149_v31, 17  ;;  %v1133_v40 = vsub.s32 %v6216_v37, %v6558_v42 }
  0xee   : > { %5487 = vmatpush3.bf16.msra.mxu1 %v1528_v53  ;;  %v1416_v15 = vadd.f32 %v1384_v12, %v1316_v18  ;;  %v1417_v6 = vadd.f32 %v1385_v20, %v1317_v58  ;;  %v1484_v10 = vsel %vm1448_vm8, %v6580_v33, 0.0  ;;  %v1485_v47 = vsel %vm1449_vm10, %v6580_v33, 0.0 }
  0xef   : > { %vm1164_vm12 = vcmp.eq.s32.totalorder %v1132_v34, 0  ;;  %vm1232_vm13 = vcmp.eq.s32.totalorder %v1132_v34, 1  ;;  %vm1332_vm9 = vcmp.eq.s32.totalorder %v1132_v34, 16  ;;  %vm1165_vm0 = vcmp.eq.s32.totalorder %v1133_v40, 0 }
  0xf0   : > { %v1516_v26 = vadd.f32 %v1484_v10, %v1416_v15  ;;  %v1517_v2 = vadd.f32 %v1485_v47, %v1417_v6  ;;  %v1200_v21 = vsel %vm1164_vm12, %v6568_v50, 0.0  ;;  %v1268_v31 = vsel %vm1232_vm13, %v6572_v32, 0.0 }
  0xf1   : > { %vm1233_vm6 = vcmp.eq.s32.totalorder %v1133_v40, 1  ;;  %v1300_v55 = vadd.f32 %v1268_v31, %v1200_v21  ;;  %vm1333_vm14 = vcmp.eq.s32.totalorder %v1133_v40, 16  ;;  %v1201_v49 = vsel %vm1165_vm0, %v6568_v50, 0.0 }
  0xf2   : > { %v1537_v56 = vpack.c.bf16 %v1517_v2, %v1516_v26  ;;  %v1269_v25 = vsel %vm1233_vm6, %v6572_v32, 0.0  ;;  %v1368_v16 = vsel %vm1332_vm9, %v6576_v13, 0.0  ;;  %v1369_v53 = vsel %vm1333_vm14, %v6576_v13, 0.0 }
  0xf3   : > { %v1301_v19 = vadd.f32 %v1269_v25, %v1201_v49  ;;  %v1400_v18 = vadd.f32 %v1368_v16, %v1300_v55  ;;  %vm1432_vm15 = vcmp.eq.s32.totalorder %v1132_v34, 17  ;;  %vm1433_vm7 = vcmp.eq.s32.totalorder %v1133_v40, 17 }
  0xf4   : > { %5488 = vmatprep.subr.bf16.mxu1 %v1537_v56  ;;  %v1468_v58 = vsel %vm1432_vm15, %v6580_v33, 0.0  ;;  %v1150_v12 = vsub.s32 %v6219_v38, %v6558_v42  ;;  %v1151_v20 = vsub.s32 %v6229_v44, %v6558_v42  ;;  %v1469_v6 = vsel %vm1433_vm7, %v6580_v33, 0.0 }
  0xf5   : > { %v1401_v15 = vadd.f32 %v1369_v53, %v1301_v19  ;;  %v1500_v10 = vadd.f32 %v1468_v58, %v1400_v18  ;;  %v1134_v47 = vsub.s32 %v6232_v45, %v6558_v42  ;;  %v1135_v19 = vsub.s32 %v6235_v46, %v6558_v42 }
  0xf6   : > { %vm1182_vm1 = vcmp.eq.s32.totalorder %v1150_v12, 0  ;;  %vm1183_vm11 = vcmp.eq.s32.totalorder %v1151_v20, 0  ;;  %vm1250_vm2 = vcmp.eq.s32.totalorder %v1150_v12, 1  ;;  %vm1251_vm3 = vcmp.eq.s32.totalorder %v1151_v20, 1 }
  0xf7   : > { %v1501_v34 = vadd.f32 %v1469_v6, %v1401_v15  ;;  %v1218_v40 = vsel %vm1182_vm1, %v6568_v50, 0.0  ;;  %v1219_v26 = vsel %vm1183_vm11, %v6568_v50, 0.0  ;;  %v1286_v2 = vsel %vm1250_vm2, %v6572_v32, 0.0 }
  0xf8   : > { %v1287_v21 = vsel %vm1251_vm3, %v6572_v32, 0.0  ;;  %v1318_v31 = vadd.f32 %v1286_v2, %v1218_v40  ;;  %vm1350_vm4 = vcmp.eq.s32.totalorder %v1150_v12, 16  ;;  %vm1351_vm5 = vcmp.eq.s32.totalorder %v1151_v20, 16 }
  0xf9   : > { %v1529_v55 = vpack.c.bf16 %v1501_v34, %v1500_v10  ;;  %v1319_v56 = vadd.f32 %v1287_v21, %v1219_v26  ;;  %v1386_v49 = vsel %vm1350_vm4, %v6576_v13, 0.0  ;;  %v1387_v25 = vsel %vm1351_vm5, %v6576_v13, 0.0 }
  0xfa   : > { %v1418_v16 = vadd.f32 %v1386_v49, %v1318_v31  ;;  %vm1450_vm8 = vcmp.eq.s32.totalorder %v1150_v12, 17  ;;  %vm1451_vm10 = vcmp.eq.s32.totalorder %v1151_v20, 17  ;;  %vm1166_vm12 = vcmp.eq.s32.totalorder %v1134_v47, 0 }
  0xfb   : > { %5489 = vmatpush3.bf16.msra.mxu1 %v1529_v55  ;;  %v1419_v53 = vadd.f32 %v1387_v25, %v1319_v56  ;;  %v1486_v18 = vsel %vm1450_vm8, %v6580_v33, 0.0  ;;  %v1487_v58 = vsel %vm1451_vm10, %v6580_v33, 0.0  ;;  %vm1167_vm13 = vcmp.eq.s32.totalorder %v1135_v19, 0 }
  0xfc   : > { %v1518_v15 = vadd.f32 %v1486_v18, %v1418_v16  ;;  %v1202_v6 = vsel %vm1166_vm12, %v6568_v50, 0.0  ;;  %vm1234_vm9 = vcmp.eq.s32.totalorder %v1134_v47, 1  ;;  %v1203_v34 = vsel %vm1167_vm13, %v6568_v50, 0.0 }
  0xfd   : > { %v1519_v10 = vadd.f32 %v1487_v58, %v1419_v53  ;;  %vm1235_vm0 = vcmp.eq.s32.totalorder %v1135_v19, 1  ;;  %v1270_v12 = vsel %vm1234_vm9, %v6572_v32, 0.0  ;;  %vm1334_vm6 = vcmp.eq.s32.totalorder %v1134_v47, 16 }
  0xfe   : > { %v1271_v20 = vsel %vm1235_vm0, %v6572_v32, 0.0  ;;  %v1302_v40 = vadd.f32 %v1270_v12, %v1202_v6  ;;  %vm1335_vm14 = vcmp.eq.s32.totalorder %v1135_v19, 16  ;;  %v1370_v21 = vsel %vm1334_vm6, %v6576_v13, 0.0 }
  0xff   : > { %v1538_v26 = vpack.c.bf16 %v1519_v10, %v1518_v15  ;;  %v1303_v2 = vadd.f32 %v1271_v20, %v1203_v34  ;;  %v1371_v31 = vsel %vm1335_vm14, %v6576_v13, 0.0  ;;  %vm1434_vm15 = vcmp.eq.s32.totalorder %v1134_v47, 17 }
 0x100   : > { %v1402_v55 = vadd.f32 %v1370_v21, %v1302_v40  ;;  %vm1435_vm7 = vcmp.eq.s32.totalorder %v1135_v19, 17  ;;  %v1152_v56 = vsub.s32 %v6243_v48, %v6558_v42  ;;  %v1470_v25 = vsel %vm1434_vm15, %v6580_v33, 0.0 }
 0x101   : > { %5490 = vmatprep.subr.bf16.mxu1 %v1538_v26  ;;  %v1403_v49 = vadd.f32 %v1371_v31, %v1303_v2  ;;  %v1471_v16 = vsel %vm1435_vm7, %v6580_v33, 0.0  ;;  %v1153_v53 = vsub.s32 %v6250_v52, %v6558_v42  ;;  %v1136_v26 = vsub.s32 %v6259_v57, %v6558_v42 }
 0x102   : > { %v1502_v18 = vadd.f32 %v1470_v25, %v1402_v55  ;;  %vm1184_vm1 = vcmp.eq.s32.totalorder %v1152_v56, 0  ;;  %vm1252_vm11 = vcmp.eq.s32.totalorder %v1152_v56, 1  ;;  %vm1352_vm2 = vcmp.eq.s32.totalorder %v1152_v56, 16 }
 0x103   : > { %v1503_v58 = vadd.f32 %v1471_v16, %v1403_v49  ;;  %vm1185_vm3 = vcmp.eq.s32.totalorder %v1153_v53, 0  ;;  %v1220_v47 = vsel %vm1184_vm1, %v6568_v50, 0.0  ;;  %vm1253_vm4 = vcmp.eq.s32.totalorder %v1153_v53, 1 }
 0x104   : > { %v1221_v19 = vsel %vm1185_vm3, %v6568_v50, 0.0  ;;  %v1288_v15 = vsel %vm1252_vm11, %v6572_v32, 0.0  ;;  %v1289_v6 = vsel %vm1253_vm4, %v6572_v32, 0.0  ;;  %vm1353_vm5 = vcmp.eq.s32.totalorder %v1153_v53, 16 }
 0x105   : > { %v1530_v10 = vpack.c.bf16 %v1503_v58, %v1502_v18  ;;  %v1320_v34 = vadd.f32 %v1288_v15, %v1220_v47  ;;  %v1321_v12 = vadd.f32 %v1289_v6, %v1221_v19  ;;  %v1388_v20 = vsel %vm1352_vm2, %v6576_v13, 0.0 }
 0x106   : > { %v1389_v40 = vsel %vm1353_vm5, %v6576_v13, 0.0  ;;  %vm1452_vm8 = vcmp.eq.s32.totalorder %v1152_v56, 17  ;;  %vm1453_vm10 = vcmp.eq.s32.totalorder %v1153_v53, 17  ;;  %v1137_v49 = vsub.s32 %v6263_v59, %v6558_v42 }
 0x107   : > { %5491 = vmatpush3.bf16.msra.mxu1 %v1530_v10  ;;  %v1420_v2 = vadd.f32 %v1388_v20, %v1320_v34  ;;  %v1421_v21 = vadd.f32 %v1389_v40, %v1321_v12  ;;  %v1488_v31 = vsel %vm1452_vm8, %v6580_v33, 0.0  ;;  %v1489_v55 = vsel %vm1453_vm10, %v6580_v33, 0.0 }
 0x108   : > { %vm1168_vm12 = vcmp.eq.s32.totalorder %v1136_v26, 0  ;;  %vm1236_vm13 = vcmp.eq.s32.totalorder %v1136_v26, 1  ;;  %vm1336_vm9 = vcmp.eq.s32.totalorder %v1136_v26, 16  ;;  %vm1169_vm0 = vcmp.eq.s32.totalorder %v1137_v49, 0 }
 0x109   : > { %v1520_v25 = vadd.f32 %v1488_v31, %v1420_v2  ;;  %v1521_v16 = vadd.f32 %v1489_v55, %v1421_v21  ;;  %v1204_v56 = vsel %vm1168_vm12, %v6568_v50, 0.0  ;;  %v1272_v53 = vsel %vm1236_vm13, %v6572_v32, 0.0 }
 0x10a   : > { %vm1237_vm6 = vcmp.eq.s32.totalorder %v1137_v49, 1  ;;  %v1304_v18 = vadd.f32 %v1272_v53, %v1204_v56  ;;  %vm1337_vm14 = vcmp.eq.s32.totalorder %v1137_v49, 16  ;;  %v1205_v47 = vsel %vm1169_vm0, %v6568_v50, 0.0 }
 0x10b   : > { %v1539_v58 = vpack.c.bf16 %v1521_v16, %v1520_v25  ;;  %v1273_v19 = vsel %vm1237_vm6, %v6572_v32, 0.0  ;;  %v1372_v15 = vsel %vm1336_vm9, %v6576_v13, 0.0  ;;  %v1373_v10 = vsel %vm1337_vm14, %v6576_v13, 0.0 }
 0x10c   : > { %v1305_v6 = vadd.f32 %v1273_v19, %v1205_v47  ;;  %v1404_v34 = vadd.f32 %v1372_v15, %v1304_v18  ;;  %vm1436_vm15 = vcmp.eq.s32.totalorder %v1136_v26, 17  ;;  %vm1437_vm7 = vcmp.eq.s32.totalorder %v1137_v49, 17 }
 0x10d   : > { %5492 = vmatprep.subr.bf16.mxu1 %v1539_v58  ;;  %v1472_v12 = vsel %vm1436_vm15, %v6580_v33, 0.0  ;;  %v1154_v20 = vsub.s32 %v6270_v61, %v6558_v42  ;;  %v1155_v40 = vsub.s32 %v6273_v62, %v6558_v42  ;;  %v1473_v21 = vsel %vm1437_vm7, %v6580_v33, 0.0 }
 0x10e   : > { %v1405_v2 = vadd.f32 %v1373_v10, %v1305_v6  ;;  %v1504_v31 = vadd.f32 %v1472_v12, %v1404_v34  ;;  %v1138_v55 = vsub.s32 %v6276_v63, %v6558_v42  ;;  %v1139_v6 = vsub.s32 %v6284_v1, %v6558_v42 }
 0x10f   : > { %vm1186_vm1 = vcmp.eq.s32.totalorder %v1154_v20, 0  ;;  %vm1187_vm11 = vcmp.eq.s32.totalorder %v1155_v40, 0  ;;  %vm1254_vm2 = vcmp.eq.s32.totalorder %v1154_v20, 1  ;;  %vm1255_vm3 = vcmp.eq.s32.totalorder %v1155_v40, 1 }
 0x110   : > { %v1505_v26 = vadd.f32 %v1473_v21, %v1405_v2  ;;  %v1222_v49 = vsel %vm1186_vm1, %v6568_v50, 0.0  ;;  %v1223_v25 = vsel %vm1187_vm11, %v6568_v50, 0.0  ;;  %v1290_v16 = vsel %vm1254_vm2, %v6572_v32, 0.0 }
 0x111   : > { %v1291_v56 = vsel %vm1255_vm3, %v6572_v32, 0.0  ;;  %v1322_v53 = vadd.f32 %v1290_v16, %v1222_v49  ;;  %vm1354_vm4 = vcmp.eq.s32.totalorder %v1154_v20, 16  ;;  %vm1355_vm5 = vcmp.eq.s32.totalorder %v1155_v40, 16 }
 0x112   : > { %v1531_v18 = vpack.c.bf16 %v1505_v26, %v1504_v31  ;;  %v1323_v58 = vadd.f32 %v1291_v56, %v1223_v25  ;;  %v1390_v47 = vsel %vm1354_vm4, %v6576_v13, 0.0  ;;  %v1391_v19 = vsel %vm1355_vm5, %v6576_v13, 0.0 }
 0x113   : > { %v1422_v15 = vadd.f32 %v1390_v47, %v1322_v53  ;;  %vm1454_vm8 = vcmp.eq.s32.totalorder %v1154_v20, 17  ;;  %vm1455_vm10 = vcmp.eq.s32.totalorder %v1155_v40, 17  ;;  %vm1170_vm12 = vcmp.eq.s32.totalorder %v1138_v55, 0 }
 0x114   : > { %5493 = vmatpush3.bf16.msra.mxu1 %v1531_v18  ;;  %v1423_v10 = vadd.f32 %v1391_v19, %v1323_v58  ;;  %v1490_v34 = vsel %vm1454_vm8, %v6580_v33, 0.0  ;;  %v1491_v12 = vsel %vm1455_vm10, %v6580_v33, 0.0  ;;  %vm1171_vm13 = vcmp.eq.s32.totalorder %v1139_v6, 0 }
 0x115   : > { %v1522_v2 = vadd.f32 %v1490_v34, %v1422_v15  ;;  %v1206_v21 = vsel %vm1170_vm12, %v6568_v50, 0.0  ;;  %vm1238_vm9 = vcmp.eq.s32.totalorder %v1138_v55, 1  ;;  %v1207_v26 = vsel %vm1171_vm13, %v6568_v50, 0.0 }
 0x116   : > { %v1523_v31 = vadd.f32 %v1491_v12, %v1423_v10  ;;  %vm1239_vm0 = vcmp.eq.s32.totalorder %v1139_v6, 1  ;;  %v1274_v20 = vsel %vm1238_vm9, %v6572_v32, 0.0  ;;  %vm1338_vm6 = vcmp.eq.s32.totalorder %v1138_v55, 16 }
 0x117   : > { %v1275_v40 = vsel %vm1239_vm0, %v6572_v32, 0.0  ;;  %v1306_v49 = vadd.f32 %v1274_v20, %v1206_v21  ;;  %vm1339_vm14 = vcmp.eq.s32.totalorder %v1139_v6, 16  ;;  %v1374_v56 = vsel %vm1338_vm6, %v6576_v13, 0.0 }
 0x118   : > { %v1540_v25 = vpack.c.bf16 %v1523_v31, %v1522_v2  ;;  %v1307_v16 = vadd.f32 %v1275_v40, %v1207_v26  ;;  %v1375_v53 = vsel %vm1339_vm14, %v6576_v13, 0.0  ;;  %vm1438_vm15 = vcmp.eq.s32.totalorder %v1138_v55, 17 }
 0x119   : > { %v1406_v18 = vadd.f32 %v1374_v56, %v1306_v49  ;;  %vm1439_vm7 = vcmp.eq.s32.totalorder %v1139_v6, 17  ;;  %v1156_v58 = vsub.s32 %v6292_v3, %v6558_v42  ;;  %v1474_v19 = vsel %vm1438_vm15, %v6580_v33, 0.0 }
 0x11a   : > { %5494 = vmatprep.subr.bf16.mxu1 %v1540_v25  ;;  %v1407_v47 = vadd.f32 %v1375_v53, %v1307_v16  ;;  %v1475_v15 = vsel %vm1439_vm7, %v6580_v33, 0.0  ;;  %v1157_v10 = vsub.s32 %v6295_v4, %v6558_v42  ;;  %v1140_v25 = vsub.s32 %v6308_v7, %v6558_v42 }
 0x11b   : > { %v1506_v34 = vadd.f32 %v1474_v19, %v1406_v18  ;;  %vm1188_vm1 = vcmp.eq.s32.totalorder %v1156_v58, 0  ;;  %vm1256_vm11 = vcmp.eq.s32.totalorder %v1156_v58, 1  ;;  %vm1356_vm2 = vcmp.eq.s32.totalorder %v1156_v58, 16 }
 0x11c   : > { %v1507_v12 = vadd.f32 %v1475_v15, %v1407_v47  ;;  %vm1189_vm3 = vcmp.eq.s32.totalorder %v1157_v10, 0  ;;  %v1224_v55 = vsel %vm1188_vm1, %v6568_v50, 0.0  ;;  %vm1257_vm4 = vcmp.eq.s32.totalorder %v1157_v10, 1 }
 0x11d   : > { %v1225_v6 = vsel %vm1189_vm3, %v6568_v50, 0.0  ;;  %v1292_v2 = vsel %vm1256_vm11, %v6572_v32, 0.0  ;;  %v1293_v21 = vsel %vm1257_vm4, %v6572_v32, 0.0  ;;  %vm1357_vm5 = vcmp.eq.s32.totalorder %v1157_v10, 16 }
 0x11e   : > { %v1532_v31 = vpack.c.bf16 %v1507_v12, %v1506_v34  ;;  %v1324_v26 = vadd.f32 %v1292_v2, %v1224_v55  ;;  %v1325_v20 = vadd.f32 %v1293_v21, %v1225_v6  ;;  %v1392_v40 = vsel %vm1356_vm2, %v6576_v13, 0.0 }
 0x11f   : > { %v1393_v49 = vsel %vm1357_vm5, %v6576_v13, 0.0  ;;  %vm1456_vm8 = vcmp.eq.s32.totalorder %v1156_v58, 17  ;;  %vm1457_vm10 = vcmp.eq.s32.totalorder %v1157_v10, 17  ;;  %v1141_v47 = vsub.s32 %v6311_v8, %v6558_v42 }
 0x120   : > { %5495 = vmatpush3.bf16.msra.mxu1 %v1532_v31  ;;  %v1424_v16 = vadd.f32 %v1392_v40, %v1324_v26  ;;  %v1425_v56 = vadd.f32 %v1393_v49, %v1325_v20  ;;  %v1492_v53 = vsel %vm1456_vm8, %v6580_v33, 0.0  ;;  %v1493_v18 = vsel %vm1457_vm10, %v6580_v33, 0.0 }
 0x121   : > { %vm1172_vm12 = vcmp.eq.s32.totalorder %v1140_v25, 0  ;;  %vm1240_vm13 = vcmp.eq.s32.totalorder %v1140_v25, 1  ;;  %vm1340_vm9 = vcmp.eq.s32.totalorder %v1140_v25, 16  ;;  %vm1173_vm0 = vcmp.eq.s32.totalorder %v1141_v47, 0 }
 0x122   : > { %v1524_v19 = vadd.f32 %v1492_v53, %v1424_v16  ;;  %v1525_v15 = vadd.f32 %v1493_v18, %v1425_v56  ;;  %v1208_v58 = vsel %vm1172_vm12, %v6568_v50, 0.0  ;;  %v1276_v10 = vsel %vm1240_vm13, %v6572_v32, 0.0 }
 0x123   : > { %vm1241_vm6 = vcmp.eq.s32.totalorder %v1141_v47, 1  ;;  %v1308_v34 = vadd.f32 %v1276_v10, %v1208_v58  ;;  %vm1341_vm14 = vcmp.eq.s32.totalorder %v1141_v47, 16  ;;  %v1209_v55 = vsel %vm1173_vm0, %v6568_v50, 0.0 }
 0x124   : > { %v1541_v12 = vpack.c.bf16 %v1525_v15, %v1524_v19  ;;  %v1277_v6 = vsel %vm1241_vm6, %v6572_v32, 0.0  ;;  %v1376_v42 = vsel %vm1340_vm9, %v6576_v13, 0.0  ;;  %v1377_v21 = vsel %vm1341_vm14, %v6576_v13, 0.0 }
 0x125   : > { %v1309_v2 = vadd.f32 %v1277_v6, %v1209_v55  ;;  %v1408_v31 = vadd.f32 %v1376_v42, %v1308_v34  ;;  %vm1440_vm15 = vcmp.eq.s32.totalorder %v1140_v25, 17  ;;  %vm1441_vm7 = vcmp.eq.s32.totalorder %v1141_v47, 17 }
 0x126   : > { %5496 = vmatprep.subr.bf16.mxu1 %v1541_v12  ;;  %v1476_v26 = vsel %vm1440_vm15, %v6580_v33, 0.0  ;;  %v1681_v20 = vsub.s32 2, %v6154_v9  ;;  %v1477_v49 = vsel %vm1441_vm7, %v6580_v33, 0.0 }
 0x127   : > { %v1409_v40 = vadd.f32 %v1377_v21, %v1309_v2  ;;  %v1508_v16 = vadd.f32 %v1476_v26, %v1408_v31 }
 0x128   : > { %v6774_v50 = vrot.slane %v6267_v60, %v1681_v20  ;;  %v6777_v32 = vrot.slane %v6278_v0, %v1681_v20  ;;  %v6780_v13 = vrot.slane %v6316_v11, %v1681_v20  ;;  %v6783_v25 = vrot.slane %v6353_v41, %v1681_v20 }
 0x129   : > { %v1509_v56 = vadd.f32 %v1477_v49, %v1409_v40  ;;  %v6786_v53 = vrot.slane %v6366_v54, %v1681_v20  ;;  %v6815_v20 = vld.sshfl [vmem:[%s6224_s8] sm:$0x33 pattern:$0x76325410] }
 0x12a   : > { %v1699_v33 = vsub.s32 %v6169_v14, %v6774_v50  ;;  %v1700_v18 = vsub.s32 %v6172_v17, %v6774_v50  ;;  %v1683_v47 = vsub.s32 %v6154_v9, %v6774_v50  ;;  %v1684_v19 = vsub.s32 %v9111_v39, %v6774_v50 }
 0x12b   : > { %v1533_v15 = vpack.c.bf16 %v1509_v56, %v1508_v16  ;;  %v6798_v58 = vsub.s32 %v9112_v43, %v6774_v50  ;;  %v6802_v10 = vsub.s32 %v9115_v5, %v6774_v50  ;;  %v6806_v34 = vsub.s32 %v6188_v22, %v6774_v50 }
 0x12c   : > { %vm1731_vm1 = vcmp.eq.s32.totalorder %v1699_v33, 0  ;;  %vm1732_vm11 = vcmp.eq.s32.totalorder %v1700_v18, 0  ;;  %vm1799_vm2 = vcmp.eq.s32.totalorder %v1699_v33, 1  ;;  %vm1800_vm3 = vcmp.eq.s32.totalorder %v1700_v18, 1 }
 0x12d   : > { %5497 = vmatpush3.bf16.msra.mxu1 %v1533_v15  ;;  %v1767_v12 = vsel %vm1731_vm1, %v6777_v32, 0.0  ;;  %v1768_v55 = vsel %vm1732_vm11, %v6777_v32, 0.0  ;;  %v1835_v6 = vsel %vm1799_vm2, %v6780_v13, 0.0  ;;  %v1836_v42 = vsel %vm1800_vm3, %v6780_v13, 0.0 }
 0x12e   : > { %v1867_v2 = vadd.f32 %v1835_v6, %v1767_v12  ;;  %v1868_v21 = vadd.f32 %v1836_v42, %v1768_v55  ;;  %vm1899_vm4 = vcmp.eq.s32.totalorder %v1699_v33, 16  ;;  %vm1900_vm5 = vcmp.eq.s32.totalorder %v1700_v18, 16 }
 0x12f   : > { %v1935_v31 = vsel %vm1899_vm4, %v6783_v25, 0.0  ;;  %v1936_v26 = vsel %vm1900_vm5, %v6783_v25, 0.0  ;;  %vm1999_vm8 = vcmp.eq.s32.totalorder %v1699_v33, 17  ;;  %vm2000_vm10 = vcmp.eq.s32.totalorder %v1700_v18, 17 }
 0x130   : > { %1575 = vmatmul.mubr.bf16.vlgmr.msra.gmra.mrb[4].mxu1 %v6815_v20  ;;  %v1967_v40 = vadd.f32 %v1935_v31, %v1867_v2  ;;  %v1968_v49 = vadd.f32 %v1936_v26, %v1868_v21  ;;  %v2035_v16 = vsel %vm1999_vm8, %v6786_v53, 0.0  ;;  %v2036_v56 = vsel %vm2000_vm10, %v6786_v53, 0.0 }
 0x131   : > { %vm1715_vm12 = vcmp.eq.s32.totalorder %v1683_v47, 0  ;;  %vm1716_vm13 = vcmp.eq.s32.totalorder %v1684_v19, 0  ;;  %vm1783_vm9 = vcmp.eq.s32.totalorder %v1683_v47, 1  ;;  %vm1784_vm0 = vcmp.eq.s32.totalorder %v1684_v19, 1  ;;  %2131 = vmatprep.mubr.bf16.mxu1 %v9114_v51 }
 0x132   : > { %v2067_v15 = vadd.f32 %v2035_v16, %v1967_v40  ;;  %v2068_v12 = vadd.f32 %v2036_v56, %v1968_v49  ;;  %v1751_v33 = vsel %vm1715_vm12, %v6777_v32, 0.0  ;;  %v1752_v18 = vsel %vm1716_vm13, %v6777_v32, 0.0 }
 0x133   : > { %v1819_v55 = vsel %vm1783_vm9, %v6780_v13, 0.0  ;;  %v1820_v6 = vsel %vm1784_vm0, %v6780_v13, 0.0  ;;  %vm1883_vm6 = vcmp.eq.s32.totalorder %v1683_v47, 16  ;;  %vm1884_vm14 = vcmp.eq.s32.totalorder %v1684_v19, 16 }
 0x134   : > { %v2091_v42 = vpack.c.bf16 %v2068_v12, %v2067_v15  ;;  %v1851_v2 = vadd.f32 %v1819_v55, %v1751_v33  ;;  %v1852_v21 = vadd.f32 %v1820_v6, %v1752_v18  ;;  %v1919_v31 = vsel %vm1883_vm6, %v6783_v25, 0.0 }
 0x135   : > { %v1920_v26 = vsel %vm1884_vm14, %v6783_v25, 0.0  ;;  %vm1983_vm15 = vcmp.eq.s32.totalorder %v1683_v47, 17  ;;  %vm1984_vm7 = vcmp.eq.s32.totalorder %v1684_v19, 17  ;;  %vm1733_vm1 = vcmp.eq.s32.totalorder %v6798_v58, 0 }
 0x136   : > { %5508 = vmatprep.subr.bf16.mxu1 %v2091_v42  ;;  %v1951_v40 = vadd.f32 %v1919_v31, %v1851_v2  ;;  %v1952_v49 = vadd.f32 %v1920_v26, %v1852_v21  ;;  %v2019_v16 = vsel %vm1983_vm15, %v6786_v53, 0.0  ;;  %v2020_v56 = vsel %vm1984_vm7, %v6786_v53, 0.0 }
 0x137   : > { %vm1734_vm11 = vcmp.eq.s32.totalorder %v6802_v10, 0  ;;  %v1769_v15 = vsel %vm1733_vm1, %v6777_v32, 0.0  ;;  %vm1801_vm2 = vcmp.eq.s32.totalorder %v6798_v58, 1  ;;  %vm1802_vm3 = vcmp.eq.s32.totalorder %v6802_v10, 1 }
 0x138   : > { %v2051_v12 = vadd.f32 %v2019_v16, %v1951_v40  ;;  %v2052_v47 = vadd.f32 %v2020_v56, %v1952_v49  ;;  %v1770_v19 = vsel %vm1734_vm11, %v6777_v32, 0.0  ;;  %v1837_v33 = vsel %vm1801_vm2, %v6780_v13, 0.0 }
 0x139   : > { %v1838_v18 = vsel %vm1802_vm3, %v6780_v13, 0.0  ;;  %v1869_v55 = vadd.f32 %v1837_v33, %v1769_v15  ;;  %vm1901_vm4 = vcmp.eq.s32.totalorder %v6798_v58, 16  ;;  %vm1902_vm5 = vcmp.eq.s32.totalorder %v6802_v10, 16 }
 0x13a   : > { %v2083_v6 = vpack.c.bf16 %v2052_v47, %v2051_v12  ;;  %v1870_v42 = vadd.f32 %v1838_v18, %v1770_v19  ;;  %v1937_v2 = vsel %vm1901_vm4, %v6783_v25, 0.0  ;;  %v1938_v21 = vsel %vm1902_vm5, %v6783_v25, 0.0 }
 0x13b   : > { %v1969_v31 = vadd.f32 %v1937_v2, %v1869_v55  ;;  %vm2001_vm8 = vcmp.eq.s32.totalorder %v6798_v58, 17  ;;  %vm2002_vm10 = vcmp.eq.s32.totalorder %v6802_v10, 17  ;;  %v1686_v26 = vsub.s32 %v6191_v23, %v6774_v50 }
 0x13c   : > { %5509 = vmatpush3.bf16.msra.mxu1 %v2083_v6  ;;  %v1970_v40 = vadd.f32 %v1938_v21, %v1870_v42  ;;  %v2037_v49 = vsel %vm2001_vm8, %v6786_v53, 0.0  ;;  %v2038_v16 = vsel %vm2002_vm10, %v6786_v53, 0.0  ;;  %vm1717_vm12 = vcmp.eq.s32.totalorder %v6806_v34, 0 }
 0x13d   : > { %v2069_v56 = vadd.f32 %v2037_v49, %v1969_v31  ;;  %vm1718_vm13 = vcmp.eq.s32.totalorder %v1686_v26, 0  ;;  %v1753_v15 = vsel %vm1717_vm12, %v6777_v32, 0.0  ;;  %vm1785_vm9 = vcmp.eq.s32.totalorder %v6806_v34, 1 }
 0x13e   : > { %v2070_v58 = vadd.f32 %v2038_v16, %v1970_v40  ;;  %v1754_v10 = vsel %vm1718_vm13, %v6777_v32, 0.0  ;;  %vm1786_vm0 = vcmp.eq.s32.totalorder %v1686_v26, 1  ;;  %v1821_v12 = vsel %vm1785_vm9, %v6780_v13, 0.0 }
 0x13f   : > { %v1822_v47 = vsel %vm1786_vm0, %v6780_v13, 0.0  ;;  %v1853_v19 = vadd.f32 %v1821_v12, %v1753_v15  ;;  %vm1885_vm6 = vcmp.eq.s32.totalorder %v6806_v34, 16  ;;  %vm1886_vm14 = vcmp.eq.s32.totalorder %v1686_v26, 16 }
 0x140   : > { %v2092_v33 = vpack.c.bf16 %v2070_v58, %v2069_v56  ;;  %v1854_v18 = vadd.f32 %v1822_v47, %v1754_v10  ;;  %v1921_v55 = vsel %vm1885_vm6, %v6783_v25, 0.0  ;;  %v1922_v6 = vsel %vm1886_vm14, %v6783_v25, 0.0 }
 0x141   : > { %v1953_v42 = vadd.f32 %v1921_v55, %v1853_v19  ;;  %vm1985_vm15 = vcmp.eq.s32.totalorder %v6806_v34, 17  ;;  %vm1986_vm7 = vcmp.eq.s32.totalorder %v1686_v26, 17  ;;  %v1703_v2 = vsub.s32 %v6194_v24, %v6774_v50 }
 0x142   : > { %5510 = vmatprep.subr.bf16.mxu1 %v2092_v33  ;;  %v1954_v21 = vadd.f32 %v1922_v6, %v1854_v18  ;;  %v2021_v31 = vsel %vm1985_vm15, %v6786_v53, 0.0  ;;  %v2022_v40 = vsel %vm1986_vm7, %v6786_v53, 0.0  ;;  %v1704_v49 = vsub.s32 %v6198_v27, %v6774_v50 }
 0x143   : > { %v2053_v16 = vadd.f32 %v2021_v31, %v1953_v42  ;;  %vm1735_vm1 = vcmp.eq.s32.totalorder %v1703_v2, 0  ;;  %vm1803_vm11 = vcmp.eq.s32.totalorder %v1703_v2, 1  ;;  %vm1903_vm2 = vcmp.eq.s32.totalorder %v1703_v2, 16 }
 0x144   : > { %v2054_v56 = vadd.f32 %v2022_v40, %v1954_v21  ;;  %vm1736_vm3 = vcmp.eq.s32.totalorder %v1704_v49, 0  ;;  %v1771_v34 = vsel %vm1735_vm1, %v6777_v32, 0.0  ;;  %vm1804_vm4 = vcmp.eq.s32.totalorder %v1704_v49, 1 }
 0x145   : > { %v1772_v26 = vsel %vm1736_vm3, %v6777_v32, 0.0  ;;  %v1839_v15 = vsel %vm1803_vm11, %v6780_v13, 0.0  ;;  %v1840_v58 = vsel %vm1804_vm4, %v6780_v13, 0.0  ;;  %vm1904_vm5 = vcmp.eq.s32.totalorder %v1704_v49, 16 }
 0x146   : > { %v2084_v10 = vpack.c.bf16 %v2054_v56, %v2053_v16  ;;  %v1871_v12 = vadd.f32 %v1839_v15, %v1771_v34  ;;  %v1872_v47 = vadd.f32 %v1840_v58, %v1772_v26  ;;  %v1939_v19 = vsel %vm1903_vm2, %v6783_v25, 0.0 }
 0x147   : > { %v1940_v33 = vsel %vm1904_vm5, %v6783_v25, 0.0  ;;  %vm2003_vm8 = vcmp.eq.s32.totalorder %v1703_v2, 17  ;;  %vm2004_vm10 = vcmp.eq.s32.totalorder %v1704_v49, 17  ;;  %v1687_v18 = vsub.s32 %v6201_v28, %v6774_v50 }
 0x148   : > { %5511 = vmatpush3.bf16.msra.mxu1 %v2084_v10  ;;  %v1971_v55 = vadd.f32 %v1939_v19, %v1871_v12  ;;  %v1972_v6 = vadd.f32 %v1940_v33, %v1872_v47  ;;  %v2039_v42 = vsel %vm2003_vm8, %v6786_v53, 0.0  ;;  %v2040_v21 = vsel %vm2004_vm10, %v6786_v53, 0.0 }
 0x149   : > { %v1688_v31 = vsub.s32 %v6204_v29, %v6774_v50  ;;  %vm1719_vm12 = vcmp.eq.s32.totalorder %v1687_v18, 0  ;;  %vm1787_vm13 = vcmp.eq.s32.totalorder %v1687_v18, 1  ;;  %vm1887_vm9 = vcmp.eq.s32.totalorder %v1687_v18, 16 }
 0x14a   : > { %v2071_v40 = vadd.f32 %v2039_v42, %v1971_v55  ;;  %v2072_v16 = vadd.f32 %v2040_v21, %v1972_v6  ;;  %v1755_v2 = vsel %vm1719_vm12, %v6777_v32, 0.0  ;;  %v1823_v49 = vsel %vm1787_vm13, %v6780_v13, 0.0 }
 0x14b   : > { %vm1720_vm0 = vcmp.eq.s32.totalorder %v1688_v31, 0  ;;  %vm1788_vm6 = vcmp.eq.s32.totalorder %v1688_v31, 1  ;;  %v1855_v56 = vadd.f32 %v1823_v49, %v1755_v2  ;;  %vm1888_vm14 = vcmp.eq.s32.totalorder %v1688_v31, 16 }
 0x14c   : > { %v2093_v34 = vpack.c.bf16 %v2072_v16, %v2071_v40  ;;  %v1756_v26 = vsel %vm1720_vm0, %v6777_v32, 0.0  ;;  %v1824_v15 = vsel %vm1788_vm6, %v6780_v13, 0.0  ;;  %v1923_v58 = vsel %vm1887_vm9, %v6783_v25, 0.0 }
 0x14d   : > { %v1856_v10 = vadd.f32 %v1824_v15, %v1756_v26  ;;  %v1924_v12 = vsel %vm1888_vm14, %v6783_v25, 0.0  ;;  %v1955_v47 = vadd.f32 %v1923_v58, %v1855_v56  ;;  %vm1987_vm15 = vcmp.eq.s32.totalorder %v1687_v18, 17 }
 0x14e   : > { %5512 = vmatprep.subr.bf16.mxu1 %v2093_v34  ;;  %vm1988_vm7 = vcmp.eq.s32.totalorder %v1688_v31, 17  ;;  %v2023_v19 = vsel %vm1987_vm15, %v6786_v53, 0.0  ;;  %v1705_v33 = vsub.s32 %v6207_v30, %v6774_v50  ;;  %v1706_v55 = vsub.s32 %v6210_v35, %v6774_v50 }
 0x14f   : > { %v1956_v6 = vadd.f32 %v1924_v12, %v1856_v10  ;;  %v2024_v42 = vsel %vm1988_vm7, %v6786_v53, 0.0  ;;  %v2055_v21 = vadd.f32 %v2023_v19, %v1955_v47  ;;  %v1689_v40 = vsub.s32 %v6213_v36, %v6774_v50 }
 0x150   : > { %vm1737_vm1 = vcmp.eq.s32.totalorder %v1705_v33, 0  ;;  %vm1738_vm11 = vcmp.eq.s32.totalorder %v1706_v55, 0  ;;  %vm1805_vm2 = vcmp.eq.s32.totalorder %v1705_v33, 1  ;;  %vm1806_vm3 = vcmp.eq.s32.totalorder %v1706_v55, 1 }
 0x151   : > { %v2056_v18 = vadd.f32 %v2024_v42, %v1956_v6  ;;  %v1773_v31 = vsel %vm1737_vm1, %v6777_v32, 0.0  ;;  %v1774_v16 = vsel %vm1738_vm11, %v6777_v32, 0.0  ;;  %v1841_v2 = vsel %vm1805_vm2, %v6780_v13, 0.0 }
 0x152   : > { %v1842_v49 = vsel %vm1806_vm3, %v6780_v13, 0.0  ;;  %v1873_v56 = vadd.f32 %v1841_v2, %v1773_v31  ;;  %vm1905_vm4 = vcmp.eq.s32.totalorder %v1705_v33, 16  ;;  %vm1906_vm5 = vcmp.eq.s32.totalorder %v1706_v55, 16 }
 0x153   : > { %v2085_v34 = vpack.c.bf16 %v2056_v18, %v2055_v21  ;;  %v1874_v26 = vadd.f32 %v1842_v49, %v1774_v16  ;;  %v1941_v15 = vsel %vm1905_vm4, %v6783_v25, 0.0  ;;  %v1942_v58 = vsel %vm1906_vm5, %v6783_v25, 0.0 }
 0x154   : > { %v1973_v10 = vadd.f32 %v1941_v15, %v1873_v56  ;;  %vm2005_vm8 = vcmp.eq.s32.totalorder %v1705_v33, 17  ;;  %vm2006_vm10 = vcmp.eq.s32.totalorder %v1706_v55, 17  ;;  %v1690_v12 = vsub.s32 %v6216_v37, %v6774_v50 }
 0x155   : > { %5513 = vmatpush3.bf16.msra.mxu1 %v2085_v34  ;;  %v1974_v47 = vadd.f32 %v1942_v58, %v1874_v26  ;;  %v2041_v19 = vsel %vm2005_vm8, %v6786_v53, 0.0  ;;  %v2042_v6 = vsel %vm2006_vm10, %v6786_v53, 0.0  ;;  %vm1721_vm12 = vcmp.eq.s32.totalorder %v1689_v40, 0 }
 0x156   : > { %v2073_v42 = vadd.f32 %v2041_v19, %v1973_v10  ;;  %vm1722_vm13 = vcmp.eq.s32.totalorder %v1690_v12, 0  ;;  %v1757_v21 = vsel %vm1721_vm12, %v6777_v32, 0.0  ;;  %vm1789_vm9 = vcmp.eq.s32.totalorder %v1689_v40, 1 }
 0x157   : > { %v2074_v18 = vadd.f32 %v2042_v6, %v1974_v47  ;;  %v1758_v31 = vsel %vm1722_vm13, %v6777_v32, 0.0  ;;  %vm1790_vm0 = vcmp.eq.s32.totalorder %v1690_v12, 1  ;;  %v1825_v33 = vsel %vm1789_vm9, %v6780_v13, 0.0 }
 0x158   : > { %v1826_v55 = vsel %vm1790_vm0, %v6780_v13, 0.0  ;;  %v1857_v16 = vadd.f32 %v1825_v33, %v1757_v21  ;;  %vm1889_vm6 = vcmp.eq.s32.totalorder %v1689_v40, 16  ;;  %vm1890_vm14 = vcmp.eq.s32.totalorder %v1690_v12, 16 }
 0x159   : > { %v2094_v2 = vpack.c.bf16 %v2074_v18, %v2073_v42  ;;  %v1858_v49 = vadd.f32 %v1826_v55, %v1758_v31  ;;  %v1925_v56 = vsel %vm1889_vm6, %v6783_v25, 0.0  ;;  %v1926_v34 = vsel %vm1890_vm14, %v6783_v25, 0.0 }
 0x15a   : > { %v1957_v26 = vadd.f32 %v1925_v56, %v1857_v16  ;;  %vm1989_vm15 = vcmp.eq.s32.totalorder %v1689_v40, 17  ;;  %vm1990_vm7 = vcmp.eq.s32.totalorder %v1690_v12, 17  ;;  %v1707_v15 = vsub.s32 %v6219_v38, %v6774_v50 }
 0x15b   : > { %5514 = vmatprep.subr.bf16.mxu1 %v2094_v2  ;;  %v1958_v58 = vadd.f32 %v1926_v34, %v1858_v49  ;;  %v2025_v10 = vsel %vm1989_vm15, %v6786_v53, 0.0  ;;  %v2026_v47 = vsel %vm1990_vm7, %v6786_v53, 0.0  ;;  %v1708_v19 = vsub.s32 %v6229_v44, %v6774_v50 }
 0x15c   : > { %v2057_v6 = vadd.f32 %v2025_v10, %v1957_v26  ;;  %vm1739_vm1 = vcmp.eq.s32.totalorder %v1707_v15, 0  ;;  %vm1807_vm11 = vcmp.eq.s32.totalorder %v1707_v15, 1  ;;  %vm1907_vm2 = vcmp.eq.s32.totalorder %v1707_v15, 16 }
 0x15d   : > { %v2058_v42 = vadd.f32 %v2026_v47, %v1958_v58  ;;  %vm1740_vm3 = vcmp.eq.s32.totalorder %v1708_v19, 0  ;;  %v1775_v40 = vsel %vm1739_vm1, %v6777_v32, 0.0  ;;  %vm1808_vm4 = vcmp.eq.s32.totalorder %v1708_v19, 1 }
 0x15e   : > { %v1776_v12 = vsel %vm1740_vm3, %v6777_v32, 0.0  ;;  %v1843_v21 = vsel %vm1807_vm11, %v6780_v13, 0.0  ;;  %v1844_v18 = vsel %vm1808_vm4, %v6780_v13, 0.0  ;;  %vm1908_vm5 = vcmp.eq.s32.totalorder %v1708_v19, 16 }
 0x15f   : > { %v2086_v31 = vpack.c.bf16 %v2058_v42, %v2057_v6  ;;  %v1875_v33 = vadd.f32 %v1843_v21, %v1775_v40  ;;  %v1876_v55 = vadd.f32 %v1844_v18, %v1776_v12  ;;  %v1943_v16 = vsel %vm1907_vm2, %v6783_v25, 0.0 }
 0x160   : > { %v1944_v2 = vsel %vm1908_vm5, %v6783_v25, 0.0  ;;  %vm2007_vm8 = vcmp.eq.s32.totalorder %v1707_v15, 17  ;;  %vm2008_vm10 = vcmp.eq.s32.totalorder %v1708_v19, 17  ;;  %v1691_v49 = vsub.s32 %v6232_v45, %v6774_v50 }
 0x161   : > { %5515 = vmatpush3.bf16.msra.mxu1 %v2086_v31  ;;  %v1975_v56 = vadd.f32 %v1943_v16, %v1875_v33  ;;  %v1976_v34 = vadd.f32 %v1944_v2, %v1876_v55  ;;  %v2043_v26 = vsel %vm2007_vm8, %v6786_v53, 0.0  ;;  %v2044_v58 = vsel %vm2008_vm10, %v6786_v53, 0.0 }
 0x162   : > { %v1692_v10 = vsub.s32 %v6235_v46, %v6774_v50  ;;  %vm1723_vm12 = vcmp.eq.s32.totalorder %v1691_v49, 0  ;;  %vm1791_vm13 = vcmp.eq.s32.totalorder %v1691_v49, 1  ;;  %vm1891_vm9 = vcmp.eq.s32.totalorder %v1691_v49, 16 }
 0x163   : > { %v2075_v47 = vadd.f32 %v2043_v26, %v1975_v56  ;;  %v2076_v6 = vadd.f32 %v2044_v58, %v1976_v34  ;;  %v1759_v15 = vsel %vm1723_vm12, %v6777_v32, 0.0  ;;  %v1827_v19 = vsel %vm1791_vm13, %v6780_v13, 0.0 }
 0x164   : > { %vm1724_vm0 = vcmp.eq.s32.totalorder %v1692_v10, 0  ;;  %vm1792_vm6 = vcmp.eq.s32.totalorder %v1692_v10, 1  ;;  %v1859_v42 = vadd.f32 %v1827_v19, %v1759_v15  ;;  %vm1892_vm14 = vcmp.eq.s32.totalorder %v1692_v10, 16 }
 0x165   : > { %v2095_v40 = vpack.c.bf16 %v2076_v6, %v2075_v47  ;;  %v1760_v12 = vsel %vm1724_vm0, %v6777_v32, 0.0  ;;  %v1828_v21 = vsel %vm1792_vm6, %v6780_v13, 0.0  ;;  %v1927_v18 = vsel %vm1891_vm9, %v6783_v25, 0.0 }
 0x166   : > { %v1860_v31 = vadd.f32 %v1828_v21, %v1760_v12  ;;  %v1928_v33 = vsel %vm1892_vm14, %v6783_v25, 0.0  ;;  %v1959_v55 = vadd.f32 %v1927_v18, %v1859_v42  ;;  %vm1991_vm15 = vcmp.eq.s32.totalorder %v1691_v49, 17 }
 0x167   : > { %5516 = vmatprep.subr.bf16.mxu1 %v2095_v40  ;;  %vm1992_vm7 = vcmp.eq.s32.totalorder %v1692_v10, 17  ;;  %v2027_v16 = vsel %vm1991_vm15, %v6786_v53, 0.0  ;;  %v1709_v2 = vsub.s32 %v6243_v48, %v6774_v50  ;;  %v1710_v56 = vsub.s32 %v6250_v52, %v6774_v50 }
 0x168   : > { %v1960_v34 = vadd.f32 %v1928_v33, %v1860_v31  ;;  %v2028_v26 = vsel %vm1992_vm7, %v6786_v53, 0.0  ;;  %v2059_v58 = vadd.f32 %v2027_v16, %v1959_v55  ;;  %v1693_v47 = vsub.s32 %v6259_v57, %v6774_v50 }
 0x169   : > { %vm1741_vm1 = vcmp.eq.s32.totalorder %v1709_v2, 0  ;;  %vm1742_vm11 = vcmp.eq.s32.totalorder %v1710_v56, 0  ;;  %vm1809_vm2 = vcmp.eq.s32.totalorder %v1709_v2, 1  ;;  %vm1810_vm3 = vcmp.eq.s32.totalorder %v1710_v56, 1 }
 0x16a   : > { %v2060_v49 = vadd.f32 %v2028_v26, %v1960_v34  ;;  %v1777_v10 = vsel %vm1741_vm1, %v6777_v32, 0.0  ;;  %v1778_v6 = vsel %vm1742_vm11, %v6777_v32, 0.0  ;;  %v1845_v15 = vsel %vm1809_vm2, %v6780_v13, 0.0 }
 0x16b   : > { %v1846_v19 = vsel %vm1810_vm3, %v6780_v13, 0.0  ;;  %v1877_v42 = vadd.f32 %v1845_v15, %v1777_v10  ;;  %vm1909_vm4 = vcmp.eq.s32.totalorder %v1709_v2, 16  ;;  %vm1910_vm5 = vcmp.eq.s32.totalorder %v1710_v56, 16 }
 0x16c   : > { %v2087_v40 = vpack.c.bf16 %v2060_v49, %v2059_v58  ;;  %v1878_v12 = vadd.f32 %v1846_v19, %v1778_v6  ;;  %v1945_v21 = vsel %vm1909_vm4, %v6783_v25, 0.0  ;;  %v1946_v18 = vsel %vm1910_vm5, %v6783_v25, 0.0 }
 0x16d   : > { %v1977_v31 = vadd.f32 %v1945_v21, %v1877_v42  ;;  %vm2009_vm8 = vcmp.eq.s32.totalorder %v1709_v2, 17  ;;  %vm2010_vm10 = vcmp.eq.s32.totalorder %v1710_v56, 17  ;;  %v1694_v33 = vsub.s32 %v6263_v59, %v6774_v50 }
 0x16e   : > { %5517 = vmatpush3.bf16.msra.mxu1 %v2087_v40  ;;  %v1978_v55 = vadd.f32 %v1946_v18, %v1878_v12  ;;  %v2045_v16 = vsel %vm2009_vm8, %v6786_v53, 0.0  ;;  %v2046_v34 = vsel %vm2010_vm10, %v6786_v53, 0.0  ;;  %vm1725_vm12 = vcmp.eq.s32.totalorder %v1693_v47, 0 }
 0x16f   : > { %v2077_v26 = vadd.f32 %v2045_v16, %v1977_v31  ;;  %vm1726_vm13 = vcmp.eq.s32.totalorder %v1694_v33, 0  ;;  %v1761_v58 = vsel %vm1725_vm12, %v6777_v32, 0.0  ;;  %vm1793_vm9 = vcmp.eq.s32.totalorder %v1693_v47, 1 }
 0x170   : > { %v2078_v49 = vadd.f32 %v2046_v34, %v1978_v55  ;;  %v1762_v10 = vsel %vm1726_vm13, %v6777_v32, 0.0  ;;  %vm1794_vm0 = vcmp.eq.s32.totalorder %v1694_v33, 1  ;;  %v1829_v2 = vsel %vm1793_vm9, %v6780_v13, 0.0 }
 0x171   : > { %v1830_v56 = vsel %vm1794_vm0, %v6780_v13, 0.0  ;;  %v1861_v6 = vadd.f32 %v1829_v2, %v1761_v58  ;;  %vm1893_vm6 = vcmp.eq.s32.totalorder %v1693_v47, 16  ;;  %vm1894_vm14 = vcmp.eq.s32.totalorder %v1694_v33, 16 }
 0x172   : > { %v2096_v15 = vpack.c.bf16 %v2078_v49, %v2077_v26  ;;  %v1862_v19 = vadd.f32 %v1830_v56, %v1762_v10  ;;  %v1929_v42 = vsel %vm1893_vm6, %v6783_v25, 0.0  ;;  %v1930_v40 = vsel %vm1894_vm14, %v6783_v25, 0.0 }
 0x173   : > { %v1961_v12 = vadd.f32 %v1929_v42, %v1861_v6  ;;  %vm1993_vm15 = vcmp.eq.s32.totalorder %v1693_v47, 17  ;;  %vm1994_vm7 = vcmp.eq.s32.totalorder %v1694_v33, 17  ;;  %v1711_v21 = vsub.s32 %v6270_v61, %v6774_v50 }
 0x174   : > { %5518 = vmatprep.subr.bf16.mxu1 %v2096_v15  ;;  %v1962_v18 = vadd.f32 %v1930_v40, %v1862_v19  ;;  %v2029_v31 = vsel %vm1993_vm15, %v6786_v53, 0.0  ;;  %v2030_v55 = vsel %vm1994_vm7, %v6786_v53, 0.0  ;;  %v1712_v16 = vsub.s32 %v6273_v62, %v6774_v50 }
 0x175   : > { %v2061_v34 = vadd.f32 %v2029_v31, %v1961_v12  ;;  %vm1743_vm1 = vcmp.eq.s32.totalorder %v1711_v21, 0  ;;  %vm1811_vm11 = vcmp.eq.s32.totalorder %v1711_v21, 1  ;;  %vm1911_vm2 = vcmp.eq.s32.totalorder %v1711_v21, 16 }
 0x176   : > { %v2062_v26 = vadd.f32 %v2030_v55, %v1962_v18  ;;  %vm1744_vm3 = vcmp.eq.s32.totalorder %v1712_v16, 0  ;;  %v1779_v47 = vsel %vm1743_vm1, %v6777_v32, 0.0  ;;  %vm1812_vm4 = vcmp.eq.s32.totalorder %v1712_v16, 1 }
 0x177   : > { %v1780_v33 = vsel %vm1744_vm3, %v6777_v32, 0.0  ;;  %v1847_v58 = vsel %vm1811_vm11, %v6780_v13, 0.0  ;;  %v1848_v49 = vsel %vm1812_vm4, %v6780_v13, 0.0  ;;  %vm1912_vm5 = vcmp.eq.s32.totalorder %v1712_v16, 16 }
 0x178   : > { %v2088_v10 = vpack.c.bf16 %v2062_v26, %v2061_v34  ;;  %v1879_v2 = vadd.f32 %v1847_v58, %v1779_v47  ;;  %v1880_v56 = vadd.f32 %v1848_v49, %v1780_v33  ;;  %v1947_v6 = vsel %vm1911_vm2, %v6783_v25, 0.0 }
 0x179   : > { %v1948_v15 = vsel %vm1912_vm5, %v6783_v25, 0.0  ;;  %vm2011_vm8 = vcmp.eq.s32.totalorder %v1711_v21, 17  ;;  %vm2012_vm10 = vcmp.eq.s32.totalorder %v1712_v16, 17  ;;  %v1695_v19 = vsub.s32 %v6276_v63, %v6774_v50 }
 0x17a   : > { %5519 = vmatpush3.bf16.msra.mxu1 %v2088_v10  ;;  %v1979_v42 = vadd.f32 %v1947_v6, %v1879_v2  ;;  %v1980_v40 = vadd.f32 %v1948_v15, %v1880_v56  ;;  %v2047_v12 = vsel %vm2011_vm8, %v6786_v53, 0.0  ;;  %v2048_v18 = vsel %vm2012_vm10, %v6786_v53, 0.0 }
 0x17b   : > { %v1696_v31 = vsub.s32 %v6284_v1, %v6774_v50  ;;  %vm1727_vm12 = vcmp.eq.s32.totalorder %v1695_v19, 0  ;;  %vm1795_vm13 = vcmp.eq.s32.totalorder %v1695_v19, 1  ;;  %vm1895_vm9 = vcmp.eq.s32.totalorder %v1695_v19, 16 }
 0x17c   : > { %v2079_v55 = vadd.f32 %v2047_v12, %v1979_v42  ;;  %v2080_v34 = vadd.f32 %v2048_v18, %v1980_v40  ;;  %v1763_v21 = vsel %vm1727_vm12, %v6777_v32, 0.0  ;;  %v1831_v16 = vsel %vm1795_vm13, %v6780_v13, 0.0 }
 0x17d   : > { %vm1728_vm0 = vcmp.eq.s32.totalorder %v1696_v31, 0  ;;  %vm1796_vm6 = vcmp.eq.s32.totalorder %v1696_v31, 1  ;;  %v1863_v26 = vadd.f32 %v1831_v16, %v1763_v21  ;;  %vm1896_vm14 = vcmp.eq.s32.totalorder %v1696_v31, 16 }
 0x17e   : > { %v2097_v47 = vpack.c.bf16 %v2080_v34, %v2079_v55  ;;  %v1764_v33 = vsel %vm1728_vm0, %v6777_v32, 0.0  ;;  %v1832_v58 = vsel %vm1796_vm6, %v6780_v13, 0.0  ;;  %v1931_v49 = vsel %vm1895_vm9, %v6783_v25, 0.0 }
 0x17f   : > { %v1864_v10 = vadd.f32 %v1832_v58, %v1764_v33  ;;  %v1932_v2 = vsel %vm1896_vm14, %v6783_v25, 0.0  ;;  %v1963_v56 = vadd.f32 %v1931_v49, %v1863_v26  ;;  %vm1995_vm15 = vcmp.eq.s32.totalorder %v1695_v19, 17 }
 0x180   : > { %5520 = vmatprep.subr.bf16.mxu1 %v2097_v47  ;;  %vm1996_vm7 = vcmp.eq.s32.totalorder %v1696_v31, 17  ;;  %v2031_v6 = vsel %vm1995_vm15, %v6786_v53, 0.0  ;;  %v1713_v15 = vsub.s32 %v6292_v3, %v6774_v50  ;;  %v1714_v42 = vsub.s32 %v6295_v4, %v6774_v50 }
 0x181   : > { %v1964_v40 = vadd.f32 %v1932_v2, %v1864_v10  ;;  %v2032_v12 = vsel %vm1996_vm7, %v6786_v53, 0.0  ;;  %v2063_v18 = vadd.f32 %v2031_v6, %v1963_v56  ;;  %v1697_v55 = vsub.s32 %v6308_v7, %v6774_v50 }
 0x182   : > { %vm1745_vm1 = vcmp.eq.s32.totalorder %v1713_v15, 0  ;;  %vm1746_vm11 = vcmp.eq.s32.totalorder %v1714_v42, 0  ;;  %vm1813_vm2 = vcmp.eq.s32.totalorder %v1713_v15, 1  ;;  %vm1814_vm3 = vcmp.eq.s32.totalorder %v1714_v42, 1 }
 0x183   : > { %v2064_v19 = vadd.f32 %v2032_v12, %v1964_v40  ;;  %v1781_v31 = vsel %vm1745_vm1, %v6777_v32, 0.0  ;;  %v1782_v34 = vsel %vm1746_vm11, %v6777_v32, 0.0  ;;  %v1849_v21 = vsel %vm1813_vm2, %v6780_v13, 0.0 }
 0x184   : > { %v1850_v16 = vsel %vm1814_vm3, %v6780_v13, 0.0  ;;  %v1881_v26 = vadd.f32 %v1849_v21, %v1781_v31  ;;  %vm1913_vm4 = vcmp.eq.s32.totalorder %v1713_v15, 16  ;;  %vm1914_vm5 = vcmp.eq.s32.totalorder %v1714_v42, 16 }
 0x185   : > { %v2089_v47 = vpack.c.bf16 %v2064_v19, %v2063_v18  ;;  %v1882_v33 = vadd.f32 %v1850_v16, %v1782_v34  ;;  %v1949_v58 = vsel %vm1913_vm4, %v6783_v25, 0.0  ;;  %v1950_v49 = vsel %vm1914_vm5, %v6783_v25, 0.0 }
 0x186   : > { %v1981_v10 = vadd.f32 %v1949_v58, %v1881_v26  ;;  %vm2013_vm8 = vcmp.eq.s32.totalorder %v1713_v15, 17  ;;  %vm2014_vm10 = vcmp.eq.s32.totalorder %v1714_v42, 17  ;;  %v1698_v2 = vsub.s32 %v6311_v8, %v6774_v50 }
 0x187   : > { %5521 = vmatpush3.bf16.msra.mxu1 %v2089_v47  ;;  %v1982_v56 = vadd.f32 %v1950_v49, %v1882_v33  ;;  %v2049_v6 = vsel %vm2013_vm8, %v6786_v53, 0.0  ;;  %v2050_v40 = vsel %vm2014_vm10, %v6786_v53, 0.0  ;;  %vm1729_vm12 = vcmp.eq.s32.totalorder %v1697_v55, 0 }
 0x188   : > { %v2081_v12 = vadd.f32 %v2049_v6, %v1981_v10  ;;  %vm1730_vm13 = vcmp.eq.s32.totalorder %v1698_v2, 0  ;;  %v1765_v18 = vsel %vm1729_vm12, %v6777_v32, 0.0  ;;  %vm1797_vm9 = vcmp.eq.s32.totalorder %v1697_v55, 1 }
 0x189   : > { %v2082_v19 = vadd.f32 %v2050_v40, %v1982_v56  ;;  %v1766_v31 = vsel %vm1730_vm13, %v6777_v32, 0.0  ;;  %vm1798_vm0 = vcmp.eq.s32.totalorder %v1698_v2, 1  ;;  %v1833_v15 = vsel %vm1797_vm9, %v6780_v13, 0.0 }
 0x18a   : > { %v1834_v50 = vsel %vm1798_vm0, %v6780_v13, 0.0  ;;  %v1865_v42 = vadd.f32 %v1833_v15, %v1765_v18  ;;  %vm1897_vm6 = vcmp.eq.s32.totalorder %v1697_v55, 16  ;;  %vm1898_vm14 = vcmp.eq.s32.totalorder %v1698_v2, 16 }
 0x18b   : > { %v2098_v34 = vpack.c.bf16 %v2082_v19, %v2081_v12  ;;  %v1866_v21 = vadd.f32 %v1834_v50, %v1766_v31  ;;  %v1933_v16 = vsel %vm1897_vm6, %v6783_v25, 0.0  ;;  %v1934_v26 = vsel %vm1898_vm14, %v6783_v25, 0.0 }
 0x18c   : > { %v1965_v47 = vadd.f32 %v1933_v16, %v1865_v42  ;;  %vm1997_vm15 = vcmp.eq.s32.totalorder %v1697_v55, 17  ;;  %vm1998_vm7 = vcmp.eq.s32.totalorder %v1698_v2, 17  ;;  %v8987_v49 = vmov 0.0  }
 0x18d   : > { %5522 = vmatprep.subr.bf16.mxu1 %v2098_v34  ;;  %v1966_v33 = vadd.f32 %v1934_v26, %v1866_v21  ;;  %v2033_v32 = vsel %vm1997_vm15, %v6786_v53, 0.0  ;;  %v2034_v58 = vsel %vm1998_vm7, %v6786_v53, 0.0  ;;  %5676 = vmatprep.subr.bf16.mxu0 %v8987_v49  ;;  %vm9059_vm1 = vmmov 0  }
 0x18e   : > { %v2065_v13 = vadd.f32 %v2033_v32, %v1965_v47  ;;  %5678 = vmatprep.mubr.msk.bf16.mxu0 %vm9059_vm1, %v8987_v49  ;;  %v2701_v10 = vsub.s32 4, %v6154_v9 }
 0x18f   : > { %v2066_v25 = vadd.f32 %v2034_v58, %v1966_v33 }
 0x190   : > { %v7008_v55 = vrot.slane %v6267_v60, %v2701_v10  ;;  %v7011_v56 = vrot.slane %v6278_v0, %v2701_v10  ;;  %v7014_v53 = vrot.slane %v6316_v11, %v2701_v10  ;;  %v7021_v12 = vrot.slane %v6353_v41, %v2701_v10 }
 0x191   : > { %v2090_v2 = vpack.c.bf16 %v2066_v25, %v2065_v13  ;;  %v7024_v18 = vrot.slane %v6366_v54, %v2701_v10 }
 0x192   : > { %v2719_v6 = vsub.s32 %v6169_v14, %v7008_v55  ;;  %v2720_v40 = vsub.s32 %v6172_v17, %v7008_v55  ;;  %v2704_v58 = vsub.s32 %v9111_v39, %v7008_v55 }
 0x193   : > { %5523 = vmatpush3.bf16.msra.mxu1 %v2090_v2 }
 0x194   : > { %vm2751_vm11 = vcmp.eq.s32.totalorder %v2719_v6, 0  ;;  %vm2752_vm2 = vcmp.eq.s32.totalorder %v2720_v40, 0  ;;  %vm2819_vm3 = vcmp.eq.s32.totalorder %v2719_v6, 1  ;;  %vm2820_vm4 = vcmp.eq.s32.totalorder %v2720_v40, 1 }
 0x195   : > { %v2787_v19 = vsel %vm2751_vm11, %v7011_v56, 0.0  ;;  %v2788_v31 = vsel %vm2752_vm2, %v7011_v56, 0.0  ;;  %v2855_v15 = vsel %vm2819_vm3, %v7014_v53, 0.0  ;;  %v2856_v50 = vsel %vm2820_vm4, %v7014_v53, 0.0 }
 0x196   : > { %2132 = vmatmul.mubr.bf16.vlgmr.msra.gmra.mrb[8].mxu1 %v6815_v20  ;;  %v2887_v42 = vadd.f32 %v2855_v15, %v2787_v19  ;;  %v2888_v34 = vadd.f32 %v2856_v50, %v2788_v31  ;;  %vm2919_vm5 = vcmp.eq.s32.totalorder %v2719_v6, 16  ;;  %vm2920_vm8 = vcmp.eq.s32.totalorder %v2720_v40, 16 }
 0x197   : > { %v2955_v21 = vsel %vm2919_vm5, %v7021_v12, 0.0  ;;  %v2956_v16 = vsel %vm2920_vm8, %v7021_v12, 0.0  ;;  %vm3019_vm10 = vcmp.eq.s32.totalorder %v2719_v6, 17  ;;  %vm3020_vm12 = vcmp.eq.s32.totalorder %v2720_v40, 17  ;;  %3151 = vmatprep.mubr.bf16.mxu1 %v9114_v51 }
 0x198   : > { %v2987_v26 = vadd.f32 %v2955_v21, %v2887_v42  ;;  %v2988_v47 = vadd.f32 %v2956_v16, %v2888_v34  ;;  %v3055_v33 = vsel %vm3019_vm10, %v7024_v18, 0.0  ;;  %v3056_v32 = vsel %vm3020_vm12, %v7024_v18, 0.0 }
 0x199   : > { %v2703_v20 = vsub.s32 %v6154_v9, %v7008_v55  ;;  %vm2736_vm9 = vcmp.eq.s32.totalorder %v2704_v58, 0  ;;  %vm2804_vm6 = vcmp.eq.s32.totalorder %v2704_v58, 1  ;;  %vm2904_vm15 = vcmp.eq.s32.totalorder %v2704_v58, 16 }
 0x19a   : > { %v3087_v13 = vadd.f32 %v3055_v33, %v2987_v26  ;;  %v3088_v10 = vadd.f32 %v3056_v32, %v2988_v47  ;;  %v2772_v6 = vsel %vm2736_vm9, %v7011_v56, 0.0  ;;  %v2840_v31 = vsel %vm2804_vm6, %v7014_v53, 0.0 }
 0x19b   : > { %vm2735_vm13 = vcmp.eq.s32.totalorder %v2703_v20, 0  ;;  %vm2803_vm0 = vcmp.eq.s32.totalorder %v2703_v20, 1  ;;  %vm2903_vm14 = vcmp.eq.s32.totalorder %v2703_v20, 16  ;;  %v2872_v42 = vadd.f32 %v2840_v31, %v2772_v6 }
 0x19c   : > { %v3111_v25 = vpack.c.bf16 %v3088_v10, %v3087_v13  ;;  %v2771_v2 = vsel %vm2735_vm13, %v7011_v56, 0.0  ;;  %v2839_v40 = vsel %vm2803_vm0, %v7014_v53, 0.0  ;;  %v2939_v34 = vsel %vm2903_vm14, %v7021_v12, 0.0 }
 0x19d   : > { %v5476_v19 = vpop.f32.mrb[0].mxu1  ;;  %v2871_v15 = vadd.f32 %v2839_v40, %v2771_v2  ;;  %v2940_v21 = vsel %vm2904_vm15, %v7021_v12, 0.0  ;;  %vm3003_vm7 = vcmp.eq.s32.totalorder %v2703_v20, 17  ;;  %vm3004_vm11 = vcmp.eq.s32.totalorder %v2704_v58, 17 }
 0x19e   : > { %v5477_v50 = vpop.f32.mrb[1].mxu1  ;;  %5556 = vmatprep.subr.bf16.mxu1 %v3111_v25  ;;  %v3039_v33 = vsel %vm3003_vm7, %v7024_v18, 0.0  ;;  %v2972_v13 = vadd.f32 %v2940_v21, %v2872_v42  ;;  %v3040_v10 = vsel %vm3004_vm11, %v7024_v18, 0.0  ;;  %vm9062_vm2 = vcmask 1041408  }
 0x19f   : > { %v5478_v16 = vadd.f32 %v5477_v50, %v5476_v19  ;;  %v5479_v26 = vpop.f32.mrb[2].mxu1  ;;  %v2971_v47 = vadd.f32 %v2939_v34, %v2871_v15  ;;  %v2721_v6 = vsub.s32 %v9112_v43, %v7008_v55  ;;  %v2722_v20 = vsub.s32 %v9115_v5, %v7008_v55 }
 0x1a0   : > { %v5480_v32 = vpop.f32.mrb[3].mxu1  ;;  %v3072_v40 = vadd.f32 %v3040_v10, %v2972_v13  ;;  %v2705_v19 = vsub.s32 %v6188_v22, %v7008_v55  ;;  %v2706_v31 = vsub.s32 %v6191_v23, %v7008_v55 }
 0x1a1   : > { %v3071_v2 = vadd.f32 %v3039_v33, %v2971_v47  ;;  %v1121_v25 = vpack.c.bf16 %v5478_v16, %v5478_v16  ;;  %vm2753_vm3 = vcmp.eq.s32.totalorder %v2721_v6, 0  ;;  %vm2754_vm4 = vcmp.eq.s32.totalorder %v2722_v20, 0 }
 0x1a2   : > { %vm2821_vm5 = vcmp.eq.s32.totalorder %v2721_v6, 1  ;;  %vm2822_vm8 = vcmp.eq.s32.totalorder %v2722_v20, 1  ;;  %v2790_v15 = vsel %vm2754_vm4, %v7011_v56, 0.0  ;;  %vm2921_vm10 = vcmp.eq.s32.totalorder %v2721_v6, 16 }
 0x1a3   : > { %v3103_v49 = vpack.c.bf16 %v3072_v40, %v3071_v2  ;;  %v7053_v58 = vsel %vm9062_vm2, %v1121_v25, 0  ;;  %v2857_v50 = vsel %vm2821_vm5, %v7014_v53, 0.0  ;;  %v2858_v42 = vsel %vm2822_vm8, %v7014_v53, 0.0 }
 0x1a4   : > { %v2890_v21 = vadd.f32 %v2858_v42, %v2790_v15  ;;  %vm2922_vm12 = vcmp.eq.s32.totalorder %v2722_v20, 16  ;;  %v2957_v16 = vsel %vm2921_vm10, %v7021_v12, 0.0  ;;  %vm2737_vm13 = vcmp.eq.s32.totalorder %v2705_v19, 0 }
 0x1a5   : > { %5557 = vmatpush3.bf16.msra.mxu1 %v3103_v49  ;;  %v2789_v49 = vsel %vm2753_vm3, %v7011_v56, 0.0  ;;  %v2958_v26 = vsel %vm2922_vm12, %v7021_v12, 0.0  ;;  %vm2738_vm9 = vcmp.eq.s32.totalorder %v2706_v31, 0  ;;  %vm3021_vm0 = vcmp.eq.s32.totalorder %v2721_v6, 17 }
 0x1a6   : > { %v2889_v34 = vadd.f32 %v2857_v50, %v2789_v49  ;;  %v2990_v33 = vadd.f32 %v2958_v26, %v2890_v21  ;;  %vm3022_vm6 = vcmp.eq.s32.totalorder %v2722_v20, 17  ;;  %v3057_v32 = vsel %vm3021_vm0, %v7024_v18, 0.0 }
 0x1a7   : > { %v3058_v13 = vsel %vm3022_vm6, %v7024_v18, 0.0  ;;  %v2773_v10 = vsel %vm2737_vm13, %v7011_v56, 0.0  ;;  %v2774_v2 = vsel %vm2738_vm9, %v7011_v56, 0.0  ;;  %vm2805_vm14 = vcmp.eq.s32.totalorder %v2705_v19, 1 }
 0x1a8   : > { %v2989_v47 = vadd.f32 %v2957_v16, %v2889_v34  ;;  %v3090_v25 = vadd.f32 %v3058_v13, %v2990_v33  ;;  %vm2806_vm15 = vcmp.eq.s32.totalorder %v2706_v31, 1  ;;  %v2841_v49 = vsel %vm2805_vm14, %v7014_v53, 0.0 }
 0x1a9   : > { %v2842_v15 = vsel %vm2806_vm15, %v7014_v53, 0.0  ;;  %vm2905_vm7 = vcmp.eq.s32.totalorder %v2705_v19, 16  ;;  %vm2906_vm11 = vcmp.eq.s32.totalorder %v2706_v31, 16  ;;  %v2873_v20 = vadd.f32 %v2841_v49, %v2773_v10 }
 0x1aa   : > { %v3089_v40 = vadd.f32 %v3057_v32, %v2989_v47  ;;  %v2874_v50 = vadd.f32 %v2842_v15, %v2774_v2  ;;  %v2941_v42 = vsel %vm2905_vm7, %v7021_v12, 0.0  ;;  %v2942_v34 = vsel %vm2906_vm11, %v7021_v12, 0.0 }
 0x1ab   : > { %vm3005_vm3 = vcmp.eq.s32.totalorder %v2705_v19, 17  ;;  %vm3006_vm4 = vcmp.eq.s32.totalorder %v2706_v31, 17  ;;  %v2723_v21 = vsub.s32 %v6194_v24, %v7008_v55  ;;  %v2973_v16 = vadd.f32 %v2941_v42, %v2873_v20 }
 0x1ac   : > { %v3112_v6 = vpack.c.bf16 %v3090_v25, %v3089_v40  ;;  %v2974_v26 = vadd.f32 %v2942_v34, %v2874_v50  ;;  %v3041_v47 = vsel %vm3005_vm3, %v7024_v18, 0.0  ;;  %v3042_v33 = vsel %vm3006_vm4, %v7024_v18, 0.0 }
 0x1ad   : > { %v2724_v32 = vsub.s32 %v6198_v27, %v7008_v55  ;;  %vm2755_vm5 = vcmp.eq.s32.totalorder %v2723_v21, 0  ;;  %vm2823_vm8 = vcmp.eq.s32.totalorder %v2723_v21, 1  ;;  %vm2923_vm10 = vcmp.eq.s32.totalorder %v2723_v21, 16 }
 0x1ae   : > { %5558 = vmatprep.subr.bf16.mxu1 %v3112_v6  ;;  %v3073_v13 = vadd.f32 %v3041_v47, %v2973_v16  ;;  %v3074_v10 = vadd.f32 %v3042_v33, %v2974_v26  ;;  %v2791_v19 = vsel %vm2755_vm5, %v7011_v56, 0.0  ;;  %v2859_v31 = vsel %vm2823_vm8, %v7014_v53, 0.0 }
 0x1af   : > { %vm2756_vm12 = vcmp.eq.s32.totalorder %v2724_v32, 0  ;;  %vm2824_vm13 = vcmp.eq.s32.totalorder %v2724_v32, 1  ;;  %v2891_v2 = vadd.f32 %v2859_v31, %v2791_v19  ;;  %vm2924_vm9 = vcmp.eq.s32.totalorder %v2724_v32, 16 }
 0x1b0   : > { %v3104_v40 = vpack.c.bf16 %v3074_v10, %v3073_v13  ;;  %v2792_v25 = vsel %vm2756_vm12, %v7011_v56, 0.0  ;;  %v2860_v49 = vsel %vm2824_vm13, %v7014_v53, 0.0  ;;  %v2959_v15 = vsel %vm2923_vm10, %v7021_v12, 0.0 }
 0x1b1   : > { %v2892_v6 = vadd.f32 %v2860_v49, %v2792_v25  ;;  %v2960_v20 = vsel %vm2924_vm9, %v7021_v12, 0.0  ;;  %v2991_v50 = vadd.f32 %v2959_v15, %v2891_v2  ;;  %vm3023_vm0 = vcmp.eq.s32.totalorder %v2723_v21, 17 }
 0x1b2   : > { %5559 = vmatpush3.bf16.msra.mxu1 %v3104_v40  ;;  %vm3024_vm6 = vcmp.eq.s32.totalorder %v2724_v32, 17  ;;  %v3059_v42 = vsel %vm3023_vm0, %v7024_v18, 0.0  ;;  %v2707_v34 = vsub.s32 %v6201_v28, %v7008_v55  ;;  %v2708_v16 = vsub.s32 %v6204_v29, %v7008_v55 }
 0x1b3   : > { %v2992_v26 = vadd.f32 %v2960_v20, %v2892_v6  ;;  %v3060_v47 = vsel %vm3024_vm6, %v7024_v18, 0.0  ;;  %v3091_v33 = vadd.f32 %v3059_v42, %v2991_v50  ;;  %v2191_v13 = vsub.s32 3, %v6154_v9 }
 0x1b4   : > { %vm2739_vm14 = vcmp.eq.s32.totalorder %v2707_v34, 0  ;;  %vm2740_vm15 = vcmp.eq.s32.totalorder %v2708_v16, 0  ;;  %vm2807_vm7 = vcmp.eq.s32.totalorder %v2707_v34, 1  ;;  %vm2808_vm11 = vcmp.eq.s32.totalorder %v2708_v16, 1 }
 0x1b5   : > { %v3092_v21 = vadd.f32 %v3060_v47, %v2992_v26  ;;  %v2775_v32 = vsel %vm2739_vm14, %v7011_v56, 0.0  ;;  %v2776_v10 = vsel %vm2740_vm15, %v7011_v56, 0.0  ;;  %v2843_v19 = vsel %vm2807_vm7, %v7014_v53, 0.0 }
 0x1b6   : > { %v2844_v31 = vsel %vm2808_vm11, %v7014_v53, 0.0  ;;  %v2875_v2 = vadd.f32 %v2843_v19, %v2775_v32  ;;  %vm2907_vm3 = vcmp.eq.s32.totalorder %v2707_v34, 16  ;;  %vm2908_vm4 = vcmp.eq.s32.totalorder %v2708_v16, 16 }
 0x1b7   : > { %v3113_v40 = vpack.c.bf16 %v3092_v21, %v3091_v33  ;;  %v2876_v25 = vadd.f32 %v2844_v31, %v2776_v10  ;;  %v2943_v49 = vsel %vm2907_vm3, %v7021_v12, 0.0  ;;  %v2944_v15 = vsel %vm2908_vm4, %v7021_v12, 0.0 }
 0x1b8   : > { %v2975_v6 = vadd.f32 %v2943_v49, %v2875_v2  ;;  %vm3007_vm5 = vcmp.eq.s32.totalorder %v2707_v34, 17  ;;  %vm3008_vm8 = vcmp.eq.s32.totalorder %v2708_v16, 17  ;;  %v7099_v20 = vrot.slane %v6267_v60, %v2191_v13 }
 0x1b9   : > { %5560 = vmatprep.subr.bf16.mxu1 %v3113_v40  ;;  %v2976_v50 = vadd.f32 %v2944_v15, %v2876_v25  ;;  %v3043_v42 = vsel %vm3007_vm5, %v7024_v18, 0.0  ;;  %v3044_v26 = vsel %vm3008_vm8, %v7024_v18, 0.0  ;;  %v7104_v47 = vrot.slane %v6278_v0, %v2191_v13 }
 0x1ba   : > { %v3075_v33 = vadd.f32 %v3043_v42, %v2975_v6  ;;  %v2209_v21 = vsub.s32 %v6169_v14, %v7099_v20  ;;  %v2210_v34 = vsub.s32 %v6172_v17, %v7099_v20  ;;  %v7111_v16 = vrot.slane %v6316_v11, %v2191_v13 }
 0x1bb   : > { %v3076_v32 = vadd.f32 %v3044_v26, %v2976_v50  ;;  %v7114_v10 = vrot.slane %v6353_v41, %v2191_v13  ;;  %v7117_v19 = vrot.slane %v6366_v54, %v2191_v13  ;;  %v2725_v31 = vsub.s32 %v6207_v30, %v7008_v55 }
 0x1bc   : > { %vm2241_vm10 = vcmp.eq.s32.totalorder %v2209_v21, 0  ;;  %vm2242_vm12 = vcmp.eq.s32.totalorder %v2210_v34, 0  ;;  %vm2309_vm13 = vcmp.eq.s32.totalorder %v2209_v21, 1  ;;  %vm2310_vm9 = vcmp.eq.s32.totalorder %v2210_v34, 1 }
 0x1bd   : > { %v3105_v2 = vpack.c.bf16 %v3076_v32, %v3075_v33  ;;  %v2277_v40 = vsel %vm2241_vm10, %v7104_v47, 0.0  ;;  %v2278_v25 = vsel %vm2242_vm12, %v7104_v47, 0.0  ;;  %v2345_v49 = vsel %vm2309_vm13, %v7111_v16, 0.0 }
 0x1be   : > { %v2346_v15 = vsel %vm2310_vm9, %v7111_v16, 0.0  ;;  %v2377_v6 = vadd.f32 %v2345_v49, %v2277_v40  ;;  %vm2409_vm0 = vcmp.eq.s32.totalorder %v2209_v21, 16  ;;  %vm2410_vm6 = vcmp.eq.s32.totalorder %v2210_v34, 16 }
 0x1bf   : > { %5561 = vmatpush3.bf16.msra.mxu1 %v3105_v2  ;;  %v2378_v13 = vadd.f32 %v2346_v15, %v2278_v25  ;;  %v2445_v50 = vsel %vm2409_vm0, %v7114_v10, 0.0  ;;  %v2446_v42 = vsel %vm2410_vm6, %v7114_v10, 0.0  ;;  %vm2509_vm14 = vcmp.eq.s32.totalorder %v2209_v21, 17 }
 0x1c0   : > { %v2477_v26 = vadd.f32 %v2445_v50, %v2377_v6  ;;  %vm2510_vm15 = vcmp.eq.s32.totalorder %v2210_v34, 17  ;;  %v2545_v33 = vsel %vm2509_vm14, %v7117_v19, 0.0  ;;  %v2726_v32 = vsub.s32 %v6210_v35, %v7008_v55 }
 0x1c1   : > { %v2478_v17 = vadd.f32 %v2446_v42, %v2378_v13  ;;  %v2546_v14 = vsel %vm2510_vm15, %v7117_v19, 0.0  ;;  %vm2757_vm7 = vcmp.eq.s32.totalorder %v2725_v31, 0  ;;  %vm2825_vm11 = vcmp.eq.s32.totalorder %v2725_v31, 1 }
 0x1c2   : > { %v7131_v40 = vadd.f32 %v2545_v33, %v2477_v26  ;;  %vm2758_vm3 = vcmp.eq.s32.totalorder %v2726_v32, 0  ;;  %v2793_v2 = vsel %vm2757_vm7, %v7011_v56, 0.0  ;;  %vm2826_vm4 = vcmp.eq.s32.totalorder %v2726_v32, 1 }
 0x1c3   : > { %vm9061_vm5 = vcmask 31744   ;;  %v7134_v21 = vadd.f32 %v2546_v14, %v2478_v17  ;;  %v2794_v34 = vsel %vm2758_vm3, %v7011_v56, 0.0  ;;  %v2861_v25 = vsel %vm2825_vm11, %v7014_v53, 0.0 }
 0x1c4   : > { %v2862_v49 = vsel %vm2826_vm4, %v7014_v53, 0.0  ;;  %v2893_v6 = vadd.f32 %v2861_v25, %v2793_v2  ;;  %vm2925_vm8 = vcmp.eq.s32.totalorder %v2725_v31, 16  ;;  %vm2926_vm10 = vcmp.eq.s32.totalorder %v2726_v32, 16 }
 0x1c5   : > { %v2894_v13 = vadd.f32 %v2862_v49, %v2794_v34  ;;  %v2961_v26 = vsel %vm2925_vm8, %v7021_v12, 0.0  ;;  %v2962_v14 = vsel %vm2926_vm10, %v7021_v12, 0.0  ;;  %vm3025_vm12 = vcmp.eq.s32.totalorder %v2725_v31, 17 }
 0x1c6   : > { %v2993_v54 = vadd.f32 %v2961_v26, %v2893_v6  ;;  %vm3026_vm13 = vcmp.eq.s32.totalorder %v2726_v32, 17  ;;  %v3061_v2 = vsel %vm3025_vm12, %v7024_v18, 0.0  ;;  %v2193_v25 = vsub.s32 %v6154_v9, %v7099_v20 }
 0x1c7   : > { %v2994_v41 = vadd.f32 %v2962_v14, %v2894_v13  ;;  %v3062_v34 = vsel %vm3026_vm13, %v7024_v18, 0.0  ;;  %v2194_v49 = vsub.s32 %v9111_v39, %v7099_v20  ;;  %v2709_v31 = vsub.s32 %v6213_v36, %v7008_v55 }
 0x1c8   : > { %v3093_v0 = vadd.f32 %v3061_v2, %v2993_v54  ;;  %vm2225_vm9 = vcmp.eq.s32.totalorder %v2193_v25, 0  ;;  %vm2293_vm6 = vcmp.eq.s32.totalorder %v2193_v25, 1  ;;  %v5437_v54 = vld [vmem:[%s8970_s5 + $0x4] sm:$0xf]  ;;  %vm2393_vm15 = vcmp.eq.s32.totalorder %v2193_v25, 16 }
 0x1c9   : > { %v3094_v60 = vadd.f32 %v3062_v34, %v2994_v41  ;;  %vm2226_vm0 = vcmp.eq.s32.totalorder %v2194_v49, 0  ;;  %vm2294_vm14 = vcmp.eq.s32.totalorder %v2194_v49, 1  ;;  %v2329_v41 = vsel %vm2293_vm6, %v7111_v16, 0.0 }
 0x1ca   : > { %v2262_v6 = vsel %vm2226_vm0, %v7104_v47, 0.0  ;;  %v2330_v13 = vsel %vm2294_vm14, %v7111_v16, 0.0  ;;  %vm2394_vm7 = vcmp.eq.s32.totalorder %v2194_v49, 16  ;;  %vm2493_vm11 = vcmp.eq.s32.totalorder %v2193_v25, 17 }
 0x1cb   : > { %v3114_v32 = vpack.c.bf16 %v3094_v60, %v3093_v0  ;;  %v2362_v60 = vadd.f32 %v2330_v13, %v2262_v6  ;;  %v2429_v0 = vsel %vm2393_vm15, %v7114_v10, 0.0  ;;  %v2430_v26 = vsel %vm2394_vm7, %v7114_v10, 0.0 }
 0x1cc   : > { %vm2494_vm3 = vcmp.eq.s32.totalorder %v2194_v49, 17  ;;  %v2710_v14 = vsub.s32 %v6216_v37, %v7008_v55  ;;  %vm2741_vm4 = vcmp.eq.s32.totalorder %v2709_v31, 0  ;;  %v2529_v2 = vsel %vm2493_vm11, %v7117_v19, 0.0 }
 0x1cd   : > { %5562 = vmatprep.subr.bf16.mxu1 %v3114_v32  ;;  %v2530_v34 = vsel %vm2494_vm3, %v7117_v19, 0.0  ;;  %v2777_v25 = vsel %vm2741_vm4, %v7011_v56, 0.0  ;;  %vm2809_vm10 = vcmp.eq.s32.totalorder %v2709_v31, 1  ;;  %vm2909_vm13 = vcmp.eq.s32.totalorder %v2709_v31, 16 }
 0x1ce   : > { %vm2742_vm8 = vcmp.eq.s32.totalorder %v2710_v14, 0  ;;  %vm2810_vm12 = vcmp.eq.s32.totalorder %v2710_v14, 1  ;;  %v2945_v13 = vsel %vm2909_vm13, %v7021_v12, 0.0  ;;  %vm3009_vm0 = vcmp.eq.s32.totalorder %v2709_v31, 17 }
 0x1cf   : > { %v2778_v32 = vsel %vm2742_vm8, %v7011_v56, 0.0  ;;  %vm3010_vm6 = vcmp.eq.s32.totalorder %v2710_v14, 17 }
 0x203   : > { %v5498_v15 = vpop.f32.mrb[4].mxu1 }
 0x204   : > { %v5499_v50 = vpop.f32.mrb[5].mxu1 }
 0x205   : > { %v5500_v17 = vadd.f32 %v5499_v50, %v5498_v15  ;;  %v5501_v33 = vpop.f32.mrb[6].mxu1  ;;  %v2261_v15 = vsel %vm2225_vm9, %v7104_v47, 0.0  ;;  %v9116_v50 = vmov 0.0   ;;  %vm2910_vm9 = vcmp.eq.s32.totalorder %v2710_v14, 16  ;;  %v1120_v14 = vld [vmem:[%s8970_s5] sm:$0xf] }
 0x206   : > { %v5502_v11 = vpop.f32.mrb[7].mxu1  ;;  %v2462_v33 = vadd.f32 %v2430_v26, %v2362_v60 }
 0x207   : > { %v1584_v42 = vpack.c.bf16 %v5500_v17, %v5500_v17 }
 0x209   : > { %v1591_v11 = vsel %vm9062_vm2, %v1584_v42, 0  ;;  %v2361_v42 = vadd.f32 %v2329_v41, %v2261_v15  ;;  %v2845_v15 = vsel %vm2809_vm10, %v7014_v53, 0.0 }
 0x20a   : > { %5677 = vmatpush3.bf16.msra.mxu0 %v1591_v11  ;;  %v7174_v11 = vadd.f32 %v2530_v34, %v2462_v33  ;;  %v2877_v6 = vadd.f32 %v2845_v15, %v2777_v25  ;;  %v3046_v33 = vsel %vm3010_vm6, %v7024_v18, 0.0 }
 0x20b   : > { %5682 = vmatprep.subr.bf16.mxu0 %v9116_v50  ;;  %v2461_v17 = vadd.f32 %v2429_v0, %v2361_v42  ;;  %v2946_v42 = vsel %vm2910_vm9, %v7021_v12, 0.0  ;;  %v2211_v0 = vsub.s32 %v9112_v43, %v7099_v20 }
 0x20c   : > { %v2977_v60 = vadd.f32 %v2945_v13, %v2877_v6 }
 0x20d   : > { %5679 = vmatmul.mubr.msk.bf16.vlgmr.msra.gmra.mrb[0].mxu0 %vm9061_vm5, %v5437_v54  ;;  %v7172_v49 = vadd.f32 %v2529_v2, %v2461_v17  ;;  %v3045_v17 = vsel %vm3009_vm0, %v7024_v18, 0.0  ;;  %v2212_v2 = vsub.s32 %v9115_v5, %v7099_v20  ;;  %vm2243_vm14 = vcmp.eq.s32.totalorder %v2211_v0, 0 }
 0x20e   : > { %5683 = vmatpush3.bf16.msra.mxu0 %v7053_v58  ;;  %5684 = vmatprep.mubr.msk.bf16.mxu0 %vm9059_vm1, %v9116_v50  ;;  %v2846_v58 = vsel %vm2810_vm12, %v7014_v53, 0.0  ;;  %v3077_v34 = vadd.f32 %v3045_v17, %v2977_v60  ;;  %vm2311_vm15 = vcmp.eq.s32.totalorder %v2211_v0, 1  ;;  %vm2411_vm7 = vcmp.eq.s32.totalorder %v2211_v0, 16 }
 0x20f   : > { %5688 = vmatprep.subr.bf16.mxu0 %v9116_v50  ;;  %v2878_v41 = vadd.f32 %v2846_v58, %v2778_v32  ;;  %vm2244_vm11 = vcmp.eq.s32.totalorder %v2212_v2, 0  ;;  %v2279_v31 = vsel %vm2243_vm14, %v7104_v47, 0.0  ;;  %vm2312_vm3 = vcmp.eq.s32.totalorder %v2212_v2, 1 }
 0x210   : > { %v2280_v32 = vsel %vm2244_vm11, %v7104_v47, 0.0  ;;  %v2347_v15 = vsel %vm2311_vm15, %v7111_v16, 0.0  ;;  %v2348_v58 = vsel %vm2312_vm3, %v7111_v16, 0.0  ;;  %vm2412_vm4 = vcmp.eq.s32.totalorder %v2212_v2, 16 }
 0x211   : > { %v2978_v26 = vadd.f32 %v2946_v42, %v2878_v41  ;;  %v2379_v41 = vadd.f32 %v2347_v15, %v2279_v31  ;;  %v2380_v13 = vadd.f32 %v2348_v58, %v2280_v32  ;;  %v2447_v42 = vsel %vm2411_vm7, %v7114_v10, 0.0 }
 0x212   : > { %v2448_v60 = vsel %vm2412_vm4, %v7114_v10, 0.0  ;;  %vm2511_vm8 = vcmp.eq.s32.totalorder %v2211_v0, 17  ;;  %vm2512_vm10 = vcmp.eq.s32.totalorder %v2212_v2, 17 }
 0x213   : > { %v3078_v25 = vadd.f32 %v3046_v33, %v2978_v26  ;;  %v2727_v26 = vsub.s32 %v6219_v38, %v7008_v55  ;;  %v2479_v17 = vadd.f32 %v2447_v42, %v2379_v41  ;;  %v2480_v33 = vadd.f32 %v2448_v60, %v2380_v13 }
 0x214   : > { %v2547_v54 = vsel %vm2511_vm8, %v7117_v19, 0.0 }
 0x215   : > { %v3106_v6 = vpack.c.bf16 %v3078_v25, %v3077_v34  ;;  %v2548_v34 = vsel %vm2512_vm10, %v7117_v19, 0.0  ;;  %v2728_v25 = vsub.s32 %v6229_v44, %v7008_v55  ;;  %vm2759_vm12 = vcmp.eq.s32.totalorder %v2727_v26, 0 }
 0x216   : > { %vm2827_vm13 = vcmp.eq.s32.totalorder %v2727_v26, 1  ;;  %vm2927_vm9 = vcmp.eq.s32.totalorder %v2727_v26, 16  ;;  %v7207_v0 = vadd.f32 %v2547_v54, %v2479_v17  ;;  %v7209_v2 = vadd.f32 %v2548_v34, %v2480_v33 }
 0x217   : > { %5563 = vmatpush3.bf16.msra.mxu1 %v3106_v6  ;;  %v2795_v31 = vsel %vm2759_vm12, %v7011_v56, 0.0  ;;  %vm2760_vm0 = vcmp.eq.s32.totalorder %v2728_v25, 0  ;;  %vm2828_vm6 = vcmp.eq.s32.totalorder %v2728_v25, 1  ;;  %vm2928_vm14 = vcmp.eq.s32.totalorder %v2728_v25, 16 }
 0x218   : > { %v2796_v58 = vsel %vm2760_vm0, %v7011_v56, 0.0  ;;  %v2864_v6 = vsel %vm2828_vm6, %v7014_v53, 0.0  ;;  %v2963_v54 = vsel %vm2927_vm9, %v7021_v12, 0.0  ;;  %v2964_v13 = vsel %vm2928_vm14, %v7021_v12, 0.0 }
 0x219   : > { %5685 = vmatmul.mubr.msk.bf16.vlgmr.msra.gmra.mrb[0].mxu0 %vm9061_vm5, %v1120_v14  ;;  %v2863_v14 = vsel %vm2827_vm13, %v7014_v53, 0.0  ;;  %v2896_v41 = vadd.f32 %v2864_v6, %v2796_v58  ;;  %vm3027_vm15 = vcmp.eq.s32.totalorder %v2727_v26, 17  ;;  %vm3028_vm7 = vcmp.eq.s32.totalorder %v2728_v25, 17 }
 0x21a   : > { %5690 = vmatprep.mubr.msk.bf16.mxu0 %vm9059_vm1, %v9116_v50  ;;  %v2895_v32 = vadd.f32 %v2863_v14, %v2795_v31  ;;  %v3063_v60 = vsel %vm3027_vm15, %v7024_v18, 0.0  ;;  %v2195_v17 = vsub.s32 %v6188_v22, %v7099_v20  ;;  %v2196_v33 = vsub.s32 %v6191_v23, %v7099_v20 }
 0x21b   : > { %v2996_v34 = vadd.f32 %v2964_v13, %v2896_v41  ;;  %v3064_v31 = vsel %vm3028_vm7, %v7024_v18, 0.0  ;;  %v2711_v58 = vsub.s32 %v6232_v45, %v7008_v55 }
 0x21c   : > { %v2995_v42 = vadd.f32 %v2963_v54, %v2895_v32  ;;  %vm2227_vm11 = vcmp.eq.s32.totalorder %v2195_v17, 0  ;;  %vm2228_vm3 = vcmp.eq.s32.totalorder %v2196_v33, 0  ;;  %vm2295_vm4 = vcmp.eq.s32.totalorder %v2195_v17, 1 }
 0x21d   : > { %vm2296_vm8 = vcmp.eq.s32.totalorder %v2196_v33, 1  ;;  %v3096_v26 = vadd.f32 %v3064_v31, %v2996_v34  ;;  %v2263_v25 = vsel %vm2227_vm11, %v7104_v47, 0.0  ;;  %v2264_v32 = vsel %vm2228_vm3, %v7104_v47, 0.0 }
 0x21e   : > { %v3095_v14 = vadd.f32 %v3063_v60, %v2995_v42  ;;  %v2331_v6 = vsel %vm2295_vm4, %v7111_v16, 0.0  ;;  %v2332_v54 = vsel %vm2296_vm8, %v7111_v16, 0.0  ;;  %vm2395_vm10 = vcmp.eq.s32.totalorder %v2195_v17, 16 }
 0x21f   : > { %v2363_v41 = vadd.f32 %v2331_v6, %v2263_v25  ;;  %vm2396_vm12 = vcmp.eq.s32.totalorder %v2196_v33, 16  ;;  %v2364_v42 = vadd.f32 %v2332_v54, %v2264_v32  ;;  %v2431_v60 = vsel %vm2395_vm10, %v7114_v10, 0.0 }
 0x220   : > { %v3115_v13 = vpack.c.bf16 %v3096_v26, %v3095_v14  ;;  %v2432_v15 = vsel %vm2396_vm12, %v7114_v10, 0.0  ;;  %vm2495_vm13 = vcmp.eq.s32.totalorder %v2195_v17, 17  ;;  %vm2496_vm9 = vcmp.eq.s32.totalorder %v2196_v33, 17 }
 0x221   : > { %v2463_v50 = vadd.f32 %v2431_v60, %v2363_v41  ;;  %v2712_v34 = vsub.s32 %v6235_v46, %v7008_v55  ;;  %v2464_v31 = vadd.f32 %v2432_v15, %v2364_v42  ;;  %v2531_v23 = vsel %vm2495_vm13, %v7117_v19, 0.0 }
 0x222   : > { %5564 = vmatprep.subr.bf16.mxu1 %v3115_v13  ;;  %v2532_v25 = vsel %vm2496_vm9, %v7117_v19, 0.0  ;;  %vm2743_vm0 = vcmp.eq.s32.totalorder %v2711_v58, 0  ;;  %vm2811_vm14 = vcmp.eq.s32.totalorder %v2711_v58, 1  ;;  %vm2911_vm7 = vcmp.eq.s32.totalorder %v2711_v58, 16 }
 0x223   : > { %v7237_v6 = vadd.f32 %v2531_v23, %v2463_v50  ;;  %vm2744_vm6 = vcmp.eq.s32.totalorder %v2712_v34, 0  ;;  %v2779_v14 = vsel %vm2743_vm0, %v7011_v56, 0.0  ;;  %v7240_v26 = vadd.f32 %v2532_v25, %v2464_v31 }
 0x224   : > { %v2780_v17 = vsel %vm2744_vm6, %v7011_v56, 0.0  ;;  %vm2812_vm15 = vcmp.eq.s32.totalorder %v2712_v34, 1  ;;  %v2847_v33 = vsel %vm2811_vm14, %v7014_v53, 0.0  ;;  %vm2912_vm11 = vcmp.eq.s32.totalorder %v2712_v34, 16 }
 0x225   : > { %v2848_v15 = vsel %vm2812_vm15, %v7014_v53, 0.0  ;;  %v2879_v32 = vadd.f32 %v2847_v33, %v2779_v14  ;;  %v2947_v54 = vsel %vm2911_vm7, %v7021_v12, 0.0  ;;  %v2948_v41 = vsel %vm2912_vm11, %v7021_v12, 0.0 }
 0x226   : > { %v2880_v50 = vadd.f32 %v2848_v15, %v2780_v17  ;;  %vm3011_vm3 = vcmp.eq.s32.totalorder %v2711_v58, 17  ;;  %vm3012_vm4 = vcmp.eq.s32.totalorder %v2712_v34, 17  ;;  %v2213_v42 = vsub.s32 %v6194_v24, %v7099_v20 }
 0x227   : > { %v2979_v13 = vadd.f32 %v2947_v54, %v2879_v32  ;;  %v3047_v31 = vsel %vm3011_vm3, %v7024_v18, 0.0  ;;  %v3048_v25 = vsel %vm3012_vm4, %v7024_v18, 0.0  ;;  %v2214_v14 = vsub.s32 %v6198_v27, %v7099_v20 }
 0x228   : > { %v2980_v60 = vadd.f32 %v2948_v41, %v2880_v50  ;;  %vm2245_vm8 = vcmp.eq.s32.totalorder %v2213_v42, 0  ;;  %vm2313_vm10 = vcmp.eq.s32.totalorder %v2213_v42, 1  ;;  %vm2413_vm12 = vcmp.eq.s32.totalorder %v2213_v42, 16 }
 0x229   : > { %v3079_v33 = vadd.f32 %v3047_v31, %v2979_v13  ;;  %vm2246_vm13 = vcmp.eq.s32.totalorder %v2214_v14, 0  ;;  %v2281_v58 = vsel %vm2245_vm8, %v7104_v47, 0.0  ;;  %vm2314_vm9 = vcmp.eq.s32.totalorder %v2214_v14, 1 }
 0x22a   : > { %v3080_v17 = vadd.f32 %v3048_v25, %v2980_v60  ;;  %v2282_v34 = vsel %vm2246_vm13, %v7104_v47, 0.0  ;;  %v2349_v15 = vsel %vm2313_vm10, %v7111_v16, 0.0  ;;  %v2350_v32 = vsel %vm2314_vm9, %v7111_v16, 0.0 }
 0x22b   : > { %vm2414_vm0 = vcmp.eq.s32.totalorder %v2214_v14, 16  ;;  %v2381_v54 = vadd.f32 %v2349_v15, %v2281_v58  ;;  %v2382_v41 = vadd.f32 %v2350_v32, %v2282_v34  ;;  %v2449_v13 = vsel %vm2413_vm12, %v7114_v10, 0.0 }
 0x22c   : > { %v3107_v50 = vpack.c.bf16 %v3080_v17, %v3079_v33  ;;  %v2450_v31 = vsel %vm2414_vm0, %v7114_v10, 0.0  ;;  %vm2513_vm6 = vcmp.eq.s32.totalorder %v2213_v42, 17  ;;  %vm2514_vm14 = vcmp.eq.s32.totalorder %v2214_v14, 17 }
 0x22d   : > { %v2729_v60 = vsub.s32 %v6243_v48, %v7008_v55  ;;  %v2481_v25 = vadd.f32 %v2449_v13, %v2381_v54  ;;  %v2482_v23 = vadd.f32 %v2450_v31, %v2382_v41  ;;  %v2549_v27 = vsel %vm2513_vm6, %v7117_v19, 0.0 }
 0x22e   : > { %5565 = vmatpush3.bf16.msra.mxu1 %v3107_v50  ;;  %v2550_v24 = vsel %vm2514_vm14, %v7117_v19, 0.0  ;;  %v2730_v33 = vsub.s32 %v6250_v52, %v7008_v55  ;;  %v2197_v13 = vsub.s32 %v6201_v28, %v7099_v20  ;;  %v2198_v31 = vsub.s32 %v6204_v29, %v7099_v20 }
 0x22f   : > { %vm2761_vm15 = vcmp.eq.s32.totalorder %v2729_v60, 0  ;;  %vm2829_vm7 = vcmp.eq.s32.totalorder %v2729_v60, 1  ;;  %vm2929_vm11 = vcmp.eq.s32.totalorder %v2729_v60, 16  ;;  %v7267_v17 = vadd.f32 %v2549_v27, %v2481_v25 }
 0x230   : > { %v7269_v42 = vadd.f32 %v2550_v24, %v2482_v23  ;;  %v2797_v14 = vsel %vm2761_vm15, %v7011_v56, 0.0  ;;  %v2865_v58 = vsel %vm2829_vm7, %v7014_v53, 0.0  ;;  %vm2762_vm3 = vcmp.eq.s32.totalorder %v2730_v33, 0 }
 0x231   : > { %vm2830_vm4 = vcmp.eq.s32.totalorder %v2730_v33, 1  ;;  %v2897_v34 = vadd.f32 %v2865_v58, %v2797_v14  ;;  %vm2930_vm8 = vcmp.eq.s32.totalorder %v2730_v33, 16  ;;  %v2798_v32 = vsel %vm2762_vm3, %v7011_v56, 0.0 }
 0x232   : > { %v2866_v50 = vsel %vm2830_vm4, %v7014_v53, 0.0  ;;  %v2965_v27 = vsel %vm2929_vm11, %v7021_v12, 0.0  ;;  %v2966_v24 = vsel %vm2930_vm8, %v7021_v12, 0.0  ;;  %vm3029_vm10 = vcmp.eq.s32.totalorder %v2729_v60, 17 }
 0x233   : > { %v2898_v54 = vadd.f32 %v2866_v50, %v2798_v32  ;;  %v2997_v23 = vadd.f32 %v2965_v27, %v2897_v34  ;;  %vm3030_vm12 = vcmp.eq.s32.totalorder %v2730_v33, 17  ;;  %v3065_v41 = vsel %vm3029_vm10, %v7024_v18, 0.0 }
 0x234   : > { %v3066_v14 = vsel %vm3030_vm12, %v7024_v18, 0.0  ;;  %v2713_v32 = vsub.s32 %v6259_v57, %v7008_v55  ;;  %vm2229_vm13 = vcmp.eq.s32.totalorder %v2197_v13, 0  ;;  %vm2230_vm9 = vcmp.eq.s32.totalorder %v2198_v31, 0 }
 0x235   : > { %v2998_v25 = vadd.f32 %v2966_v24, %v2898_v54  ;;  %v3097_v58 = vadd.f32 %v3065_v41, %v2997_v23  ;;  %vm2297_vm0 = vcmp.eq.s32.totalorder %v2197_v13, 1  ;;  %vm2298_vm6 = vcmp.eq.s32.totalorder %v2198_v31, 1 }
 0x236   : > { %v2265_v33 = vsel %vm2229_vm13, %v7104_v47, 0.0  ;;  %v2266_v34 = vsel %vm2230_vm9, %v7104_v47, 0.0  ;;  %v2333_v50 = vsel %vm2297_vm0, %v7111_v16, 0.0  ;;  %v2334_v27 = vsel %vm2298_vm6, %v7111_v16, 0.0 }
 0x237   : > { %v3098_v60 = vadd.f32 %v3066_v14, %v2998_v25  ;;  %v2365_v54 = vadd.f32 %v2333_v50, %v2265_v33  ;;  %vm2397_vm14 = vcmp.eq.s32.totalorder %v2197_v13, 16  ;;  %vm2398_vm15 = vcmp.eq.s32.totalorder %v2198_v31, 16 }
 0x238   : > { %v2366_v23 = vadd.f32 %v2334_v27, %v2266_v34  ;;  %v2433_v41 = vsel %vm2397_vm14, %v7114_v10, 0.0  ;;  %v2434_v15 = vsel %vm2398_vm15, %v7114_v10, 0.0  ;;  %vm2497_vm7 = vcmp.eq.s32.totalorder %v2197_v13, 17 }
 0x239   : > { %v3116_v24 = vpack.c.bf16 %v3098_v60, %v3097_v58  ;;  %v2465_v29 = vadd.f32 %v2433_v41, %v2365_v54  ;;  %vm2498_vm11 = vcmp.eq.s32.totalorder %v2198_v31, 17  ;;  %v2714_v25 = vsub.s32 %v6263_v59, %v7008_v55 }
 0x23a   : > { %v2466_v14 = vadd.f32 %v2434_v15, %v2366_v23  ;;  %v2533_v28 = vsel %vm2497_vm7, %v7117_v19, 0.0  ;;  %v2534_v33 = vsel %vm2498_vm11, %v7117_v19, 0.0  ;;  %vm2745_vm3 = vcmp.eq.s32.totalorder %v2713_v32, 0 }
 0x23b   : > { %5566 = vmatprep.subr.bf16.mxu1 %v3116_v24  ;;  %v7297_v50 = vadd.f32 %v2533_v28, %v2465_v29  ;;  %vm2746_vm4 = vcmp.eq.s32.totalorder %v2714_v25, 0  ;;  %v2781_v58 = vsel %vm2745_vm3, %v7011_v56, 0.0  ;;  %vm2813_vm8 = vcmp.eq.s32.totalorder %v2713_v32, 1 }
 0x23c   : > { %v7300_v60 = vadd.f32 %v2534_v33, %v2466_v14  ;;  %v2782_v13 = vsel %vm2746_vm4, %v7011_v56, 0.0  ;;  %vm2814_vm10 = vcmp.eq.s32.totalorder %v2714_v25, 1  ;;  %v2849_v31 = vsel %vm2813_vm8, %v7014_v53, 0.0 }
 0x23d   : > { %v2850_v15 = vsel %vm2814_vm10, %v7014_v53, 0.0  ;;  %v2881_v34 = vadd.f32 %v2849_v31, %v2781_v58  ;;  %vm2913_vm12 = vcmp.eq.s32.totalorder %v2713_v32, 16  ;;  %vm2914_vm13 = vcmp.eq.s32.totalorder %v2714_v25, 16 }
 0x23e   : > { %v2882_v29 = vadd.f32 %v2850_v15, %v2782_v13  ;;  %v2949_v27 = vsel %vm2913_vm12, %v7021_v12, 0.0  ;;  %v2950_v54 = vsel %vm2914_vm13, %v7021_v12, 0.0  ;;  %vm3013_vm9 = vcmp.eq.s32.totalorder %v2713_v32, 17 }
 0x23f   : > { %v2981_v24 = vadd.f32 %v2949_v27, %v2881_v34  ;;  %vm3014_vm0 = vcmp.eq.s32.totalorder %v2714_v25, 17  ;;  %v2215_v23 = vsub.s32 %v6207_v30, %v7099_v20  ;;  %v3049_v14 = vsel %vm3013_vm9, %v7024_v18, 0.0 }
 0x240   : > { %v2982_v41 = vadd.f32 %v2950_v54, %v2882_v29  ;;  %v3050_v33 = vsel %vm3014_vm0, %v7024_v18, 0.0  ;;  %v2216_v58 = vsub.s32 %v6210_v35, %v7099_v20 }
 0x241   : > { %v3081_v31 = vadd.f32 %v3049_v14, %v2981_v24  ;;  %vm2247_vm6 = vcmp.eq.s32.totalorder %v2215_v23, 0  ;;  %vm2315_vm14 = vcmp.eq.s32.totalorder %v2215_v23, 1  ;;  %vm2415_vm15 = vcmp.eq.s32.totalorder %v2215_v23, 16 }
 0x242   : > { %v3082_v13 = vadd.f32 %v3050_v33, %v2982_v41  ;;  %vm2248_vm7 = vcmp.eq.s32.totalorder %v2216_v58, 0  ;;  %v2283_v32 = vsel %vm2247_vm6, %v7104_v47, 0.0  ;;  %vm2316_vm11 = vcmp.eq.s32.totalorder %v2216_v58, 1 }
 0x243   : > { %v2284_v25 = vsel %vm2248_vm7, %v7104_v47, 0.0  ;;  %v2351_v15 = vsel %vm2315_vm14, %v7111_v16, 0.0  ;;  %v2352_v34 = vsel %vm2316_vm11, %v7111_v16, 0.0  ;;  %vm2416_vm3 = vcmp.eq.s32.totalorder %v2216_v58, 16 }
 0x244   : > { %v3108_v29 = vpack.c.bf16 %v3082_v13, %v3081_v31  ;;  %v2383_v27 = vadd.f32 %v2351_v15, %v2283_v32  ;;  %v2384_v54 = vadd.f32 %v2352_v34, %v2284_v25  ;;  %v2451_v24 = vsel %vm2415_vm15, %v7114_v10, 0.0 }
 0x245   : > { %v2452_v14 = vsel %vm2416_vm3, %v7114_v10, 0.0  ;;  %vm2515_vm4 = vcmp.eq.s32.totalorder %v2215_v23, 17  ;;  %vm2516_vm8 = vcmp.eq.s32.totalorder %v2216_v58, 17  ;;  %v2731_v41 = vsub.s32 %v6270_v61, %v7008_v55 }
 0x246   : > { %5567 = vmatpush3.bf16.msra.mxu1 %v3108_v29  ;;  %v2483_v33 = vadd.f32 %v2451_v24, %v2383_v27  ;;  %v2484_v28 = vadd.f32 %v2452_v14, %v2384_v54  ;;  %v2551_v35 = vsel %vm2515_vm4, %v7117_v19, 0.0  ;;  %v2552_v30 = vsel %vm2516_vm8, %v7117_v19, 0.0 }
 0x247   : > { %v2732_v31 = vsub.s32 %v6273_v62, %v7008_v55  ;;  %vm2763_vm10 = vcmp.eq.s32.totalorder %v2731_v41, 0  ;;  %vm2831_vm12 = vcmp.eq.s32.totalorder %v2731_v41, 1  ;;  %vm2931_vm13 = vcmp.eq.s32.totalorder %v2731_v41, 16 }
 0x248   : > { %v7327_v13 = vadd.f32 %v2551_v35, %v2483_v33  ;;  %v7329_v23 = vadd.f32 %v2552_v30, %v2484_v28  ;;  %v2799_v58 = vsel %vm2763_vm10, %v7011_v56, 0.0  ;;  %v2867_v32 = vsel %vm2831_vm12, %v7014_v53, 0.0 }
 0x249   : > { %vm2764_vm9 = vcmp.eq.s32.totalorder %v2732_v31, 0  ;;  %vm2832_vm0 = vcmp.eq.s32.totalorder %v2732_v31, 1  ;;  %v2899_v25 = vadd.f32 %v2867_v32, %v2799_v58  ;;  %vm2932_vm6 = vcmp.eq.s32.totalorder %v2732_v31, 16 }
 0x24a   : > { %v2800_v34 = vsel %vm2764_vm9, %v7011_v56, 0.0  ;;  %v2868_v29 = vsel %vm2832_vm0, %v7014_v53, 0.0  ;;  %v2967_v35 = vsel %vm2931_vm13, %v7021_v12, 0.0  ;;  %v2968_v30 = vsel %vm2932_vm6, %v7021_v12, 0.0 }
 0x24b   : > { %v2900_v27 = vadd.f32 %v2868_v29, %v2800_v34  ;;  %v2999_v28 = vadd.f32 %v2967_v35, %v2899_v25  ;;  %vm3031_vm14 = vcmp.eq.s32.totalorder %v2731_v41, 17  ;;  %vm3032_vm15 = vcmp.eq.s32.totalorder %v2732_v31, 17 }
 0x24c   : > { %v3067_v54 = vsel %vm3031_vm14, %v7024_v18, 0.0  ;;  %v2199_v24 = vsub.s32 %v6213_v36, %v7099_v20  ;;  %v2200_v14 = vsub.s32 %v6216_v37, %v7099_v20  ;;  %v3068_v58 = vsel %vm3032_vm15, %v7024_v18, 0.0 }
 0x24d   : > { %v3000_v33 = vadd.f32 %v2968_v30, %v2900_v27  ;;  %v3099_v32 = vadd.f32 %v3067_v54, %v2999_v28  ;;  %v2715_v34 = vsub.s32 %v6276_v63, %v7008_v55 }
 0x24e   : > { %vm2231_vm7 = vcmp.eq.s32.totalorder %v2199_v24, 0  ;;  %vm2232_vm11 = vcmp.eq.s32.totalorder %v2200_v14, 0  ;;  %vm2299_vm3 = vcmp.eq.s32.totalorder %v2199_v24, 1  ;;  %vm2300_vm4 = vcmp.eq.s32.totalorder %v2200_v14, 1 }
 0x24f   : > { %v3100_v41 = vadd.f32 %v3068_v58, %v3000_v33  ;;  %v2267_v31 = vsel %vm2231_vm7, %v7104_v47, 0.0  ;;  %v2268_v25 = vsel %vm2232_vm11, %v7104_v47, 0.0  ;;  %v2335_v29 = vsel %vm2299_vm3, %v7111_v16, 0.0 }
 0x250   : > { %v2336_v35 = vsel %vm2300_vm4, %v7111_v16, 0.0  ;;  %v2367_v27 = vadd.f32 %v2335_v29, %v2267_v31  ;;  %vm2399_vm8 = vcmp.eq.s32.totalorder %v2199_v24, 16  ;;  %vm2400_vm10 = vcmp.eq.s32.totalorder %v2200_v14, 16 }
 0x251   : > { %v3117_v30 = vpack.c.bf16 %v3100_v41, %v3099_v32  ;;  %v2368_v28 = vadd.f32 %v2336_v35, %v2268_v25  ;;  %v2435_v54 = vsel %vm2399_vm8, %v7114_v10, 0.0  ;;  %v2436_v15 = vsel %vm2400_vm10, %v7114_v10, 0.0 }
 0x252   : > { %v2467_v37 = vadd.f32 %v2435_v54, %v2367_v27  ;;  %vm2499_vm12 = vcmp.eq.s32.totalorder %v2199_v24, 17  ;;  %vm2500_vm13 = vcmp.eq.s32.totalorder %v2200_v14, 17  ;;  %v2716_v33 = vsub.s32 %v6284_v1, %v7008_v55 }
 0x253   : > { %5568 = vmatprep.subr.bf16.mxu1 %v3117_v30  ;;  %v2468_v58 = vadd.f32 %v2436_v15, %v2368_v28  ;;  %v2535_v36 = vsel %vm2499_vm12, %v7117_v19, 0.0  ;;  %v2536_v31 = vsel %vm2500_vm13, %v7117_v19, 0.0  ;;  %vm2747_vm9 = vcmp.eq.s32.totalorder %v2715_v34, 0 }
 0x254   : > { %v7357_v29 = vadd.f32 %v2535_v36, %v2467_v37  ;;  %vm2748_vm0 = vcmp.eq.s32.totalorder %v2716_v33, 0  ;;  %v2783_v32 = vsel %vm2747_vm9, %v7011_v56, 0.0  ;;  %vm2815_vm6 = vcmp.eq.s32.totalorder %v2715_v34, 1 }
 0x255   : > { %v7360_v41 = vadd.f32 %v2536_v31, %v2468_v58  ;;  %v2784_v24 = vsel %vm2748_vm0, %v7011_v56, 0.0  ;;  %vm2816_vm14 = vcmp.eq.s32.totalorder %v2716_v33, 1  ;;  %v2851_v14 = vsel %vm2815_vm6, %v7014_v53, 0.0 }
 0x256   : > { %v2852_v15 = vsel %vm2816_vm14, %v7014_v53, 0.0  ;;  %v2883_v25 = vadd.f32 %v2851_v14, %v2783_v32  ;;  %vm2915_vm15 = vcmp.eq.s32.totalorder %v2715_v34, 16  ;;  %vm2916_vm7 = vcmp.eq.s32.totalorder %v2716_v33, 16 }
 0x257   : > { %v2884_v37 = vadd.f32 %v2852_v15, %v2784_v24  ;;  %v2951_v35 = vsel %vm2915_vm15, %v7021_v12, 0.0  ;;  %v2952_v27 = vsel %vm2916_vm7, %v7021_v12, 0.0  ;;  %vm3015_vm11 = vcmp.eq.s32.totalorder %v2715_v34, 17 }
 0x258   : > { %v2983_v30 = vadd.f32 %v2951_v35, %v2883_v25  ;;  %vm3016_vm3 = vcmp.eq.s32.totalorder %v2716_v33, 17  ;;  %v2217_v28 = vsub.s32 %v6219_v38, %v7099_v20  ;;  %v3051_v58 = vsel %vm3015_vm11, %v7024_v18, 0.0 }
 0x259   : > { %v2984_v54 = vadd.f32 %v2952_v27, %v2884_v37  ;;  %v3052_v31 = vsel %vm3016_vm3, %v7024_v18, 0.0  ;;  %v2218_v32 = vsub.s32 %v6229_v44, %v7099_v20 }
 0x25a   : > { %v3083_v14 = vadd.f32 %v3051_v58, %v2983_v30  ;;  %vm2249_vm4 = vcmp.eq.s32.totalorder %v2217_v28, 0  ;;  %vm2317_vm8 = vcmp.eq.s32.totalorder %v2217_v28, 1  ;;  %vm2417_vm10 = vcmp.eq.s32.totalorder %v2217_v28, 16 }
 0x25b   : > { %v3084_v24 = vadd.f32 %v3052_v31, %v2984_v54  ;;  %vm2250_vm12 = vcmp.eq.s32.totalorder %v2218_v32, 0  ;;  %v2285_v34 = vsel %vm2249_vm4, %v7104_v47, 0.0  ;;  %vm2318_vm13 = vcmp.eq.s32.totalorder %v2218_v32, 1 }
 0x25c   : > { %v2286_v33 = vsel %vm2250_vm12, %v7104_v47, 0.0  ;;  %v2353_v15 = vsel %vm2317_vm8, %v7111_v16, 0.0  ;;  %v2354_v25 = vsel %vm2318_vm13, %v7111_v16, 0.0  ;;  %vm2418_vm9 = vcmp.eq.s32.totalorder %v2218_v32, 16 }
 0x25d   : > { %v3109_v37 = vpack.c.bf16 %v3084_v24, %v3083_v14  ;;  %v2385_v35 = vadd.f32 %v2353_v15, %v2285_v34  ;;  %v2386_v27 = vadd.f32 %v2354_v25, %v2286_v33  ;;  %v2453_v30 = vsel %vm2417_vm10, %v7114_v10, 0.0 }
 0x25e   : > { %v2454_v58 = vsel %vm2418_vm9, %v7114_v10, 0.0  ;;  %vm2517_vm0 = vcmp.eq.s32.totalorder %v2217_v28, 17  ;;  %vm2518_vm6 = vcmp.eq.s32.totalorder %v2218_v32, 17  ;;  %v2733_v54 = vsub.s32 %v6292_v3, %v7008_v55 }
 0x25f   : > { %5569 = vmatpush3.bf16.msra.mxu1 %v3109_v37  ;;  %v2485_v31 = vadd.f32 %v2453_v30, %v2385_v35  ;;  %v2486_v36 = vadd.f32 %v2454_v58, %v2386_v27  ;;  %v2553_v44 = vsel %vm2517_vm0, %v7117_v19, 0.0  ;;  %v2554_v38 = vsel %vm2518_vm6, %v7117_v19, 0.0 }
 0x260   : > { %v2734_v14 = vsub.s32 %v6295_v4, %v7008_v55  ;;  %vm2765_vm14 = vcmp.eq.s32.totalorder %v2733_v54, 0  ;;  %vm2833_vm15 = vcmp.eq.s32.totalorder %v2733_v54, 1  ;;  %vm2933_vm7 = vcmp.eq.s32.totalorder %v2733_v54, 16 }
 0x261   : > { %v7387_v24 = vadd.f32 %v2553_v44, %v2485_v31  ;;  %v7389_v28 = vadd.f32 %v2554_v38, %v2486_v36  ;;  %v2801_v32 = vsel %vm2765_vm14, %v7011_v56, 0.0  ;;  %v2869_v34 = vsel %vm2833_vm15, %v7014_v53, 0.0 }
 0x262   : > { %vm2766_vm11 = vcmp.eq.s32.totalorder %v2734_v14, 0  ;;  %vm2834_vm3 = vcmp.eq.s32.totalorder %v2734_v14, 1  ;;  %v2901_v33 = vadd.f32 %v2869_v34, %v2801_v32  ;;  %vm2934_vm4 = vcmp.eq.s32.totalorder %v2734_v14, 16 }
 0x263   : > { %v2802_v25 = vsel %vm2766_vm11, %v7011_v56, 0.0  ;;  %v2870_v37 = vsel %vm2834_vm3, %v7014_v53, 0.0  ;;  %v2969_v44 = vsel %vm2933_vm7, %v7021_v12, 0.0  ;;  %v2970_v36 = vsel %vm2934_vm4, %v7021_v12, 0.0 }
 0x264   : > { %v2902_v38 = vadd.f32 %v2870_v37, %v2802_v25  ;;  %v3001_v27 = vadd.f32 %v2969_v44, %v2901_v33  ;;  %vm3033_vm8 = vcmp.eq.s32.totalorder %v2733_v54, 17  ;;  %vm3034_vm10 = vcmp.eq.s32.totalorder %v2734_v14, 17 }
 0x265   : > { %v3069_v58 = vsel %vm3033_vm8, %v7024_v18, 0.0  ;;  %v2201_v31 = vsub.s32 %v6232_v45, %v7099_v20  ;;  %v2202_v32 = vsub.s32 %v6235_v46, %v7099_v20  ;;  %v3070_v3 = vsel %vm3034_vm10, %v7024_v18, 0.0 }
 0x266   : > { %v3002_v4 = vadd.f32 %v2970_v36, %v2902_v38  ;;  %v3101_v25 = vadd.f32 %v3069_v58, %v3001_v27  ;;  %v9117_v58 = vpack.c.bf16 %v7134_v21, %v7131_v40  ;;  %v2220_v40 = vsub.s32 %v6250_v52, %v7099_v20 }
 0x267   : > { %vm2233_vm12 = vcmp.eq.s32.totalorder %v2201_v31, 0  ;;  %vm2234_vm13 = vcmp.eq.s32.totalorder %v2202_v32, 0  ;;  %vm2301_vm9 = vcmp.eq.s32.totalorder %v2201_v31, 1  ;;  %vm2302_vm0 = vcmp.eq.s32.totalorder %v2202_v32, 1 }
 0x268   : > { %v3102_v14 = vadd.f32 %v3070_v3, %v3002_v4  ;;  %v2269_v33 = vsel %vm2233_vm12, %v7104_v47, 0.0  ;;  %v2270_v44 = vsel %vm2234_vm13, %v7104_v47, 0.0  ;;  %v2337_v45 = vsel %vm2301_vm9, %v7111_v16, 0.0  ;;  %v5440_v3 = vld [vmem:[%s8970_s5 + $0x8] sm:$0xf] }
 0x269   : > { %v5524_v35 = vpop.f32.mrb[8].mxu1  ;;  %vm2401_vm6 = vcmp.eq.s32.totalorder %v2201_v31, 16  ;;  %vm2402_vm14 = vcmp.eq.s32.totalorder %v2202_v32, 16  ;;  %v2369_v36 = vadd.f32 %v2337_v45, %v2269_v33  ;;  %vm2501_vm15 = vcmp.eq.s32.totalorder %v2201_v31, 17 }
 0x26a   : > { %v5525_v30 = vpop.f32.mrb[9].mxu1  ;;  %v3118_v38 = vpack.c.bf16 %v3102_v14, %v3101_v25  ;;  %v2437_v4 = vsel %vm2401_vm6, %v7114_v10, 0.0  ;;  %vm2502_vm7 = vcmp.eq.s32.totalorder %v2202_v32, 17  ;;  %v2537_v45 = vsel %vm2501_vm15, %v7117_v19, 0.0 }
 0x26b   : > { %v5526_v34 = vadd.f32 %v5525_v30, %v5524_v35  ;;  %v5527_v15 = vpop.f32.mrb[10].mxu1  ;;  %v2338_v35 = vsel %vm2302_vm0, %v7111_v16, 0.0  ;;  %v2438_v30 = vsel %vm2402_vm14, %v7114_v10, 0.0  ;;  %v2718_v14 = vsub.s32 %v6311_v8, %v7008_v55 }
 0x26c   : > { %v5528_v37 = vpop.f32.mrb[11].mxu1  ;;  %v2370_v27 = vadd.f32 %v2338_v35, %v2270_v44  ;;  %5570 = vmatprep.subr.bf16.mxu1 %v3118_v38  ;;  %v2219_v31 = vsub.s32 %v6243_v48, %v7099_v20  ;;  %v3211_v33 = vsub.s32 5, %v6154_v9  ;;  %v7436_v44 = vsub.s32 %v6259_v57, %v7099_v20 }
 0x26d   : > { %v2141_v54 = vpack.c.bf16 %v5526_v34, %v5526_v34  ;;  %v2469_v34 = vadd.f32 %v2437_v4, %v2369_v36  ;;  %v2538_v37 = vsel %vm2502_vm7, %v7117_v19, 0.0  ;;  %vm2750_vm3 = vcmp.eq.s32.totalorder %v2718_v14, 0 }
 0x26e   : > { %v2470_v25 = vadd.f32 %v2438_v30, %v2370_v27  ;;  %vm2818_vm8 = vcmp.eq.s32.totalorder %v2718_v14, 1  ;;  %v9119_v35 = vpack.c.bf16 %v7209_v2, %v7207_v0  ;;  %v2786_v36 = vsel %vm2750_vm3, %v7011_v56, 0.0 }
 0x26f   : > { %v2146_v15 = vsel %vm9062_vm2, %v2141_v54, 0  ;;  %v2717_v54 = vsub.s32 %v6308_v7, %v7008_v55  ;;  %v7429_v21 = vadd.f32 %v2537_v45, %v2469_v34  ;;  %v9118_v55 = vpack.c.bf16 %v7174_v11, %v7172_v49 }
 0x270   : > { %5689 = vmatpush3.bf16.msra.mxu0 %v2146_v15  ;;  %v7431_v32 = vadd.f32 %v2538_v37, %v2470_v25  ;;  %v2854_v11 = vsel %vm2818_vm8, %v7014_v53, 0.0  ;;  %vm2918_vm12 = vcmp.eq.s32.totalorder %v2718_v14, 16  ;;  %v9120_v2 = vpack.c.bf16 %v7240_v26, %v7237_v6 }
 0x271   : > { %5532 = vmatprep.subr.bf16.mxu0 %v9117_v58  ;;  %vm2749_vm11 = vcmp.eq.s32.totalorder %v2717_v54, 0  ;;  %vm2817_vm4 = vcmp.eq.s32.totalorder %v2717_v54, 1  ;;  %vm2917_vm10 = vcmp.eq.s32.totalorder %v2717_v54, 16  ;;  %v2954_v0 = vsel %vm2918_vm12, %v7021_v12, 0.0 }
 0x272   : > { %v2597_v15 = vpack.c.bf16 %v7431_v32, %v7429_v21  ;;  %v2785_v38 = vsel %vm2749_vm11, %v7011_v56, 0.0  ;;  %v2853_v49 = vsel %vm2817_vm4, %v7014_v53, 0.0  ;;  %v2953_v4 = vsel %vm2917_vm10, %v7021_v12, 0.0 }
 0x273   : > { %5691 = vmatmul.mubr.msk.bf16.vlgmr.msra.gmra.mrb[0].mxu0 %vm9061_vm5, %v5440_v3  ;;  %v2885_v27 = vadd.f32 %v2853_v49, %v2785_v38  ;;  %v2886_v3 = vadd.f32 %v2854_v11, %v2786_v36  ;;  %vm3017_vm13 = vcmp.eq.s32.totalorder %v2717_v54, 17  ;;  %vm3018_vm9 = vcmp.eq.s32.totalorder %v2718_v14, 17 }
 0x274   : > { %5533 = vmatpush3.bf16.msra.mxu0 %v9118_v55  ;;  %2641 = vmatprep.mubr.bf16.mxu0 %v9114_v51  ;;  %v3053_v56 = vsel %vm3017_vm13, %v7024_v18, 0.0  ;;  %vm2251_vm0 = vcmp.eq.s32.totalorder %v2219_v31, 0  ;;  %v9121_v53 = vpack.c.bf16 %v7269_v42, %v7267_v17  ;;  %v3054_v34 = vsel %vm3018_vm9, %v7024_v18, 0.0 }
 0x275   : > { %5534 = vmatprep.subr.bf16.mxu0 %v9119_v35  ;;  %v2985_v30 = vadd.f32 %v2953_v4, %v2885_v27  ;;  %v2986_v58 = vadd.f32 %v2954_v0, %v2886_v3  ;;  %vm2252_vm6 = vcmp.eq.s32.totalorder %v2220_v40, 0  ;;  %v2287_v12 = vsel %vm2251_vm0, %v7104_v47, 0.0  ;;  %v9125_v27 = vld [vmem:[#allocation37_spill] sm:$0xff] }
 0x276   : > { %v2288_v45 = vsel %vm2252_vm6, %v7104_v47, 0.0  ;;  %vm2319_vm14 = vcmp.eq.s32.totalorder %v2219_v31, 1  ;;  %vm2320_vm15 = vcmp.eq.s32.totalorder %v2220_v40, 1  ;;  %vm2419_vm7 = vcmp.eq.s32.totalorder %v2219_v31, 16  ;;  %v9127_v4 = vld [vmem:[#allocation45_spill] sm:$0xff] }
 0x277   : > { %v3085_v25 = vadd.f32 %v3053_v56, %v2985_v30  ;;  %v3086_v6 = vadd.f32 %v3054_v34, %v2986_v58  ;;  %v2355_v26 = vsel %vm2319_vm14, %v7111_v16, 0.0  ;;  %v2356_v37 = vsel %vm2320_vm15, %v7111_v16, 0.0  ;;  %v9129_v30 = vld [vmem:[#allocation46_spill] sm:$0xff]  ;;  %v9131_v34 = vld [vmem:[#allocation15_spill] sm:$0xff] }
 0x278   : > { %5535 = vmatpush3.bf16.msra.mxu0 %v9120_v2  ;;  %v9122_v17 = vpack.c.bf16 %v7300_v60, %v7297_v50  ;;  %v2387_v42 = vadd.f32 %v2355_v26, %v2287_v12  ;;  %v2388_v18 = vadd.f32 %v2356_v37, %v2288_v45  ;;  %vm2420_vm11 = vcmp.eq.s32.totalorder %v2220_v40, 16  ;;  %v9124_v60 = vld [vmem:[#allocation35_spill] sm:$0xff] }
 0x279   : > { %5536 = vmatprep.subr.bf16.mxu0 %v9121_v53  ;;  %v2455_v54 = vsel %vm2419_vm7, %v7114_v10, 0.0  ;;  %v9123_v14 = vpack.c.bf16 %v7329_v23, %v7327_v13  ;;  %v3110_v55 = vpack.c.bf16 %v3086_v6, %v3085_v25  ;;  %v2456_v35 = vsel %vm2420_vm11, %v7114_v10, 0.0  ;;  %v9126_v13 = vld [vmem:[#allocation44_spill] sm:$0xff] }
 0x27a   : > { %vm2519_vm3 = vcmp.eq.s32.totalorder %v2219_v31, 17  ;;  %vm2520_vm4 = vcmp.eq.s32.totalorder %v2220_v40, 17  ;;  %v2487_v38 = vadd.f32 %v2455_v54, %v2387_v42  ;;  %v2488_v36 = vadd.f32 %v2456_v35, %v2388_v18  ;;  %v9132_v25 = vld [vmem:[#allocation16_spill] sm:$0xff] }
 0x27b   : > { %v2555_v49 = vsel %vm2519_vm3, %v7117_v19, 0.0  ;;  %v2556_v50 = vsel %vm2520_vm4, %v7117_v19, 0.0  ;;  %5571 = vmatpush3.bf16.msra.mxu1 %v3110_v55  ;;  %v7476_v11 = vrot.slane %v9124_v60, %v3211_v33  ;;  %v7479_v3 = vrot.slane %v9125_v27, %v3211_v33 }
 0x27c   : > { %5537 = vmatpush3.bf16.msra.mxu0 %v9122_v17  ;;  %v7482_v23 = vrot.slane %v9126_v13, %v3211_v33  ;;  %v7485_v31 = vrot.slane %v9127_v4, %v3211_v33  ;;  %v9128_v40 = vpack.c.bf16 %v7360_v41, %v7357_v29  ;;  %v2587_v0 = vadd.f32 %v2555_v49, %v2487_v38 }
 0x27d   : > { %5538 = vmatprep.subr.bf16.mxu0 %v9123_v14  ;;  %v2588_v2 = vadd.f32 %v2556_v50, %v2488_v36  ;;  %v7491_v56 = vrot.slane %v9129_v30, %v3211_v33  ;;  %v2204_v53 = vsub.s32 %v6263_v59, %v7099_v20  ;;  %v9130_v58 = vpack.c.bf16 %v7389_v28, %v7387_v24  ;;  %v7506_v33 = vld.sshfl [vmem:[%s6224_s8] sm:$0x33 pattern:$0x76325410] }
 0x27e   : > { %v3229_v12 = vsub.s32 %v9131_v34, %v7476_v11  ;;  %v3230_v45 = vsub.s32 %v9132_v25, %v7476_v11  ;;  %vm2235_vm8 = vcmp.eq.s32.totalorder %v7436_v44, 0  ;;  %vm2303_vm10 = vcmp.eq.s32.totalorder %v7436_v44, 1  ;;  %3152 = vmatmul.mubr.bf16.vlgmr.msra.gmra.mrb[12].mxu1 %v7506_v33 }
 0x27f   : > { %v2606_v29 = vpack.c.bf16 %v2588_v2, %v2587_v0  ;;  %vm2236_vm12 = vcmp.eq.s32.totalorder %v2204_v53, 0  ;;  %v2271_v41 = vsel %vm2235_vm8, %v7104_v47, 0.0  ;;  %vm2304_vm13 = vcmp.eq.s32.totalorder %v2204_v53, 1  ;;  %3661 = vmatprep.mubr.bf16.mxu1 %v9114_v51 }
 0x280   : > { %5539 = vmatpush3.bf16.msra.mxu0 %v9128_v40  ;;  %vm3261_vm9 = vcmp.eq.s32.totalorder %v3229_v12, 0  ;;  %vm3262_vm0 = vcmp.eq.s32.totalorder %v3230_v45, 0  ;;  %vm3329_vm6 = vcmp.eq.s32.totalorder %v3229_v12, 1  ;;  %vm3330_vm14 = vcmp.eq.s32.totalorder %v3230_v45, 1 }
 0x281   : > { %5540 = vmatprep.subr.bf16.mxu0 %v9130_v58  ;;  %v3297_v24 = vsel %vm3261_vm9, %v7479_v3, 0.0  ;;  %v3298_v28 = vsel %vm3262_vm0, %v7479_v3, 0.0  ;;  %v3365_v6 = vsel %vm3329_vm6, %v7482_v23, 0.0  ;;  %v3366_v26 = vsel %vm3330_vm14, %v7482_v23, 0.0 }
 0x282   : > { %v3397_v37 = vadd.f32 %v3365_v6, %v3297_v24  ;;  %v3398_v17 = vadd.f32 %v3366_v26, %v3298_v28  ;;  %vm3429_vm15 = vcmp.eq.s32.totalorder %v3229_v12, 16  ;;  %vm3430_vm7 = vcmp.eq.s32.totalorder %v3230_v45, 16 }
 0x283   : > { %v3465_v42 = vsel %vm3429_vm15, %v7485_v31, 0.0  ;;  %v3466_v18 = vsel %vm3430_vm7, %v7485_v31, 0.0  ;;  %vm3529_vm11 = vcmp.eq.s32.totalorder %v3229_v12, 17  ;;  %vm3530_vm3 = vcmp.eq.s32.totalorder %v3230_v45, 17 }
 0x284   : > { %5541 = vmatpush3.bf16.msra.mxu0 %v2597_v15  ;;  %v3497_v21 = vadd.f32 %v3465_v42, %v3397_v37  ;;  %v3498_v32 = vadd.f32 %v3466_v18, %v3398_v17  ;;  %v3565_v15 = vsel %vm3529_vm11, %v7491_v56, 0.0  ;;  %v3566_v54 = vsel %vm3530_vm3, %v7491_v56, 0.0 }
 0x285   : > { %5542 = vmatprep.subr.bf16.mxu0 %v2606_v29  ;;  %v2272_v14 = vsel %vm2236_vm12, %v7104_v47, 0.0  ;;  %v2339_v55 = vsel %vm2303_vm10, %v7111_v16, 0.0  ;;  %v2340_v35 = vsel %vm2304_vm13, %v7111_v16, 0.0  ;;  %vm2403_vm4 = vcmp.eq.s32.totalorder %v7436_v44, 16 }
 0x286   : > { %v3597_v38 = vadd.f32 %v3565_v15, %v3497_v21  ;;  %v3598_v36 = vadd.f32 %v3566_v54, %v3498_v32  ;;  %v2371_v49 = vadd.f32 %v2339_v55, %v2271_v41  ;;  %v2372_v50 = vadd.f32 %v2340_v35, %v2272_v14 }
 0x287   : > { %vm2404_vm8 = vcmp.eq.s32.totalorder %v2204_v53, 16  ;;  %v2439_v40 = vsel %vm2403_vm4, %v7114_v10, 0.0  ;;  %vm2503_vm9 = vcmp.eq.s32.totalorder %v7436_v44, 17  ;;  %vm2504_vm0 = vcmp.eq.s32.totalorder %v2204_v53, 17 }
 0x288   : > { %v3621_v0 = vpack.c.bf16 %v3598_v36, %v3597_v38  ;;  %v2440_v2 = vsel %vm2404_vm8, %v7114_v10, 0.0  ;;  %v2471_v58 = vadd.f32 %v2439_v40, %v2371_v49  ;;  %v2539_v12 = vsel %vm2503_vm9, %v7117_v19, 0.0 }
 0x289   : > { %v2472_v45 = vadd.f32 %v2440_v2, %v2372_v50  ;;  %v2540_v29 = vsel %vm2504_vm0, %v7117_v19, 0.0  ;;  %v3213_v24 = vsub.s32 %v6154_v9, %v7476_v11  ;;  %v3214_v41 = vsub.s32 %v9111_v39, %v7476_v11 }
 0x28a   : > { %5580 = vmatprep.subr.bf16.mxu1 %v3621_v0  ;;  %v2571_v28 = vadd.f32 %v2539_v12, %v2471_v58  ;;  %v2221_v44 = vsub.s32 %v6270_v61, %v7099_v20  ;;  %v2222_v53 = vsub.s32 %v6273_v62, %v7099_v20  ;;  %v7544_v6 = vsub.s32 %v9112_v43, %v7476_v11 }
 0x28b   : > { %v2572_v26 = vadd.f32 %v2540_v29, %v2472_v45  ;;  %vm3245_vm10 = vcmp.eq.s32.totalorder %v3213_v24, 0  ;;  %vm3246_vm12 = vcmp.eq.s32.totalorder %v3214_v41, 0  ;;  %vm3313_vm13 = vcmp.eq.s32.totalorder %v3213_v24, 1 }
 0x28c   : > { %v3281_v37 = vsel %vm3245_vm10, %v7479_v3, 0.0  ;;  %v3282_v17 = vsel %vm3246_vm12, %v7479_v3, 0.0  ;;  %vm3314_vm6 = vcmp.eq.s32.totalorder %v3214_v41, 1  ;;  %v3349_v42 = vsel %vm3313_vm13, %v7482_v23, 0.0 }
 0x28d   : > { %v2598_v18 = vpack.c.bf16 %v2572_v26, %v2571_v28  ;;  %v3350_v21 = vsel %vm3314_vm6, %v7482_v23, 0.0  ;;  %v3381_v32 = vadd.f32 %v3349_v42, %v3281_v37  ;;  %vm3413_vm14 = vcmp.eq.s32.totalorder %v3213_v24, 16 }
 0x28e   : > { %v3382_v15 = vadd.f32 %v3350_v21, %v3282_v17  ;;  %vm3414_vm15 = vcmp.eq.s32.totalorder %v3214_v41, 16  ;;  %v3449_v54 = vsel %vm3413_vm14, %v7485_v31, 0.0  ;;  %vm3513_vm7 = vcmp.eq.s32.totalorder %v3213_v24, 17 }
 0x28f   : > { %5543 = vmatpush3.bf16.msra.mxu0 %v2598_v18  ;;  %v3450_v14 = vsel %vm3414_vm15, %v7485_v31, 0.0  ;;  %v3481_v55 = vadd.f32 %v3449_v54, %v3381_v32  ;;  %vm3514_vm11 = vcmp.eq.s32.totalorder %v3214_v41, 17  ;;  %v3549_v35 = vsel %vm3513_vm7, %v7491_v56, 0.0 }
 0x290   : > { %v3482_v38 = vadd.f32 %v3450_v14, %v3382_v15  ;;  %v3550_v36 = vsel %vm3514_vm11, %v7491_v56, 0.0  ;;  %vm2253_vm3 = vcmp.eq.s32.totalorder %v2221_v44, 0  ;;  %vm2254_vm4 = vcmp.eq.s32.totalorder %v2222_v53, 0 }
 0x291   : > { %v3581_v49 = vadd.f32 %v3549_v35, %v3481_v55  ;;  %v2289_v50 = vsel %vm2253_vm3, %v7104_v47, 0.0  ;;  %v2290_v40 = vsel %vm2254_vm4, %v7104_v47, 0.0  ;;  %vm2321_vm8 = vcmp.eq.s32.totalorder %v2221_v44, 1 }
 0x292   : > { %v3582_v0 = vadd.f32 %v3550_v36, %v3482_v38  ;;  %vm2322_vm9 = vcmp.eq.s32.totalorder %v2222_v53, 1  ;;  %v2357_v2 = vsel %vm2321_vm8, %v7111_v16, 0.0  ;;  %vm2421_vm0 = vcmp.eq.s32.totalorder %v2221_v44, 16 }
 0x293   : > { %v2358_v58 = vsel %vm2322_vm9, %v7111_v16, 0.0  ;;  %v2389_v12 = vadd.f32 %v2357_v2, %v2289_v50  ;;  %vm2422_vm10 = vcmp.eq.s32.totalorder %v2222_v53, 16  ;;  %v2457_v45 = vsel %vm2421_vm0, %v7114_v10, 0.0 }
 0x294   : > { %v3613_v29 = vpack.c.bf16 %v3582_v0, %v3581_v49  ;;  %v2390_v24 = vadd.f32 %v2358_v58, %v2290_v40  ;;  %v2458_v41 = vsel %vm2422_vm10, %v7114_v10, 0.0  ;;  %vm2521_vm12 = vcmp.eq.s32.totalorder %v2221_v44, 17 }
 0x295   : > { %v2489_v28 = vadd.f32 %v2457_v45, %v2389_v12  ;;  %vm2522_vm13 = vcmp.eq.s32.totalorder %v2222_v53, 17  ;;  %v2557_v26 = vsel %vm2521_vm12, %v7117_v19, 0.0  ;;  %v3232_v37 = vsub.s32 %v9115_v5, %v7476_v11 }
 0x296   : > { %5581 = vmatpush3.bf16.msra.mxu1 %v3613_v29  ;;  %v2490_v17 = vadd.f32 %v2458_v41, %v2390_v24  ;;  %v2558_v42 = vsel %vm2522_vm13, %v7117_v19, 0.0  ;;  %vm3263_vm6 = vcmp.eq.s32.totalorder %v7544_v6, 0  ;;  %vm3331_vm14 = vcmp.eq.s32.totalorder %v7544_v6, 1  ;;  %v9134_v24 = vld [vmem:[#allocation39_spill] sm:$0xff] }
 0x297   : > { %v2589_v18 = vadd.f32 %v2557_v26, %v2489_v28  ;;  %vm3264_vm15 = vcmp.eq.s32.totalorder %v3232_v37, 0  ;;  %v3299_v21 = vsel %vm3263_vm6, %v7479_v3, 0.0  ;;  %vm3332_vm7 = vcmp.eq.s32.totalorder %v3232_v37, 1 }
 0x298   : > { %v2590_v44 = vadd.f32 %v2558_v42, %v2490_v17  ;;  %v3300_v53 = vsel %vm3264_vm15, %v7479_v3, 0.0  ;;  %v3367_v32 = vsel %vm3331_vm14, %v7482_v23, 0.0  ;;  %v3368_v15 = vsel %vm3332_vm7, %v7482_v23, 0.0 }
 0x299   : > { %v3399_v54 = vadd.f32 %v3367_v32, %v3299_v21  ;;  %v3400_v14 = vadd.f32 %v3368_v15, %v3300_v53  ;;  %vm3431_vm11 = vcmp.eq.s32.totalorder %v7544_v6, 16  ;;  %vm3432_vm3 = vcmp.eq.s32.totalorder %v3232_v37, 16 }
 0x29a   : > { %v2607_v55 = vpack.c.bf16 %v2590_v44, %v2589_v18  ;;  %v3467_v35 = vsel %vm3431_vm11, %v7485_v31, 0.0  ;;  %v3468_v38 = vsel %vm3432_vm3, %v7485_v31, 0.0  ;;  %vm3531_vm4 = vcmp.eq.s32.totalorder %v7544_v6, 17  ;;  %v9133_v6 = vld [vmem:[#allocation22_spill] sm:$0xff] }
 0x29b   : > { %v3499_v36 = vadd.f32 %v3467_v35, %v3399_v54  ;;  %v3500_v49 = vadd.f32 %v3468_v38, %v3400_v14  ;;  %vm3532_vm8 = vcmp.eq.s32.totalorder %v3232_v37, 17  ;;  %v3567_v50 = vsel %vm3531_vm4, %v7491_v56, 0.0 }
 0x29c   : > { %5544 = vmatprep.subr.bf16.mxu0 %v2607_v55  ;;  %v3568_v40 = vsel %vm3532_vm8, %v7491_v56, 0.0  ;;  %v2205_v0 = vsub.s32 %v6276_v63, %v7099_v20  ;;  %v2206_v2 = vsub.s32 %v6284_v1, %v7099_v20  ;;  %v3215_v58 = vsub.s32 %v6188_v22, %v7476_v11 }
 0x29d   : > { %v3599_v12 = vadd.f32 %v3567_v50, %v3499_v36  ;;  %v3600_v45 = vadd.f32 %v3568_v40, %v3500_v49  ;;  %v3216_v29 = vsub.s32 %v9133_v6, %v7476_v11  ;;  %v7586_v41 = vsub.s32 %v9134_v24, %v7099_v20 }
 0x29e   : > { %vm2237_vm9 = vcmp.eq.s32.totalorder %v2205_v0, 0  ;;  %vm2238_vm0 = vcmp.eq.s32.totalorder %v2206_v2, 0  ;;  %vm2305_vm10 = vcmp.eq.s32.totalorder %v2205_v0, 1  ;;  %vm2306_vm12 = vcmp.eq.s32.totalorder %v2206_v2, 1 }
 0x29f   : > { %v3622_v28 = vpack.c.bf16 %v3600_v45, %v3599_v12  ;;  %v2273_v26 = vsel %vm2237_vm9, %v7104_v47, 0.0  ;;  %v2274_v37 = vsel %vm2238_vm0, %v7104_v47, 0.0  ;;  %v2341_v17 = vsel %vm2305_vm10, %v7111_v16, 0.0 }
 0x2a0   : > { %v2342_v42 = vsel %vm2306_vm12, %v7111_v16, 0.0  ;;  %v2373_v18 = vadd.f32 %v2341_v17, %v2273_v26  ;;  %vm2405_vm13 = vcmp.eq.s32.totalorder %v2205_v0, 16  ;;  %vm2406_vm6 = vcmp.eq.s32.totalorder %v2206_v2, 16 }
 0x2a1   : > { %5582 = vmatprep.subr.bf16.mxu1 %v3622_v28  ;;  %v2374_v21 = vadd.f32 %v2342_v42, %v2274_v37  ;;  %v2441_v44 = vsel %vm2405_vm13, %v7114_v10, 0.0  ;;  %v2442_v53 = vsel %vm2406_vm6, %v7114_v10, 0.0  ;;  %vm2505_vm14 = vcmp.eq.s32.totalorder %v2205_v0, 17  ;;  %v9135_v42 = vld [vmem:[#allocation40_spill] sm:$0xff] }
 0x2a2   : > { %v2473_v32 = vadd.f32 %v2441_v44, %v2373_v18  ;;  %vm2506_vm15 = vcmp.eq.s32.totalorder %v2206_v2, 17  ;;  %v2541_v15 = vsel %vm2505_vm14, %v7117_v19, 0.0  ;;  %vm3247_vm7 = vcmp.eq.s32.totalorder %v3215_v58, 0 }
 0x2a3   : > { %v2474_v54 = vadd.f32 %v2442_v53, %v2374_v21  ;;  %v2542_v14 = vsel %vm2506_vm15, %v7117_v19, 0.0  ;;  %vm3248_vm11 = vcmp.eq.s32.totalorder %v3216_v29, 0  ;;  %v3283_v55 = vsel %vm3247_vm7, %v7479_v3, 0.0 }
 0x2a4   : > { %v2573_v35 = vadd.f32 %v2541_v15, %v2473_v32  ;;  %v3284_v38 = vsel %vm3248_vm11, %v7479_v3, 0.0  ;;  %vm3315_vm3 = vcmp.eq.s32.totalorder %v3215_v58, 1  ;;  %vm3316_vm4 = vcmp.eq.s32.totalorder %v3216_v29, 1 }
 0x2a5   : > { %v2574_v36 = vadd.f32 %v2542_v14, %v2474_v54  ;;  %v3351_v49 = vsel %vm3315_vm3, %v7482_v23, 0.0  ;;  %v3352_v50 = vsel %vm3316_vm4, %v7482_v23, 0.0  ;;  %vm3415_vm8 = vcmp.eq.s32.totalorder %v3215_v58, 16 }
 0x2a6   : > { %v3383_v40 = vadd.f32 %v3351_v49, %v3283_v55  ;;  %v3384_v0 = vadd.f32 %v3352_v50, %v3284_v38  ;;  %vm3416_vm9 = vcmp.eq.s32.totalorder %v3216_v29, 16  ;;  %v3451_v2 = vsel %vm3415_vm8, %v7485_v31, 0.0  ;;  %v9136_v49 = vld [vmem:[#allocation23_spill] sm:$0xff] }
 0x2a7   : > { %v2599_v12 = vpack.c.bf16 %v2574_v36, %v2573_v35  ;;  %v3452_v45 = vsel %vm3416_vm9, %v7485_v31, 0.0  ;;  %vm3515_vm0 = vcmp.eq.s32.totalorder %v3215_v58, 17  ;;  %vm3516_vm10 = vcmp.eq.s32.totalorder %v3216_v29, 17 }
 0x2a8   : > { %v3483_v28 = vadd.f32 %v3451_v2, %v3383_v40  ;;  %v3484_v26 = vadd.f32 %v3452_v45, %v3384_v0  ;;  %v3551_v37 = vsel %vm3515_vm0, %v7491_v56, 0.0  ;;  %v3552_v17 = vsel %vm3516_vm10, %v7491_v56, 0.0  ;;  %v9137_v40 = vld [vmem:[#allocation24_spill] sm:$0xff] }
 0x2a9   : > { %5545 = vmatpush3.bf16.msra.mxu0 %v2599_v12  ;;  %v2224_v18 = vsub.s32 %v9135_v42, %v7099_v20  ;;  %vm2255_vm12 = vcmp.eq.s32.totalorder %v7586_v41, 0  ;;  %vm2323_vm13 = vcmp.eq.s32.totalorder %v7586_v41, 1  ;;  %vm2423_vm6 = vcmp.eq.s32.totalorder %v7586_v41, 16 }
 0x2aa   : > { %v3583_v21 = vadd.f32 %v3551_v37, %v3483_v28  ;;  %v3584_v44 = vadd.f32 %v3552_v17, %v3484_v26  ;;  %v2291_v58 = vsel %vm2255_vm12, %v7104_v47, 0.0  ;;  %v2359_v29 = vsel %vm2323_vm13, %v7111_v16, 0.0 }
 0x2ab   : > { %vm2256_vm14 = vcmp.eq.s32.totalorder %v2224_v18, 0  ;;  %vm2324_vm15 = vcmp.eq.s32.totalorder %v2224_v18, 1  ;;  %v2391_v53 = vadd.f32 %v2359_v29, %v2291_v58  ;;  %vm2424_vm7 = vcmp.eq.s32.totalorder %v2224_v18, 16 }
 0x2ac   : > { %v3614_v32 = vpack.c.bf16 %v3584_v44, %v3583_v21  ;;  %v2292_v15 = vsel %vm2256_vm14, %v7104_v47, 0.0  ;;  %v2360_v54 = vsel %vm2324_vm15, %v7111_v16, 0.0  ;;  %v2459_v14 = vsel %vm2423_vm6, %v7114_v10, 0.0 }
 0x2ad   : > { %v2392_v55 = vadd.f32 %v2360_v54, %v2292_v15  ;;  %v2460_v35 = vsel %vm2424_vm7, %v7114_v10, 0.0  ;;  %v2491_v38 = vadd.f32 %v2459_v14, %v2391_v53  ;;  %vm2523_vm11 = vcmp.eq.s32.totalorder %v7586_v41, 17 }
 0x2ae   : > { %5583 = vmatpush3.bf16.msra.mxu1 %v3614_v32  ;;  %vm2524_vm3 = vcmp.eq.s32.totalorder %v2224_v18, 17  ;;  %v2559_v36 = vsel %vm2523_vm11, %v7117_v19, 0.0  ;;  %v3233_v50 = vsub.s32 %v9136_v49, %v7476_v11  ;;  %v3234_v0 = vsub.s32 %v9137_v40, %v7476_v11 }
 0x2af   : > { %v2492_v2 = vadd.f32 %v2460_v35, %v2392_v55  ;;  %v2560_v12 = vsel %vm2524_vm3, %v7117_v19, 0.0  ;;  %v2591_v45 = vadd.f32 %v2559_v36, %v2491_v38  ;;  %v2207_v28 = vsub.s32 %v6308_v7, %v7099_v20 }
 0x2b0   : > { %vm3265_vm4 = vcmp.eq.s32.totalorder %v3233_v50, 0  ;;  %vm3266_vm8 = vcmp.eq.s32.totalorder %v3234_v0, 0  ;;  %vm3333_vm9 = vcmp.eq.s32.totalorder %v3233_v50, 1  ;;  %vm3334_vm0 = vcmp.eq.s32.totalorder %v3234_v0, 1 }
 0x2b1   : > { %v2592_v41 = vadd.f32 %v2560_v12, %v2492_v2  ;;  %v3301_v26 = vsel %vm3265_vm4, %v7479_v3, 0.0  ;;  %v3302_v37 = vsel %vm3266_vm8, %v7479_v3, 0.0  ;;  %v3369_v17 = vsel %vm3333_vm9, %v7482_v23, 0.0 }
 0x2b2   : > { %v3370_v18 = vsel %vm3334_vm0, %v7482_v23, 0.0  ;;  %v3401_v21 = vadd.f32 %v3369_v17, %v3301_v26  ;;  %vm3433_vm10 = vcmp.eq.s32.totalorder %v3233_v50, 16  ;;  %vm3434_vm12 = vcmp.eq.s32.totalorder %v3234_v0, 16  ;;  %v9138_v17 = vld [vmem:[#allocation25_spill] sm:$0xff] }
 0x2b3   : > { %v2608_v44 = vpack.c.bf16 %v2592_v41, %v2591_v45  ;;  %v3402_v58 = vadd.f32 %v3370_v18, %v3302_v37  ;;  %v3469_v29 = vsel %vm3433_vm10, %v7485_v31, 0.0  ;;  %v3470_v53 = vsel %vm3434_vm12, %v7485_v31, 0.0 }
 0x2b4   : > { %v3501_v32 = vadd.f32 %v3469_v29, %v3401_v21  ;;  %vm3533_vm13 = vcmp.eq.s32.totalorder %v3233_v50, 17  ;;  %vm3534_vm6 = vcmp.eq.s32.totalorder %v3234_v0, 17  ;;  %v2208_v15 = vsub.s32 %v6311_v8, %v7099_v20 }
 0x2b5   : > { %5546 = vmatprep.subr.bf16.mxu0 %v2608_v44  ;;  %v3502_v54 = vadd.f32 %v3470_v53, %v3402_v58  ;;  %v3569_v14 = vsel %vm3533_vm13, %v7491_v56, 0.0  ;;  %v3570_v55 = vsel %vm3534_vm6, %v7491_v56, 0.0  ;;  %vm2239_vm14 = vcmp.eq.s32.totalorder %v2207_v28, 0  ;;  %v9139_v44 = vld [vmem:[#allocation26_spill] sm:$0xff] }
 0x2b6   : > { %v3601_v35 = vadd.f32 %v3569_v14, %v3501_v32  ;;  %vm2240_vm15 = vcmp.eq.s32.totalorder %v2208_v15, 0  ;;  %v2275_v38 = vsel %vm2239_vm14, %v7104_v47, 0.0  ;;  %vm2307_vm7 = vcmp.eq.s32.totalorder %v2207_v28, 1 }
 0x2b7   : > { %v3602_v36 = vadd.f32 %v3570_v55, %v3502_v54  ;;  %v2276_v2 = vsel %vm2240_vm15, %v7104_v47, 0.0  ;;  %vm2308_vm11 = vcmp.eq.s32.totalorder %v2208_v15, 1  ;;  %v2343_v50 = vsel %vm2307_vm7, %v7111_v16, 0.0 }
 0x2b8   : > { %v2344_v20 = vsel %vm2308_vm11, %v7111_v16, 0.0  ;;  %v2375_v0 = vadd.f32 %v2343_v50, %v2275_v38  ;;  %vm2407_vm3 = vcmp.eq.s32.totalorder %v2207_v28, 16  ;;  %vm2408_vm4 = vcmp.eq.s32.totalorder %v2208_v15, 16  ;;  %v9140_v38 = vld [vmem:[#allocation27_spill] sm:$0xff] }
 0x2b9   : > { %v3623_v12 = vpack.c.bf16 %v3602_v36, %v3601_v35  ;;  %v2376_v45 = vadd.f32 %v2344_v20, %v2276_v2  ;;  %v2443_v41 = vsel %vm2407_vm3, %v7114_v10, 0.0  ;;  %v2444_v26 = vsel %vm2408_vm4, %v7114_v10, 0.0 }
 0x2ba   : > { %v2475_v37 = vadd.f32 %v2443_v41, %v2375_v0  ;;  %vm2507_vm8 = vcmp.eq.s32.totalorder %v2207_v28, 17  ;;  %vm2508_vm9 = vcmp.eq.s32.totalorder %v2208_v15, 17  ;;  %v3217_v47 = vsub.s32 %v9138_v17, %v7476_v11 }
 0x2bb   : > { %5584 = vmatprep.subr.bf16.mxu1 %v3623_v12  ;;  %v2476_v18 = vadd.f32 %v2444_v26, %v2376_v45  ;;  %v2543_v21 = vsel %vm2507_vm8, %v7117_v19, 0.0  ;;  %v2544_v16 = vsel %vm2508_vm9, %v7117_v19, 0.0  ;;  %v3218_v58 = vsub.s32 %v9139_v44, %v7476_v11  ;;  %v9141_v12 = vld [vmem:[#allocation28_spill] sm:$0xff] }
 0x2bc   : > { %v2575_v29 = vadd.f32 %v2543_v21, %v2475_v37  ;;  %vm3249_vm0 = vcmp.eq.s32.totalorder %v3217_v47, 0  ;;  %vm3317_vm10 = vcmp.eq.s32.totalorder %v3217_v47, 1  ;;  %vm3417_vm12 = vcmp.eq.s32.totalorder %v3217_v47, 16 }
 0x2bd   : > { %v2576_v10 = vadd.f32 %v2544_v16, %v2476_v18  ;;  %vm3250_vm13 = vcmp.eq.s32.totalorder %v3218_v58, 0  ;;  %v3285_v28 = vsel %vm3249_vm0, %v7479_v3, 0.0  ;;  %vm3318_vm6 = vcmp.eq.s32.totalorder %v3218_v58, 1 }
 0x2be   : > { %v3286_v53 = vsel %vm3250_vm13, %v7479_v3, 0.0  ;;  %v3353_v32 = vsel %vm3317_vm10, %v7482_v23, 0.0  ;;  %v3354_v15 = vsel %vm3318_vm6, %v7482_v23, 0.0  ;;  %vm3418_vm14 = vcmp.eq.s32.totalorder %v3218_v58, 16 }
 0x2bf   : > { %v2600_v19 = vpack.c.bf16 %v2576_v10, %v2575_v29  ;;  %v3385_v54 = vadd.f32 %v3353_v32, %v3285_v28  ;;  %v3386_v14 = vadd.f32 %v3354_v15, %v3286_v53  ;;  %v3453_v55 = vsel %vm3417_vm12, %v7485_v31, 0.0  ;;  %v9143_v15 = vld [vmem:[#allocation29_spill] sm:$0xff] }
 0x2c0   : > { %v3454_v35 = vsel %vm3418_vm14, %v7485_v31, 0.0  ;;  %vm3517_vm15 = vcmp.eq.s32.totalorder %v3217_v47, 17  ;;  %vm3518_vm7 = vcmp.eq.s32.totalorder %v3218_v58, 17  ;;  %v3235_v36 = vsub.s32 %v9140_v38, %v7476_v11 }
 0x2c1   : > { %5547 = vmatpush3.bf16.msra.mxu0 %v2600_v19  ;;  %v3485_v2 = vadd.f32 %v3453_v55, %v3385_v54  ;;  %v3486_v50 = vadd.f32 %v3454_v35, %v3386_v14  ;;  %v3553_v20 = vsel %vm3517_vm15, %v7491_v56, 0.0  ;;  %v3554_v0 = vsel %vm3518_vm7, %v7491_v56, 0.0  ;;  %v9144_v54 = vld [vmem:[#allocation30_spill] sm:$0xff] }
 0x2c2   : > { %v3236_v45 = vsub.s32 %v9141_v12, %v7476_v11  ;;  %vm3267_vm11 = vcmp.eq.s32.totalorder %v3235_v36, 0  ;;  %vm3335_vm3 = vcmp.eq.s32.totalorder %v3235_v36, 1  ;;  %vm3435_vm4 = vcmp.eq.s32.totalorder %v3235_v36, 16 }
 0x2c3   : > { %v9142_v41 = vmov 0.0   ;;  %v3585_v26 = vadd.f32 %v3553_v20, %v3485_v2  ;;  %v3586_v37 = vadd.f32 %v3554_v0, %v3486_v50  ;;  %v3303_v47 = vsel %vm3267_vm11, %v7479_v3, 0.0  ;;  %v9145_v50 = vld [vmem:[#allocation31_spill] sm:$0xff] }
 0x2c4   : > { %5694 = vmatprep.subr.bf16.mxu0 %v9142_v41  ;;  %v3371_v18 = vsel %vm3335_vm3, %v7482_v23, 0.0  ;;  %2642 = vmatmul.mubr.bf16.vlgmr.msra.gmra.mrb[4].mxu0 %v7506_v33  ;;  %vm3268_vm8 = vcmp.eq.s32.totalorder %v3236_v45, 0  ;;  %vm3336_vm9 = vcmp.eq.s32.totalorder %v3236_v45, 1  ;;  %vm3436_vm0 = vcmp.eq.s32.totalorder %v3236_v45, 16 }
 0x2c5   : > { %v3403_v21 = vadd.f32 %v3371_v18, %v3303_v47  ;;  %v3615_v16 = vpack.c.bf16 %v3586_v37, %v3585_v26  ;;  %v3304_v58 = vsel %vm3268_vm8, %v7479_v3, 0.0  ;;  %v3372_v29 = vsel %vm3336_vm9, %v7482_v23, 0.0  ;;  %5696 = vmatprep.mubr.msk.bf16.mxu0 %vm9059_vm1, %v9142_v41 }
 0x2c6   : > { %v3471_v10 = vsel %vm3435_vm4, %v7485_v31, 0.0  ;;  %v3404_v28 = vadd.f32 %v3372_v29, %v3304_v58  ;;  %v3472_v53 = vsel %vm3436_vm0, %v7485_v31, 0.0  ;;  %vm3535_vm10 = vcmp.eq.s32.totalorder %v3235_v36, 17 }
 0x2c7   : > { %v3503_v32 = vadd.f32 %v3471_v10, %v3403_v21  ;;  %5585 = vmatpush3.bf16.msra.mxu1 %v3615_v16  ;;  %vm3536_vm12 = vcmp.eq.s32.totalorder %v3236_v45, 17  ;;  %v3571_v33 = vsel %vm3535_vm10, %v7491_v56, 0.0  ;;  %v3219_v19 = vsub.s32 %v9143_v15, %v7476_v11  ;;  %v9146_v10 = vld [vmem:[#allocation32_spill] sm:$0xff] }
 0x2c8   : > { %v3220_v14 = vsub.s32 %v9144_v54, %v7476_v11  ;;  %v3504_v55 = vadd.f32 %v3472_v53, %v3404_v28  ;;  %v3572_v35 = vsel %vm3536_vm12, %v7491_v56, 0.0  ;;  %v3237_v20 = vsub.s32 %v9145_v50, %v7476_v11 }
 0x2c9   : > { %v3603_v2 = vadd.f32 %v3571_v33, %v3503_v32  ;;  %vm3251_vm13 = vcmp.eq.s32.totalorder %v3219_v19, 0  ;;  %vm3319_vm14 = vcmp.eq.s32.totalorder %v3219_v19, 1  ;;  %vm3419_vm7 = vcmp.eq.s32.totalorder %v3219_v19, 16 }
 0x2ca   : > { %vm3252_vm6 = vcmp.eq.s32.totalorder %v3220_v14, 0  ;;  %vm3320_vm15 = vcmp.eq.s32.totalorder %v3220_v14, 1  ;;  %v3604_v36 = vadd.f32 %v3572_v35, %v3504_v55  ;;  %v3287_v0 = vsel %vm3251_vm13, %v7479_v3, 0.0 }
 0x2cb   : > { %v3288_v45 = vsel %vm3252_vm6, %v7479_v3, 0.0  ;;  %v3355_v26 = vsel %vm3319_vm14, %v7482_v23, 0.0  ;;  %v3356_v37 = vsel %vm3320_vm15, %v7482_v23, 0.0  ;;  %vm3420_vm11 = vcmp.eq.s32.totalorder %v3220_v14, 16 }
 0x2cc   : > { %v3387_v47 = vadd.f32 %v3355_v26, %v3287_v0  ;;  %v3624_v18 = vpack.c.bf16 %v3604_v36, %v3603_v2  ;;  %v3388_v21 = vadd.f32 %v3356_v37, %v3288_v45  ;;  %v3455_v16 = vsel %vm3419_vm7, %v7485_v31, 0.0 }
 0x2cd   : > { %v3456_v58 = vsel %vm3420_vm11, %v7485_v31, 0.0  ;;  %vm3519_vm3 = vcmp.eq.s32.totalorder %v3219_v19, 17  ;;  %vm3520_vm4 = vcmp.eq.s32.totalorder %v3220_v14, 17  ;;  %v3238_v28 = vsub.s32 %v9146_v10, %v7476_v11 }
 0x2ce   : > { %v3487_v29 = vadd.f32 %v3455_v16, %v3387_v47  ;;  %5586 = vmatprep.subr.bf16.mxu1 %v3624_v18  ;;  %v3488_v53 = vadd.f32 %v3456_v58, %v3388_v21  ;;  %v3555_v32 = vsel %vm3519_vm3, %v7491_v56, 0.0  ;;  %v3556_v33 = vsel %vm3520_vm4, %v7491_v56, 0.0  ;;  %v9147_v21 = vld [vmem:[#allocation33_spill] sm:$0xff] }
 0x2cf   : > { %vm3269_vm8 = vcmp.eq.s32.totalorder %v3237_v20, 0  ;;  %vm3270_vm9 = vcmp.eq.s32.totalorder %v3238_v28, 0  ;;  %vm3337_vm0 = vcmp.eq.s32.totalorder %v3237_v20, 1  ;;  %vm3338_vm10 = vcmp.eq.s32.totalorder %v3238_v28, 1 }
 0x2d0   : > { %v3587_v55 = vadd.f32 %v3555_v32, %v3487_v29  ;;  %v3305_v35 = vsel %vm3269_vm8, %v7479_v3, 0.0  ;;  %v3588_v2 = vadd.f32 %v3556_v33, %v3488_v53  ;;  %v3306_v36 = vsel %vm3270_vm9, %v7479_v3, 0.0 }
 0x2d1   : > { %v3373_v19 = vsel %vm3337_vm0, %v7482_v23, 0.0  ;;  %v3374_v14 = vsel %vm3338_vm10, %v7482_v23, 0.0  ;;  %vm3437_vm12 = vcmp.eq.s32.totalorder %v3237_v20, 16  ;;  %vm3438_vm13 = vcmp.eq.s32.totalorder %v3238_v28, 16 }
 0x2d2   : > { %v3405_v0 = vadd.f32 %v3373_v19, %v3305_v35  ;;  %v3616_v45 = vpack.c.bf16 %v3588_v2, %v3587_v55  ;;  %v3406_v26 = vadd.f32 %v3374_v14, %v3306_v36  ;;  %v3473_v37 = vsel %vm3437_vm12, %v7485_v31, 0.0 }
 0x2d3   : > { %v3474_v47 = vsel %vm3438_vm13, %v7485_v31, 0.0  ;;  %vm3537_vm6 = vcmp.eq.s32.totalorder %v3237_v20, 17  ;;  %vm3538_vm14 = vcmp.eq.s32.totalorder %v3238_v28, 17  ;;  %v3221_v16 = vsub.s32 %v9147_v21, %v7476_v11 }
 0x2d4   : > { %v3505_v18 = vadd.f32 %v3473_v37, %v3405_v0  ;;  %5587 = vmatpush3.bf16.msra.mxu1 %v3616_v45  ;;  %v3506_v58 = vadd.f32 %v3474_v47, %v3406_v26  ;;  %v3573_v29 = vsel %vm3537_vm6, %v7491_v56, 0.0  ;;  %v3574_v53 = vsel %vm3538_vm14, %v7491_v56, 0.0 }
 0x2d5   : > { %v3222_v32 = vsub.s32 %v6235_v46, %v7476_v11  ;;  %vm3253_vm15 = vcmp.eq.s32.totalorder %v3221_v16, 0  ;;  %vm3321_vm7 = vcmp.eq.s32.totalorder %v3221_v16, 1  ;;  %vm3421_vm11 = vcmp.eq.s32.totalorder %v3221_v16, 16 }
 0x2d6   : > { %v3605_v33 = vadd.f32 %v3573_v29, %v3505_v18  ;;  %v3606_v55 = vadd.f32 %v3574_v53, %v3506_v58  ;;  %v3289_v20 = vsel %vm3253_vm15, %v7479_v3, 0.0  ;;  %v3357_v35 = vsel %vm3321_vm7, %v7482_v23, 0.0 }
 0x2d7   : > { %vm3254_vm3 = vcmp.eq.s32.totalorder %v3222_v32, 0  ;;  %vm3322_vm4 = vcmp.eq.s32.totalorder %v3222_v32, 1  ;;  %vm3422_vm8 = vcmp.eq.s32.totalorder %v3222_v32, 16  ;;  %v3389_v19 = vadd.f32 %v3357_v35, %v3289_v20 }
 0x2d8   : > { %v3290_v28 = vsel %vm3254_vm3, %v7479_v3, 0.0  ;;  %v3358_v2 = vsel %vm3322_vm4, %v7482_v23, 0.0  ;;  %v3625_v36 = vpack.c.bf16 %v3606_v55, %v3605_v33  ;;  %v3457_v0 = vsel %vm3421_vm11, %v7485_v31, 0.0 }
 0x2d9   : > { %v3390_v14 = vadd.f32 %v3358_v2, %v3290_v28  ;;  %v3458_v45 = vsel %vm3422_vm8, %v7485_v31, 0.0  ;;  %vm3521_vm9 = vcmp.eq.s32.totalorder %v3221_v16, 17  ;;  %vm3522_vm0 = vcmp.eq.s32.totalorder %v3222_v32, 17 }
 0x2da   : > { %v3239_v26 = vsub.s32 %v6243_v48, %v7476_v11  ;;  %5588 = vmatprep.subr.bf16.mxu1 %v3625_v36  ;;  %v3489_v37 = vadd.f32 %v3457_v0, %v3389_v19  ;;  %v3557_v18 = vsel %vm3521_vm9, %v7491_v56, 0.0  ;;  %v3558_v58 = vsel %vm3522_vm0, %v7491_v56, 0.0 }
 0x2db   : > { %v3490_v47 = vadd.f32 %v3458_v45, %v3390_v14  ;;  %v3240_v29 = vsub.s32 %v6250_v52, %v7476_v11  ;;  %v3223_v45 = vsub.s32 %v6259_v57, %v7476_v11 }
 0x2dc   : > { %vm3271_vm10 = vcmp.eq.s32.totalorder %v3239_v26, 0  ;;  %vm3339_vm12 = vcmp.eq.s32.totalorder %v3239_v26, 1  ;;  %vm3439_vm13 = vcmp.eq.s32.totalorder %v3239_v26, 16  ;;  %v3589_v53 = vadd.f32 %v3557_v18, %v3489_v37 }
 0x2dd   : > { %v3590_v33 = vadd.f32 %v3558_v58, %v3490_v47  ;;  %v3307_v16 = vsel %vm3271_vm10, %v7479_v3, 0.0  ;;  %v3375_v32 = vsel %vm3339_vm12, %v7482_v23, 0.0  ;;  %vm3272_vm6 = vcmp.eq.s32.totalorder %v3240_v29, 0 }
 0x2de   : > { %vm3340_vm14 = vcmp.eq.s32.totalorder %v3240_v29, 1  ;;  %v3407_v55 = vadd.f32 %v3375_v32, %v3307_v16  ;;  %vm3440_vm15 = vcmp.eq.s32.totalorder %v3240_v29, 16  ;;  %v3308_v28 = vsel %vm3272_vm6, %v7479_v3, 0.0 }
 0x2df   : > { %v3617_v20 = vpack.c.bf16 %v3590_v33, %v3589_v53  ;;  %v3376_v35 = vsel %vm3340_vm14, %v7482_v23, 0.0  ;;  %v3475_v2 = vsel %vm3439_vm13, %v7485_v31, 0.0  ;;  %v3476_v19 = vsel %vm3440_vm15, %v7485_v31, 0.0 }
 0x2e0   : > { %v3408_v36 = vadd.f32 %v3376_v35, %v3308_v28  ;;  %v3507_v14 = vadd.f32 %v3475_v2, %v3407_v55  ;;  %vm3539_vm7 = vcmp.eq.s32.totalorder %v3239_v26, 17  ;;  %vm3540_vm11 = vcmp.eq.s32.totalorder %v3240_v29, 17 }
 0x2e1   : > { %5589 = vmatpush3.bf16.msra.mxu1 %v3617_v20  ;;  %v3575_v0 = vsel %vm3539_vm7, %v7491_v56, 0.0  ;;  %v3224_v37 = vsub.s32 %v6263_v59, %v7476_v11  ;;  %v3576_v18 = vsel %vm3540_vm11, %v7491_v56, 0.0  ;;  %v3241_v53 = vsub.s32 %v6270_v61, %v7476_v11 }
 0x2e2   : > { %v3508_v47 = vadd.f32 %v3476_v19, %v3408_v36  ;;  %v3607_v58 = vadd.f32 %v3575_v0, %v3507_v14  ;;  %vm3255_vm3 = vcmp.eq.s32.totalorder %v3223_v45, 0  ;;  %vm3323_vm8 = vcmp.eq.s32.totalorder %v3223_v45, 1 }
 0x2e3   : > { %vm3256_vm4 = vcmp.eq.s32.totalorder %v3224_v37, 0  ;;  %vm3324_vm9 = vcmp.eq.s32.totalorder %v3224_v37, 1  ;;  %v3291_v29 = vsel %vm3255_vm3, %v7479_v3, 0.0  ;;  %v3359_v16 = vsel %vm3323_vm8, %v7482_v23, 0.0 }
 0x2e4   : > { %v3608_v26 = vadd.f32 %v3576_v18, %v3508_v47  ;;  %v3292_v33 = vsel %vm3256_vm4, %v7479_v3, 0.0  ;;  %v3360_v32 = vsel %vm3324_vm9, %v7482_v23, 0.0  ;;  %v3391_v55 = vadd.f32 %v3359_v16, %v3291_v29 }
 0x2e5   : > { %vm3423_vm0 = vcmp.eq.s32.totalorder %v3223_v45, 16  ;;  %vm3424_vm10 = vcmp.eq.s32.totalorder %v3224_v37, 16  ;;  %v3392_v28 = vadd.f32 %v3360_v32, %v3292_v33  ;;  %vm3523_vm12 = vcmp.eq.s32.totalorder %v3223_v45, 17 }
 0x2e6   : > { %v3626_v20 = vpack.c.bf16 %v3608_v26, %v3607_v58  ;;  %v3459_v35 = vsel %vm3423_vm0, %v7485_v31, 0.0  ;;  %v3460_v2 = vsel %vm3424_vm10, %v7485_v31, 0.0  ;;  %vm3524_vm13 = vcmp.eq.s32.totalorder %v3224_v37, 17 }
 0x2e7   : > { %v3491_v36 = vadd.f32 %v3459_v35, %v3391_v55  ;;  %v3242_v19 = vsub.s32 %v6273_v62, %v7476_v11  ;;  %v3492_v14 = vadd.f32 %v3460_v2, %v3392_v28  ;;  %v3559_v0 = vsel %vm3523_vm12, %v7491_v56, 0.0 }
 0x2e8   : > { %5590 = vmatprep.subr.bf16.mxu1 %v3626_v20  ;;  %v3560_v47 = vsel %vm3524_vm13, %v7491_v56, 0.0  ;;  %vm3273_vm6 = vcmp.eq.s32.totalorder %v3241_v53, 0  ;;  %vm3341_vm15 = vcmp.eq.s32.totalorder %v3241_v53, 1  ;;  %vm3441_vm11 = vcmp.eq.s32.totalorder %v3241_v53, 16 }
 0x2e9   : > { %v3591_v18 = vadd.f32 %v3559_v0, %v3491_v36  ;;  %vm3274_vm14 = vcmp.eq.s32.totalorder %v3242_v19, 0  ;;  %v3309_v58 = vsel %vm3273_vm6, %v7479_v3, 0.0  ;;  %v3592_v26 = vadd.f32 %v3560_v47, %v3492_v14 }
 0x2ea   : > { %v3310_v29 = vsel %vm3274_vm14, %v7479_v3, 0.0  ;;  %vm3342_vm7 = vcmp.eq.s32.totalorder %v3242_v19, 1  ;;  %v3377_v45 = vsel %vm3341_vm15, %v7482_v23, 0.0  ;;  %vm3442_vm3 = vcmp.eq.s32.totalorder %v3242_v19, 16 }
 0x2eb   : > { %v3378_v37 = vsel %vm3342_vm7, %v7482_v23, 0.0  ;;  %v3409_v33 = vadd.f32 %v3377_v45, %v3309_v58  ;;  %v3618_v16 = vpack.c.bf16 %v3592_v26, %v3591_v18  ;;  %v3477_v55 = vsel %vm3441_vm11, %v7485_v31, 0.0 }
 0x2ec   : > { %v3410_v32 = vadd.f32 %v3378_v37, %v3310_v29  ;;  %v3478_v20 = vsel %vm3442_vm3, %v7485_v31, 0.0  ;;  %vm3541_vm4 = vcmp.eq.s32.totalorder %v3241_v53, 17  ;;  %vm3542_vm8 = vcmp.eq.s32.totalorder %v3242_v19, 17 }
 0x2ed   : > { %v3509_v28 = vadd.f32 %v3477_v55, %v3409_v33  ;;  %v3225_v35 = vsub.s32 %v6276_v63, %v7476_v11  ;;  %5591 = vmatpush3.bf16.msra.mxu1 %v3618_v16  ;;  %v3577_v36 = vsel %vm3541_vm4, %v7491_v56, 0.0  ;;  %v3578_v14 = vsel %vm3542_vm8, %v7491_v56, 0.0 }
 0x2ee   : > { %v3510_v2 = vadd.f32 %v3478_v20, %v3410_v32  ;;  %v3226_v0 = vsub.s32 %v6284_v1, %v7476_v11  ;;  %v3243_v32 = vsub.s32 %v9134_v24, %v7476_v11 }
 0x2ef   : > { %v3609_v47 = vadd.f32 %v3577_v36, %v3509_v28  ;;  %vm3257_vm9 = vcmp.eq.s32.totalorder %v3225_v35, 0  ;;  %vm3325_vm0 = vcmp.eq.s32.totalorder %v3225_v35, 1  ;;  %vm3425_vm10 = vcmp.eq.s32.totalorder %v3225_v35, 16 }
 0x2f0   : > { %v3610_v18 = vadd.f32 %v3578_v14, %v3510_v2  ;;  %vm3258_vm12 = vcmp.eq.s32.totalorder %v3226_v0, 0  ;;  %v3293_v53 = vsel %vm3257_vm9, %v7479_v3, 0.0  ;;  %vm3326_vm13 = vcmp.eq.s32.totalorder %v3226_v0, 1 }
 0x2f1   : > { %v3294_v19 = vsel %vm3258_vm12, %v7479_v3, 0.0  ;;  %v3361_v58 = vsel %vm3325_vm0, %v7482_v23, 0.0  ;;  %v3362_v26 = vsel %vm3326_vm13, %v7482_v23, 0.0  ;;  %vm3426_vm6 = vcmp.eq.s32.totalorder %v3226_v0, 16 }
 0x2f2   : > { %v3627_v29 = vpack.c.bf16 %v3610_v18, %v3609_v47  ;;  %v3393_v45 = vadd.f32 %v3361_v58, %v3293_v53  ;;  %v3394_v37 = vadd.f32 %v3362_v26, %v3294_v19  ;;  %v3461_v33 = vsel %vm3425_vm10, %v7485_v31, 0.0 }
 0x2f3   : > { %v3462_v16 = vsel %vm3426_vm6, %v7485_v31, 0.0  ;;  %vm3525_vm14 = vcmp.eq.s32.totalorder %v3225_v35, 17  ;;  %vm3526_vm15 = vcmp.eq.s32.totalorder %v3226_v0, 17  ;;  %v3244_v36 = vsub.s32 %v9135_v42, %v7476_v11 }
 0x2f4   : > { %5592 = vmatprep.subr.bf16.mxu1 %v3627_v29  ;;  %v3493_v55 = vadd.f32 %v3461_v33, %v3393_v45  ;;  %v3494_v20 = vadd.f32 %v3462_v16, %v3394_v37  ;;  %v3561_v28 = vsel %vm3525_vm14, %v7491_v56, 0.0  ;;  %v3562_v2 = vsel %vm3526_vm15, %v7491_v56, 0.0 }
 0x2f5   : > { %vm3275_vm7 = vcmp.eq.s32.totalorder %v3243_v32, 0  ;;  %vm3343_vm11 = vcmp.eq.s32.totalorder %v3243_v32, 1  ;;  %vm3443_vm3 = vcmp.eq.s32.totalorder %v3243_v32, 16  ;;  %vm3276_vm4 = vcmp.eq.s32.totalorder %v3244_v36, 0 }
 0x2f6   : > { %v3593_v14 = vadd.f32 %v3561_v28, %v3493_v55  ;;  %v3594_v47 = vadd.f32 %v3562_v2, %v3494_v20  ;;  %v3311_v35 = vsel %vm3275_vm7, %v7479_v3, 0.0  ;;  %v3379_v0 = vsel %vm3343_vm11, %v7482_v23, 0.0 }
 0x2f7   : > { %vm3344_vm8 = vcmp.eq.s32.totalorder %v3244_v36, 1  ;;  %v3411_v18 = vadd.f32 %v3379_v0, %v3311_v35  ;;  %vm3444_vm9 = vcmp.eq.s32.totalorder %v3244_v36, 16  ;;  %v3312_v19 = vsel %vm3276_vm4, %v7479_v3, 0.0 }
 0x2f8   : > { %v3619_v53 = vpack.c.bf16 %v3594_v47, %v3593_v14  ;;  %v3380_v58 = vsel %vm3344_vm8, %v7482_v23, 0.0  ;;  %v3479_v26 = vsel %vm3443_vm3, %v7485_v31, 0.0  ;;  %v3480_v45 = vsel %vm3444_vm9, %v7485_v31, 0.0 }
 0x2f9   : > { %v3412_v29 = vadd.f32 %v3380_v58, %v3312_v19  ;;  %v3511_v37 = vadd.f32 %v3479_v26, %v3411_v18  ;;  %vm3543_vm0 = vcmp.eq.s32.totalorder %v3243_v32, 17  ;;  %vm3544_vm10 = vcmp.eq.s32.totalorder %v3244_v36, 17 }
 0x2fa   : > { %5593 = vmatpush3.bf16.msra.mxu1 %v3619_v53  ;;  %v3579_v33 = vsel %vm3543_vm0, %v7491_v56, 0.0  ;;  %v3227_v16 = vsub.s32 %v6308_v7, %v7476_v11  ;;  %v3228_v55 = vsub.s32 %v6311_v8, %v7476_v11  ;;  %v3580_v28 = vsel %vm3544_vm10, %v7491_v56, 0.0 }
 0x2fb   : > { %v3512_v20 = vadd.f32 %v3480_v45, %v3412_v29  ;;  %v3611_v2 = vadd.f32 %v3579_v33, %v3511_v37  ;;  %v5861_v33 = vld.sshfl [vmem:[%s6224_s8] sm:$0x33 pattern:$0x76325410] }
 0x2fc   : > { %vm3259_vm12 = vcmp.eq.s32.totalorder %v3227_v16, 0  ;;  %vm3260_vm13 = vcmp.eq.s32.totalorder %v3228_v55, 0  ;;  %vm3327_vm6 = vcmp.eq.s32.totalorder %v3227_v16, 1  ;;  %vm3328_vm14 = vcmp.eq.s32.totalorder %v3228_v55, 1 }
 0x2fd   : > { %v3612_v14 = vadd.f32 %v3580_v28, %v3512_v20  ;;  %v3295_v32 = vsel %vm3259_vm12, %v7479_v3, 0.0  ;;  %v3296_v36 = vsel %vm3260_vm13, %v7479_v3, 0.0  ;;  %v3363_v47 = vsel %vm3327_vm6, %v7482_v23, 0.0 }
 0x2fe   : > { %v3364_v35 = vsel %vm3328_vm14, %v7482_v23, 0.0  ;;  %v3395_v0 = vadd.f32 %v3363_v47, %v3295_v32  ;;  %vm3427_vm15 = vcmp.eq.s32.totalorder %v3227_v16, 16  ;;  %vm3428_vm7 = vcmp.eq.s32.totalorder %v3228_v55, 16 }
 0x2ff   : > { %v3628_v11 = vpack.c.bf16 %v3612_v14, %v3611_v2  ;;  %v3396_v18 = vadd.f32 %v3364_v35, %v3296_v36  ;;  %v3463_v53 = vsel %vm3427_vm15, %v7485_v31, 0.0  ;;  %v3464_v19 = vsel %vm3428_vm7, %v7485_v31, 0.0 }
 0x300   : > { %v3495_v58 = vadd.f32 %v3463_v53, %v3395_v0  ;;  %vm3527_vm11 = vcmp.eq.s32.totalorder %v3227_v16, 17  ;;  %vm3528_vm3 = vcmp.eq.s32.totalorder %v3228_v55, 17  ;;  %v3721_v14 = vsub.s32 6, %v6154_v9 }
 0x301   : > { %5594 = vmatprep.subr.bf16.mxu1 %v3628_v11  ;;  %v3496_v26 = vadd.f32 %v3464_v19, %v3396_v18  ;;  %v3563_v3 = vsel %vm3527_vm11, %v7491_v56, 0.0  ;;  %v3564_v29 = vsel %vm3528_vm3, %v7491_v56, 0.0 }
 0x302   : > { %v3595_v23 = vadd.f32 %v3563_v3, %v3495_v58  ;;  %v7782_v32 = vrot.slane %v9124_v60, %v3721_v14  ;;  %v7792_v35 = vrot.slane %v9125_v27, %v3721_v14  ;;  %v7795_v0 = vrot.slane %v9126_v13, %v3721_v14 }
 0x303   : > { %v3596_v45 = vadd.f32 %v3564_v29, %v3496_v26 }
 0x304   : > { %v3739_v36 = vsub.s32 %v9131_v34, %v7782_v32  ;;  %v3740_v47 = vsub.s32 %v9132_v25, %v7782_v32  ;;  %v3723_v11 = vsub.s32 %v6154_v9, %v7782_v32  ;;  %v3724_v18 = vsub.s32 %v9111_v39, %v7782_v32 }
 0x305   : > { %v3620_v37 = vpack.c.bf16 %v3596_v45, %v3595_v23  ;;  %v7806_v23 = vrot.slane %v9127_v4, %v3721_v14  ;;  %v7809_v45 = vrot.slane %v9129_v30, %v3721_v14 }
 0x306   : > { %vm3771_vm4 = vcmp.eq.s32.totalorder %v3739_v36, 0  ;;  %vm3772_vm8 = vcmp.eq.s32.totalorder %v3740_v47, 0  ;;  %vm3839_vm9 = vcmp.eq.s32.totalorder %v3739_v36, 1  ;;  %vm3840_vm0 = vcmp.eq.s32.totalorder %v3740_v47, 1 }
 0x307   : > { %5595 = vmatpush3.bf16.msra.mxu1 %v3620_v37  ;;  %v3807_v53 = vsel %vm3771_vm4, %v7792_v35, 0.0  ;;  %v3808_v19 = vsel %vm3772_vm8, %v7792_v35, 0.0  ;;  %v3875_v58 = vsel %vm3839_vm9, %v7795_v0, 0.0  ;;  %v3876_v26 = vsel %vm3840_vm0, %v7795_v0, 0.0 }
 0x308   : > { %v3907_v3 = vadd.f32 %v3875_v58, %v3807_v53  ;;  %v3908_v29 = vadd.f32 %v3876_v26, %v3808_v19  ;;  %vm3939_vm10 = vcmp.eq.s32.totalorder %v3739_v36, 16  ;;  %vm3940_vm12 = vcmp.eq.s32.totalorder %v3740_v47, 16 }
 0x309   : > { %vm3755_vm13 = vcmp.eq.s32.totalorder %v3723_v11, 0  ;;  %vm3756_vm6 = vcmp.eq.s32.totalorder %v3724_v18, 0  ;;  %vm4039_vm14 = vcmp.eq.s32.totalorder %v3739_v36, 17  ;;  %vm4040_vm15 = vcmp.eq.s32.totalorder %v3740_v47, 17 }
 0x30a   : > { %3662 = vmatmul.mubr.bf16.vlgmr.msra.gmra.mrb[16].mxu1 %v5861_v33  ;;  %v3791_v37 = vsel %vm3755_vm13, %v7792_v35, 0.0  ;;  %v3792_v33 = vsel %vm3756_vm6, %v7792_v35, 0.0  ;;  %vm3823_vm7 = vcmp.eq.s32.totalorder %v3723_v11, 1  ;;  %vm3824_vm11 = vcmp.eq.s32.totalorder %v3724_v18, 1 }
 0x30b   : > { %4681 = vmatprep.mubr.bf16.mxu1 %v9114_v51  ;;  %v3859_v14 = vsel %vm3823_vm7, %v7795_v0, 0.0  ;;  %v3860_v36 = vsel %vm3824_vm11, %v7795_v0, 0.0  ;;  %vm3923_vm3 = vcmp.eq.s32.totalorder %v3723_v11, 16  ;;  %vm3924_vm4 = vcmp.eq.s32.totalorder %v3724_v18, 16 }
 0x30c   : > { %v3891_v19 = vadd.f32 %v3859_v14, %v3791_v37  ;;  %v3892_v58 = vadd.f32 %v3860_v36, %v3792_v33  ;;  %v3959_v26 = vsel %vm3923_vm3, %v7806_v23, 0.0  ;;  %v3960_v8 = vsel %vm3924_vm4, %v7806_v23, 0.0 }
 0x30d   : > { %vm4023_vm8 = vcmp.eq.s32.totalorder %v3723_v11, 17  ;;  %vm4024_vm9 = vcmp.eq.s32.totalorder %v3724_v18, 17  ;;  %v3742_v37 = vsub.s32 %v9115_v5, %v7782_v32  ;;  %v3725_v33 = vsub.s32 %v6188_v22, %v7782_v32 }
 0x30f   : > { %vm3842_vm13 = vcmp.eq.s32.totalorder %v3742_v37, 1  ;;  %vm4042_vm7 = vcmp.eq.s32.totalorder %v3742_v37, 17  ;;  %vm3757_vm11 = vcmp.eq.s32.totalorder %v3725_v33, 0  ;;  %vm3825_vm4 = vcmp.eq.s32.totalorder %v3725_v33, 1 }
 0x310   : > { %v4078_v7 = vsel %vm4042_vm7, %v7809_v45, 0.0  ;;  %v3793_v42 = vsel %vm3757_vm11, %v7792_v35, 0.0 }
 0x351   : > { %v5572_v20 = vpop.f32.mrb[12].mxu1 }
 0x352   : > { %v5573_v28 = vpop.f32.mrb[13].mxu1 }
 0x353   : > { %v5574_v31 = vadd.f32 %v5573_v28, %v5572_v20  ;;  %v5575_v2 = vpop.f32.mrb[14].mxu1  ;;  %v3975_v20 = vsel %vm3939_vm10, %v7806_v23, 0.0  ;;  %v3976_v28 = vsel %vm3940_vm12, %v7806_v23, 0.0  ;;  %vm3774_vm10 = vcmp.eq.s32.totalorder %v3742_v37, 0 }
 0x354   : > { %v5576_v16 = vpop.f32.mrb[15].mxu1  ;;  %v4076_v2 = vsel %vm4040_vm15, %v7809_v45, 0.0  ;;  %v3810_v36 = vsel %vm3774_vm10, %v7792_v35, 0.0  ;;  %vm4025_vm10 = vcmp.eq.s32.totalorder %v3725_v33, 17 }
 0x355   : > { %v3161_v55 = vpack.c.bf16 %v5574_v31, %v5574_v31  ;;  %v4075_v31 = vsel %vm4039_vm14, %v7809_v45, 0.0  ;;  %v4007_v16 = vadd.f32 %v3975_v20, %v3907_v3  ;;  %v3992_v20 = vadd.f32 %v3960_v8, %v3892_v58 }
 0x356   : > { %v3726_v8 = vsub.s32 %v9133_v6, %v7782_v32  ;;  %v3878_v58 = vsel %vm3842_vm13, %v7795_v0, 0.0  ;;  %vm3942_vm14 = vcmp.eq.s32.totalorder %v3742_v37, 16 }
 0x357   : > { %v7785_v56 = vsel %vm9062_vm2, %v3161_v55, 0  ;;  %v4008_v55 = vadd.f32 %v3976_v28, %v3908_v29  ;;  %v7819_v47 = vadd.f32 %v4075_v31, %v4007_v16  ;;  %v3991_v29 = vadd.f32 %v3959_v26, %v3891_v19 }
 0x358   : > { %v4059_v28 = vsel %vm4023_vm8, %v7809_v45, 0.0  ;;  %v4060_v31 = vsel %vm4024_vm9, %v7809_v45, 0.0  ;;  %v7843_v16 = vsub.s32 %v9136_v49, %v7782_v32  ;;  %vm3758_vm3 = vcmp.eq.s32.totalorder %v3726_v8, 0 }
 0x359   : > { %v7821_v53 = vadd.f32 %v4076_v2, %v4008_v55  ;;  %v3741_v2 = vsub.s32 %v9112_v43, %v7782_v32  ;;  %v7835_v11 = vadd.f32 %v4059_v28, %v3991_v29  ;;  %v7837_v18 = vadd.f32 %v4060_v31, %v3992_v20 }
 0x35a   : > { %v3910_v29 = vadd.f32 %v3878_v58, %v3810_v36  ;;  %v3978_v28 = vsel %vm3942_vm14, %v7806_v23, 0.0  ;;  %v3794_v36 = vsel %vm3758_vm3, %v7792_v35, 0.0  ;;  %vm3826_vm8 = vcmp.eq.s32.totalorder %v3726_v8, 1 }
 0x35b   : > { %vm3773_vm0 = vcmp.eq.s32.totalorder %v3741_v2, 0  ;;  %vm3841_vm12 = vcmp.eq.s32.totalorder %v3741_v2, 1  ;;  %vm3941_vm6 = vcmp.eq.s32.totalorder %v3741_v2, 16  ;;  %vm4041_vm15 = vcmp.eq.s32.totalorder %v3741_v2, 17 }
 0x35c   : > { %v3809_v14 = vsel %vm3773_vm0, %v7792_v35, 0.0  ;;  %v3877_v19 = vsel %vm3841_vm12, %v7795_v0, 0.0  ;;  %v3977_v20 = vsel %vm3941_vm6, %v7806_v23, 0.0  ;;  %v4077_v55 = vsel %vm4041_vm15, %v7809_v45, 0.0 }
 0x35d   : > { %v3909_v26 = vadd.f32 %v3877_v19, %v3809_v14  ;;  %v4010_v3 = vadd.f32 %v3978_v28, %v3910_v29  ;;  %v3861_v2 = vsel %vm3825_vm4, %v7795_v0, 0.0  ;;  %v3862_v37 = vsel %vm3826_vm8, %v7795_v0, 0.0 }
 0x35e   : > { %vm3925_vm9 = vcmp.eq.s32.totalorder %v3725_v33, 16  ;;  %v3893_v58 = vadd.f32 %v3861_v2, %v3793_v42  ;;  %vm3926_vm0 = vcmp.eq.s32.totalorder %v3726_v8, 16  ;;  %vm4026_vm12 = vcmp.eq.s32.totalorder %v3726_v8, 17 }
 0x35f   : > { %v4009_v31 = vadd.f32 %v3977_v20, %v3909_v26  ;;  %v7859_v19 = vadd.f32 %v4078_v7, %v4010_v3  ;;  %v3894_v26 = vadd.f32 %v3862_v37, %v3794_v36  ;;  %v3961_v29 = vsel %vm3925_vm9, %v7806_v23, 0.0 }
 0x360   : > { %v3962_v20 = vsel %vm3926_vm0, %v7806_v23, 0.0  ;;  %v3993_v28 = vadd.f32 %v3961_v29, %v3893_v58  ;;  %v4061_v3 = vsel %vm4025_vm10, %v7809_v45, 0.0  ;;  %v3744_v42 = vsub.s32 %v9137_v40, %v7782_v32 }
 0x361   : > { %v7856_v14 = vadd.f32 %v4077_v55, %v4009_v31  ;;  %v3994_v7 = vadd.f32 %v3962_v20, %v3894_v26  ;;  %v4062_v31 = vsel %vm4026_vm12, %v7809_v45, 0.0  ;;  %vm3775_vm13 = vcmp.eq.s32.totalorder %v7843_v16, 0 }
 0x362   : > { %vm3843_vm6 = vcmp.eq.s32.totalorder %v7843_v16, 1  ;;  %vm3943_vm14 = vcmp.eq.s32.totalorder %v7843_v16, 16  ;;  %v7874_v36 = vadd.f32 %v4061_v3, %v3993_v28  ;;  %v3811_v33 = vsel %vm3775_vm13, %v7792_v35, 0.0 }
 0x363   : > { %9148 = vst [vmem:[#allocation18_spill] sm:$0xff] %v7856_v14  ;;  %v7876_v2 = vadd.f32 %v4062_v31, %v3994_v7  ;;  %v3879_v8 = vsel %vm3843_vm6, %v7795_v0, 0.0  ;;  %vm3776_vm15 = vcmp.eq.s32.totalorder %v3744_v42, 0  ;;  %vm3844_vm7 = vcmp.eq.s32.totalorder %v3744_v42, 1 }
 0x364   : > { %9149 = vst [vmem:[#allocation19_spill] sm:$0xff] %v7874_v36  ;;  %v3911_v37 = vadd.f32 %v3879_v8, %v3811_v33  ;;  %vm3944_vm11 = vcmp.eq.s32.totalorder %v3744_v42, 16  ;;  %v3812_v26 = vsel %vm3776_vm15, %v7792_v35, 0.0  ;;  %v3880_v29 = vsel %vm3844_vm7, %v7795_v0, 0.0 }
 0x365   : > { %9150 = vst [vmem:[#allocation34_spill] sm:$0xff] %v7876_v2  ;;  %v3979_v20 = vsel %vm3943_vm14, %v7806_v23, 0.0  ;;  %v3912_v28 = vadd.f32 %v3880_v29, %v3812_v26  ;;  %v3980_v7 = vsel %vm3944_vm11, %v7806_v23, 0.0  ;;  %vm4043_vm3 = vcmp.eq.s32.totalorder %v7843_v16, 17 }
 0x366   : > { %v4011_v3 = vadd.f32 %v3979_v20, %v3911_v37  ;;  %vm4044_vm4 = vcmp.eq.s32.totalorder %v3744_v42, 17  ;;  %v4079_v31 = vsel %vm4043_vm3, %v7809_v45, 0.0  ;;  %v4231_v33 = vsub.s32 7, %v6154_v9 }
 0x367   : > { %v3727_v8 = vsub.s32 %v9138_v17, %v7782_v32  ;;  %v4012_v58 = vadd.f32 %v3980_v7, %v3912_v28  ;;  %v4080_v55 = vsel %vm4044_vm4, %v7809_v45, 0.0  ;;  %v3728_v26 = vsub.s32 %v9139_v44, %v7782_v32 }
 0x368   : > { %v7892_v24 = vadd.f32 %v4079_v31, %v4011_v3  ;;  %v7897_v37 = vrot.slane %v9124_v60, %v4231_v33  ;;  %v7900_v16 = vrot.slane %v9125_v27, %v4231_v33  ;;  %v7903_v42 = vrot.slane %v9126_v13, %v4231_v33 }
 0x369   : > { %v7906_v29 = vrot.slane %v9127_v4, %v4231_v33  ;;  %v7908_v20 = vadd.f32 %v4080_v55, %v4012_v58  ;;  %v7911_v28 = vrot.slane %v9129_v30, %v4231_v33  ;;  %vm3759_vm8 = vcmp.eq.s32.totalorder %v3727_v8, 0 }
 0x36a   : > { %9151 = vst [vmem:[#allocation41_spill] sm:$0xff] %v7892_v24  ;;  %vm3760_vm9 = vcmp.eq.s32.totalorder %v3728_v26, 0  ;;  %v4249_v60 = vsub.s32 %v9131_v34, %v7897_v37  ;;  %v4250_v27 = vsub.s32 %v9132_v25, %v7897_v37  ;;  %v3795_v7 = vsel %vm3759_vm8, %v7792_v35, 0.0 }
 0x36b   : > { %9152 = vst [vmem:[#allocation20_spill] sm:$0xff] %v7908_v20  ;;  %v3796_v13 = vsel %vm3760_vm9, %v7792_v35, 0.0  ;;  %vm3827_vm0 = vcmp.eq.s32.totalorder %v3727_v8, 1  ;;  %vm3828_vm10 = vcmp.eq.s32.totalorder %v3728_v26, 1  ;;  %vm3927_vm12 = vcmp.eq.s32.totalorder %v3727_v8, 16 }
 0x36c   : > { %vm4281_vm13 = vcmp.eq.s32.totalorder %v4249_v60, 0  ;;  %vm4282_vm6 = vcmp.eq.s32.totalorder %v4250_v27, 0  ;;  %vm4349_vm14 = vcmp.eq.s32.totalorder %v4249_v60, 1  ;;  %vm4350_vm15 = vcmp.eq.s32.totalorder %v4250_v27, 1 }
 0x36d   : > { %v4317_v30 = vsel %vm4281_vm13, %v7900_v16, 0.0  ;;  %v4318_v55 = vsel %vm4282_vm6, %v7900_v16, 0.0  ;;  %v4385_v58 = vsel %vm4349_vm14, %v7903_v42, 0.0  ;;  %v4386_v3 = vsel %vm4350_vm15, %v7903_v42, 0.0 }
 0x36e   : > { %v4417_v31 = vadd.f32 %v4385_v58, %v4317_v30  ;;  %v4418_v33 = vadd.f32 %v4386_v3, %v4318_v55  ;;  %vm4449_vm7 = vcmp.eq.s32.totalorder %v4249_v60, 16  ;;  %vm4450_vm11 = vcmp.eq.s32.totalorder %v4250_v27, 16 }
 0x36f   : > { %v4485_v4 = vsel %vm4449_vm7, %v7906_v29, 0.0  ;;  %v4486_v25 = vsel %vm4450_vm11, %v7906_v29, 0.0  ;;  %vm4549_vm3 = vcmp.eq.s32.totalorder %v4249_v60, 17  ;;  %vm4550_vm4 = vcmp.eq.s32.totalorder %v4250_v27, 17 }
 0x370   : > { %v4517_v34 = vadd.f32 %v4485_v4, %v4417_v31  ;;  %v4518_v24 = vadd.f32 %v4486_v25, %v4418_v33  ;;  %v4585_v20 = vsel %vm4549_vm3, %v7911_v28, 0.0  ;;  %v4586_v36 = vsel %vm4550_vm4, %v7911_v28, 0.0 }
 0x371   : > { %v3863_v2 = vsel %vm3827_vm0, %v7795_v0, 0.0  ;;  %v3864_v30 = vsel %vm3828_vm10, %v7795_v0, 0.0  ;;  %vm3928_vm8 = vcmp.eq.s32.totalorder %v3728_v26, 16  ;;  %v3963_v55 = vsel %vm3927_vm12, %v7806_v23, 0.0 }
 0x372   : > { %v4617_v58 = vadd.f32 %v4585_v20, %v4517_v34  ;;  %v4618_v3 = vadd.f32 %v4586_v36, %v4518_v24  ;;  %v3895_v60 = vadd.f32 %v3863_v2, %v3795_v7  ;;  %v3896_v27 = vadd.f32 %v3864_v30, %v3796_v13 }
 0x373   : > { %v3964_v25 = vsel %vm3928_vm8, %v7806_v23, 0.0  ;;  %vm4027_vm9 = vcmp.eq.s32.totalorder %v3727_v8, 17  ;;  %vm4028_vm13 = vcmp.eq.s32.totalorder %v3728_v26, 17  ;;  %v4233_v4 = vsub.s32 %v6154_v9, %v7897_v37 }
 0x374   : > { %v4641_v31 = vpack.c.bf16 %v4618_v3, %v4617_v58  ;;  %v3995_v33 = vadd.f32 %v3963_v55, %v3895_v60  ;;  %v3996_v1 = vadd.f32 %v3964_v25, %v3896_v27  ;;  %v4063_v63 = vsel %vm4027_vm9, %v7809_v45, 0.0 }
 0x375   : > { %v4064_v14 = vsel %vm4028_vm13, %v7809_v45, 0.0  ;;  %v4234_v34 = vsub.s32 %v9111_v39, %v7897_v37  ;;  %vm4265_vm0 = vcmp.eq.s32.totalorder %v4233_v4, 0  ;;  %vm4333_vm10 = vcmp.eq.s32.totalorder %v4233_v4, 1 }
 0x376   : > { %5628 = vmatprep.subr.bf16.mxu1 %v4641_v31  ;;  %v7942_v24 = vadd.f32 %v4063_v63, %v3995_v33  ;;  %v7944_v36 = vadd.f32 %v4064_v14, %v3996_v1  ;;  %v4301_v2 = vsel %vm4265_vm0, %v7900_v16, 0.0  ;;  %v4369_v8 = vsel %vm4333_vm10, %v7903_v42, 0.0 }
 0x377   : > { %vm4266_vm12 = vcmp.eq.s32.totalorder %v4234_v34, 0  ;;  %vm4334_vm6 = vcmp.eq.s32.totalorder %v4234_v34, 1  ;;  %v4401_v26 = vadd.f32 %v4369_v8, %v4301_v2  ;;  %vm4433_vm14 = vcmp.eq.s32.totalorder %v4233_v4, 16 }
 0x378   : > { %v4302_v7 = vsel %vm4266_vm12, %v7900_v16, 0.0  ;;  %v4370_v13 = vsel %vm4334_vm6, %v7903_v42, 0.0  ;;  %vm4434_vm15 = vcmp.eq.s32.totalorder %v4234_v34, 16  ;;  %v4469_v1 = vsel %vm4433_vm14, %v7906_v29, 0.0 }
 0x379   : > { %v4402_v63 = vadd.f32 %v4370_v13, %v4302_v7  ;;  %v4470_v14 = vsel %vm4434_vm15, %v7906_v29, 0.0  ;;  %vm4533_vm7 = vcmp.eq.s32.totalorder %v4233_v4, 17  ;;  %v4501_v30 = vadd.f32 %v4469_v1, %v4401_v26 }
 0x37a   : > { %vm4534_vm11 = vcmp.eq.s32.totalorder %v4234_v34, 17  ;;  %v4569_v55 = vsel %vm4533_vm7, %v7911_v28, 0.0  ;;  %v3745_v58 = vsub.s32 %v9140_v38, %v7782_v32  ;;  %v3746_v27 = vsub.s32 %v9141_v12, %v7782_v32 }
 0x37b   : > { %v4502_v3 = vadd.f32 %v4470_v14, %v4402_v63  ;;  %v4570_v60 = vsel %vm4534_vm11, %v7911_v28, 0.0  ;;  %v4251_v25 = vsub.s32 %v9112_v43, %v7897_v37  ;;  %v4601_v31 = vadd.f32 %v4569_v55, %v4501_v30 }
 0x37c   : > { %vm3777_vm3 = vcmp.eq.s32.totalorder %v3745_v58, 0  ;;  %vm3845_vm4 = vcmp.eq.s32.totalorder %v3745_v58, 1  ;;  %vm3945_vm8 = vcmp.eq.s32.totalorder %v3745_v58, 16  ;;  %vm3778_vm9 = vcmp.eq.s32.totalorder %v3746_v27, 0 }
 0x37d   : > { %v4602_v4 = vadd.f32 %v4570_v60, %v4502_v3  ;;  %v3813_v33 = vsel %vm3777_vm3, %v7792_v35, 0.0  ;;  %vm3846_vm13 = vcmp.eq.s32.totalorder %v3746_v27, 1  ;;  %v3814_v34 = vsel %vm3778_vm9, %v7792_v35, 0.0 }
 0x37e   : > { %v3881_v2 = vsel %vm3845_vm4, %v7795_v0, 0.0  ;;  %v3882_v8 = vsel %vm3846_vm13, %v7795_v0, 0.0  ;;  %vm3946_vm0 = vcmp.eq.s32.totalorder %v3746_v27, 16  ;;  %v3981_v63 = vsel %vm3945_vm8, %v7806_v23, 0.0 }
 0x37f   : > { %v4633_v26 = vpack.c.bf16 %v4602_v4, %v4601_v31  ;;  %v3913_v7 = vadd.f32 %v3881_v2, %v3813_v33  ;;  %v3914_v13 = vadd.f32 %v3882_v8, %v3814_v34  ;;  %v3982_v1 = vsel %vm3946_vm0, %v7806_v23, 0.0 }
 0x380   : > { %vm4045_vm10 = vcmp.eq.s32.totalorder %v3745_v58, 17  ;;  %vm4046_vm12 = vcmp.eq.s32.totalorder %v3746_v27, 17  ;;  %v4252_v14 = vsub.s32 %v9115_v5, %v7897_v37  ;;  %vm4283_vm6 = vcmp.eq.s32.totalorder %v4251_v25, 0 }
 0x381   : > { %5629 = vmatpush3.bf16.msra.mxu1 %v4633_v26  ;;  %v4013_v55 = vadd.f32 %v3981_v63, %v3913_v7  ;;  %v4014_v3 = vadd.f32 %v3982_v1, %v3914_v13  ;;  %v4081_v60 = vsel %vm4045_vm10, %v7809_v45, 0.0  ;;  %v4082_v20 = vsel %vm4046_vm12, %v7809_v45, 0.0 }
 0x382   : > { %vm4284_vm14 = vcmp.eq.s32.totalorder %v4252_v14, 0  ;;  %vm4351_vm15 = vcmp.eq.s32.totalorder %v4251_v25, 1  ;;  %vm4352_vm7 = vcmp.eq.s32.totalorder %v4252_v14, 1  ;;  %v4319_v34 = vsel %vm4283_vm6, %v7900_v16, 0.0 }
 0x383   : > { %v7972_v58 = vadd.f32 %v4081_v60, %v4013_v55  ;;  %v7974_v27 = vadd.f32 %v4082_v20, %v4014_v3  ;;  %v4320_v8 = vsel %vm4284_vm14, %v7900_v16, 0.0  ;;  %v4387_v26 = vsel %vm4351_vm15, %v7903_v42, 0.0 }
 0x384   : > { %v4388_v7 = vsel %vm4352_vm7, %v7903_v42, 0.0  ;;  %vm4451_vm11 = vcmp.eq.s32.totalorder %v4251_v25, 16  ;;  %v4419_v1 = vadd.f32 %v4387_v26, %v4319_v34  ;;  %vm4452_vm3 = vcmp.eq.s32.totalorder %v4252_v14, 16 }
 0x385   : > { %v4487_v20 = vsel %vm4451_vm11, %v7906_v29, 0.0  ;;  %vm4551_vm4 = vcmp.eq.s32.totalorder %v4251_v25, 17  ;;  %vm4552_vm8 = vcmp.eq.s32.totalorder %v4252_v14, 17  ;;  %v4488_v3 = vsel %vm4452_vm3, %v7906_v29, 0.0 }
 0x386   : > { %v4519_v60 = vadd.f32 %v4487_v20, %v4419_v1  ;;  %v4588_v34 = vsel %vm4552_vm8, %v7911_v28, 0.0  ;;  %v3730_v25 = vsub.s32 %v9144_v54, %v7782_v32  ;;  %v4236_v26 = vsub.s32 %v9133_v6, %v7897_v37 }
 0x388   : > { %vm3762_vm13 = vcmp.eq.s32.totalorder %v3730_v25, 0  ;;  %vm3830_vm10 = vcmp.eq.s32.totalorder %v3730_v25, 1  ;;  %vm3930_vm6 = vcmp.eq.s32.totalorder %v3730_v25, 16  ;;  %vm4030_vm15 = vcmp.eq.s32.totalorder %v3730_v25, 17 }
 0x389   : > { %vm4268_vm11 = vcmp.eq.s32.totalorder %v4236_v26, 0 }
 0x397   : > { %v5548_v30 = vpop.f32.mrb[4].mxu0 }
 0x398   : > { %v5549_v31 = vpop.f32.mrb[5].mxu0 }
 0x399   : > { %v5550_v4 = vadd.f32 %v5549_v31, %v5548_v30  ;;  %v5551_v33 = vpop.f32.mrb[6].mxu0  ;;  %v4420_v30 = vadd.f32 %v4388_v7, %v4320_v8  ;;  %v4587_v31 = vsel %vm4551_vm4, %v7911_v28, 0.0  ;;  %v4235_v8 = vsub.s32 %v6188_v22, %v7897_v37 }
 0x39a   : > { %v5552_v2 = vpop.f32.mrb[7].mxu0  ;;  %v4619_v14 = vadd.f32 %v4587_v31, %v4519_v60  ;;  %v8001_v7 = vsub.s32 %v9145_v50, %v7782_v32  ;;  %vm4336_vm4 = vcmp.eq.s32.totalorder %v4236_v26, 1 }
 0x39b   : > { %v2651_v13 = vpack.c.bf16 %v5550_v4, %v5550_v4  ;;  %v5442_v4 = vld [vmem:[%s8970_s5 + $0xc] sm:$0xf]  ;;  %v4520_v33 = vadd.f32 %v4488_v3, %v4420_v30  ;;  %v3729_v2 = vsub.s32 %v9143_v15, %v7782_v32  ;;  %v3798_v30 = vsel %vm3762_vm13, %v7792_v35, 0.0 }
 0x39c   : > { %v3866_v3 = vsel %vm3830_vm10, %v7795_v0, 0.0  ;;  %vm4267_vm7 = vcmp.eq.s32.totalorder %v4235_v8, 0  ;;  %vm4335_vm3 = vcmp.eq.s32.totalorder %v4235_v8, 1  ;;  %vm4435_vm8 = vcmp.eq.s32.totalorder %v4235_v8, 16 }
 0x39d   : > { %v2656_v55 = vsel %vm9062_vm2, %v2651_v13, 0  ;;  %v4620_v13 = vadd.f32 %v4588_v34, %v4520_v33  ;;  %vm3761_vm9 = vcmp.eq.s32.totalorder %v3729_v2, 0  ;;  %vm3829_vm0 = vcmp.eq.s32.totalorder %v3729_v2, 1 }
 0x39e   : > { %5695 = vmatpush3.bf16.msra.mxu0 %v2656_v55  ;;  %v3797_v1 = vsel %vm3761_vm9, %v7792_v35, 0.0  ;;  %v3865_v20 = vsel %vm3829_vm0, %v7795_v0, 0.0  ;;  %vm3929_vm12 = vcmp.eq.s32.totalorder %v3729_v2, 16  ;;  %v3898_v31 = vadd.f32 %v3866_v3, %v3798_v30 }
 0x39f   : > { %5700 = vmatprep.subr.bf16.mxu0 %v9142_v41  ;;  %v4642_v55 = vpack.c.bf16 %v4620_v13, %v4619_v14  ;;  %v3897_v60 = vadd.f32 %v3865_v20, %v3797_v1  ;;  %vm4029_vm14 = vcmp.eq.s32.totalorder %v3729_v2, 17  ;;  %v3966_v33 = vsel %vm3930_vm6, %v7806_v23, 0.0 }
 0x3a0   : > { %v3998_v63 = vadd.f32 %v3966_v33, %v3898_v31  ;;  %v4066_v14 = vsel %vm4030_vm15, %v7809_v45, 0.0  ;;  %v4303_v1 = vsel %vm4267_vm7, %v7900_v16, 0.0  ;;  %v4304_v30 = vsel %vm4268_vm11, %v7900_v16, 0.0 }
 0x3a1   : > { %5697 = vmatmul.mubr.msk.bf16.vlgmr.msra.gmra.mrb[0].mxu0 %vm9061_vm5, %v5442_v4  ;;  %v3965_v4 = vsel %vm3929_vm12, %v7806_v23, 0.0  ;;  %5630 = vmatprep.subr.bf16.mxu1 %v4642_v55  ;;  %v4371_v20 = vsel %vm4335_vm3, %v7903_v42, 0.0  ;;  %v4372_v25 = vsel %vm4336_vm4, %v7903_v42, 0.0  ;;  %vm4436_vm9 = vcmp.eq.s32.totalorder %v4236_v26, 16 }
 0x3a2   : > { %5701 = vmatpush3.bf16.msra.mxu0 %v7785_v56  ;;  %5702 = vmatprep.mubr.msk.bf16.mxu0 %vm9059_vm1, %v9142_v41  ;;  %v3997_v34 = vadd.f32 %v3965_v4, %v3897_v60  ;;  %v4065_v56 = vsel %vm4029_vm14, %v7809_v45, 0.0  ;;  %v8020_v2 = vadd.f32 %v4066_v14, %v3998_v63  ;;  %v4403_v55 = vadd.f32 %v4371_v20, %v4303_v1  ;;  %v5444_v63 = vld [vmem:[%s8970_s5 + $0x10] sm:$0xf] }
 0x3a3   : > { %5706 = vmatprep.subr.bf16.mxu0 %v9142_v41  ;;  %v4471_v3 = vsel %vm4435_vm8, %v7906_v29, 0.0  ;;  %v4404_v31 = vadd.f32 %v4372_v25, %v4304_v30  ;;  %v4472_v4 = vsel %vm4436_vm9, %v7906_v29, 0.0  ;;  %vm4535_vm13 = vcmp.eq.s32.totalorder %v4235_v8, 17 }
 0x3a4   : > { %v8016_v13 = vadd.f32 %v4065_v56, %v3997_v34  ;;  %v4503_v33 = vadd.f32 %v4471_v3, %v4403_v55  ;;  %vm4536_vm0 = vcmp.eq.s32.totalorder %v4236_v26, 17  ;;  %v4571_v34 = vsel %vm4535_vm13, %v7911_v28, 0.0 }
 0x3a5   : > { %v3748_v56 = vsub.s32 %v9146_v10, %v7782_v32  ;;  %v4504_v14 = vadd.f32 %v4472_v4, %v4404_v31  ;;  %v4572_v1 = vsel %vm4536_vm0, %v7911_v28, 0.0  ;;  %vm3779_vm10 = vcmp.eq.s32.totalorder %v8001_v7, 0 }
 0x3a6   : > { %vm3847_vm12 = vcmp.eq.s32.totalorder %v8001_v7, 1  ;;  %v4603_v30 = vadd.f32 %v4571_v34, %v4503_v33  ;;  %v3815_v8 = vsel %vm3779_vm10, %v7792_v35, 0.0  ;;  %vm3947_vm15 = vcmp.eq.s32.totalorder %v8001_v7, 16 }
 0x3a7   : > { %vm3780_vm6 = vcmp.eq.s32.totalorder %v3748_v56, 0  ;;  %vm3848_vm14 = vcmp.eq.s32.totalorder %v3748_v56, 1  ;;  %v4604_v26 = vadd.f32 %v4572_v1, %v4504_v14  ;;  %v3883_v25 = vsel %vm3847_vm12, %v7795_v0, 0.0 }
 0x3a8   : > { %v3816_v20 = vsel %vm3780_vm6, %v7792_v35, 0.0  ;;  %v3884_v55 = vsel %vm3848_vm14, %v7795_v0, 0.0  ;;  %v3915_v3 = vadd.f32 %v3883_v25, %v3815_v8  ;;  %vm3948_vm7 = vcmp.eq.s32.totalorder %v3748_v56, 16 }
 0x3a9   : > { %v3916_v31 = vadd.f32 %v3884_v55, %v3816_v20  ;;  %v4634_v4 = vpack.c.bf16 %v4604_v26, %v4603_v30  ;;  %v3983_v33 = vsel %vm3947_vm15, %v7806_v23, 0.0  ;;  %vm4047_vm11 = vcmp.eq.s32.totalorder %v8001_v7, 17 }
 0x3aa   : > { %v4015_v34 = vadd.f32 %v3983_v33, %v3915_v3  ;;  %vm4048_vm3 = vcmp.eq.s32.totalorder %v3748_v56, 17  ;;  %v4083_v1 = vsel %vm4047_vm11, %v7809_v45, 0.0  ;;  %v4253_v8 = vsub.s32 %v9136_v49, %v7897_v37 }
 0x3ab   : > { %5631 = vmatpush3.bf16.msra.mxu1 %v4634_v4  ;;  %v4084_v60 = vsel %vm4048_vm3, %v7809_v45, 0.0  ;;  %v4254_v30 = vsub.s32 %v9137_v40, %v7897_v37  ;;  %v3731_v26 = vsub.s32 %v9147_v21, %v7782_v32  ;;  %v3732_v56 = vsub.s32 %v6235_v46, %v7782_v32 }
 0x3ac   : > { %v8056_v20 = vadd.f32 %v4083_v1, %v4015_v34  ;;  %v8064_v25 = vsub.s32 %v9138_v17, %v7897_v37  ;;  %vm4285_vm4 = vcmp.eq.s32.totalorder %v4253_v8, 0  ;;  %vm4353_vm9 = vcmp.eq.s32.totalorder %v4253_v8, 1 }
 0x3ad   : > { %5703 = vmatmul.mubr.msk.bf16.vlgmr.msra.gmra.mrb[0].mxu0 %vm9061_vm5, %v5444_v63  ;;  %v3984_v63 = vsel %vm3948_vm7, %v7806_v23, 0.0  ;;  %vm4286_vm8 = vcmp.eq.s32.totalorder %v4254_v30, 0  ;;  %vm4354_vm13 = vcmp.eq.s32.totalorder %v4254_v30, 1  ;;  %v4321_v3 = vsel %vm4285_vm4, %v7900_v16, 0.0 }
 0x3ae   : > { %5708 = vmatprep.mubr.msk.bf16.mxu0 %vm9059_vm1, %v9142_v41  ;;  %v4016_v14 = vadd.f32 %v3984_v63, %v3916_v31  ;;  %v4322_v31 = vsel %vm4286_vm8, %v7900_v16, 0.0  ;;  %v4390_v4 = vsel %vm4354_vm13, %v7903_v42, 0.0  ;;  %vm4453_vm0 = vcmp.eq.s32.totalorder %v4253_v8, 16 }
 0x3af   : > { %vm4454_vm10 = vcmp.eq.s32.totalorder %v4254_v30, 16  ;;  %v4422_v63 = vadd.f32 %v4390_v4, %v4322_v31  ;;  %v4489_v34 = vsel %vm4453_vm0, %v7906_v29, 0.0  ;;  %vm4553_vm12 = vcmp.eq.s32.totalorder %v4253_v8, 17 }
 0x3b0   : > { %v8058_v7 = vadd.f32 %v4084_v60, %v4016_v14  ;;  %v4389_v60 = vsel %vm4353_vm9, %v7903_v42, 0.0  ;;  %v4490_v14 = vsel %vm4454_vm10, %v7906_v29, 0.0  ;;  %vm4554_vm6 = vcmp.eq.s32.totalorder %v4254_v30, 17 }
 0x3b1   : > { %v4421_v33 = vadd.f32 %v4389_v60, %v4321_v3  ;;  %v4589_v55 = vsel %vm4553_vm12, %v7911_v28, 0.0  ;;  %vm3763_vm14 = vcmp.eq.s32.totalorder %v3731_v26, 0  ;;  %v4522_v17 = vadd.f32 %v4490_v14, %v4422_v63 }
 0x3b2   : > { %v4590_v40 = vsel %vm4554_vm6, %v7911_v28, 0.0  ;;  %vm3764_vm15 = vcmp.eq.s32.totalorder %v3732_v56, 0  ;;  %v3799_v49 = vsel %vm3763_vm14, %v7792_v35, 0.0  ;;  %vm3831_vm7 = vcmp.eq.s32.totalorder %v3731_v26, 1 }
 0x3b3   : > { %v4521_v1 = vadd.f32 %v4489_v34, %v4421_v33  ;;  %v3800_v60 = vsel %vm3764_vm15, %v7792_v35, 0.0  ;;  %vm3832_vm11 = vcmp.eq.s32.totalorder %v3732_v56, 1  ;;  %v4622_v31 = vadd.f32 %v4590_v40, %v4522_v17 }
 0x3b4   : > { %v3867_v4 = vsel %vm3831_vm7, %v7795_v0, 0.0  ;;  %v3868_v8 = vsel %vm3832_vm11, %v7795_v0, 0.0  ;;  %vm3931_vm3 = vcmp.eq.s32.totalorder %v3731_v26, 16  ;;  %vm3932_vm4 = vcmp.eq.s32.totalorder %v3732_v56, 16 }
 0x3b5   : > { %v4621_v3 = vadd.f32 %v4589_v55, %v4521_v1  ;;  %v3899_v30 = vadd.f32 %v3867_v4, %v3799_v49  ;;  %v3900_v33 = vadd.f32 %v3868_v8, %v3800_v60  ;;  %v3967_v63 = vsel %vm3931_vm3, %v7806_v23, 0.0 }
 0x3b6   : > { %v3968_v14 = vsel %vm3932_vm4, %v7806_v23, 0.0  ;;  %vm4031_vm8 = vcmp.eq.s32.totalorder %v3731_v26, 17  ;;  %vm4032_vm9 = vcmp.eq.s32.totalorder %v3732_v56, 17  ;;  %v4238_v17 = vsub.s32 %v9139_v44, %v7897_v37 }
 0x3b7   : > { %v4643_v34 = vpack.c.bf16 %v4622_v31, %v4621_v3  ;;  %v3999_v55 = vadd.f32 %v3967_v63, %v3899_v30  ;;  %v4000_v1 = vadd.f32 %v3968_v14, %v3900_v33  ;;  %v4067_v6 = vsel %vm4031_vm8, %v7809_v45, 0.0 }
 0x3b8   : > { %v4068_v40 = vsel %vm4032_vm9, %v7809_v45, 0.0  ;;  %vm4269_vm13 = vcmp.eq.s32.totalorder %v8064_v25, 0  ;;  %vm4337_vm0 = vcmp.eq.s32.totalorder %v8064_v25, 1  ;;  %vm4437_vm10 = vcmp.eq.s32.totalorder %v8064_v25, 16 }
 0x3b9   : > { %5632 = vmatprep.subr.bf16.mxu1 %v4643_v34  ;;  %v8089_v49 = vadd.f32 %v4067_v6, %v3999_v55  ;;  %v8091_v26 = vadd.f32 %v4068_v40, %v4000_v1  ;;  %v4305_v56 = vsel %vm4269_vm13, %v7900_v16, 0.0  ;;  %v4373_v3 = vsel %vm4337_vm0, %v7903_v42, 0.0 }
 0x3ba   : > { %vm4270_vm12 = vcmp.eq.s32.totalorder %v4238_v17, 0  ;;  %vm4338_vm6 = vcmp.eq.s32.totalorder %v4238_v17, 1  ;;  %v4405_v60 = vadd.f32 %v4373_v3, %v4305_v56  ;;  %vm4438_vm14 = vcmp.eq.s32.totalorder %v4238_v17, 16 }
 0x3bb   : > { %v4306_v4 = vsel %vm4270_vm12, %v7900_v16, 0.0  ;;  %v4374_v8 = vsel %vm4338_vm6, %v7903_v42, 0.0  ;;  %v4473_v6 = vsel %vm4437_vm10, %v7906_v29, 0.0  ;;  %v4474_v33 = vsel %vm4438_vm14, %v7906_v29, 0.0 }
 0x3bc   : > { %v4406_v30 = vadd.f32 %v4374_v8, %v4306_v4  ;;  %v4505_v63 = vadd.f32 %v4473_v6, %v4405_v60  ;;  %vm4537_vm15 = vcmp.eq.s32.totalorder %v8064_v25, 17  ;;  %vm4538_vm7 = vcmp.eq.s32.totalorder %v4238_v17, 17 }
 0x3bd   : > { %v4573_v34 = vsel %vm4537_vm15, %v7911_v28, 0.0  ;;  %v3749_v14 = vsub.s32 %v6243_v48, %v7782_v32  ;;  %v3750_v55 = vsub.s32 %v6250_v52, %v7782_v32  ;;  %v4574_v40 = vsel %vm4538_vm7, %v7911_v28, 0.0 }
 0x3be   : > { %v4506_v1 = vadd.f32 %v4474_v33, %v4406_v30  ;;  %v4605_v56 = vadd.f32 %v4573_v34, %v4505_v63  ;;  %v4255_v3 = vsub.s32 %v9140_v38, %v7897_v37 }
 0x3bf   : > { %vm3781_vm11 = vcmp.eq.s32.totalorder %v3749_v14, 0  ;;  %vm3782_vm3 = vcmp.eq.s32.totalorder %v3750_v55, 0  ;;  %vm3849_vm4 = vcmp.eq.s32.totalorder %v3749_v14, 1  ;;  %vm3850_vm8 = vcmp.eq.s32.totalorder %v3750_v55, 1 }
 0x3c0   : > { %v4606_v25 = vadd.f32 %v4574_v40, %v4506_v1  ;;  %v3817_v17 = vsel %vm3781_vm11, %v7792_v35, 0.0  ;;  %v3818_v60 = vsel %vm3782_vm3, %v7792_v35, 0.0  ;;  %v3885_v4 = vsel %vm3849_vm4, %v7795_v0, 0.0 }
 0x3c1   : > { %v3886_v8 = vsel %vm3850_vm8, %v7795_v0, 0.0  ;;  %v3917_v6 = vadd.f32 %v3885_v4, %v3817_v17  ;;  %vm3949_vm9 = vcmp.eq.s32.totalorder %v3749_v14, 16  ;;  %vm3950_vm13 = vcmp.eq.s32.totalorder %v3750_v55, 16 }
 0x3c2   : > { %v4635_v30 = vpack.c.bf16 %v4606_v25, %v4605_v56  ;;  %v3918_v33 = vadd.f32 %v3886_v8, %v3818_v60  ;;  %v3985_v63 = vsel %vm3949_vm9, %v7806_v23, 0.0  ;;  %v3986_v34 = vsel %vm3950_vm13, %v7806_v23, 0.0 }
 0x3c3   : > { %v4017_v31 = vadd.f32 %v3985_v63, %v3917_v6  ;;  %vm4049_vm0 = vcmp.eq.s32.totalorder %v3749_v14, 17  ;;  %vm4050_vm10 = vcmp.eq.s32.totalorder %v3750_v55, 17  ;;  %v4256_v1 = vsub.s32 %v9141_v12, %v7897_v37 }
 0x3c4   : > { %5633 = vmatpush3.bf16.msra.mxu1 %v4635_v30  ;;  %v4018_v40 = vadd.f32 %v3986_v34, %v3918_v33  ;;  %v4085_v38 = vsel %vm4049_vm0, %v7809_v45, 0.0  ;;  %v4086_v17 = vsel %vm4050_vm10, %v7809_v45, 0.0  ;;  %vm4287_vm12 = vcmp.eq.s32.totalorder %v4255_v3, 0 }
 0x3c5   : > { %v8120_v4 = vadd.f32 %v4085_v38, %v4017_v31  ;;  %vm4288_vm6 = vcmp.eq.s32.totalorder %v4256_v1, 0  ;;  %v4323_v56 = vsel %vm4287_vm12, %v7900_v16, 0.0  ;;  %vm4355_vm14 = vcmp.eq.s32.totalorder %v4255_v3, 1 }
 0x3c6   : > { %v8123_v25 = vadd.f32 %v4086_v17, %v4018_v40  ;;  %v4324_v14 = vsel %vm4288_vm6, %v7900_v16, 0.0  ;;  %vm4356_vm15 = vcmp.eq.s32.totalorder %v4256_v1, 1  ;;  %v4391_v55 = vsel %vm4355_vm14, %v7903_v42, 0.0 }
 0x3c7   : > { %v4392_v60 = vsel %vm4356_vm15, %v7903_v42, 0.0  ;;  %v4423_v8 = vadd.f32 %v4391_v55, %v4323_v56  ;;  %vm4455_vm7 = vcmp.eq.s32.totalorder %v4255_v3, 16  ;;  %vm4456_vm11 = vcmp.eq.s32.totalorder %v4256_v1, 16 }
 0x3c8   : > { %v4424_v31 = vadd.f32 %v4392_v60, %v4324_v14  ;;  %v4491_v6 = vsel %vm4455_vm7, %v7906_v29, 0.0  ;;  %v4492_v30 = vsel %vm4456_vm11, %v7906_v29, 0.0  ;;  %vm4555_vm3 = vcmp.eq.s32.totalorder %v4255_v3, 17 }
 0x3c9   : > { %v4523_v33 = vadd.f32 %v4491_v6, %v4423_v8  ;;  %vm4556_vm4 = vcmp.eq.s32.totalorder %v4256_v1, 17  ;;  %v3733_v63 = vsub.s32 %v6259_v57, %v7782_v32  ;;  %v4591_v40 = vsel %vm4555_vm3, %v7911_v28, 0.0 }
 0x3ca   : > { %v4524_v34 = vadd.f32 %v4492_v30, %v4424_v31  ;;  %v4592_v17 = vsel %vm4556_vm4, %v7911_v28, 0.0  ;;  %v3734_v56 = vsub.s32 %v6263_v59, %v7782_v32 }
 0x3cb   : > { %v4623_v55 = vadd.f32 %v4591_v40, %v4523_v33  ;;  %vm3765_vm8 = vcmp.eq.s32.totalorder %v3733_v63, 0  ;;  %vm3833_vm9 = vcmp.eq.s32.totalorder %v3733_v63, 1  ;;  %vm3933_vm13 = vcmp.eq.s32.totalorder %v3733_v63, 16 }
 0x3cc   : > { %v4624_v14 = vadd.f32 %v4592_v17, %v4524_v34  ;;  %vm3766_vm0 = vcmp.eq.s32.totalorder %v3734_v56, 0  ;;  %v3801_v3 = vsel %vm3765_vm8, %v7792_v35, 0.0  ;;  %vm3834_vm10 = vcmp.eq.s32.totalorder %v3734_v56, 1 }
 0x3cd   : > { %v3802_v1 = vsel %vm3766_vm0, %v7792_v35, 0.0  ;;  %v3869_v60 = vsel %vm3833_vm9, %v7795_v0, 0.0  ;;  %v3870_v8 = vsel %vm3834_vm10, %v7795_v0, 0.0  ;;  %vm3934_vm12 = vcmp.eq.s32.totalorder %v3734_v56, 16 }
 0x3ce   : > { %v4644_v31 = vpack.c.bf16 %v4624_v14, %v4623_v55  ;;  %v3901_v6 = vadd.f32 %v3869_v60, %v3801_v3  ;;  %v3902_v30 = vadd.f32 %v3870_v8, %v3802_v1  ;;  %v3969_v33 = vsel %vm3933_vm13, %v7806_v23, 0.0 }
 0x3cf   : > { %v3970_v40 = vsel %vm3934_vm12, %v7806_v23, 0.0  ;;  %vm4033_vm6 = vcmp.eq.s32.totalorder %v3733_v63, 17  ;;  %vm4034_vm14 = vcmp.eq.s32.totalorder %v3734_v56, 17  ;;  %v4239_v34 = vsub.s32 %v9143_v15, %v7897_v37 }
 0x3d0   : > { %5634 = vmatprep.subr.bf16.mxu1 %v4644_v31  ;;  %v4001_v17 = vadd.f32 %v3969_v33, %v3901_v6  ;;  %v4002_v38 = vadd.f32 %v3970_v40, %v3902_v30  ;;  %v4069_v12 = vsel %vm4033_vm6, %v7809_v45, 0.0  ;;  %v4070_v44 = vsel %vm4034_vm14, %v7809_v45, 0.0 }
 0x3d1   : > { %v4240_v55 = vsub.s32 %v9144_v54, %v7897_v37  ;;  %vm4271_vm15 = vcmp.eq.s32.totalorder %v4239_v34, 0  ;;  %vm4339_vm7 = vcmp.eq.s32.totalorder %v4239_v34, 1  ;;  %vm4439_vm11 = vcmp.eq.s32.totalorder %v4239_v34, 16 }
 0x3d2   : > { %v8150_v14 = vadd.f32 %v4069_v12, %v4001_v17  ;;  %v8152_v63 = vadd.f32 %v4070_v44, %v4002_v38  ;;  %v4307_v56 = vsel %vm4271_vm15, %v7900_v16, 0.0  ;;  %v4375_v3 = vsel %vm4339_vm7, %v7903_v42, 0.0 }
 0x3d3   : > { %vm4272_vm3 = vcmp.eq.s32.totalorder %v4240_v55, 0  ;;  %vm4340_vm4 = vcmp.eq.s32.totalorder %v4240_v55, 1  ;;  %v4407_v1 = vadd.f32 %v4375_v3, %v4307_v56  ;;  %vm4440_vm8 = vcmp.eq.s32.totalorder %v4240_v55, 16 }
 0x3d4   : > { %v4308_v8 = vsel %vm4272_vm3, %v7900_v16, 0.0  ;;  %v4376_v31 = vsel %vm4340_vm4, %v7903_v42, 0.0  ;;  %v4475_v12 = vsel %vm4439_vm11, %v7906_v29, 0.0  ;;  %v4476_v44 = vsel %vm4440_vm8, %v7906_v29, 0.0 }
 0x3d5   : > { %v4408_v6 = vadd.f32 %v4376_v31, %v4308_v8  ;;  %v4507_v38 = vadd.f32 %v4475_v12, %v4407_v1  ;;  %vm4539_vm9 = vcmp.eq.s32.totalorder %v4239_v34, 17  ;;  %vm4540_vm13 = vcmp.eq.s32.totalorder %v4240_v55, 17 }
 0x3d6   : > { %v4575_v33 = vsel %vm4539_vm9, %v7911_v28, 0.0  ;;  %v3751_v40 = vsub.s32 %v6270_v61, %v7782_v32  ;;  %v3752_v17 = vsub.s32 %v6273_v62, %v7782_v32  ;;  %v4576_v60 = vsel %vm4540_vm13, %v7911_v28, 0.0 }
 0x3d7   : > { %v4508_v3 = vadd.f32 %v4476_v44, %v4408_v6  ;;  %v4607_v54 = vadd.f32 %v4575_v33, %v4507_v38  ;;  %v4257_v8 = vsub.s32 %v9145_v50, %v7897_v37 }
 0x3d8   : > { %vm3783_vm0 = vcmp.eq.s32.totalorder %v3751_v40, 0  ;;  %vm3784_vm10 = vcmp.eq.s32.totalorder %v3752_v17, 0  ;;  %vm3851_vm12 = vcmp.eq.s32.totalorder %v3751_v40, 1  ;;  %vm3852_vm6 = vcmp.eq.s32.totalorder %v3752_v17, 1 }
 0x3d9   : > { %v4608_v31 = vadd.f32 %v4576_v60, %v4508_v3  ;;  %v3819_v12 = vsel %vm3783_vm0, %v7792_v35, 0.0  ;;  %v3820_v15 = vsel %vm3784_vm10, %v7792_v35, 0.0  ;;  %v3887_v6 = vsel %vm3851_vm12, %v7795_v0, 0.0  ;;  %v5446_v3 = vld [vmem:[%s8970_s5 + $0x14] sm:$0xf] }
 0x3da   : > { %v3888_v44 = vsel %vm3852_vm6, %v7795_v0, 0.0  ;;  %vm3951_vm14 = vcmp.eq.s32.totalorder %v3751_v40, 16  ;;  %v3919_v33 = vadd.f32 %v3887_v6, %v3819_v12  ;;  %vm3952_vm15 = vcmp.eq.s32.totalorder %v3752_v17, 16 }
 0x3db   : > { %v4636_v38 = vpack.c.bf16 %v4608_v31, %v4607_v54  ;;  %v3988_v60 = vsel %vm3952_vm15, %v7806_v23, 0.0  ;;  %vm4051_vm7 = vcmp.eq.s32.totalorder %v3751_v40, 17  ;;  %vm4052_vm11 = vcmp.eq.s32.totalorder %v3752_v17, 17 }
 0x3dc   : > { %v4087_v54 = vsel %vm4051_vm7, %v7809_v45, 0.0  ;;  %v4258_v40 = vsub.s32 %v9146_v10, %v7897_v37  ;;  %vm4289_vm3 = vcmp.eq.s32.totalorder %v4257_v8, 0  ;;  %vm4357_vm4 = vcmp.eq.s32.totalorder %v4257_v8, 1 }
 0x3dd   : > { %v5596_v30 = vpop.f32.mrb[16].mxu1  ;;  %5635 = vmatpush3.bf16.msra.mxu1 %v4636_v38  ;;  %v4325_v6 = vsel %vm4289_vm3, %v7900_v16, 0.0  ;;  %v4393_v17 = vsel %vm4357_vm4, %v7903_v42, 0.0  ;;  %vm4457_vm13 = vcmp.eq.s32.totalorder %v4257_v8, 16  ;;  %vm4557_vm10 = vcmp.eq.s32.totalorder %v4257_v8, 17 }
 0x3de   : > { %v5597_v56 = vpop.f32.mrb[17].mxu1  ;;  %vm4290_vm8 = vcmp.eq.s32.totalorder %v4258_v40, 0  ;;  %vm4358_vm9 = vcmp.eq.s32.totalorder %v4258_v40, 1  ;;  %vm4458_vm0 = vcmp.eq.s32.totalorder %v4258_v40, 16  ;;  %vm4558_vm12 = vcmp.eq.s32.totalorder %v4258_v40, 17  ;;  %v9162_v40 = vld [vmem:[#allocation20_spill] sm:$0xff] }
 0x3df   : > { %v5598_v1 = vadd.f32 %v5597_v56, %v5596_v30  ;;  %v5599_v34 = vpop.f32.mrb[18].mxu1  ;;  %v3920_v30 = vadd.f32 %v3888_v44, %v3820_v15  ;;  %v9153_v15 = vpack.c.bf16 %v7821_v53, %v7819_v47  ;;  %v4425_v47 = vadd.f32 %v4393_v17, %v4325_v6  ;;  %v9159_v17 = vld [vmem:[#allocation34_spill] sm:$0xff] }
 0x3e0   : > { %v5600_v55 = vpop.f32.mrb[19].mxu1  ;;  %v3987_v34 = vsel %vm3951_vm14, %v7806_v23, 0.0  ;;  %v9154_v53 = vpack.c.bf16 %v7837_v18, %v7835_v11  ;;  %v4326_v38 = vsel %vm4290_vm8, %v7900_v16, 0.0  ;;  %v4494_v11 = vsel %vm4458_vm0, %v7906_v29, 0.0 }
 0x3e1   : > { %v3671_v22 = vpack.c.bf16 %v5598_v1, %v5598_v1  ;;  %v4019_v1 = vadd.f32 %v3987_v34, %v3919_v33  ;;  %v4020_v55 = vadd.f32 %v3988_v60, %v3920_v30  ;;  %v4394_v33 = vsel %vm4358_vm9, %v7903_v42, 0.0  ;;  %v9155_v30 = vld [vmem:[#allocation18_spill] sm:$0xff] }
 0x3e2   : > { %v4426_v34 = vadd.f32 %v4394_v33, %v4326_v38  ;;  %v4493_v60 = vsel %vm4457_vm13, %v7906_v29, 0.0  ;;  %v4241_v6 = vsub.s32 %v9147_v21, %v7897_v37 }
 0x3e3   : > { %v3676_v56 = vsel %vm9062_vm2, %v3671_v22, 0  ;;  %v4088_v22 = vsel %vm4052_vm11, %v7809_v45, 0.0  ;;  %v8187_v31 = vadd.f32 %v4087_v54, %v4019_v1  ;;  %v4525_v18 = vadd.f32 %v4493_v60, %v4425_v47  ;;  %v9157_v1 = vld [vmem:[#allocation36_spill] sm:$0xff]  ;;  %v9163_v47 = vld [vmem:[#allocation41_spill] sm:$0xff] }
 0x3e4   : > { %5707 = vmatpush3.bf16.msra.mxu0 %v3676_v56  ;;  %v8189_v12 = vadd.f32 %v4088_v22, %v4020_v55  ;;  %v9156_v56 = vpack.c.bf16 %v7859_v19, %v9155_v30  ;;  %v3735_v55 = vsub.s32 %v9157_v1, %v7782_v32  ;;  %v4526_v54 = vadd.f32 %v4494_v11, %v4426_v34  ;;  %v9158_v22 = vld [vmem:[#allocation38_spill] sm:$0xff] }
 0x3e5   : > { %5604 = vmatprep.subr.bf16.mxu0 %v9153_v15  ;;  %v4594_v15 = vsel %vm4558_vm12, %v7911_v28, 0.0  ;;  %v3736_v19 = vsub.s32 %v9158_v22, %v7782_v32  ;;  %v9164_v33 = vpack.c.bf16 %v9162_v40, %v9163_v47  ;;  %v9166_v40 = vpack.c.bf16 %v7974_v27, %v7972_v58 }
 0x3e6   : > { %v4137_v44 = vpack.c.bf16 %v8189_v12, %v8187_v31  ;;  %vm3767_vm6 = vcmp.eq.s32.totalorder %v3735_v55, 0  ;;  %vm3835_vm14 = vcmp.eq.s32.totalorder %v3735_v55, 1  ;;  %vm3935_vm15 = vcmp.eq.s32.totalorder %v3735_v55, 16 }
 0x3e7   : > { %5709 = vmatmul.mubr.msk.bf16.vlgmr.msra.gmra.mrb[0].mxu0 %vm9061_vm5, %v5446_v3  ;;  %v4593_v3 = vsel %vm4557_vm10, %v7911_v28, 0.0  ;;  %v4626_v30 = vadd.f32 %v4594_v15, %v4526_v54  ;;  %vm3768_vm7 = vcmp.eq.s32.totalorder %v3736_v19, 0  ;;  %vm3836_vm11 = vcmp.eq.s32.totalorder %v3736_v19, 1 }
 0x3e8   : > { %5605 = vmatpush3.bf16.msra.mxu0 %v9154_v53  ;;  %4171 = vmatprep.mubr.bf16.mxu0 %v9114_v51  ;;  %v9160_v53 = vld [vmem:[#allocation19_spill] sm:$0xff]  ;;  %v4625_v8 = vadd.f32 %v4593_v3, %v4525_v18  ;;  %v3804_v34 = vsel %vm3768_vm7, %v7792_v35, 0.0  ;;  %v3871_v60 = vsel %vm3835_vm14, %v7795_v0, 0.0  ;;  %v3872_v11 = vsel %vm3836_vm11, %v7795_v0, 0.0 }
 0x3e9   : > { %5606 = vmatprep.subr.bf16.mxu0 %v9156_v56  ;;  %v9161_v38 = vpack.c.bf16 %v9159_v17, %v9160_v53  ;;  %v3803_v56 = vsel %vm3767_vm6, %v7792_v35, 0.0  ;;  %vm3936_vm3 = vcmp.eq.s32.totalorder %v3736_v19, 16  ;;  %v3904_v17 = vadd.f32 %v3872_v11, %v3804_v34 }
 0x3ea   : > { %v4645_v18 = vpack.c.bf16 %v4626_v30, %v4625_v8  ;;  %v3903_v3 = vadd.f32 %v3871_v60, %v3803_v56  ;;  %v3971_v53 = vsel %vm3935_vm15, %v7806_v23, 0.0  ;;  %v3972_v54 = vsel %vm3936_vm3, %v7806_v23, 0.0 }
 0x3eb   : > { %vm4035_vm4 = vcmp.eq.s32.totalorder %v3735_v55, 17  ;;  %vm4036_vm8 = vcmp.eq.s32.totalorder %v3736_v19, 17  ;;  %v4242_v15 = vsub.s32 %v6235_v46, %v7897_v37  ;;  %v4004_v47 = vadd.f32 %v3972_v54, %v3904_v17 }
 0x3ec   : > { %5607 = vmatpush3.bf16.msra.mxu0 %v9161_v38  ;;  %v9165_v38 = vpack.c.bf16 %v7944_v36, %v7942_v24  ;;  %5636 = vmatprep.subr.bf16.mxu1 %v4645_v18  ;;  %v4003_v8 = vadd.f32 %v3971_v53, %v3903_v3  ;;  %v4072_v30 = vsel %vm4036_vm8, %v7809_v45, 0.0  ;;  %vm4273_vm9 = vcmp.eq.s32.totalorder %v4241_v6, 0 }
 0x3ed   : > { %5608 = vmatprep.subr.bf16.mxu0 %v9164_v33  ;;  %v4071_v33 = vsel %vm4035_vm4, %v7809_v45, 0.0  ;;  %vm4274_vm13 = vcmp.eq.s32.totalorder %v4242_v15, 0  ;;  %vm4341_vm0 = vcmp.eq.s32.totalorder %v4241_v6, 1  ;;  %vm4342_vm10 = vcmp.eq.s32.totalorder %v4242_v15, 1 }
 0x3ee   : > { %v4103_v24 = vadd.f32 %v4071_v33, %v4003_v8  ;;  %v4104_v36 = vadd.f32 %v4072_v30, %v4004_v47  ;;  %v4309_v55 = vsel %vm4273_vm9, %v7900_v16, 0.0  ;;  %v4310_v19 = vsel %vm4274_vm13, %v7900_v16, 0.0 }
 0x3ef   : > { %v9167_v58 = vpack.c.bf16 %v8020_v2, %v8016_v13  ;;  %v4377_v27 = vsel %vm4341_vm0, %v7903_v42, 0.0  ;;  %v4378_v56 = vsel %vm4342_vm10, %v7903_v42, 0.0  ;;  %vm4441_vm12 = vcmp.eq.s32.totalorder %v4241_v6, 16  ;;  %v9169_v13 = vld [vmem:[#allocation39_spill] sm:$0xff] }
 0x3f0   : > { %5609 = vmatpush3.bf16.msra.mxu0 %v9165_v38  ;;  %vm4442_vm6 = vcmp.eq.s32.totalorder %v4242_v15, 16  ;;  %v9168_v34 = vpack.c.bf16 %v8058_v7, %v8056_v20  ;;  %v4129_v60 = vpack.c.bf16 %v4104_v36, %v4103_v24  ;;  %v4409_v11 = vadd.f32 %v4377_v27, %v4309_v55  ;;  %v9171_v7 = vld [vmem:[#allocation40_spill] sm:$0xff] }
 0x3f1   : > { %5610 = vmatprep.subr.bf16.mxu0 %v9166_v40  ;;  %v4410_v18 = vadd.f32 %v4378_v56, %v4310_v19  ;;  %v4477_v3 = vsel %vm4441_vm12, %v7906_v29, 0.0  ;;  %v4478_v17 = vsel %vm4442_vm6, %v7906_v29, 0.0  ;;  %vm4541_vm14 = vcmp.eq.s32.totalorder %v4241_v6, 17 }
 0x3f2   : > { %vm4542_vm15 = vcmp.eq.s32.totalorder %v4242_v15, 17  ;;  %v3753_v2 = vsub.s32 %v9169_v13, %v7782_v32  ;;  %v4509_v53 = vadd.f32 %v4477_v3, %v4409_v11  ;;  %v4577_v54 = vsel %vm4541_vm14, %v7911_v28, 0.0 }
 0x3f3   : > { %v4510_v38 = vadd.f32 %v4478_v17, %v4410_v18  ;;  %v4578_v40 = vsel %vm4542_vm15, %v7911_v28, 0.0  ;;  %v9170_v20 = vpack.c.bf16 %v8091_v26, %v8089_v49  ;;  %v3754_v8 = vsub.s32 %v9171_v7, %v7782_v32  ;;  %v9174_v18 = vld [vmem:[#allocation42_spill] sm:$0xff] }
 0x3f4   : > { %5611 = vmatpush3.bf16.msra.mxu0 %v9167_v58  ;;  %vm3785_vm7 = vcmp.eq.s32.totalorder %v3753_v2, 0  ;;  %vm3853_vm11 = vcmp.eq.s32.totalorder %v3753_v2, 1  ;;  %vm3953_vm3 = vcmp.eq.s32.totalorder %v3753_v2, 16  ;;  %v9172_v6 = vpack.c.bf16 %v8123_v25, %v8120_v4 }
 0x3f5   : > { %5612 = vmatprep.subr.bf16.mxu0 %v9168_v34  ;;  %v4609_v15 = vadd.f32 %v4577_v54, %v4509_v53  ;;  %v4610_v47 = vadd.f32 %v4578_v40, %v4510_v38  ;;  %v3821_v33 = vsel %vm3785_vm7, %v7792_v35, 0.0  ;;  %v3889_v30 = vsel %vm3853_vm11, %v7795_v0, 0.0 }
 0x3f6   : > { %vm3786_vm4 = vcmp.eq.s32.totalorder %v3754_v8, 0  ;;  %vm3854_vm8 = vcmp.eq.s32.totalorder %v3754_v8, 1  ;;  %v3921_v49 = vadd.f32 %v3889_v30, %v3821_v33  ;;  %vm3954_vm9 = vcmp.eq.s32.totalorder %v3754_v8, 16 }
 0x3f7   : > { %v4637_v26 = vpack.c.bf16 %v4610_v47, %v4609_v15  ;;  %v3822_v24 = vsel %vm3786_vm4, %v7792_v35, 0.0  ;;  %v3890_v36 = vsel %vm3854_vm8, %v7795_v0, 0.0  ;;  %v3989_v55 = vsel %vm3953_vm3, %v7806_v23, 0.0 }
 0x3f8   : > { %5613 = vmatpush3.bf16.msra.mxu0 %v9170_v20  ;;  %v9173_v4 = vpack.c.bf16 %v8152_v63, %v8150_v14  ;;  %v3922_v25 = vadd.f32 %v3890_v36, %v3822_v24  ;;  %v3990_v19 = vsel %vm3954_vm9, %v7806_v23, 0.0  ;;  %v4021_v58 = vadd.f32 %v3989_v55, %v3921_v49 }
 0x3f9   : > { %5614 = vmatprep.subr.bf16.mxu0 %v9172_v6  ;;  %vm4053_vm13 = vcmp.eq.s32.totalorder %v3753_v2, 17  ;;  %5637 = vmatpush3.bf16.msra.mxu1 %v4637_v26  ;;  %vm4054_vm0 = vcmp.eq.s32.totalorder %v3754_v8, 17  ;;  %v4259_v56 = vsub.s32 %v6243_v48, %v7897_v37  ;;  %v4260_v14 = vsub.s32 %v6250_v52, %v7897_v37 }
 0x3fa   : > { %v4089_v27 = vsel %vm4053_vm13, %v7809_v45, 0.0  ;;  %v4022_v63 = vadd.f32 %v3990_v19, %v3922_v25  ;;  %v4090_v34 = vsel %vm4054_vm0, %v7809_v45, 0.0  ;;  %v3737_v3 = vsub.s32 %v9174_v18, %v7782_v32 }
 0x3fb   : > { %v4121_v11 = vadd.f32 %v4089_v27, %v4021_v58  ;;  %vm4291_vm10 = vcmp.eq.s32.totalorder %v4259_v56, 0  ;;  %vm4292_vm12 = vcmp.eq.s32.totalorder %v4260_v14, 0  ;;  %vm4359_vm6 = vcmp.eq.s32.totalorder %v4259_v56, 1 }
 0x3fc   : > { %5615 = vmatpush3.bf16.msra.mxu0 %v9173_v4  ;;  %vm4360_vm14 = vcmp.eq.s32.totalorder %v4260_v14, 1  ;;  %v4122_v31 = vadd.f32 %v4090_v34, %v4022_v63  ;;  %v4327_v12 = vsel %vm4291_vm10, %v7900_v16, 0.0  ;;  %v4395_v17 = vsel %vm4359_vm6, %v7903_v42, 0.0 }
 0x3fd   : > { %5616 = vmatprep.subr.bf16.mxu0 %v4137_v44  ;;  %v4328_v44 = vsel %vm4292_vm12, %v7900_v16, 0.0  ;;  %v4396_v2 = vsel %vm4360_vm14, %v7903_v42, 0.0  ;;  %v4427_v53 = vadd.f32 %v4395_v17, %v4327_v12  ;;  %vm4459_vm15 = vcmp.eq.s32.totalorder %v4259_v56, 16 }
 0x3fe   : > { %vm4460_vm7 = vcmp.eq.s32.totalorder %v4260_v14, 16  ;;  %v4138_v38 = vpack.c.bf16 %v4122_v31, %v4121_v11  ;;  %v4428_v54 = vadd.f32 %v4396_v2, %v4328_v44  ;;  %v4495_v40 = vsel %vm4459_vm15, %v7906_v29, 0.0 }
 0x3ff   : > { %v4496_v20 = vsel %vm4460_vm7, %v7906_v29, 0.0  ;;  %v4527_v8 = vadd.f32 %v4495_v40, %v4427_v53  ;;  %vm4559_vm11 = vcmp.eq.s32.totalorder %v4259_v56, 17  ;;  %vm4560_vm3 = vcmp.eq.s32.totalorder %v4260_v14, 17 }
 0x400   : > { %5617 = vmatpush3.bf16.msra.mxu0 %v4129_v60  ;;  %v9175_v60 = vld [vmem:[#allocation43_spill] sm:$0xff]  ;;  %v4528_v15 = vadd.f32 %v4496_v20, %v4428_v54  ;;  %v4595_v47 = vsel %vm4559_vm11, %v7911_v28, 0.0  ;;  %v4596_v33 = vsel %vm4560_vm3, %v7911_v28, 0.0  ;;  %vm3769_vm4 = vcmp.eq.s32.totalorder %v3737_v3, 0 }
 0x401   : > { %v3738_v6 = vsub.s32 %v9175_v60, %v7782_v32  ;;  %5618 = vmatprep.subr.bf16.mxu0 %v4138_v38  ;;  %v4627_v30 = vadd.f32 %v4595_v47, %v4527_v8  ;;  %v3805_v49 = vsel %vm3769_vm4, %v7792_v35, 0.0  ;;  %vm3837_vm9 = vcmp.eq.s32.totalorder %v3737_v3, 1 }
 0x402   : > { %v4628_v26 = vadd.f32 %v4596_v33, %v4528_v15  ;;  %v3873_v36 = vsel %vm3837_vm9, %v7795_v0, 0.0  ;;  %vm3937_vm0 = vcmp.eq.s32.totalorder %v3737_v3, 16  ;;  %vm4037_vm12 = vcmp.eq.s32.totalorder %v3737_v3, 17 }
 0x403   : > { %vm3770_vm8 = vcmp.eq.s32.totalorder %v3738_v6, 0  ;;  %vm3838_vm13 = vcmp.eq.s32.totalorder %v3738_v6, 1  ;;  %v3905_v55 = vadd.f32 %v3873_v36, %v3805_v49  ;;  %vm3938_vm10 = vcmp.eq.s32.totalorder %v3738_v6, 16 }
 0x404   : > { %v3806_v24 = vsel %vm3770_vm8, %v7792_v35, 0.0  ;;  %v3874_v32 = vsel %vm3838_vm13, %v7795_v0, 0.0  ;;  %v4646_v4 = vpack.c.bf16 %v4628_v26, %v4627_v30  ;;  %v3973_v19 = vsel %vm3937_vm0, %v7806_v23, 0.0 }
 0x405   : > { %v3906_v25 = vadd.f32 %v3874_v32, %v3806_v24  ;;  %v3974_v58 = vsel %vm3938_vm10, %v7806_v23, 0.0  ;;  %v4005_v27 = vadd.f32 %v3973_v19, %v3905_v55  ;;  %vm4038_vm6 = vcmp.eq.s32.totalorder %v3738_v6, 17  ;;  %v8319_v49 = vld.sshfl [vmem:[%s6224_s8] sm:$0x33 pattern:$0x76325410] }
 0x406   : > { %v4243_v35 = vsub.s32 %v6259_v57, %v7897_v37  ;;  %5638 = vmatprep.subr.bf16.mxu1 %v4646_v4  ;;  %v4073_v14 = vsel %vm4037_vm12, %v7809_v45, 0.0  ;;  %v4074_v0 = vsel %vm4038_vm6, %v7809_v45, 0.0  ;;  %v4244_v63 = vsub.s32 %v6263_v59, %v7897_v37 }
 0x407   : > { %v4006_v56 = vadd.f32 %v3974_v58, %v3906_v25  ;;  %v4105_v34 = vadd.f32 %v4073_v14, %v4005_v27  ;;  %v4261_v38 = vsub.s32 %v6270_v61, %v7897_v37  ;;  %v4262_v6 = vsub.s32 %v6273_v62, %v7897_v37 }
 0x408   : > { %vm4275_vm14 = vcmp.eq.s32.totalorder %v4243_v35, 0  ;;  %vm4343_vm15 = vcmp.eq.s32.totalorder %v4243_v35, 1  ;;  %vm4443_vm7 = vcmp.eq.s32.totalorder %v4243_v35, 16  ;;  %vm4276_vm11 = vcmp.eq.s32.totalorder %v4244_v63, 0 }
 0x409   : > { %v4106_v23 = vadd.f32 %v4074_v0, %v4006_v56  ;;  %v4311_v11 = vsel %vm4275_vm14, %v7900_v16, 0.0  ;;  %vm4344_vm3 = vcmp.eq.s32.totalorder %v4244_v63, 1  ;;  %v4312_v3 = vsel %vm4276_vm11, %v7900_v16, 0.0 }
 0x40a   : > { %v4379_v31 = vsel %vm4343_vm15, %v7903_v42, 0.0  ;;  %v4380_v12 = vsel %vm4344_vm3, %v7903_v42, 0.0  ;;  %vm4444_vm4 = vcmp.eq.s32.totalorder %v4244_v63, 16  ;;  %v4479_v2 = vsel %vm4443_vm7, %v7906_v29, 0.0 }
 0x40b   : > { %v4130_v45 = vpack.c.bf16 %v4106_v23, %v4105_v34  ;;  %v4411_v44 = vadd.f32 %v4379_v31, %v4311_v11  ;;  %v4412_v17 = vadd.f32 %v4380_v12, %v4312_v3  ;;  %v4480_v53 = vsel %vm4444_vm4, %v7906_v29, 0.0 }
 0x40c   : > { %vm4543_vm8 = vcmp.eq.s32.totalorder %v4243_v35, 17  ;;  %vm4544_vm9 = vcmp.eq.s32.totalorder %v4244_v63, 17  ;;  %vm4293_vm13 = vcmp.eq.s32.totalorder %v4261_v38, 0  ;;  %vm4361_vm0 = vcmp.eq.s32.totalorder %v4261_v38, 1 }
 0x40d   : > { %5619 = vmatpush3.bf16.msra.mxu0 %v4130_v45  ;;  %v4511_v54 = vadd.f32 %v4479_v2, %v4411_v44  ;;  %v4512_v40 = vadd.f32 %v4480_v53, %v4412_v17  ;;  %v4579_v20 = vsel %vm4543_vm8, %v7911_v28, 0.0  ;;  %v4580_v8 = vsel %vm4544_vm9, %v7911_v28, 0.0 }
 0x40e   : > { %vm4461_vm10 = vcmp.eq.s32.totalorder %v4261_v38, 16  ;;  %5712 = vmatprep.subr.bf16.mxu0 %v9142_v41  ;;  %v4329_v33 = vsel %vm4293_vm13, %v7900_v16, 0.0  ;;  %v4397_v30 = vsel %vm4361_vm0, %v7903_v42, 0.0  ;;  %vm4294_vm12 = vcmp.eq.s32.totalorder %v4262_v6, 0 }
 0x40f   : > { %v4611_v15 = vadd.f32 %v4579_v20, %v4511_v54  ;;  %v4612_v47 = vadd.f32 %v4580_v8, %v4512_v40  ;;  %vm4362_vm6 = vcmp.eq.s32.totalorder %v4262_v6, 1  ;;  %v4429_v26 = vadd.f32 %v4397_v30, %v4329_v33 }
 0x410   : > { %4172 = vmatmul.mubr.bf16.vlgmr.msra.gmra.mrb[8].mxu0 %v8319_v49  ;;  %vm4462_vm14 = vcmp.eq.s32.totalorder %v4262_v6, 16  ;;  %v4330_v36 = vsel %vm4294_vm12, %v7900_v16, 0.0  ;;  %v4398_v32 = vsel %vm4362_vm6, %v7903_v42, 0.0  ;;  %v4497_v55 = vsel %vm4461_vm10, %v7906_v29, 0.0 }
 0x411   : > { %v4638_v24 = vpack.c.bf16 %v4612_v47, %v4611_v15  ;;  %5714 = vmatprep.mubr.msk.bf16.mxu0 %vm9059_vm1, %v9142_v41  ;;  %v4430_v4 = vadd.f32 %v4398_v32, %v4330_v36  ;;  %v4498_v25 = vsel %vm4462_vm14, %v7906_v29, 0.0  ;;  %v4529_v19 = vadd.f32 %v4497_v55, %v4429_v26 }
 0x412   : > { %vm4561_vm15 = vcmp.eq.s32.totalorder %v4261_v38, 17  ;;  %vm4562_vm7 = vcmp.eq.s32.totalorder %v4262_v6, 17  ;;  %v4245_v27 = vsub.s32 %v9157_v1, %v7897_v37  ;;  %v4246_v35 = vsub.s32 %v9158_v22, %v7897_v37 }
 0x413   : > { %5639 = vmatpush3.bf16.msra.mxu1 %v4638_v24  ;;  %v4597_v58 = vsel %vm4561_vm15, %v7911_v28, 0.0  ;;  %v4530_v56 = vadd.f32 %v4498_v25, %v4430_v4  ;;  %v4598_v14 = vsel %vm4562_vm7, %v7911_v28, 0.0  ;;  %v4263_v63 = vsub.s32 %v9169_v13, %v7897_v37 }
 0x414   : > { %v4629_v0 = vadd.f32 %v4597_v58, %v4529_v19  ;;  %vm4277_vm11 = vcmp.eq.s32.totalorder %v4245_v27, 0  ;;  %vm4278_vm3 = vcmp.eq.s32.totalorder %v4246_v35, 0  ;;  %vm4345_vm4 = vcmp.eq.s32.totalorder %v4245_v27, 1 }
 0x415   : > { %vm4346_vm8 = vcmp.eq.s32.totalorder %v4246_v35, 1  ;;  %v4630_v34 = vadd.f32 %v4598_v14, %v4530_v56  ;;  %v4313_v23 = vsel %vm4277_vm11, %v7900_v16, 0.0  ;;  %v4314_v11 = vsel %vm4278_vm3, %v7900_v16, 0.0 }
 0x416   : > { %v4381_v3 = vsel %vm4345_vm4, %v7903_v42, 0.0  ;;  %v4382_v31 = vsel %vm4346_vm8, %v7903_v42, 0.0  ;;  %vm4445_vm9 = vcmp.eq.s32.totalorder %v4245_v27, 16  ;;  %vm4446_vm13 = vcmp.eq.s32.totalorder %v4246_v35, 16 }
 0x417   : > { %v4413_v12 = vadd.f32 %v4381_v3, %v4313_v23  ;;  %v4647_v45 = vpack.c.bf16 %v4630_v34, %v4629_v0  ;;  %v4414_v44 = vadd.f32 %v4382_v31, %v4314_v11  ;;  %v4481_v17 = vsel %vm4445_vm9, %v7906_v29, 0.0 }
 0x418   : > { %v4482_v2 = vsel %vm4446_vm13, %v7906_v29, 0.0  ;;  %vm4545_vm0 = vcmp.eq.s32.totalorder %v4245_v27, 17  ;;  %vm4546_vm10 = vcmp.eq.s32.totalorder %v4246_v35, 17  ;;  %v4264_v38 = vsub.s32 %v9171_v7, %v7897_v37 }
 0x419   : > { %v4513_v53 = vadd.f32 %v4481_v17, %v4413_v12  ;;  %5640 = vmatprep.subr.bf16.mxu1 %v4647_v45  ;;  %v4514_v54 = vadd.f32 %v4482_v2, %v4414_v44  ;;  %v4581_v40 = vsel %vm4545_vm0, %v7911_v28, 0.0  ;;  %v4582_v20 = vsel %vm4546_vm10, %v7911_v28, 0.0 }
 0x41a   : > { %vm4295_vm12 = vcmp.eq.s32.totalorder %v4263_v63, 0  ;;  %vm4296_vm6 = vcmp.eq.s32.totalorder %v4264_v38, 0  ;;  %vm4363_vm14 = vcmp.eq.s32.totalorder %v4263_v63, 1  ;;  %vm4364_vm15 = vcmp.eq.s32.totalorder %v4264_v38, 1 }
 0x41b   : > { %v4613_v8 = vadd.f32 %v4581_v40, %v4513_v53  ;;  %v4331_v6 = vsel %vm4295_vm12, %v7900_v16, 0.0  ;;  %v4614_v15 = vadd.f32 %v4582_v20, %v4514_v54  ;;  %v4332_v47 = vsel %vm4296_vm6, %v7900_v16, 0.0  ;;  %v509_v54 = vld [vmem:[%s6156_s11 + $0x8] sm:$0x1]  ;;  %s5251_s11 = scalar_lea.sflag [#allocation7], %s6148_s17 }
 0x41c   : > { %v4399_v33 = vsel %vm4363_vm14, %v7903_v42, 0.0  ;;  %v4400_v30 = vsel %vm4364_vm15, %v7903_v42, 0.0  ;;  %vm4463_vm7 = vcmp.eq.s32.totalorder %v4263_v63, 16  ;;  %vm4464_vm11 = vcmp.eq.s32.totalorder %v4264_v38, 16  ;;  %v515_v40 = vld [vmem:[%s6159_s7 + $0x8] sm:$0x1] }
 0x41d   : > { %v4431_v26 = vadd.f32 %v4399_v33, %v4331_v6  ;;  %v4639_v24 = vpack.c.bf16 %v4614_v15, %v4613_v8  ;;  %v4432_v36 = vadd.f32 %v4400_v30, %v4332_v47  ;;  %v4499_v32 = vsel %vm4463_vm7, %v7906_v29, 0.0  ;;  %s5868_s7 = sshll.u32 %s5978_s26, 4  ;;  %s5869_s7 = int_to_ptr.vmem [resolvable:$false] %s5868_s7 }
 0x41e   : > { %v4500_v55 = vsel %vm4464_vm11, %v7906_v29, 0.0  ;;  %vm4563_vm3 = vcmp.eq.s32.totalorder %v4263_v63, 17  ;;  %vm4564_vm4 = vcmp.eq.s32.totalorder %v4264_v38, 17  ;;  %v4247_v25 = vsub.s32 %v9174_v18, %v7897_v37  ;;  %v507_v38 = vld [vmem:[%s448_s22 + $0x8] sm:$0x1]  ;;  %s5870_s22 = scalar_lea.vmem %s5869_s7, 256 }
 0x41f   : > { %v4531_v4 = vadd.f32 %v4499_v32, %v4431_v26  ;;  %5641 = vmatpush3.bf16.msra.mxu1 %v4639_v24  ;;  %v4532_v19 = vadd.f32 %v4500_v55, %v4432_v36  ;;  %v4599_v58 = vsel %vm4563_vm3, %v7911_v28, 0.0  ;;  %v4600_v27 = vsel %vm4564_vm4, %v7911_v28, 0.0 }
 0x420   : > { %v4248_v35 = vsub.s32 %v9175_v60, %v7897_v37  ;;  %vm4279_vm8 = vcmp.eq.s32.totalorder %v4247_v25, 0  ;;  %vm4347_vm9 = vcmp.eq.s32.totalorder %v4247_v25, 1  ;;  %vm4447_vm13 = vcmp.eq.s32.totalorder %v4247_v25, 16 }
 0x421   : > { %v4631_v56 = vadd.f32 %v4599_v58, %v4531_v4  ;;  %v4632_v14 = vadd.f32 %v4600_v27, %v4532_v19  ;;  %v4315_v0 = vsel %vm4279_vm8, %v7900_v16, 0.0  ;;  %v4383_v34 = vsel %vm4347_vm9, %v7903_v42, 0.0  ;;  %v9178_v27 = vld [vmem:[#allocation17_spill] sm:$0xff] }
 0x422   : > { %vm4280_vm0 = vcmp.eq.s32.totalorder %v4248_v35, 0  ;;  %vm4348_vm10 = vcmp.eq.s32.totalorder %v4248_v35, 1  ;;  %vm4448_vm12 = vcmp.eq.s32.totalorder %v4248_v35, 16  ;;  %v4415_v3 = vadd.f32 %v4383_v34, %v4315_v0 }
 0x423   : > { %v4316_v63 = vsel %vm4280_vm0, %v7900_v16, 0.0  ;;  %v4384_v23 = vsel %vm4348_vm10, %v7903_v42, 0.0  ;;  %v4648_v11 = vpack.c.bf16 %v4632_v14, %v4631_v56  ;;  %v4483_v31 = vsel %vm4447_vm13, %v7906_v29, 0.0 }
 0x424   : > { %v4416_v37 = vadd.f32 %v4384_v23, %v4316_v63  ;;  %v4484_v12 = vsel %vm4448_vm12, %v7906_v29, 0.0  ;;  %vm4547_vm6 = vcmp.eq.s32.totalorder %v4247_v25, 17  ;;  %vm4548_vm14 = vcmp.eq.s32.totalorder %v4248_v35, 17  ;;  %v513_v29 = vld [vmem:[%s455_s21 + $0x8] sm:$0x1]  ;;  %v9181_v63 = vld [vmem:[#allocation15_spill] sm:$0xff] }
 0x425   : > { %5642 = vmatprep.subr.bf16.mxu1 %v4648_v11  ;;  %v4515_v16 = vadd.f32 %v4483_v31, %v4415_v3  ;;  %v4583_v44 = vsel %vm4547_vm6, %v7911_v28, 0.0  ;;  %v4584_v42 = vsel %vm4548_vm14, %v7911_v28, 0.0  ;;  %v511_v20 = vadd.f32 %v509_v54, %v507_v38  ;;  %v9182_v23 = vld [vmem:[#allocation16_spill] sm:$0xff] }
 0x426   : > { %v4516_v45 = vadd.f32 %v4484_v12, %v4416_v37  ;;  %v517_v8 = vadd.f32 %v515_v40, %v513_v29 }
 0x427   : > { %v4615_v17 = vadd.f32 %v4583_v44, %v4515_v16  ;;  %v533_v6 = vfloor.f32 %v511_v20  ;;  %vm519_vm15 = vcmp.gt.f32.partialorder %v511_v20, -1.0  ;;  %vm521_vm7 = vcmp.lt.f32.partialorder %v511_v20, 16.0 }
 0x428   : > { %v4616_v2 = vadd.f32 %v4584_v42, %v4516_v45  ;;  %v535_v15 = vfloor.f32 %v517_v8  ;;  %vm523_vm11 = vmand %vm519_vm15, %vm521_vm7  ;;  %vm525_vm3 = vcmp.gt.f32.partialorder %v517_v8, -1.0  ;;  %vm529_vm13 = vcmp.lt.f32.partialorder %v517_v8, 16.0 }
 0x429   : > { %v5764_v47 = vtrunc.f32 %v533_v6  ;;  %vm527_vm9 = vmand %vm523_vm11, %vm525_vm3  ;;  %v537_v24 = vsub.f32 %v511_v20, %v533_v6 }
 0x42a   : > { %v4640_v53 = vpack.c.bf16 %v4616_v2, %v4615_v17  ;;  %v5768_v33 = vtrunc.f32 %v535_v15  ;;  %v539_v36 = vsub.f32 %v517_v8, %v535_v15  ;;  %vm8373_vm6 = vmand %vm527_vm9, %vm529_vm13 }
 0x42b   : > { %v5765_v28 = vcvt.f32.s32 %v5764_v47  ;;  %v541_v4 = vsub.f32 1.0, %v537_v24 }
 0x42c   : > { %5643 = vmatpush3.bf16.msra.mxu1 %v4640_v53  ;;  %v5769_v30 = vcvt.f32.s32 %v5768_v33  ;;  %v543_v25 = vsub.f32 1.0, %v539_v36  ;;  %v603_v16 = vmul.f32 %v539_v36, %v537_v24 }
 0x42d   : > { %vm551_vm4 = vcmp.ge.s32.totalorder %v5765_v28, 0  ;;  %vm553_vm8 = vcmp.le.s32.totalorder %v5765_v28, 15  ;;  %v587_v26 = vadd.s32 1, %v5765_v28  ;;  %v613_v32 = vmul.u32 16, %v5765_v28 }
 0x42e   : > { %vm555_vm0 = vmand %vm551_vm4, %vm553_vm8  ;;  %vm557_vm10 = vcmp.ge.s32.totalorder %v5769_v30, 0  ;;  %vm561_vm7 = vcmp.le.s32.totalorder %v5769_v30, 15  ;;  %v549_v58 = vmul.f32 %v543_v25, %v541_v4  ;;  %v569_v56 = vmul.f32 %v541_v4, %v539_v36 }
 0x42f   : > { %4682 = vmatmul.mubr.bf16.vlgmr.msra.gmra.mrb[20].mxu1 %v8319_v49  ;;  %v571_v49 = vadd.s32 1, %v5769_v30  ;;  %vm589_vm14 = vcmp.ge.s32.totalorder %v587_v26, 0  ;;  %vm591_vm1 = vcmp.le.s32.totalorder %v587_v26, 15  ;;  %vm559_vm15 = vmand %vm555_vm0, %vm557_vm10  ;;  %v615_v19 = vadd.s32 %v5769_v30, %v613_v32 }
 0x430   : > { %vm593_vm5 = vmand %vm589_vm14, %vm591_vm1  ;;  %v585_v31 = vmul.f32 %v543_v25, %v537_v24 }
 0x431   : > { %vm573_vm12 = vcmp.ge.s32.totalorder %v571_v49, 0  ;;  %vm577_vm3 = vcmp.le.s32.totalorder %v571_v49, 15  ;;  %vm563_vm4 = vmand %vm559_vm15, %vm561_vm7  ;;  %v8383_v35 = vrot.slane %v615_v19, %v9178_v27 }
 0x432   : > { %vm575_vm11 = vmand %vm555_vm0, %vm573_vm12 }
 0x433   : > { %vm579_vm8 = vmand %vm575_vm11, %vm577_vm3  ;;  %v4759_v34 = vsub.s32 %v9181_v63, %v8383_v35  ;;  %v4760_v11 = vsub.s32 %v9182_v23, %v8383_v35  ;;  %v4743_v3 = vsub.s32 %v6154_v9, %v8383_v35  ;;  %v8407_v12 = vsub.s32 %v9111_v39, %v8383_v35  ;;  %v9185_v63 = vld [vmem:[#allocation21_spill] sm:$0xff] }
 0x434   : > { %vm595_vm9 = vmand %vm593_vm5, %vm557_vm10  ;;  %v4761_v6 = vsub.s32 %v9112_v43, %v8383_v35  ;;  %v4762_v15 = vsub.s32 %v9115_v5, %v8383_v35 }
 0x435   : > { %vm565_vm13 = vmand %vm563_vm4, %vm8373_vm6  ;;  %vm4792_vm14 = vcmp.eq.s32.totalorder %v4760_v11, 0  ;;  %vm4775_vm15 = vcmp.eq.s32.totalorder %v4743_v3, 0  ;;  %vm4843_vm11 = vcmp.eq.s32.totalorder %v4743_v3, 1  ;;  %vm4776_vm4 = vcmp.eq.s32.totalorder %v8407_v12, 0 }
 0x436   : > { %vm581_vm0 = vmand %vm579_vm8, %vm8373_vm6  ;;  %v567_v0 = vsel %vm565_vm13, %v549_v58, 0.0  ;;  %vm4844_vm8 = vcmp.eq.s32.totalorder %v8407_v12, 1  ;;  %vm4943_vm13 = vcmp.eq.s32.totalorder %v4743_v3, 16 }
 0x437   : > { %vm8390_vm2 = vmand %vm595_vm9, %vm561_vm7  ;;  %v583_v37 = vsel %vm581_vm0, %v569_v56, 0.0  ;;  %v8415_v44 = vrot.slane %v567_v0, %v9178_v27  ;;  %vm4860_vm7 = vcmp.eq.s32.totalorder %v4760_v11, 1  ;;  %vm4960_vm9 = vcmp.eq.s32.totalorder %v4760_v11, 16 }
 0x438   : > { %vm605_vm1 = vmand %vm593_vm5, %vm573_vm12  ;;  %vm4791_vm12 = vcmp.eq.s32.totalorder %v4759_v34, 0  ;;  %v8418_v9 = vrot.slane %v583_v37, %v9178_v27  ;;  %vm5059_vm0 = vcmp.eq.s32.totalorder %v4759_v34, 17  ;;  %v9186_v37 = vld [vmem:[#allocation22_spill] sm:$0xff] }
 0x439   : > { %vm599_vm10 = vmand %vm8390_vm2, %vm8373_vm6  ;;  %vm4859_vm2 = vcmp.eq.s32.totalorder %v4759_v34, 1  ;;  %v4827_v39 = vsel %vm4791_vm12, %v8415_v44, 0.0  ;;  %v4828_v17 = vsel %vm4792_vm14, %v8415_v44, 0.0  ;;  %v4811_v2 = vsel %vm4775_vm15, %v8415_v44, 0.0 }
 0x43a   : > { %vm8410_vm5 = vmand %vm605_vm1, %vm577_vm3  ;;  %v601_v42 = vsel %vm599_vm10, %v585_v31, 0.0  ;;  %v4895_v53 = vsel %vm4859_vm2, %v8418_v9, 0.0  ;;  %v4896_v38 = vsel %vm4860_vm7, %v8418_v9, 0.0  ;;  %v4879_v29 = vsel %vm4843_vm11, %v8418_v9, 0.0 }
 0x43b   : > { %vm609_vm3 = vmand %vm8410_vm5, %vm8373_vm6  ;;  %v8432_v54 = vrot.slane %v601_v42, %v9178_v27  ;;  %vm4959_vm6 = vcmp.eq.s32.totalorder %v4759_v34, 16  ;;  %v4812_v20 = vsel %vm4776_vm4, %v8415_v44, 0.0  ;;  %v4880_v8 = vsel %vm4844_vm8, %v8418_v9, 0.0 }
 0x43c   : > { %v611_v40 = vsel %vm609_vm3, %v603_v16, 0.0  ;;  %v4927_v47 = vadd.f32 %v4895_v53, %v4827_v39  ;;  %v4928_v33 = vadd.f32 %v4896_v38, %v4828_v17  ;;  %v4911_v28 = vadd.f32 %v4879_v29, %v4811_v2  ;;  %v9187_v2 = vld [vmem:[#allocation23_spill] sm:$0xff]  ;;  %v9188_v29 = vld [vmem:[#allocation24_spill] sm:$0xff] }
 0x43d   : > { %v4995_v30 = vsel %vm4959_vm6, %v8432_v54, 0.0  ;;  %v4996_v49 = vsel %vm4960_vm9, %v8432_v54, 0.0  ;;  %v8444_v26 = vrot.slane %v611_v40, %v9178_v27  ;;  %vm4944_vm1 = vcmp.eq.s32.totalorder %v8407_v12, 16 }
 0x43e   : > { %vm5060_vm10 = vcmp.eq.s32.totalorder %v4760_v11, 17  ;;  %v4912_v24 = vadd.f32 %v4880_v8, %v4812_v20  ;;  %v4979_v43 = vsel %vm4943_vm13, %v8432_v54, 0.0  ;;  %vm5043_vm5 = vcmp.eq.s32.totalorder %v4743_v3, 17 }
 0x43f   : > { %vm4793_vm12 = vcmp.eq.s32.totalorder %v4761_v6, 0  ;;  %vm4794_vm14 = vcmp.eq.s32.totalorder %v4762_v15, 0  ;;  %vm4861_vm15 = vcmp.eq.s32.totalorder %v4761_v6, 1  ;;  %vm4862_vm2 = vcmp.eq.s32.totalorder %v4762_v15, 1 }
 0x440   : > { %v5027_v5 = vadd.f32 %v4995_v30, %v4927_v47  ;;  %v5028_v36 = vadd.f32 %v4996_v49, %v4928_v33  ;;  %v4980_v32 = vsel %vm4944_vm1, %v8432_v54, 0.0  ;;  %vm5044_vm7 = vcmp.eq.s32.totalorder %v8407_v12, 17  ;;  %v9189_v49 = vld [vmem:[#allocation25_spill] sm:$0xff] }
 0x441   : > { %v5095_v55 = vsel %vm5059_vm0, %v8444_v26, 0.0  ;;  %v5096_v4 = vsel %vm5060_vm10, %v8444_v26, 0.0  ;;  %v5011_v25 = vadd.f32 %v4979_v43, %v4911_v28  ;;  %v5079_v19 = vsel %vm5043_vm5, %v8444_v26, 0.0  ;;  %v9190_v43 = vld [vmem:[#allocation26_spill] sm:$0xff] }
 0x442   : > { %v4829_v58 = vsel %vm4793_vm12, %v8415_v44, 0.0  ;;  %v4830_v27 = vsel %vm4794_vm14, %v8415_v44, 0.0  ;;  %v4897_v56 = vsel %vm4861_vm15, %v8418_v9, 0.0  ;;  %v4898_v14 = vsel %vm4862_vm2, %v8418_v9, 0.0 }
 0x443   : > { %v5012_v0 = vadd.f32 %v4980_v32, %v4912_v24  ;;  %vm4961_vm11 = vcmp.eq.s32.totalorder %v4761_v6, 16  ;;  %vm4962_vm3 = vcmp.eq.s32.totalorder %v4762_v15, 16  ;;  %v8460_v34 = vsub.s32 %v9185_v63, %v8383_v35 }
 0x444   : > { %v8462_v23 = vadd.f32 %v5095_v55, %v5027_v5  ;;  %v8464_v11 = vadd.f32 %v5096_v4, %v5028_v36  ;;  %v5080_v3 = vsel %vm5044_vm7, %v8444_v26, 0.0  ;;  %v8469_v31 = vsub.s32 %v9186_v37, %v8383_v35 }
 0x445   : > { %v8471_v12 = vadd.f32 %v5079_v19, %v5011_v25  ;;  %v4929_v16 = vadd.f32 %v4897_v56, %v4829_v58  ;;  %v4930_v45 = vadd.f32 %v4898_v14, %v4830_v27  ;;  %v4997_v42 = vsel %vm4961_vm11, %v8432_v54, 0.0 }
 0x446   : > { %v4998_v39 = vsel %vm4962_vm3, %v8432_v54, 0.0  ;;  %vm5061_vm4 = vcmp.eq.s32.totalorder %v4761_v6, 17  ;;  %vm5062_vm8 = vcmp.eq.s32.totalorder %v4762_v15, 17  ;;  %v8475_v17 = vadd.f32 %v5080_v3, %v5012_v0 }
 0x447   : > { %vm4777_vm6 = vcmp.eq.s32.totalorder %v8460_v34, 0  ;;  %vm4845_vm9 = vcmp.eq.s32.totalorder %v8460_v34, 1  ;;  %v4763_v53 = vsub.s32 %v9187_v2, %v8383_v35  ;;  %v5151_v38 = vpack.c.bf16 %v8464_v11, %v8462_v23 }
 0x448   : > { %vm4778_vm13 = vcmp.eq.s32.totalorder %v8469_v31, 0  ;;  %vm4846_vm0 = vcmp.eq.s32.totalorder %v8469_v31, 1  ;;  %v4764_v40 = vsub.s32 %v9188_v29, %v8383_v35  ;;  %v5029_v20 = vadd.f32 %v4997_v42, %v4929_v16  ;;  %v9191_v29 = vld [vmem:[#allocation27_spill] sm:$0xff] }
 0x449   : > { %v5030_v8 = vadd.f32 %v4998_v39, %v4930_v45  ;;  %v5097_v6 = vsel %vm5061_vm4, %v8444_v26, 0.0  ;;  %v5098_v15 = vsel %vm5062_vm8, %v8444_v26, 0.0  ;;  %v4813_v47 = vsel %vm4777_vm6, %v8415_v44, 0.0 }
 0x44a   : > { %v4881_v33 = vsel %vm4845_vm9, %v8418_v9, 0.0  ;;  %vm4945_vm1 = vcmp.eq.s32.totalorder %v8460_v34, 16  ;;  %vm4946_vm10 = vcmp.eq.s32.totalorder %v8469_v31, 16  ;;  %v4814_v28 = vsel %vm4778_vm13, %v8415_v44, 0.0 }
 0x44b   : > { %v4882_v30 = vsel %vm4846_vm0, %v8418_v9, 0.0  ;;  %vm4795_vm5 = vcmp.eq.s32.totalorder %v4763_v53, 0  ;;  %vm4863_vm12 = vcmp.eq.s32.totalorder %v4763_v53, 1  ;;  %vm4796_vm14 = vcmp.eq.s32.totalorder %v4764_v40, 0 }
 0x44c   : > { %vm4864_vm15 = vcmp.eq.s32.totalorder %v4764_v40, 1  ;;  %v4747_v24 = vsub.s32 %v9189_v49, %v8383_v35  ;;  %v4748_v5 = vsub.s32 %v9190_v43, %v8383_v35  ;;  %v8499_v36 = vadd.f32 %v5097_v6, %v5029_v20 }
 0x44d   : > { %v8501_v32 = vadd.f32 %v5098_v15, %v5030_v8  ;;  %v4913_v55 = vadd.f32 %v4881_v33, %v4813_v47  ;;  %v4981_v4 = vsel %vm4945_vm1, %v8432_v54, 0.0  ;;  %v4914_v25 = vadd.f32 %v4882_v30, %v4814_v28 }
 0x44e   : > { %v4982_v19 = vsel %vm4946_vm10, %v8432_v54, 0.0  ;;  %v4831_v58 = vsel %vm4795_vm5, %v8415_v44, 0.0  ;;  %v4899_v27 = vsel %vm4863_vm12, %v8418_v9, 0.0  ;;  %v4832_v56 = vsel %vm4796_vm14, %v8415_v44, 0.0 }
 0x44f   : > { %v4900_v14 = vsel %vm4864_vm15, %v8418_v9, 0.0  ;;  %vm4963_vm2 = vcmp.eq.s32.totalorder %v4763_v53, 16  ;;  %vm4964_vm7 = vcmp.eq.s32.totalorder %v4764_v40, 16  ;;  %vm4779_vm11 = vcmp.eq.s32.totalorder %v4747_v24, 0 }
 0x450   : > { %vm4780_vm3 = vcmp.eq.s32.totalorder %v4748_v5, 0  ;;  %vm4847_vm4 = vcmp.eq.s32.totalorder %v4747_v24, 1  ;;  %vm4848_vm8 = vcmp.eq.s32.totalorder %v4748_v5, 1  ;;  %v5013_v0 = vadd.f32 %v4981_v4, %v4913_v55 }
 0x451   : > { %vm5045_vm6 = vcmp.eq.s32.totalorder %v8460_v34, 17  ;;  %vm5046_vm9 = vcmp.eq.s32.totalorder %v8469_v31, 17  ;;  %v4931_v63 = vadd.f32 %v4899_v27, %v4831_v58  ;;  %v4932_v3 = vadd.f32 %v4900_v14, %v4832_v56  ;;  %v9192_v34 = vld [vmem:[#allocation28_spill] sm:$0xff] }
 0x452   : > { %v4999_v37 = vsel %vm4963_vm2, %v8432_v54, 0.0  ;;  %v5000_v16 = vsel %vm4964_vm7, %v8432_v54, 0.0  ;;  %vm5063_vm13 = vcmp.eq.s32.totalorder %v4763_v53, 17  ;;  %v4815_v45 = vsel %vm4779_vm11, %v8415_v44, 0.0 }
 0x453   : > { %v4816_v42 = vsel %vm4780_vm3, %v8415_v44, 0.0  ;;  %v4883_v39 = vsel %vm4847_vm4, %v8418_v9, 0.0  ;;  %v4884_v2 = vsel %vm4848_vm8, %v8418_v9, 0.0  ;;  %vm5064_vm0 = vcmp.eq.s32.totalorder %v4764_v40, 17 }
 0x454   : > { %vm4947_vm1 = vcmp.eq.s32.totalorder %v4747_v24, 16  ;;  %vm4948_vm10 = vcmp.eq.s32.totalorder %v4748_v5, 16  ;;  %v8519_v20 = vsub.s32 %v9191_v29, %v8383_v35  ;;  %v5014_v8 = vadd.f32 %v4982_v19, %v4914_v25  ;;  %v9193_v19 = vld [vmem:[#allocation29_spill] sm:$0xff] }
 0x455   : > { %v5081_v53 = vsel %vm5045_vm6, %v8444_v26, 0.0  ;;  %v5082_v6 = vsel %vm5046_vm9, %v8444_v26, 0.0  ;;  %v5031_v15 = vadd.f32 %v4999_v37, %v4931_v63  ;;  %v5032_v47 = vadd.f32 %v5000_v16, %v4932_v3 }
 0x456   : > { %v5099_v33 = vsel %vm5063_vm13, %v8444_v26, 0.0  ;;  %v4915_v40 = vadd.f32 %v4883_v39, %v4815_v45  ;;  %v4916_v28 = vadd.f32 %v4884_v2, %v4816_v42  ;;  %v5100_v30 = vsel %vm5064_vm0, %v8444_v26, 0.0  ;;  %v9194_v45 = vld [vmem:[#allocation30_spill] sm:$0xff] }
 0x457   : > { %v4983_v49 = vsel %vm4947_vm1, %v8432_v54, 0.0  ;;  %v4984_v43 = vsel %vm4948_vm10, %v8432_v54, 0.0  ;;  %vm5047_vm5 = vcmp.eq.s32.totalorder %v4747_v24, 17  ;;  %vm5048_vm12 = vcmp.eq.s32.totalorder %v4748_v5, 17 }
 0x458   : > { %v8533_v55 = vsub.s32 %v9192_v34, %v8383_v35  ;;  %vm4797_vm14 = vcmp.eq.s32.totalorder %v8519_v20, 0  ;;  %vm4865_vm15 = vcmp.eq.s32.totalorder %v8519_v20, 1  ;;  %v5143_v31 = vpack.c.bf16 %v8475_v17, %v8471_v12 }
 0x459   : > { %v8539_v4 = vadd.f32 %v5081_v53, %v5013_v0  ;;  %v8541_v25 = vadd.f32 %v5082_v6, %v5014_v8  ;;  %v8545_v58 = vsub.s32 %v9193_v19, %v8383_v35  ;;  %v8547_v24 = vadd.f32 %v5099_v33, %v5031_v15 }
 0x45a   : > { %v8549_v5 = vadd.f32 %v5100_v30, %v5032_v47  ;;  %v5015_v27 = vadd.f32 %v4983_v49, %v4915_v40  ;;  %v5016_v56 = vadd.f32 %v4984_v43, %v4916_v28  ;;  %v5083_v14 = vsel %vm5047_vm5, %v8444_v26, 0.0 }
 0x45b   : > { %v5084_v63 = vsel %vm5048_vm12, %v8444_v26, 0.0  ;;  %v4833_v3 = vsel %vm4797_vm14, %v8415_v44, 0.0  ;;  %v4901_v0 = vsel %vm4865_vm15, %v8418_v9, 0.0  ;;  %v5152_v37 = vpack.c.bf16 %v8501_v32, %v8499_v36 }
 0x45c   : > { %vm4798_vm2 = vcmp.eq.s32.totalorder %v8533_v55, 0  ;;  %vm4866_vm7 = vcmp.eq.s32.totalorder %v8533_v55, 1  ;;  %vm4965_vm11 = vcmp.eq.s32.totalorder %v8519_v20, 16  ;;  %v5144_v16 = vpack.c.bf16 %v8541_v25, %v8539_v4 }
 0x45d   : > { %v8564_v42 = vsub.s32 %v9194_v45, %v8383_v35  ;;  %vm4781_vm3 = vcmp.eq.s32.totalorder %v8545_v58, 0  ;;  %vm4849_vm4 = vcmp.eq.s32.totalorder %v8545_v58, 1  ;;  %v5153_v39 = vpack.c.bf16 %v8549_v5, %v8547_v24 }
 0x45e   : > { %v8570_v2 = vadd.f32 %v5083_v14, %v5015_v27  ;;  %v8572_v29 = vadd.f32 %v5084_v63, %v5016_v56  ;;  %v4933_v8 = vadd.f32 %v4901_v0, %v4833_v3  ;;  %v4834_v6 = vsel %vm4798_vm2, %v8415_v44, 0.0 }
 0x45f   : > { %v4902_v15 = vsel %vm4866_vm7, %v8418_v9, 0.0  ;;  %vm4966_vm8 = vcmp.eq.s32.totalorder %v8533_v55, 16  ;;  %v5001_v47 = vsel %vm4965_vm11, %v8432_v54, 0.0  ;;  %vm5065_vm6 = vcmp.eq.s32.totalorder %v8519_v20, 17 }
 0x460   : > { %v4817_v40 = vsel %vm4781_vm3, %v8415_v44, 0.0  ;;  %v4885_v28 = vsel %vm4849_vm4, %v8418_v9, 0.0  ;;  %vm4949_vm9 = vcmp.eq.s32.totalorder %v8545_v58, 16  ;;  %vm4782_vm13 = vcmp.eq.s32.totalorder %v8564_v42, 0 }
 0x461   : > { %vm4850_vm0 = vcmp.eq.s32.totalorder %v8564_v42, 1  ;;  %v8586_v43 = vsub.s32 %v9145_v50, %v8383_v35  ;;  %v4934_v19 = vadd.f32 %v4902_v15, %v4834_v6  ;;  %v5002_v20 = vsel %vm4966_vm8, %v8432_v54, 0.0 }
 0x462   : > { %v5033_v27 = vadd.f32 %v5001_v47, %v4933_v8  ;;  %vm5066_vm1 = vcmp.eq.s32.totalorder %v8533_v55, 17  ;;  %v5101_v14 = vsel %vm5065_vm6, %v8444_v26, 0.0  ;;  %v4917_v63 = vadd.f32 %v4885_v28, %v4817_v40 }
 0x463   : > { %v8593_v3 = vsub.s32 %v9146_v10, %v8383_v35  ;;  %v4818_v0 = vsel %vm4782_vm13, %v8415_v44, 0.0  ;;  %v4886_v50 = vsel %vm4850_vm0, %v8418_v9, 0.0  ;;  %vm4950_vm10 = vcmp.eq.s32.totalorder %v8564_v42, 16 }
 0x464   : > { %v4985_v45 = vsel %vm4949_vm9, %v8432_v54, 0.0  ;;  %vm9195_vm5 = vcmask 1041408   ;;  %vm4799_vm12 = vcmp.eq.s32.totalorder %v8586_v43, 0  ;;  %vm4867_vm14 = vcmp.eq.s32.totalorder %v8586_v43, 1 }
 0x465   : > { %v8606_v10 = vsub.s32 %v9147_v21, %v8383_v35  ;;  %v8611_v6 = vadd.f32 %v5002_v20, %v4934_v19  ;;  %v8616_v15 = vsel %vm5066_vm1, %v8444_v26, 0.0  ;;  %v8618_v47 = vadd.f32 %v5101_v14, %v5033_v27 }
 0x466   : > { %v4918_v21 = vadd.f32 %v4886_v50, %v4818_v0  ;;  %v4986_v40 = vsel %vm4950_vm10, %v8432_v54, 0.0  ;;  %vm5049_vm15 = vcmp.eq.s32.totalorder %v8545_v58, 17  ;;  %vm4800_vm2 = vcmp.eq.s32.totalorder %v8593_v3, 0 }
 0x467   : > { %v5017_v28 = vadd.f32 %v4985_v45, %v4917_v63  ;;  %vm4868_vm7 = vcmp.eq.s32.totalorder %v8593_v3, 1  ;;  %v4903_v55 = vsel %vm4867_vm14, %v8418_v9, 0.0  ;;  %vm9196_vm11 = vcmask 31744  }
 0x468   : > { %vm5050_vm3 = vcmp.eq.s32.totalorder %v8564_v42, 17  ;;  %vm4967_vm4 = vcmp.eq.s32.totalorder %v8586_v43, 16  ;;  %vm4783_vm8 = vcmp.eq.s32.totalorder %v8606_v10, 0  ;;  %vm4851_vm6 = vcmp.eq.s32.totalorder %v8606_v10, 1 }
 0x469   : > { %vm9197_vm9 = vmmov 0   ;;  %v4836_v58 = vsel %vm4800_vm2, %v8415_v44, 0.0  ;;  %vm4968_vm1 = vcmp.eq.s32.totalorder %v8593_v3, 16  ;;  %v4769_v19 = vsub.s32 %v6243_v48, %v8383_v35 }
 0x46a   : > { %v5018_v20 = vadd.f32 %v4986_v40, %v4918_v21  ;;  %v5003_v27 = vsel %vm4967_vm4, %v8432_v54, 0.0  ;;  %v4887_v14 = vsel %vm4851_vm6, %v8418_v9, 0.0  ;;  %vm4951_vm10 = vcmp.eq.s32.totalorder %v8606_v10, 16 }
 0x46b   : > { %v4770_v50 = vsub.s32 %v6250_v52, %v8383_v35  ;;  %v5086_v48 = vsel %vm5050_vm3, %v8444_v26, 0.0  ;;  %vm4869_vm14 = vcmp.eq.s32.totalorder %v4769_v19, 1  ;;  %vm5068_vm2 = vcmp.eq.s32.totalorder %v8593_v3, 17 }
 0x46c   : > { %v8777_v23 = vsub.s32 %v9171_v7, %v8383_v35  ;;  %v8802_v17 = vsub.s32 %v9174_v18, %v8383_v35 }
 0x46d   : > { %vm4870_vm3 = vcmp.eq.s32.totalorder %v4770_v50, 1  ;;  %vm4970_vm6 = vcmp.eq.s32.totalorder %v4770_v50, 16 }
 0x4e3   : > { %v5620_v53 = vpop.f32.mrb[8].mxu0 }
 0x4e4   : > { %v5621_v33 = vpop.f32.mrb[9].mxu0 }
 0x4e5   : > { %v5622_v30 = vadd.f32 %v5621_v33, %v5620_v53  ;;  %v5623_v49 = vpop.f32.mrb[10].mxu0  ;;  %v5448_v53 = vld [vmem:[%s8970_s5 + $0x18] sm:$0xf]  ;;  %v4752_v33 = vsub.s32 %v6235_v46, %v8383_v35  ;;  %v5085_v46 = vsel %vm5049_vm15, %v8444_v26, 0.0  ;;  %vm5067_vm15 = vcmp.eq.s32.totalorder %v8586_v43, 17 }
 0x4e6   : > { %v5624_v34 = vpop.f32.mrb[11].mxu0  ;;  %v4904_v49 = vsel %vm4868_vm7, %v8418_v9, 0.0  ;;  %vm5051_vm7 = vcmp.eq.s32.totalorder %v8606_v10, 17  ;;  %v5104_v43 = vsel %vm5068_vm2, %v8444_v26, 0.0  ;;  %v4906_v10 = vsel %vm4870_vm3, %v8418_v9, 0.0 }
 0x4e7   : > { %v4181_v56 = vpack.c.bf16 %v5622_v30, %v5622_v30  ;;  %v4835_v30 = vsel %vm4799_vm12, %v8415_v44, 0.0  ;;  %vm4784_vm13 = vcmp.eq.s32.totalorder %v4752_v33, 0  ;;  %vm4852_vm0 = vcmp.eq.s32.totalorder %v4752_v33, 1 }
 0x4e8   : > { %v4935_v34 = vadd.f32 %v4903_v55, %v4835_v30  ;;  %v4820_v63 = vsel %vm4784_vm13, %v8415_v44, 0.0  ;;  %v4888_v0 = vsel %vm4852_vm0, %v8418_v9, 0.0  ;;  %v4936_v45 = vadd.f32 %v4904_v49, %v4836_v58 }
 0x4e9   : > { %v4186_v8 = vsel %vm9195_vm5, %v4181_v56, 0  ;;  %v4819_v56 = vsel %vm4783_vm8, %v8415_v44, 0.0  ;;  %vm4952_vm5 = vcmp.eq.s32.totalorder %v4752_v33, 16  ;;  %vm4801_vm12 = vcmp.eq.s32.totalorder %v4769_v19, 0 }
 0x4ea   : > { %5713 = vmatpush3.bf16.msra.mxu0 %v4186_v8  ;;  %v5004_v8 = vsel %vm4968_vm1, %v8432_v54, 0.0  ;;  %v4919_v21 = vadd.f32 %v4887_v14, %v4819_v56  ;;  %v4920_v40 = vadd.f32 %v4888_v0, %v4820_v63  ;;  %v4987_v30 = vsel %vm4951_vm10, %v8432_v54, 0.0 }
 0x4eb   : > { %5718 = vmatprep.subr.bf16.mxu0 %v9142_v41  ;;  %v4988_v52 = vsel %vm4952_vm5, %v8432_v54, 0.0  ;;  %v5036_v42 = vadd.f32 %v5004_v8, %v4936_v45  ;;  %vm5052_vm4 = vcmp.eq.s32.totalorder %v4752_v33, 17  ;;  %v4837_v55 = vsel %vm4801_vm12, %v8415_v44, 0.0 }
 0x4ec   : > { %v4905_v58 = vsel %vm4869_vm14, %v8418_v9, 0.0  ;;  %v5103_v49 = vsel %vm5067_vm15, %v8444_v26, 0.0  ;;  %v5019_v3 = vadd.f32 %v4987_v30, %v4919_v21  ;;  %vm4969_vm8 = vcmp.eq.s32.totalorder %v4769_v19, 16 }
 0x4ed   : > { %5715 = vmatmul.mubr.msk.bf16.vlgmr.msra.gmra.mrb[0].mxu0 %vm9196_vm11, %v5448_v53  ;;  %v5035_v53 = vadd.f32 %v5003_v27, %v4935_v34  ;;  %vm4802_vm11 = vcmp.eq.s32.totalorder %v4770_v50, 0  ;;  %v5020_v34 = vadd.f32 %v4988_v52, %v4920_v40  ;;  %v5087_v27 = vsel %vm5051_vm7, %v8444_v26, 0.0 }
 0x4ee   : > { %5720 = vmatprep.mubr.msk.bf16.mxu0 %vm9197_vm9, %v9142_v41  ;;  %v4838_v56 = vsel %vm4802_vm11, %v8415_v44, 0.0  ;;  %v5088_v14 = vsel %vm5052_vm4, %v8444_v26, 0.0  ;;  %v4937_v33 = vadd.f32 %v4905_v58, %v4837_v55  ;;  %v8671_v63 = vsub.s32 %v6259_v57, %v8383_v35 }
 0x4ef   : > { %v8675_v0 = vadd.f32 %v8616_v15, %v8611_v6  ;;  %v8677_v45 = vadd.f32 %v5085_v46, %v5017_v28  ;;  %v8679_v8 = vadd.f32 %v5086_v48, %v5018_v20  ;;  %v5005_v21 = vsel %vm4969_vm8, %v8432_v54, 0.0 }
 0x4f0   : > { %v8682_v40 = vadd.f32 %v5103_v49, %v5035_v53  ;;  %v8684_v30 = vadd.f32 %v5104_v43, %v5036_v42  ;;  %v4938_v52 = vadd.f32 %v4906_v10, %v4838_v56  ;;  %vm5069_vm13 = vcmp.eq.s32.totalorder %v4769_v19, 17 }
 0x4f1   : > { %v8686_v55 = vadd.f32 %v5087_v27, %v5019_v3  ;;  %v8688_v57 = vadd.f32 %v5088_v14, %v5020_v34  ;;  %v5006_v58 = vsel %vm4970_vm6, %v8432_v54, 0.0  ;;  %v8693_v6 = vsub.s32 %v6263_v59, %v8383_v35 }
 0x4f2   : > { %v5037_v15 = vadd.f32 %v5005_v21, %v4937_v33  ;;  %vm5070_vm0 = vcmp.eq.s32.totalorder %v4770_v50, 17  ;;  %vm4785_vm1 = vcmp.eq.s32.totalorder %v8671_v63, 0  ;;  %vm4853_vm10 = vcmp.eq.s32.totalorder %v8671_v63, 1 }
 0x4f3   : > { %v5145_v28 = vpack.c.bf16 %v8572_v29, %v8570_v2  ;;  %v5105_v46 = vsel %vm5069_vm13, %v8444_v26, 0.0  ;;  %v8702_v19 = vsub.s32 %v6270_v61, %v8383_v35  ;;  %v8706_v20 = vsub.s32 %v6273_v62, %v8383_v35 }
 0x4f4   : > { %v5154_v59 = vpack.c.bf16 %v8675_v0, %v8618_v47  ;;  %v5146_v50 = vpack.c.bf16 %v8679_v8, %v8677_v45  ;;  %v5038_v53 = vadd.f32 %v5006_v58, %v4938_v52  ;;  %v5106_v42 = vsel %vm5070_vm0, %v8444_v26, 0.0 }
 0x4f5   : > { %vm4786_vm5 = vcmp.eq.s32.totalorder %v8693_v6, 0  ;;  %v4821_v61 = vsel %vm4785_vm1, %v8415_v44, 0.0  ;;  %v4889_v49 = vsel %vm4853_vm10, %v8418_v9, 0.0  ;;  %v8720_v43 = vadd.f32 %v5105_v46, %v5037_v15 }
 0x4f6   : > { %vm4854_vm12 = vcmp.eq.s32.totalorder %v8693_v6, 1  ;;  %vm4953_vm14 = vcmp.eq.s32.totalorder %v8671_v63, 16  ;;  %vm4803_vm15 = vcmp.eq.s32.totalorder %v8702_v19, 0  ;;  %vm4804_vm2 = vcmp.eq.s32.totalorder %v8706_v20, 0 }
 0x4f7   : > { %vm4871_vm7 = vcmp.eq.s32.totalorder %v8702_v19, 1  ;;  %vm4872_vm11 = vcmp.eq.s32.totalorder %v8706_v20, 1  ;;  %v8728_v27 = vadd.f32 %v5106_v42, %v5038_v53  ;;  %v4822_v56 = vsel %vm4786_vm5, %v8415_v44, 0.0 }
 0x4f8   : > { %v4921_v10 = vadd.f32 %v4889_v49, %v4821_v61  ;;  %vm4954_vm3 = vcmp.eq.s32.totalorder %v8693_v6, 16  ;;  %v4890_v21 = vsel %vm4854_vm12, %v8418_v9, 0.0  ;;  %v4989_v52 = vsel %vm4953_vm14, %v8432_v54, 0.0 }
 0x4f9   : > { %v8736_v58 = vsub.s32 %v9157_v1, %v8383_v35  ;;  %v4839_v46 = vsel %vm4803_vm15, %v8415_v44, 0.0  ;;  %v4840_v53 = vsel %vm4804_vm2, %v8415_v44, 0.0  ;;  %v4907_v42 = vsel %vm4871_vm7, %v8418_v9, 0.0 }
 0x4fa   : > { %v4908_v61 = vsel %vm4872_vm11, %v8418_v9, 0.0  ;;  %vm4971_vm4 = vcmp.eq.s32.totalorder %v8702_v19, 16  ;;  %vm4972_vm8 = vcmp.eq.s32.totalorder %v8706_v20, 16  ;;  %v5156_v1 = vpack.c.bf16 %v8728_v27, %v8720_v43 }
 0x4fb   : > { %vm9198_vm6 = vcmask 1041408   ;;  %vm5053_vm13 = vcmp.eq.s32.totalorder %v8671_v63, 17  ;;  %v4940_v48 = vadd.f32 %v4908_v61, %v4840_v53  ;;  %vm5054_vm0 = vcmp.eq.s32.totalorder %v8693_v6, 17 }
 0x4fc   : > { %vm5071_vm1 = vcmp.eq.s32.totalorder %v8702_v19, 17  ;;  %vm5072_vm10 = vcmp.eq.s32.totalorder %v8706_v20, 17  ;;  %vm4787_vm5 = vcmp.eq.s32.totalorder %v8736_v58, 0  ;;  %v8770_v63 = vsub.s32 %v9169_v13, %v8383_v35 }
 0x4fd   : > { %v5089_v6 = vsel %vm5053_vm13, %v8444_v26, 0.0  ;;  %vm4855_vm14 = vcmp.eq.s32.totalorder %v8736_v58, 1  ;;  %vm9199_vm2 = vcmask 31744   ;;  %v5107_v13 = vsel %vm5071_vm1, %v8444_v26, 0.0 }
 0x4fe   : > { %v4823_v7 = vsel %vm4787_vm5, %v8415_v44, 0.0  ;;  %vm4805_vm7 = vcmp.eq.s32.totalorder %v8770_v63, 0  ;;  %vm4873_vm11 = vcmp.eq.s32.totalorder %v8770_v63, 1  ;;  %vm4789_vm13 = vcmp.eq.s32.totalorder %v8802_v17, 0 }
 0x4ff   : > { %v4841_v18 = vsel %vm4805_vm7, %v8415_v44, 0.0  ;;  %vm4857_vm1 = vcmp.eq.s32.totalorder %v8802_v17, 1  ;;  %vm4973_vm5 = vcmp.eq.s32.totalorder %v8770_v63, 16 }
 0x500   : > { %v5009_v2 = vsel %vm4973_vm5, %v8432_v54, 0.0  ;;  %v5863_v43 = vld.sshfl [vmem:[%s6224_s8] sm:$0x33 pattern:$0x76325410]  ;;  %s5433_s8 = sshll.u32 %s6148_s17, 3 }
 0x501   : > { %s498_s10 = scalar_lea.vmem [#allocation6], %s5433_s8 }
 0x502   : > { %v5644_v3 = vpop.f32.mrb[20].mxu1  ;;  %s5266_s9 = sshll.u32 %s498_s10, 4  ;;  %s8902_s9 = int_to_ptr.vmem [resolvable:$true] %s5266_s9 }
 0x503   : > { %v5645_v34 = vpop.f32.mrb[21].mxu1  ;;  %s5864_s27 = scalar_lea.vmem %s8902_s9, 128  ;;  %p5871_p8 = scmp.lt.s32.totalorder %s8902_s9, %s5869_s7 }
 0x504   : > { %v5646_v14 = vadd.f32 %v5645_v34, %v5644_v3  ;;  %v5647_v33 = vpop.f32.mrb[22].mxu1  ;;  %v8746_v3 = vsub.s32 %v9158_v22, %v8383_v35  ;;  %v4922_v34 = vadd.f32 %v4890_v21, %v4822_v56  ;;  %v5450_v22 = vld [vmem:[%s8970_s5 + $0x1c] sm:$0xf]  ;;  %v5007_v56 = vsel %vm4971_vm4, %v8432_v54, 0.0  ;;  %p5865_p5 = scmp.ne.s32.totalorder %s8902_s9, %s5864_s27  ;;  %p5872_p9 = scmp.lt.s32.totalorder %s5870_s22, %s5864_s27 }
 0x505   : > { %v5648_v15 = vpop.f32.mrb[23].mxu1  ;;  %v4990_v33 = vsel %vm4954_vm3, %v8432_v54, 0.0  ;;  %v5008_v21 = vsel %vm4972_vm8, %v8432_v54, 0.0  ;;  %vm4806_vm3 = vcmp.eq.s32.totalorder %v8777_v23, 0  ;;  %vm4874_vm4 = vcmp.eq.s32.totalorder %v8777_v23, 1 }
 0x506   : > { %v4691_v49 = vpack.c.bf16 %v5646_v14, %v5646_v14  ;;  %v5021_v15 = vadd.f32 %v4989_v52, %v4921_v10  ;;  %v4939_v14 = vadd.f32 %v4907_v42, %v4839_v46  ;;  %vm4788_vm12 = vcmp.eq.s32.totalorder %v8746_v3, 0  ;;  %p5866_p6 = pnand %p5865_p5, %p6103_p11  ;;  %p5873_p10 = por %p5872_p9, %p5871_p8 }
 0x507   : > { %vm4856_vm15 = vcmp.eq.s32.totalorder %v8746_v3, 1  ;;  %v5022_v11 = vadd.f32 %v4990_v33, %v4922_v34  ;;  %v5108_v10 = vsel %vm5072_vm10, %v8444_v26, 0.0  ;;  %v4824_v52 = vsel %vm4788_vm12, %v8415_v44, 0.0 }
 0x508   : > { %v4696_v62 = vsel %vm9198_vm6, %v4691_v49, 0  ;;  %v5039_v20 = vadd.f32 %v5007_v56, %v4939_v14  ;;  %v4892_v12 = vsel %vm4856_vm15, %v8418_v9, 0.0  ;;  %v8808_v36 = vadd.f32 %v5089_v6, %v5021_v15  ;;  %p5867_p7 = pneg %p5866_p6 }
 0x509   : > { %5719 = vmatpush3.bf16.msra.mxu0 %v4696_v62  ;;  %v5040_v62 = vadd.f32 %v5008_v21, %v4940_v48  ;;  %v4891_v48 = vsel %vm4855_vm14, %v8418_v9, 0.0  ;;  %v4924_v46 = vadd.f32 %v4892_v12, %v4824_v52  ;;  %vm4955_vm8 = vcmp.eq.s32.totalorder %v8736_v58, 16 }
 0x50a   : > { %5652 = vmatprep.subr.bf16.mxu0 %v5151_v38  ;;  %v5090_v38 = vsel %vm5054_vm0, %v8444_v26, 0.0  ;;  %v4923_v19 = vadd.f32 %v4891_v48, %v4823_v7  ;;  %vm4956_vm6 = vcmp.eq.s32.totalorder %v8746_v3, 16  ;;  %v4910_v4 = vsel %vm4874_vm4, %v8418_v9, 0.0  ;;  %v5452_v7 = vld [vmem:[%s8970_s5 + $0x20] sm:$0xf]  ;;  %p5874_p12 = pnand %p5873_p10, %p5867_p7 }
 0x50b   : > { %v8810_v32 = vadd.f32 %v5090_v38, %v5022_v11  ;;  %v4991_v25 = vsel %vm4955_vm8, %v8432_v54, 0.0  ;;  %v4992_v24 = vsel %vm4956_vm6, %v8432_v54, 0.0  ;;  %vm4974_vm12 = vcmp.eq.s32.totalorder %v8777_v23, 16 }
 0x50c   : > { %5721 = vmatmul.mubr.msk.bf16.vlgmr.msra.gmra.mrb[0].mxu0 %vm9199_vm2, %v5450_v22  ;;  %vm5055_vm14 = vcmp.eq.s32.totalorder %v8736_v58, 17  ;;  %vm5056_vm15 = vcmp.eq.s32.totalorder %v8746_v3, 17  ;;  %v4893_v42 = vsel %vm4857_vm1, %v8418_v9, 0.0  ;;  %v5010_v29 = vsel %vm4974_vm12, %v8432_v54, 0.0 }
 0x50d   : > { %5653 = vmatpush3.bf16.msra.mxu0 %v5143_v31  ;;  %5191 = vmatprep.mubr.bf16.mxu0 %v9114_v51  ;;  %v8806_v51 = vsub.s32 %v9175_v60, %v8383_v35  ;;  %v8812_v31 = vadd.f32 %v5107_v13, %v5039_v20  ;;  %v4842_v60 = vsel %vm4806_vm3, %v8415_v44, 0.0  ;;  %v4909_v35 = vsel %vm4873_vm11, %v8418_v9, 0.0 }
 0x50e   : > { %5654 = vmatprep.subr.bf16.mxu0 %v5152_v37  ;;  %v8814_v37 = vadd.f32 %v5108_v10, %v5040_v62  ;;  %v4941_v5 = vadd.f32 %v4909_v35, %v4841_v18  ;;  %vm4957_vm2 = vcmp.eq.s32.totalorder %v8802_v17, 16  ;;  %v5024_v49 = vadd.f32 %v4992_v24, %v4924_v46 }
 0x50f   : > { %vm4790_vm0 = vcmp.eq.s32.totalorder %v8806_v51, 0  ;;  %vm4858_vm10 = vcmp.eq.s32.totalorder %v8806_v51, 1  ;;  %vm4958_vm7 = vcmp.eq.s32.totalorder %v8806_v51, 16  ;;  %vm5073_vm11 = vcmp.eq.s32.totalorder %v8770_v63, 17 }
 0x510   : > { %v4826_v53 = vsel %vm4790_vm0, %v8415_v44, 0.0  ;;  %v4894_v61 = vsel %vm4858_vm10, %v8418_v9, 0.0  ;;  %vm5074_vm3 = vcmp.eq.s32.totalorder %v8777_v23, 17  ;;  %v5092_v9 = vsel %vm5056_vm15, %v8444_v26, 0.0 }
 0x511   : > { %5655 = vmatpush3.bf16.msra.mxu0 %v5144_v16  ;;  %v4942_v16 = vadd.f32 %v4910_v4, %v4842_v60  ;;  %v4926_v0 = vadd.f32 %v4894_v61, %v4826_v53  ;;  %v5041_v34 = vadd.f32 %v5009_v2, %v4941_v5  ;;  %v4993_v15 = vsel %vm4957_vm2, %v8432_v54, 0.0 }
 0x512   : > { %5656 = vmatprep.subr.bf16.mxu0 %v5153_v39  ;;  %v4825_v39 = vsel %vm4789_vm13, %v8415_v44, 0.0  ;;  %v5091_v44 = vsel %vm5055_vm14, %v8444_v26, 0.0  ;;  %v4994_v45 = vsel %vm4958_vm7, %v8432_v54, 0.0  ;;  %v5109_v8 = vsel %vm5073_vm11, %v8444_v26, 0.0 }
 0x513   : > { %v4925_v47 = vadd.f32 %v4893_v42, %v4825_v39  ;;  %v5042_v33 = vadd.f32 %v5010_v29, %v4942_v16  ;;  %vm5057_vm4 = vcmp.eq.s32.totalorder %v8802_v17, 17  ;;  %vm5058_vm8 = vcmp.eq.s32.totalorder %v8806_v51, 17 }
 0x514   : > { %v5148_v58 = vpack.c.bf16 %v8810_v32, %v8808_v36  ;;  %v5124_v54 = vadd.f32 %v5092_v9, %v5024_v49  ;;  %v5026_v22 = vadd.f32 %v4994_v45, %v4926_v0  ;;  %v5141_v56 = vadd.f32 %v5109_v8, %v5041_v34 }
 0x515   : > { %5657 = vmatpush3.bf16.msra.mxu0 %v5145_v28  ;;  %v5023_v28 = vadd.f32 %v4991_v25, %v4923_v19  ;;  %v5025_v14 = vadd.f32 %v4993_v15, %v4925_v47  ;;  %v5093_v63 = vsel %vm5057_vm4, %v8444_v26, 0.0  ;;  %v5094_v6 = vsel %vm5058_vm8, %v8444_v26, 0.0 }
 0x516   : > { %5658 = vmatprep.subr.bf16.mxu0 %v5154_v59  ;;  %v9200_v59 = vpack.c.bf16 %v8684_v30, %v8682_v40  ;;  %v5157_v40 = vpack.c.bf16 %v8814_v37, %v8812_v31  ;;  %v9201_v30 = vpack.c.bf16 %v8688_v57, %v8686_v55  ;;  %v5126_v55 = vadd.f32 %v5094_v6, %v5026_v22 }
 0x517   : > { %v5123_v3 = vadd.f32 %v5091_v44, %v5023_v28  ;;  %v5125_v11 = vadd.f32 %v5093_v63, %v5025_v14  ;;  %vm9202_vm6 = vcmask 1041408   ;;  %vm9203_vm13 = vcmask 31744  }
 0x519   : > { %5659 = vmatpush3.bf16.msra.mxu0 %v5146_v50  ;;  %v5110_v50 = vsel %vm5074_vm3, %v8444_v26, 0.0  ;;  %v5149_v23 = vpack.c.bf16 %v5124_v54, %v5123_v3  ;;  %v5150_v38 = vpack.c.bf16 %v5126_v55, %v5125_v11 }
 0x51a   : > { %5660 = vmatprep.subr.bf16.mxu0 %v9200_v59  ;;  %v5142_v21 = vadd.f32 %v5110_v50, %v5042_v33 }
 0x51c   : > { %v5158_v57 = vpack.c.bf16 %v5142_v21, %v5141_v56 }
 0x51d   : > { %5661 = vmatpush3.bf16.msra.mxu0 %v9201_v30 }
 0x51e   : > { %5662 = vmatprep.subr.bf16.mxu0 %v5156_v1 }
 0x521   : > { %5663 = vmatpush3.bf16.msra.mxu0 %v5148_v58 }
 0x522   : > { %5664 = vmatprep.subr.bf16.mxu0 %v5157_v40 }
 0x525   : > { %5665 = vmatpush3.bf16.msra.mxu0 %v5149_v23 }
 0x526   : > { %5666 = vmatprep.subr.bf16.mxu0 %v5158_v57 }
 0x529   : > { %5667 = vmatpush3.bf16.msra.mxu0 %v5150_v38 }
 0x52a   : > { %5724 = vmatprep.subr.bf16.mxu0 %v9142_v41 }
 0x52c   : > { %5192 = vmatmul.mubr.bf16.vlgmr.msra.gmra.mrb[12].mxu0 %v5863_v43 }
 0x52d   : > { %5726 = vmatprep.mubr.msk.bf16.mxu0 %vm9197_vm9, %v9142_v41 }
 0x5ff   : > { %v5668_v26 = vpop.f32.mrb[12].mxu0 }
 0x600   : > { %v5669_v27 = vpop.f32.mrb[13].mxu0 }
 0x601   : > { %v5670_v1 = vadd.f32 %v5669_v27, %v5668_v26  ;;  %v5671_v20 = vpop.f32.mrb[14].mxu0 }
 0x602   : > { %v5672_v62 = vpop.f32.mrb[15].mxu0 }
 0x603   : > { %v5201_v13 = vpack.c.bf16 %v5670_v1, %v5670_v1 }
 0x605   : > { %v5206_v10 = vsel %vm9202_vm6, %v5201_v13, 0 }
 0x606   : > { %5725 = vmatpush3.bf16.msra.mxu0 %v5206_v10 }
 0x609   : > { %5727 = vmatmul.mubr.msk.bf16.vlgmr.msra.gmra.mrb[0].mxu0 %vm9203_vm13, %v5452_v7 }
 0x6dc   : > { %v5242_v41 = vpop.f32.mrb[0].mxu0 }
 0x6dd   : > { %5249 = vst [vmem:[%s498_s10] sm:$0xff] %v5242_v41  ;;  %v5728_v52 = vpop.f32.mrb[1].mxu0 }
 0x6de   : > { %v5245_v48 = vpop.f32.mrb[2].mxu0 }
 0x6df   : > { %5877 = shalt.err (!%p5874_p12)
}
 0x6e0   : > { %s5878_s17 = scalar_lea.hbm %s8907_s16, 128  ;;  %s5882_s8 = scalar_lea.hbm %s8971_s6, 512 }
 0x6e1   : > { %p5879_p0 = scmp.ne.s32.totalorder %s8907_s16, %s5878_s17  ;;  %p5883_p3 = scmp.lt.u32.totalorder %s8907_s16, %s8971_s6 }
 0x6e2   : > { %p5884_p4 = scmp.lt.u32.totalorder %s5882_s8, %s5878_s17  ;;  %p5886_p6 = scmp.lt.u32.totalorder %s5878_s17, %s8907_s16 }
 0x6e3   : > { %p5880_p1 = pnand %p5879_p0, %p6103_p11 }
 0x6e4   : > { %p5885_p5 = por %p5884_p4, %p5883_p3 }
 0x6e5   : > { %p5881_p2 = pneg %p5880_p1 }
 0x6e6   : > { %p5887_p7 = por %p5886_p6, %p5885_p5 }
 0x6e8   : > { %p5888_p8 = pnand %p5887_p7, %p5881_p2 }
 0x6ea   : > { %5891 = shalt.err (!%p5888_p8)
}
 0x6eb   : > { %5770 = dma.vmem_to_hbm [thread:$0]  (%p6103_p11), %s8902_s9, 128, %s8907_s16, %s5251_s11   ;;  %v5729_v12 = vpop.f32.mrb[3].mxu0 }
 0x6ec PF: > { %s9204_s10 = sld [smem:[#allocation9_spill]]  ;;  %p5776_p9 = scmp.ge.s32.totalorder %s5974_s30, 2 }
 0x6ee   : > { %p5773_p10 = pnand %p5776_p9, %p6110_p13 }
 0x6f2   : > { %s5278_s20 = sand.u32 1, %s9204_s10  }
 0x6f3   : > { %s5279_s15 = scalar_lea.sflag [#allocation7], %s5278_s20 }
 0x6f4   : > { %5933 = dma.done.wait (!%p5773_p10), %s5279_s15, 128  }
 0x6f5   : > { %5935 = vsyncadd (!%p5773_p10), %s5279_s15, 4294967168  ;;  %s19_s30 = sadd.s32 1, %s5974_s30   ;;  %s9206_s19 = sld [smem:[#allocation12_spill]] }
 0x6f6   : > { %p16_p12 = scmp.ge.s32.totalorder %s19_s30, 6   ;;  %s9207_s9 = sld [smem:[#allocation13_spill]] }
 0x6f7   : > { %s9208_s16 = sld [smem:[#allocation10_spill]]  ;;  %s9209_s11 = sld [smem:[#allocation11_spill]] }
 0x6f8   : > { %s9210_s21 = smov %s5950_s24  ;;  %s9211_s22 = smov %s5946_s23 }
 0x6f9   : > { %s9213_s24 = smov %s5954_s25  ;;  %s9215_s26 = smov %s5966_s28 }
 0x6fa   : > { %s9216_s27 = smov %s5970_s29  ;;  %18 = sbr.rel (!%p16_p12) target bundleno = 6 (0x6), region = 271 }
 0x6fb   : > { %s9212_s23 = smov %s9206_s19 }
 0x6fc   : > { %s9214_s25 = smov %s9207_s9 }
 0x6fd   : > { %s9217_s28 = smov %s9208_s16  ;;  %s9218_s29 = smov %s9209_s11 }
 0x701   :  { %5284 = vsyncpa [#allocation7], 1 }
 0x702   :  { %5286 = vsyncpa [#allocation7 + $0x1], 1 }

</bundles_post_ra>
